<compile_context>
chip_gen: v6e
topology: v6e:2x2x1
jax: 0.10.0
libtpu: 0.0.40
codegen_flags: <defaults>
</compile_context>

<pallas_src>
import functools

import jax
import jax.numpy as jnp
from jax import lax
from jax.experimental import pallas as pl
from jax.experimental.pallas import tpu as pltpu

_LEAKY_SLOPE = 0.2


# --------------------------------------------------------------------------
# helpers: tiling + VMEM budgeting
# --------------------------------------------------------------------------
def _round_up(x, m):
    return (x + m - 1) // m * m


def _choose_tm(m_rows, row_bytes, budget=12 * 1024 * 1024):
    """Row tile: large (<=512), multiple of 16 (bf16 packing), >=4 grid steps
    on big problems, bounded double-buffered VMEM working set."""
    if m_rows <= 512:
        tm = max(16, _round_up(m_rows, 16))
    elif m_rows < 2048:
        tm = max(128, (m_rows // 4 // 16) * 16)
    else:
        tm = 512
    while tm > 32 and tm * row_bytes > budget:
        tm = max(32, _round_up(tm // 2, 16))
    return tm


def _vmem_limit(footprint_bytes):
    # never below the largest per-gen scoped default we rely on; cap for v7x.
    return int(min(48 * 2**20, max(32 * 2**20, 2 * footprint_bytes)))


def _apply_act(acc, act):
    if act == "leaky":
        return jnp.where(acc >= 0, acc, _LEAKY_SLOPE * acc)
    if act == "relu":
        return jnp.maximum(acc, 0.0)
    return acc


# --------------------------------------------------------------------------
# Pallas kernel 1: stride-1 conv with in-kernel tap reduction
#   x_ref : (tm_in, Cin)   halo'd row window of the padded, flattened input
#   w_ref : (ntaps, Cin, Cout), b_ref : (1, Cout)
#   optional r_ref (tm, Cout) residual, optional (hw, hb) fused 1x1 head
# --------------------------------------------------------------------------
def _conv_tap_kernel(*refs, taps, tm, act, has_res, has_head):
    it = iter(refs)
    x_ref = next(it)
    w_ref = next(it)
    b_ref = next(it)
    r_ref = next(it) if has_res else None
    hw_ref = next(it) if has_head else None
    hb_ref = next(it) if has_head else None
    o_ref = next(it)
    o2_ref = next(it) if has_head else None

    cout = o_ref.shape[1]
    acc = jnp.zeros((tm, cout), jnp.float32)
    for idx, off in enumerate(taps):                       # static python loop
        acc = acc + jnp.dot(x_ref[off:off + tm, :], w_ref[idx],
                            preferred_element_type=jnp.float32)
    acc = acc + b_ref[...]
    acc = _apply_act(acc, act)
    if has_res:
        # residual added after activation: only used with act == "none"
        acc = acc + r_ref[...].astype(jnp.float32)
    o_ref[...] = acc.astype(o_ref.dtype)
    if has_head:
        h = jnp.dot(acc.astype(jnp.bfloat16), hw_ref[...],
                    preferred_element_type=jnp.float32) + hb_ref[...]
        h = _apply_act(h, "leaky")                         # recon heads: leaky
        o2_ref[...] = h.astype(o2_ref.dtype)


def _conv_s1_tap(x, w, b, padding, dil, act, residual=None, head=None):
    """Stride-1 conv, NHWC.  Returns NHWC output (and head output if given)."""
    x = x.astype(jnp.bfloat16)
    n, H, W, Cin = x.shape
    KH, KW, _, Cout = w.shape
    if padding:
        x = jnp.pad(x, ((0, 0), (padding, padding), (padding, padding), (0, 0)))
    Hp, Wp = int(x.shape[1]), int(x.shape[2])
    Ho = Hp - dil * (KH - 1)
    Wo = Wp - dil * (KW - 1)
    M = n * Hp * Wp                              # "wide" output rows (== input rows)
    halo = dil * (KH - 1) * Wp + dil * (KW - 1)
    ntaps = KH * KW
    out_dtype = jnp.float32 if Cout < 8 else jnp.bfloat16
    out_bytes = 4 if out_dtype == jnp.float32 else 2
    head_cols = 0 if head is None else int(head[0].shape[-1])

    row_bytes = 2 * Cin * 2 + 2 * Cout * out_bytes + Cout * 4
    if residual is not None:
        row_bytes += 2 * Cout * 2
    if head_cols:
        row_bytes += 2 * head_cols * 4
    tm = _choose_tm(M, row_bytes)
    gm = -(-M // tm)
    Mp = gm * tm
    tm_in = _round_up(tm + halo, 8)
    rows_in = (gm - 1) * tm + tm_in

    x_flat = x.reshape(M, Cin)
    x_flat = jnp.pad(x_flat, ((0, rows_in - M), (0, 0)))
    w_flat = w.reshape(ntaps, Cin, Cout).astype(jnp.bfloat16)
    bias2 = b.reshape(1, Cout).astype(jnp.float32)
    taps = tuple(int(i * dil * Wp + j * dil) for i in range(KH) for j in range(KW))

    in_specs = [
        pl.BlockSpec((pl.Element(tm_in), Cin), lambda m: (m * tm, 0)),
        pl.BlockSpec((ntaps, Cin, Cout), lambda m: (0, 0, 0)),
        pl.BlockSpec((1, Cout), lambda m: (0, 0)),
    ]
    args = [x_flat, w_flat, bias2]
    if residual is not None:
        r = residual.astype(jnp.bfloat16)
        r = jnp.pad(r, ((0, 0), (0, Hp - int(r.shape[1])),
                        (0, Wp - int(r.shape[2])), (0, 0)))
        r_flat = jnp.pad(r.reshape(M, Cout), ((0, Mp - M), (0, 0)))
        in_specs.append(pl.BlockSpec((tm, Cout), lambda m: (m, 0)))
        args.append(r_flat)
    if head is not None:
        hw, hb = head
        in_specs += [pl.BlockSpec((Cout, head_cols), lambda m: (0, 0)),
                     pl.BlockSpec((1, head_cols), lambda m: (0, 0))]
        args += [hw.reshape(Cout, head_cols).astype(jnp.bfloat16),
                 hb.reshape(1, head_cols).astype(jnp.float32)]

    out_shapes = [jax.ShapeDtypeStruct((Mp, Cout), out_dtype)]
    out_specs = [pl.BlockSpec((tm, Cout), lambda m: (m, 0))]
    if head is not None:
        out_shapes.append(jax.ShapeDtypeStruct((Mp, head_cols), jnp.float32))
        out_specs.append(pl.BlockSpec((tm, head_cols), lambda m: (m, 0)))

    fp = 2 * (tm_in * Cin * 2 + ntaps * Cin * Cout * 2 + Cout * 4
              + tm * Cout * out_bytes) + tm * Cout * 4 + tm_in * Cin * 4
    if residual is not None:
        fp += 2 * tm * Cout * 2
    if head is not None:
        fp += 2 * (Cout * head_cols * 2 + head_cols * 4 + tm * head_cols * 4)

    kern = functools.partial(_conv_tap_kernel, taps=taps, tm=tm, act=act,
                             has_res=residual is not None,
                             has_head=head is not None)
    outs = pl.pallas_call(
        kern,
        out_shape=tuple(out_shapes) if head is not None else out_shapes[0],
        grid=(gm,),
        in_specs=in_specs,
        out_specs=tuple(out_specs) if head is not None else out_specs[0],
        compiler_params=pltpu.CompilerParams(
            dimension_semantics=("parallel",),
            vmem_limit_bytes=_vmem_limit(fp)),
    )(*args)

    if head is None:
        out = outs[:M].reshape(n, Hp, Wp, Cout)[:, :Ho, :Wo, :]
        return out
    main, hout = outs
    out = main[:M].reshape(n, Hp, Wp, Cout)[:, :Ho, :Wo, :]
    h = hout[:M].reshape(n, Hp, Wp, head_cols)[:, :Ho, :Wo, :]
    return out, h


# --------------------------------------------------------------------------
# Pallas kernel 2: fused GEMM + bias + act (+ residual) — stride-2 / fallback
# --------------------------------------------------------------------------
def _mm_kernel(*refs, act, has_res):
    it = iter(refs)
    a_ref = next(it)
    b_ref = next(it)
    bias_ref = next(it)
    r_ref = next(it) if has_res else None
    o_ref = next(it)
    acc = jnp.dot(a_ref[...], b_ref[...], preferred_element_type=jnp.float32)
    acc = acc + bias_ref[...]
    acc = _apply_act(acc, act)
    if has_res:
        acc = acc + r_ref[...].astype(jnp.float32)
    o_ref[...] = acc.astype(o_ref.dtype)


def matmul_bias_act(a, b, bias, act, residual=None):
    """act( a @ b + bias ) [+ residual].  a:(M,K), b:(K,N), bias:(N,)."""
    M, K = a.shape
    N = b.shape[1]
    out_dtype = jnp.float32 if N < 8 else jnp.bfloat16
    out_bytes = 4 if out_dtype == jnp.float32 else 2
    a = a.astype(jnp.bfloat16)
    bmat = b.astype(jnp.bfloat16)
    bias2 = bias.reshape(1, N).astype(jnp.float32)

    row_bytes = 2 * K * 2 + 2 * N * out_bytes + N * 4
    tm = _choose_tm(M, row_bytes)
    gm = -(-M // tm)
    Mp = gm * tm
    if Mp != M:
        a = jnp.pad(a, ((0, Mp - M), (0, 0)))
        if residual is not None:
            residual = jnp.pad(residual, ((0, Mp - M), (0, 0)))

    in_specs = [pl.BlockSpec((tm, K), lambda i: (i, 0)),
                pl.BlockSpec((K, N), lambda i: (0, 0)),
                pl.BlockSpec((1, N), lambda i: (0, 0))]
    args = [a, bmat, bias2]
    if residual is not None:
        in_specs.append(pl.BlockSpec((tm, N), lambda i: (i, 0)))
        args.append(residual.astype(jnp.bfloat16))

    fp = 2 * (tm * K * 2 + K * N * 2 + N * 4 + tm * N * out_bytes) + tm * N * 4
    if residual is not None:
        fp += 2 * tm * N * 2

    out = pl.pallas_call(
        functools.partial(_mm_kernel, act=act, has_res=residual is not None),
        out_shape=jax.ShapeDtypeStruct((Mp, N), out_dtype),
        grid=(gm,),
        in_specs=in_specs,
        out_specs=pl.BlockSpec((tm, N), lambda i: (i, 0)),
        compiler_params=pltpu.CompilerParams(
            dimension_semantics=("parallel",),
            vmem_limit_bytes=_vmem_limit(fp)),
    )(*args)
    return out[:M]


def _conv_im2col(x, w, b, stride, padding, dilation, act, residual=None):
    """General conv via im2col + GEMM (used for stride-2 convs / fallback)."""
    x = x.astype(jnp.bfloat16)
    n, H, W, Cin = x.shape
    KH, KW, _, Cout = w.shape
    if padding > 0:
        x = jnp.pad(x, ((0, 0), (padding, padding), (padding, padding), (0, 0)))
    Hp, Wp = x.shape[1], x.shape[2]
    Ho = (Hp - dilation * (KH - 1) - 1) // stride + 1
    Wo = (Wp - dilation * (KW - 1) - 1) // stride + 1
    if KH == 1 and KW == 1 and stride == 1:
        A = x.reshape(n * Ho * Wo, Cin)
    else:
        cols = []
        for i in range(KH):
            for j in range(KW):
                ys, xs = i * dilation, j * dilation
                cols.append(x[:, ys:ys + stride * (Ho - 1) + 1:stride,
                              xs:xs + stride * (Wo - 1) + 1:stride, :])
        A = jnp.concatenate(cols, axis=-1).reshape(n * Ho * Wo, KH * KW * Cin)
    B = w.reshape(KH * KW * Cin, Cout)
    res = None if residual is None else residual.reshape(n * Ho * Wo, Cout)
    out = matmul_bias_act(A, B, b, act, residual=res)
    return out.reshape(n, Ho, Wo, Cout)


# --------------------------------------------------------------------------
# self-test of the pl.Element tap-conv path (falls back to im2col if needed)
# --------------------------------------------------------------------------
_TAP_STATE = {"ok": None}


def _tap_conv_supported():
    if _TAP_STATE["ok"] is None:
        try:
            kx, kw, kh = jax.random.split(jax.random.PRNGKey(1234), 3)
            x = jax.random.normal(kx, (2, 16, 16, 8), jnp.float32)
            w = jax.random.normal(kw, (3, 3, 8, 8), jnp.float32) / jnp.sqrt(72.0)
            b = jnp.linspace(-0.1, 0.1, 8).astype(jnp.float32)
            hw = jax.random.normal(kh, (8, 2), jnp.float32) / jnp.sqrt(8.0)
            hb = jnp.zeros((2,), jnp.float32)
            got, got_h = _conv_s1_tap(x, w, b, 1, 1, "leaky", head=(hw, hb))
            ref = _conv_im2col(x, w, b, 1, 1, 1, "leaky").astype(jnp.float32)
            ref_h = _apply_act(ref @ hw + hb, "leaky")
            ok = bool(jnp.allclose(got.astype(jnp.float32), ref,
                                   atol=5e-2, rtol=5e-2))
            ok = ok and bool(jnp.allclose(got_h, ref_h, atol=5e-2, rtol=5e-2))
        except Exception:
            ok = False
        _TAP_STATE["ok"] = ok
    return _TAP_STATE["ok"]


def conv2d(x, w, b, stride=1, padding=0, dilation=1, act="leaky",
           residual=None, head=None):
    """NHWC conv.  Dispatch: stride-1 -> in-kernel tap reduction, else im2col."""
    if residual is not None:
        assert act == "none", "fused residual is add-after-activation; act must be 'none'"
    if stride == 1 and _tap_conv_supported():
        return _conv_s1_tap(x, w, b, padding, dilation, act, residual, head)
    out = _conv_im2col(x, w, b, stride, padding, dilation, act, residual)
    if head is not None:
        hw, hb = head
        h = jnp.einsum("nhwc,cd->nhwd", out.astype(jnp.float32),
                       hw.astype(jnp.float32)) + hb.astype(jnp.float32)
        return out, _apply_act(h, "leaky")
    return out


def deconv_block(x, w, b, act="leaky"):
    # DeconvBlock: nearest upsample x2, then 3x3 conv (stride 1, pad 1)
    # TODO(synk): fold the x2 upsample into the conv's row gather.
    x = jnp.repeat(jnp.repeat(x, 2, axis=1), 2, axis=2)
    return conv2d(x, w, b, 1, 1, 1, act)


def res_block_noBN(x, p):
    h1 = conv2d(x, p["c1"]["w"], p["c1"]["b"], 1, 1, 1, act="relu")
    return conv2d(h1, p["c2"]["w"], p["c2"]["b"], 1, 1, 1, act="none",
                  residual=x)


# --------------------------------------------------------------------------
# Plain-JAX glue: resizes (PyTorch F.interpolate semantics)
# --------------------------------------------------------------------------
def bilinear_resize_nchw(x, out_h, out_w):
    _, _, H, W = x.shape
    sh, sw = H / out_h, W / out_w
    sy = jnp.maximum((jnp.arange(out_h, dtype=jnp.float32) + 0.5) * sh - 0.5, 0.0)
    sx = jnp.maximum((jnp.arange(out_w, dtype=jnp.float32) + 0.5) * sw - 0.5, 0.0)
    y0 = jnp.floor(sy).astype(jnp.int32)
    x0 = jnp.floor(sx).astype(jnp.int32)
    y1 = jnp.minimum(y0 + 1, H - 1)
    x1 = jnp.minimum(x0 + 1, W - 1)
    ly = (sy - y0)[None, None, :, None]
    lx = (sx - x0)[None, None, None, :]
    v00 = x[:, :, y0][:, :, :, x0]
    v01 = x[:, :, y0][:, :, :, x1]
    v10 = x[:, :, y1][:, :, :, x0]
    v11 = x[:, :, y1][:, :, :, x1]
    return (v00 * (1 - ly) * (1 - lx) + v01 * (1 - ly) * lx
            + v10 * ly * (1 - lx) + v11 * ly * lx)


def nearest_resize_nchw(x, out_h, out_w):
    _, _, H, W = x.shape
    iy = jnp.floor(jnp.arange(out_h) * (H / out_h)).astype(jnp.int32)
    ix = jnp.floor(jnp.arange(out_w) * (W / out_w)).astype(jnp.int32)
    return x[:, :, iy][:, :, :, ix]


# --------------------------------------------------------------------------
# Pallas kernel 3: forward-warp bilinear splat (scatter-add), per batch item
# --------------------------------------------------------------------------
def _splat_kernel(idx_ref, wgt_ref, feat_ref, o_ref):
    bidx = pl.program_id(0)
    o_ref[...] = jnp.zeros_like(o_ref)
    P = feat_ref.shape[0]

    def body(s, carry):
        f = feat_ref[pl.ds(s, 1), :]
        for k in range(4):
            ti = idx_ref[bidx, k, s]
            wk = wgt_ref[bidx, k, s]
            o_ref[pl.ds(ti, 1), :] = o_ref[pl.ds(ti, 1), :] + wk * f
        return carry

    lax.fori_loop(0, P, body, 0)


def _splat_pallas(feat_flat, idx_all, wgt_all):
    B, P, C = feat_flat.shape
    gs = pltpu.PrefetchScalarGridSpec(
        num_scalar_prefetch=2,
        grid=(B,),
        in_specs=[pl.BlockSpec((None, P, C), lambda b, idx, wgt: (b, 0, 0))],
        out_specs=pl.BlockSpec((None, P, C), lambda b, idx, wgt: (b, 0, 0)),
    )
    return pl.pallas_call(
        _splat_kernel,
        out_shape=jax.ShapeDtypeStruct((B, P, C), jnp.float32),
        grid_spec=gs,
        compiler_params=pltpu.CompilerParams(
            dimension_semantics=("arbitrary",)),
    )(idx_all, wgt_all, feat_flat.astype(jnp.float32))


def _splat_xla(feat_flat, idx_all, wgt_all):
    def single(f, idx, wg):
        P, C = f.shape
        contrib = wg[:, :, None] * f[None, :, :]
        return jnp.zeros((P, C), jnp.float32).at[idx.reshape(-1)].add(
            contrib.reshape(-1, C))
    return jax.vmap(single)(feat_flat, idx_all, wgt_all)


_SPLAT_STATE = {"ok": None}


def _splat_supported():
    if _SPLAT_STATE["ok"] is None:
        try:
            f = jax.random.normal(jax.random.PRNGKey(11), (2, 16, 8), jnp.float32)
            idx = jax.random.randint(jax.random.PRNGKey(12), (2, 4, 16), 0, 16,
                                     dtype=jnp.int32)
            wg = jax.random.uniform(jax.random.PRNGKey(13), (2, 4, 16),
                                    dtype=jnp.float32)
            got = _splat_pallas(f, idx, wg)
            ref = _splat_xla(f, idx, wg)
            ok = bool(jnp.allclose(got, ref, atol=1e-4, rtol=1e-4))
        except Exception:
            ok = False
        _SPLAT_STATE["ok"] = ok
    return _SPLAT_STATE["ok"]


def forward_warp_fn(feat, flow):
    """Bilinear forward splatting (Forward-Warp package semantics).
    feat: (B,H,W,C) NHWC, flow: (B,H,W,2) with flow[...,0]=dx, flow[...,1]=dy."""
    B, H, W, C = feat.shape
    feat = feat.astype(jnp.float32)
    flow = flow.astype(jnp.float32)
    gx = jnp.arange(W, dtype=jnp.float32)[None, None, :] + flow[..., 0]
    gy = jnp.arange(H, dtype=jnp.float32)[None, :, None] + flow[..., 1]
    x0 = jnp.floor(gx)
    y0 = jnp.floor(gy)
    valid = (x0 >= 0) & (x0 + 1 <= W - 1) & (y0 >= 0) & (y0 + 1 <= H - 1)
    idxs, wgts = [], []
    for dy in (0, 1):
        for dx in (0, 1):
            xc, yc = x0 + dx, y0 + dy
            wgt = (1.0 - jnp.abs(gx - xc)) * (1.0 - jnp.abs(gy - yc))
            wgt = jnp.where(valid, wgt, 0.0)
            idx = jnp.clip(yc.astype(jnp.int32) * W + xc.astype(jnp.int32),
                           0, H * W - 1)
            idxs.append(idx.reshape(B, H * W))
            wgts.append(wgt.reshape(B, H * W))
    idx_all = jnp.stack(idxs, axis=1)                       # (B, 4, P) int32
    wgt_all = jnp.stack(wgts, axis=1)                       # (B, 4, P) f32
    feat_flat = feat.reshape(B, H * W, C)
    if _splat_supported():
        out = _splat_pallas(feat_flat, idx_all, wgt_all)
    else:
        out = _splat_xla(feat_flat, idx_all, wgt_all)
    return out.reshape(B, H, W, C)


# --------------------------------------------------------------------------
# Parameter init (deterministic, synthetic).  Weights pre-cast to bf16 once.
# --------------------------------------------------------------------------
def _conv_p(key, k, cin, cout):
    kw, kb = jax.random.split(key)
    w = jax.random.normal(kw, (k, k, cin, cout), jnp.float32) / jnp.sqrt(k * k * cin)
    b = jax.random.normal(kb, (cout,), jnp.float32) * 0.01
    return {"w": w.astype(jnp.bfloat16), "b": b}


def init_params(key, nf, in_ch, num_frames, num_blocks):
    keys = iter(jax.random.split(key, 64))
    nxt = lambda: next(keys)
    p = {}
    p["conv1"] = _conv_p(nxt(), 5, in_ch, nf)
    p["conv2"] = _conv_p(nxt(), 3, nf, nf * 2)
    p["conv3"] = _conv_p(nxt(), 3, nf * 2, nf * 2)
    p["conv4"] = _conv_p(nxt(), 3, nf * 2, nf * 4)
    p["middle"] = [{"c1": _conv_p(nxt(), 3, nf * 4, nf * 4),
                    "c2": _conv_p(nxt(), 3, nf * 4, nf * 4)}
                   for _ in range(num_blocks)]
    ic = nf * 4
    p["spa"] = {
        "shrink1": _conv_p(nxt(), 1, ic, ic // 4),
        "shrink2": _conv_p(nxt(), 1, ic, ic // 4),
        "conv1": _conv_p(nxt(), 3, ic // 2, ic // 4 * 3),
        "conv2": _conv_p(nxt(), 3, ic // 4 * 3, ic),
        "conv3": _conv_p(nxt(), 3, ic, ic),
        "conv4": _conv_p(nxt(), 3, ic, ic // 2),
        "conv5": _conv_p(nxt(), 3, ic // 2, ic // 4),   # deconv (upsample+conv)
        "conv6": _conv_p(nxt(), 3, ic // 4, 1),
    }
    p["temporal"] = _conv_p(nxt(), 1, num_frames, num_frames)
    p["dil1"] = _conv_p(nxt(), 3, nf * 4, nf * 4)
    p["dil2"] = _conv_p(nxt(), 3, nf * 4, nf * 4)
    p["dil3"] = _conv_p(nxt(), 3, nf * 4, nf * 4)
    p["dil4"] = _conv_p(nxt(), 3, nf * 4, nf * 4)
    p["recon4"] = _conv_p(nxt(), 1, nf * 4, 2)
    p["deconv1"] = _conv_p(nxt(), 3, nf * 8, nf * 2)
    p["conv5"] = _conv_p(nxt(), 3, nf * 2, nf * 2)
    p["conv6"] = _conv_p(nxt(), 3, nf * 2, nf * 2)
    p["recon2"] = _conv_p(nxt(), 1, nf * 2, 2)
    p["deconv2"] = _conv_p(nxt(), 3, nf * 4, nf)
    p["conv7"] = _conv_p(nxt(), 3, nf, nf // 2)
    p["final"] = _conv_p(nxt(), 3, nf // 2, 2)
    return p


def _wb(p):
    return p["w"], p["b"]


def _head_wb(p):
    w = p["w"]
    return w.reshape(int(w.shape[2]), int(w.shape[3])), p["b"]


# --------------------------------------------------------------------------
# FlowFusion / SpatialAttentionGen — references batched through one spa pass
# --------------------------------------------------------------------------
def flow_fusion(params, target_feat, refs, small_mask):
    spa = params["spa"]
    t, b, h4, w4, C = refs.shape
    ts = conv2d(target_feat, *_wb(spa["shrink1"]), 1, 0, 1, "leaky")
    rs = conv2d(refs.reshape(t * b, h4, w4, C), *_wb(spa["shrink2"]), 1, 0, 1, "leaky")
    ts_rep = jnp.broadcast_to(ts[None], (t,) + ts.shape).reshape(t * b, h4, w4, -1)
    x = jnp.concatenate([ts_rep, rs], axis=-1)
    a1 = conv2d(x, *_wb(spa["conv1"]), 1, 1, 1, "leaky")
    a2 = conv2d(a1, *_wb(spa["conv2"]), 2, 1, 1, "leaky")      # stride 2 -> GEMM
    a3 = conv2d(a2, *_wb(spa["conv3"]), 1, 1, 1, "leaky")
    a4 = conv2d(a3, *_wb(spa["conv4"]), 1, 1, 1, "leaky")
    a5 = deconv_block(a4, *_wb(spa["conv5"]), act="leaky")
    a6 = conv2d(a5, *_wb(spa["conv6"]), 1, 1, 1, "none")        # (t*b,h4,w4,1)

    att = jnp.transpose(a6.reshape(t, b, h4, w4), (1, 2, 3, 0))  # (b,h4,w4,t)
    # temporal 1x1 selection over t=3 channels: lane-sparse -> plain XLA einsum
    tw = params["temporal"]["w"].reshape(t, t).astype(jnp.float32)
    tb = params["temporal"]["b"].astype(jnp.float32)
    mod = _apply_act(att.astype(jnp.float32) @ tw + tb, "leaky")
    refs_b = jnp.transpose(refs, (1, 2, 3, 0, 4))                # (b,h4,w4,t,C)
    result = jnp.sum(refs_b.astype(jnp.float32) * mod[..., None], axis=3)
    return small_mask * result + target_feat.astype(jnp.float32) * (1.0 - small_mask)


# --------------------------------------------------------------------------
# Full IGFC forward (Model.forward)
# --------------------------------------------------------------------------
USE_RESIDUAL = True
PASSMASK = True


def igfc_forward(params, flows, masks):
    """flows: (B,2,T,H,W), masks: (B,1,T,H,W). Returns (flow, f4, f2) NCHW."""
    b, _, t, h, w = flows.shape
    inputs = jnp.concatenate([flows, masks], axis=1) if PASSMASK else flows
    pivot = t // 2
    h4, w4 = h // 4, w // 4
    h2, w2 = h // 2, w // 2

    # ---- encoder: all T frames batched along the leading dim --------------
    frames = jnp.transpose(inputs, (2, 0, 3, 4, 1)).reshape(t * b, h, w, -1)
    x = jnp.pad(frames.astype(jnp.bfloat16),
                ((0, 0), (2, 2), (2, 2), (0, 0)), mode="reflect")
    c1 = conv2d(x, *_wb(params["conv1"]), 1, 0, 1, "leaky")
    c2 = conv2d(c1, *_wb(params["conv2"]), 2, 1, 1, "leaky")
    c3 = conv2d(c2, *_wb(params["conv3"]), 1, 1, 1, "leaky")
    c4 = conv2d(c3, *_wb(params["conv4"]), 2, 1, 1, "leaky")
    feat = c4
    for rp in params["middle"]:
        feat = res_block_noBN(feat, rp)

    feat_f = feat.reshape(t, b, h4, w4, -1)
    c4_pivot = c4.reshape(t, b, h4, w4, -1)[pivot]
    c2_pivot = c2.reshape(t, b, h2, w2, -1)[pivot]
    target_feat = feat_f[pivot]

    # ---- forward-warp non-pivot features toward the pivot (batched) -------
    non_pivot = [i for i in range(t) if i != pivot]
    shifts = jnp.array([float(pivot - i) for i in non_pivot], jnp.float32)
    np_flows = jnp.stack([flows[:, :, i] for i in non_pivot], 0)    # (t-1,b,2,h,w)
    sflow = bilinear_resize_nchw(np_flows.reshape((t - 1) * b, 2, h, w), h4, w4)
    sflow = (sflow.reshape(t - 1, b, 2, h4, w4) / 4.0
             * shifts[:, None, None, None, None])
    sflow = jnp.transpose(sflow, (0, 1, 3, 4, 2)).reshape((t - 1) * b, h4, w4, 2)
    np_feats = jnp.stack([feat_f[i] for i in non_pivot], 0)
    warped = forward_warp_fn(np_feats.reshape((t - 1) * b, h4, w4, -1), sflow)
    warped = warped.reshape(t - 1, b, h4, w4, -1)

    ref_list, wi = [], 0
    for i in range(t):
        if i == pivot:
            ref_list.append(target_feat.astype(jnp.bfloat16))
        else:
            ref_list.append(warped[wi].astype(jnp.bfloat16))
            wi += 1
    refs = jnp.stack(ref_list, 0)                                   # (t,b,h4,w4,C)

    small_mask = nearest_resize_nchw(masks[:, :, pivot], h4, w4)
    small_mask = jnp.transpose(small_mask, (0, 2, 3, 1))            # (b,h4,w4,1)

    fused = flow_fusion(params, target_feat, refs, small_mask)

    # ---- dilated context + decoder (recon heads fused into their producers)
    a1 = conv2d(fused, *_wb(params["dil1"]), 1, 8, 8, "leaky")
    a2 = conv2d(a1, *_wb(params["dil2"]), 1, 4, 4, "leaky")
    a3 = conv2d(a2, *_wb(params["dil3"]), 1, 2, 2, "leaky")
    a4, f4 = conv2d(a3, *_wb(params["dil4"]), 1, 1, 1, "leaky",
                    head=_head_wb(params["recon4"]))
    d1 = jnp.concatenate([a4, c4_pivot], axis=-1)
    d2 = deconv_block(d1, *_wb(params["deconv1"]))
    d3 = conv2d(d2, *_wb(params["conv5"]), 1, 1, 1, "leaky")
    d4, f2 = conv2d(d3, *_wb(params["conv6"]), 1, 1, 1, "leaky",
                    head=_head_wb(params["recon2"]))
    d5 = jnp.concatenate([d4, c2_pivot], axis=-1)
    d6 = deconv_block(d5, *_wb(params["deconv2"]))
    d7 = conv2d(d6, *_wb(params["conv7"]), 1, 1, 1, "leaky")
    flow = conv2d(d7, *_wb(params["final"]), 1, 1, 1, "none")

    flow = jnp.transpose(flow, (0, 3, 1, 2)).astype(jnp.float32)    # back to NCHW
    f4 = jnp.transpose(f4, (0, 3, 1, 2)).astype(jnp.float32)
    f2 = jnp.transpose(f2, (0, 3, 1, 2)).astype(jnp.float32)
    if USE_RESIDUAL:
        flow = flow + flows[:, :, pivot]
    return flow, f4, f2


# --------------------------------------------------------------------------
if __name__ == "__main__":
    # config: cnum=8, in_channel=3 (2 flow + 1 mask, PASSMASK), resBlocks=2,
    #         use_bias=True, conv_type='vanilla', num_frames=3, use_residual=True
    NF, IN_CH, NUM_FRAMES, NUM_BLOCKS = 8, 3, 3, 2
    B, T, H, W = 2, NUM_FRAMES, 16, 16

    key = jax.random.PRNGKey(0)
    kf, km = jax.random.split(key)
    flows = jax.random.normal(kf, (B, 2, T, H, W), jnp.float32)
    masks = (jax.random.uniform(km, (B, 1, T, H, W)) > 0.5).astype(jnp.float32)

    params = init_params(jax.random.PRNGKey(42), NF, IN_CH, NUM_FRAMES, NUM_BLOCKS)

    # decide Pallas backends (tap-conv / splat) eagerly before jit tracing
    _tap_conv_supported()
    _splat_supported()

    fwd = jax.jit(lambda f, m: igfc_forward(params, f, m))
    flow, f4, f2 = fwd(flows, masks)
    jax.block_until_ready((flow, f4, f2))

    assert flow.shape == (B, 2, H, W), flow.shape
    assert f4.shape == (B, 2, H // 4, W // 4), f4.shape
    assert f2.shape == (B, 2, H // 2, W // 2), f2.shape
    assert all(bool(jnp.isfinite(x).all()) for x in (flow, f4, f2))
    print("KERNEL_OK")
</pallas_src>

<mosaic_0001>
module attributes {stable_mosaic.version = 11 : i64} {
  func.func @_splat_kernel(%arg0: i32, %arg1: memref<2x4x16xi32, #tpu.memory_space<smem>>, %arg2: memref<2x4x16xf32, #tpu.memory_space<smem>>, %arg3: memref<1x16x8xf32, #tpu.memory_space<vmem>>, %arg4: memref<1x16x8xf32, #tpu.memory_space<vmem>>) attributes {dimension_semantics = [#tpu.dimension_semantics<arbitrary>], iteration_bounds = array<i64: 2>, scalar_prefetch = 2 : i64, scratch_operands = 0 : i64, tpu.core_type = #tpu.core_type<tc>, window_params = [{transform_indices = @transform_0, window_bounds = array<i64: 1, 16, 8>}, {transform_indices = @transform_1, window_bounds = array<i64: 1, 16, 8>}]} {
    %cst = arith.constant 0.000000e+00 : f32
    %0 = vector.broadcast %cst : f32 to vector<16x8xf32>
    %c0 = arith.constant 0 : index
    %c0_0 = arith.constant 0 : index
    %c0_1 = arith.constant 0 : index
    %1 = vector.load %arg4[%c0, %c0_0, %c0_1] : memref<1x16x8xf32, #tpu.memory_space<vmem>>, vector<1x16x8xf32>
    %2 = vector.shape_cast %1 : vector<1x16x8xf32> to vector<16x8xf32>
    %3 = vector.shape_cast %0 : vector<16x8xf32> to vector<1x16x8xf32>
    tpu.vector_store %arg4[%c0, %c0_0, %c0_1], %3 {strides = array<i32>} : memref<1x16x8xf32, #tpu.memory_space<vmem>>, vector<1x16x8xf32>,
    %c0_i32 = arith.constant 0 : i32
    %c16_i32 = arith.constant 16 : i32
    %4 = arith.addi %c0_i32, %c16_i32 : i32
    %c1_i32 = arith.constant 1 : i32
    scf.for %arg5 = %c0_i32 to %4 step %c1_i32  : i32 {
      %c0_3 = arith.constant 0 : index
      %5 = arith.index_cast %arg5 : i32 to index
      %c0_4 = arith.constant 0 : index
      %6 = vector.load %arg3[%c0_3, %5, %c0_4] : memref<1x16x8xf32, #tpu.memory_space<vmem>>, vector<1x1x8xf32>
      %7 = vector.shape_cast %6 : vector<1x1x8xf32> to vector<1x8xf32>
      %8 = arith.index_cast %arg0 : i32 to index
      %c0_5 = arith.constant 0 : index
      %9 = arith.index_cast %arg5 : i32 to index
      %10 = memref.load %arg1[%8, %c0_5, %9] : memref<2x4x16xi32, #tpu.memory_space<smem>>
      %11 = arith.index_cast %arg0 : i32 to index
      %c0_6 = arith.constant 0 : index
      %12 = arith.index_cast %arg5 : i32 to index
      %13 = memref.load %arg2[%11, %c0_6, %12] : memref<2x4x16xf32, #tpu.memory_space<smem>>
      %c0_7 = arith.constant 0 : index
      %14 = arith.index_cast %10 : i32 to index
      %c0_8 = arith.constant 0 : index
      %15 = vector.load %arg4[%c0_7, %14, %c0_8] : memref<1x16x8xf32, #tpu.memory_space<vmem>>, vector<1x1x8xf32>
      %16 = vector.shape_cast %15 : vector<1x1x8xf32> to vector<1x8xf32>
      %17 = vector.broadcast %13 : f32 to vector<1x8xf32>
      %18 = arith.mulf %17, %7 : vector<1x8xf32>
      %19 = arith.addf %16, %18 : vector<1x8xf32>
      %c0_9 = arith.constant 0 : index
      %20 = arith.index_cast %10 : i32 to index
      %c0_10 = arith.constant 0 : index
      %21 = vector.load %arg4[%c0_9, %20, %c0_10] : memref<1x16x8xf32, #tpu.memory_space<vmem>>, vector<1x1x8xf32>
      %22 = vector.shape_cast %21 : vector<1x1x8xf32> to vector<1x8xf32>
      %23 = vector.shape_cast %19 : vector<1x8xf32> to vector<1x1x8xf32>
      tpu.vector_store %arg4[%c0_9, %20, %c0_10], %23 {strides = array<i32>} : memref<1x16x8xf32, #tpu.memory_space<vmem>>, vector<1x1x8xf32>,
      %24 = arith.index_cast %arg0 : i32 to index
      %c1 = arith.constant 1 : index
      %25 = arith.index_cast %arg5 : i32 to index
      %26 = memref.load %arg1[%24, %c1, %25] : memref<2x4x16xi32, #tpu.memory_space<smem>>
      %27 = arith.index_cast %arg0 : i32 to index
      %c1_11 = arith.constant 1 : index
      %28 = arith.index_cast %arg5 : i32 to index
      %29 = memref.load %arg2[%27, %c1_11, %28] : memref<2x4x16xf32, #tpu.memory_space<smem>>
      %c0_12 = arith.constant 0 : index
      %30 = arith.index_cast %26 : i32 to index
      %c0_13 = arith.constant 0 : index
      %31 = vector.load %arg4[%c0_12, %30, %c0_13] : memref<1x16x8xf32, #tpu.memory_space<vmem>>, vector<1x1x8xf32>
      %32 = vector.shape_cast %31 : vector<1x1x8xf32> to vector<1x8xf32>
      %33 = vector.broadcast %29 : f32 to vector<1x8xf32>
      %34 = arith.mulf %33, %7 : vector<1x8xf32>
      %35 = arith.addf %32, %34 : vector<1x8xf32>
      %c0_14 = arith.constant 0 : index
      %36 = arith.index_cast %26 : i32 to index
      %c0_15 = arith.constant 0 : index
      %37 = vector.load %arg4[%c0_14, %36, %c0_15] : memref<1x16x8xf32, #tpu.memory_space<vmem>>, vector<1x1x8xf32>
      %38 = vector.shape_cast %37 : vector<1x1x8xf32> to vector<1x8xf32>
      %39 = vector.shape_cast %35 : vector<1x8xf32> to vector<1x1x8xf32>
      tpu.vector_store %arg4[%c0_14, %36, %c0_15], %39 {strides = array<i32>} : memref<1x16x8xf32, #tpu.memory_space<vmem>>, vector<1x1x8xf32>,
      %40 = arith.index_cast %arg0 : i32 to index
      %c2 = arith.constant 2 : index
      %41 = arith.index_cast %arg5 : i32 to index
      %42 = memref.load %arg1[%40, %c2, %41] : memref<2x4x16xi32, #tpu.memory_space<smem>>
      %43 = arith.index_cast %arg0 : i32 to index
      %c2_16 = arith.constant 2 : index
      %44 = arith.index_cast %arg5 : i32 to index
      %45 = memref.load %arg2[%43, %c2_16, %44] : memref<2x4x16xf32, #tpu.memory_space<smem>>
      %c0_17 = arith.constant 0 : index
      %46 = arith.index_cast %42 : i32 to index
      %c0_18 = arith.constant 0 : index
      %47 = vector.load %arg4[%c0_17, %46, %c0_18] : memref<1x16x8xf32, #tpu.memory_space<vmem>>, vector<1x1x8xf32>
      %48 = vector.shape_cast %47 : vector<1x1x8xf32> to vector<1x8xf32>
      %49 = vector.broadcast %45 : f32 to vector<1x8xf32>
      %50 = arith.mulf %49, %7 : vector<1x8xf32>
      %51 = arith.addf %48, %50 : vector<1x8xf32>
      %c0_19 = arith.constant 0 : index
      %52 = arith.index_cast %42 : i32 to index
      %c0_20 = arith.constant 0 : index
      %53 = vector.load %arg4[%c0_19, %52, %c0_20] : memref<1x16x8xf32, #tpu.memory_space<vmem>>, vector<1x1x8xf32>
      %54 = vector.shape_cast %53 : vector<1x1x8xf32> to vector<1x8xf32>
      %55 = vector.shape_cast %51 : vector<1x8xf32> to vector<1x1x8xf32>
      tpu.vector_store %arg4[%c0_19, %52, %c0_20], %55 {strides = array<i32>} : memref<1x16x8xf32, #tpu.memory_space<vmem>>, vector<1x1x8xf32>,
      %56 = arith.index_cast %arg0 : i32 to index
      %c3 = arith.constant 3 : index
      %57 = arith.index_cast %arg5 : i32 to index
      %58 = memref.load %arg1[%56, %c3, %57] : memref<2x4x16xi32, #tpu.memory_space<smem>>
      %59 = arith.index_cast %arg0 : i32 to index
      %c3_21 = arith.constant 3 : index
      %60 = arith.index_cast %arg5 : i32 to index
      %61 = memref.load %arg2[%59, %c3_21, %60] : memref<2x4x16xf32, #tpu.memory_space<smem>>
      %c0_22 = arith.constant 0 : index
      %62 = arith.index_cast %58 : i32 to index
      %c0_23 = arith.constant 0 : index
      %63 = vector.load %arg4[%c0_22, %62, %c0_23] : memref<1x16x8xf32, #tpu.memory_space<vmem>>, vector<1x1x8xf32>
      %64 = vector.shape_cast %63 : vector<1x1x8xf32> to vector<1x8xf32>
      %65 = vector.broadcast %61 : f32 to vector<1x8xf32>
      %66 = arith.mulf %65, %7 : vector<1x8xf32>
      %67 = arith.addf %64, %66 : vector<1x8xf32>
      %c0_24 = arith.constant 0 : index
      %68 = arith.index_cast %58 : i32 to index
      %c0_25 = arith.constant 0 : index
      %69 = vector.load %arg4[%c0_24, %68, %c0_25] : memref<1x16x8xf32, #tpu.memory_space<vmem>>, vector<1x1x8xf32>
      %70 = vector.shape_cast %69 : vector<1x1x8xf32> to vector<1x8xf32>
      %71 = vector.shape_cast %67 : vector<1x8xf32> to vector<1x1x8xf32>
      tpu.vector_store %arg4[%c0_24, %68, %c0_25], %71 {strides = array<i32>} : memref<1x16x8xf32, #tpu.memory_space<vmem>>, vector<1x1x8xf32>,
    }
    %c16_i32_2 = arith.constant 16 : i32
    return
  }
  func.func @transform_0(%arg0: i32, %arg1: memref<2x4x16xi32, #tpu.memory_space<smem>>, %arg2: memref<2x4x16xf32, #tpu.memory_space<smem>>) -> (i32, i32, i32) {
    %c0_i32 = arith.constant 0 : i32
    %c0_i32_0 = arith.constant 0 : i32
    %c0_i32_1 = arith.constant 0 : i32
    return %arg0, %c0_i32, %c0_i32_0 : i32, i32, i32
  }
  func.func @transform_1(%arg0: i32, %arg1: memref<2x4x16xi32, #tpu.memory_space<smem>>, %arg2: memref<2x4x16xf32, #tpu.memory_space<smem>>) -> (i32, i32, i32) {
    %c0_i32 = arith.constant 0 : i32
    %c0_i32_0 = arith.constant 0 : i32
    %c0_i32_1 = arith.constant 0 : i32
    return %arg0, %c0_i32, %c0_i32_0 : i32, i32, i32
  }
}

module attributes {stable_mosaic.version = 11 : i64} {
  func.func @_mm_kernel(%arg0: i32, %arg1: memref<384x75xbf16, #tpu.memory_space<vmem>>, %arg2: memref<75x8xbf16, #tpu.memory_space<vmem>>, %arg3: memref<1x8xf32, #tpu.memory_space<vmem>>, %arg4: memref<384x8xbf16, #tpu.memory_space<vmem>>) attributes {dimension_semantics = [#tpu.dimension_semantics<parallel>], iteration_bounds = array<i64: 4>, scalar_prefetch = 0 : i64, scratch_operands = 0 : i64, tpu.core_type = #tpu.core_type<tc>, window_params = [{transform_indices = @transform_0, window_bounds = array<i64: 384, 75>}, {pipeline_mode = #tpu.pipeline_mode<synchronous>, transform_indices = @transform_1, window_bounds = array<i64: 75, 8>}, {pipeline_mode = #tpu.pipeline_mode<synchronous>, transform_indices = @transform_2, window_bounds = array<i64: 1, 8>}, {transform_indices = @transform_3, window_bounds = array<i64: 384, 8>}]} {
    %c0 = arith.constant 0 : index
    %c0_0 = arith.constant 0 : index
    %0 = vector.load %arg1[%c0, %c0_0] : memref<384x75xbf16, #tpu.memory_space<vmem>>, vector<384x75xbf16>
    %c0_1 = arith.constant 0 : index
    %c0_2 = arith.constant 0 : index
    %1 = vector.load %arg2[%c0_1, %c0_2] : memref<75x8xbf16, #tpu.memory_space<vmem>>, vector<75x8xbf16>
    %cst = arith.constant dense<0.000000e+00> : vector<384x8xf32>
    %2 = tpu.matmul %0, %1, %cst {dimension_numbers = #tpu.dot_dimension_numbers<[1], [0], [0], [1], [0, 0, 1, 1], [], []>} : vector<384x75xbf16>, vector<75x8xbf16>, vector<384x8xf32> -> vector<384x8xf32>
    %c0_3 = arith.constant 0 : index
    %c0_4 = arith.constant 0 : index
    %3 = vector.load %arg3[%c0_3, %c0_4] : memref<1x8xf32, #tpu.memory_space<vmem>>, vector<1x8xf32>
    %4 = vector.broadcast %3 : vector<1x8xf32> to vector<384x8xf32>
    %5 = arith.addf %2, %4 : vector<384x8xf32>
    %cst_5 = arith.constant 0.000000e+00 : f32
    %6 = vector.broadcast %cst_5 : f32 to vector<384x8xf32>
    %7 = arith.cmpf oge, %5, %6 : vector<384x8xf32>
    %cst_6 = arith.constant 2.000000e-01 : f32
    %8 = vector.broadcast %cst_6 : f32 to vector<384x8xf32>
    %9 = arith.mulf %8, %5 : vector<384x8xf32>
    %10 = arith.select %7, %5, %9 : vector<384x8xi1>, vector<384x8xf32>
    %11 = arith.truncf %10 : vector<384x8xf32> to vector<384x8xbf16>
    %c0_7 = arith.constant 0 : index
    %c0_8 = arith.constant 0 : index
    %12 = vector.load %arg4[%c0_7, %c0_8] : memref<384x8xbf16, #tpu.memory_space<vmem>>, vector<384x8xbf16>
    tpu.vector_store %arg4[%c0_7, %c0_8], %11 {strides = array<i32>} : memref<384x8xbf16, #tpu.memory_space<vmem>>, vector<384x8xbf16>,
    return
  }
  func.func @transform_0(%arg0: i32) -> (i32, i32) {
    %c0_i32 = arith.constant 0 : i32
    %c0_i32_0 = arith.constant 0 : i32
    return %arg0, %c0_i32 : i32, i32
  }
  func.func @transform_1(%arg0: i32) -> (i32, i32) {
    %c0_i32 = arith.constant 0 : i32
    %c0_i32_0 = arith.constant 0 : i32
    %c0_i32_1 = arith.constant 0 : i32
    return %c0_i32, %c0_i32_0 : i32, i32
  }
  func.func @transform_2(%arg0: i32) -> (i32, i32) {
    %c0_i32 = arith.constant 0 : i32
    %c0_i32_0 = arith.constant 0 : i32
    %c0_i32_1 = arith.constant 0 : i32
    return %c0_i32, %c0_i32_0 : i32, i32
  }
  func.func @transform_3(%arg0: i32) -> (i32, i32) {
    %c0_i32 = arith.constant 0 : i32
    %c0_i32_0 = arith.constant 0 : i32
    return %arg0, %c0_i32 : i32, i32
  }
}

module attributes {stable_mosaic.version = 11 : i64} {
  func.func @_mm_kernel(%arg0: i32, %arg1: memref<384x72xbf16, #tpu.memory_space<vmem>>, %arg2: memref<72x16xbf16, #tpu.memory_space<vmem>>, %arg3: memref<1x16xf32, #tpu.memory_space<vmem>>, %arg4: memref<384x16xbf16, #tpu.memory_space<vmem>>) attributes {dimension_semantics = [#tpu.dimension_semantics<parallel>], iteration_bounds = array<i64: 1>, scalar_prefetch = 0 : i64, scratch_operands = 0 : i64, tpu.core_type = #tpu.core_type<tc>, window_params = [{transform_indices = @transform_0, window_bounds = array<i64: 384, 72>}, {pipeline_mode = #tpu.pipeline_mode<synchronous>, transform_indices = @transform_1, window_bounds = array<i64: 72, 16>}, {pipeline_mode = #tpu.pipeline_mode<synchronous>, transform_indices = @transform_2, window_bounds = array<i64: 1, 16>}, {transform_indices = @transform_3, window_bounds = array<i64: 384, 16>}]} {
    %c0 = arith.constant 0 : index
    %c0_0 = arith.constant 0 : index
    %0 = vector.load %arg1[%c0, %c0_0] : memref<384x72xbf16, #tpu.memory_space<vmem>>, vector<384x72xbf16>
    %c0_1 = arith.constant 0 : index
    %c0_2 = arith.constant 0 : index
    %1 = vector.load %arg2[%c0_1, %c0_2] : memref<72x16xbf16, #tpu.memory_space<vmem>>, vector<72x16xbf16>
    %cst = arith.constant dense<0.000000e+00> : vector<384x16xf32>
    %2 = tpu.matmul %0, %1, %cst {dimension_numbers = #tpu.dot_dimension_numbers<[1], [0], [0], [1], [0, 0, 1, 1], [], []>} : vector<384x72xbf16>, vector<72x16xbf16>, vector<384x16xf32> -> vector<384x16xf32>
    %c0_3 = arith.constant 0 : index
    %c0_4 = arith.constant 0 : index
    %3 = vector.load %arg3[%c0_3, %c0_4] : memref<1x16xf32, #tpu.memory_space<vmem>>, vector<1x16xf32>
    %4 = vector.broadcast %3 : vector<1x16xf32> to vector<384x16xf32>
    %5 = arith.addf %2, %4 : vector<384x16xf32>
    %cst_5 = arith.constant 0.000000e+00 : f32
    %6 = vector.broadcast %cst_5 : f32 to vector<384x16xf32>
    %7 = arith.cmpf oge, %5, %6 : vector<384x16xf32>
    %cst_6 = arith.constant 2.000000e-01 : f32
    %8 = vector.broadcast %cst_6 : f32 to vector<384x16xf32>
    %9 = arith.mulf %8, %5 : vector<384x16xf32>
    %10 = arith.select %7, %5, %9 : vector<384x16xi1>, vector<384x16xf32>
    %11 = arith.truncf %10 : vector<384x16xf32> to vector<384x16xbf16>
    %c0_7 = arith.constant 0 : index
    %c0_8 = arith.constant 0 : index
    %12 = vector.load %arg4[%c0_7, %c0_8] : memref<384x16xbf16, #tpu.memory_space<vmem>>, vector<384x16xbf16>
    tpu.vector_store %arg4[%c0_7, %c0_8], %11 {strides = array<i32>} : memref<384x16xbf16, #tpu.memory_space<vmem>>, vector<384x16xbf16>,
    return
  }
  func.func @transform_0(%arg0: i32) -> (i32, i32) {
    %c0_i32 = arith.constant 0 : i32
    %c0_i32_0 = arith.constant 0 : i32
    return %arg0, %c0_i32 : i32, i32
  }
  func.func @transform_1(%arg0: i32) -> (i32, i32) {
    %c0_i32 = arith.constant 0 : i32
    %c0_i32_0 = arith.constant 0 : i32
    %c0_i32_1 = arith.constant 0 : i32
    return %c0_i32, %c0_i32_0 : i32, i32
  }
  func.func @transform_2(%arg0: i32) -> (i32, i32) {
    %c0_i32 = arith.constant 0 : i32
    %c0_i32_0 = arith.constant 0 : i32
    %c0_i32_1 = arith.constant 0 : i32
    return %c0_i32, %c0_i32_0 : i32, i32
  }
  func.func @transform_3(%arg0: i32) -> (i32, i32) {
    %c0_i32 = arith.constant 0 : i32
    %c0_i32_0 = arith.constant 0 : i32
    return %arg0, %c0_i32 : i32, i32
  }
}

module attributes {stable_mosaic.version = 11 : i64} {
  func.func @_mm_kernel(%arg0: i32, %arg1: memref<384x144xbf16, #tpu.memory_space<vmem>>, %arg2: memref<144x16xbf16, #tpu.memory_space<vmem>>, %arg3: memref<1x16xf32, #tpu.memory_space<vmem>>, %arg4: memref<384x16xbf16, #tpu.memory_space<vmem>>) attributes {dimension_semantics = [#tpu.dimension_semantics<parallel>], iteration_bounds = array<i64: 1>, scalar_prefetch = 0 : i64, scratch_operands = 0 : i64, tpu.core_type = #tpu.core_type<tc>, window_params = [{transform_indices = @transform_0, window_bounds = array<i64: 384, 144>}, {pipeline_mode = #tpu.pipeline_mode<synchronous>, transform_indices = @transform_1, window_bounds = array<i64: 144, 16>}, {pipeline_mode = #tpu.pipeline_mode<synchronous>, transform_indices = @transform_2, window_bounds = array<i64: 1, 16>}, {transform_indices = @transform_3, window_bounds = array<i64: 384, 16>}]} {
    %c0 = arith.constant 0 : index
    %c0_0 = arith.constant 0 : index
    %0 = vector.load %arg1[%c0, %c0_0] : memref<384x144xbf16, #tpu.memory_space<vmem>>, vector<384x144xbf16>
    %c0_1 = arith.constant 0 : index
    %c0_2 = arith.constant 0 : index
    %1 = vector.load %arg2[%c0_1, %c0_2] : memref<144x16xbf16, #tpu.memory_space<vmem>>, vector<144x16xbf16>
    %cst = arith.constant dense<0.000000e+00> : vector<384x16xf32>
    %2 = tpu.matmul %0, %1, %cst {dimension_numbers = #tpu.dot_dimension_numbers<[1], [0], [0], [1], [0, 0, 1, 1], [], []>} : vector<384x144xbf16>, vector<144x16xbf16>, vector<384x16xf32> -> vector<384x16xf32>
    %c0_3 = arith.constant 0 : index
    %c0_4 = arith.constant 0 : index
    %3 = vector.load %arg3[%c0_3, %c0_4] : memref<1x16xf32, #tpu.memory_space<vmem>>, vector<1x16xf32>
    %4 = vector.broadcast %3 : vector<1x16xf32> to vector<384x16xf32>
    %5 = arith.addf %2, %4 : vector<384x16xf32>
    %cst_5 = arith.constant 0.000000e+00 : f32
    %6 = vector.broadcast %cst_5 : f32 to vector<384x16xf32>
    %7 = arith.cmpf oge, %5, %6 : vector<384x16xf32>
    %cst_6 = arith.constant 2.000000e-01 : f32
    %8 = vector.broadcast %cst_6 : f32 to vector<384x16xf32>
    %9 = arith.mulf %8, %5 : vector<384x16xf32>
    %10 = arith.select %7, %5, %9 : vector<384x16xi1>, vector<384x16xf32>
    %11 = arith.truncf %10 : vector<384x16xf32> to vector<384x16xbf16>
    %c0_7 = arith.constant 0 : index
    %c0_8 = arith.constant 0 : index
    %12 = vector.load %arg4[%c0_7, %c0_8] : memref<384x16xbf16, #tpu.memory_space<vmem>>, vector<384x16xbf16>
    tpu.vector_store %arg4[%c0_7, %c0_8], %11 {strides = array<i32>} : memref<384x16xbf16, #tpu.memory_space<vmem>>, vector<384x16xbf16>,
    return
  }
  func.func @transform_0(%arg0: i32) -> (i32, i32) {
    %c0_i32 = arith.constant 0 : i32
    %c0_i32_0 = arith.constant 0 : i32
    return %arg0, %c0_i32 : i32, i32
  }
  func.func @transform_1(%arg0: i32) -> (i32, i32) {
    %c0_i32 = arith.constant 0 : i32
    %c0_i32_0 = arith.constant 0 : i32
    %c0_i32_1 = arith.constant 0 : i32
    return %c0_i32, %c0_i32_0 : i32, i32
  }
  func.func @transform_2(%arg0: i32) -> (i32, i32) {
    %c0_i32 = arith.constant 0 : i32
    %c0_i32_0 = arith.constant 0 : i32
    %c0_i32_1 = arith.constant 0 : i32
    return %c0_i32, %c0_i32_0 : i32, i32
  }
  func.func @transform_3(%arg0: i32) -> (i32, i32) {
    %c0_i32 = arith.constant 0 : i32
    %c0_i32_0 = arith.constant 0 : i32
    return %arg0, %c0_i32 : i32, i32
  }
}

module attributes {stable_mosaic.version = 11 : i64} {
  func.func @_mm_kernel(%arg0: i32, %arg1: memref<96x144xbf16, #tpu.memory_space<vmem>>, %arg2: memref<144x32xbf16, #tpu.memory_space<vmem>>, %arg3: memref<1x32xf32, #tpu.memory_space<vmem>>, %arg4: memref<96x32xbf16, #tpu.memory_space<vmem>>) attributes {dimension_semantics = [#tpu.dimension_semantics<parallel>], iteration_bounds = array<i64: 1>, scalar_prefetch = 0 : i64, scratch_operands = 0 : i64, tpu.core_type = #tpu.core_type<tc>, window_params = [{transform_indices = @transform_0, window_bounds = array<i64: 96, 144>}, {pipeline_mode = #tpu.pipeline_mode<synchronous>, transform_indices = @transform_1, window_bounds = array<i64: 144, 32>}, {pipeline_mode = #tpu.pipeline_mode<synchronous>, transform_indices = @transform_2, window_bounds = array<i64: 1, 32>}, {transform_indices = @transform_3, window_bounds = array<i64: 96, 32>}]} {
    %c0 = arith.constant 0 : index
    %c0_0 = arith.constant 0 : index
    %0 = vector.load %arg1[%c0, %c0_0] : memref<96x144xbf16, #tpu.memory_space<vmem>>, vector<96x144xbf16>
    %c0_1 = arith.constant 0 : index
    %c0_2 = arith.constant 0 : index
    %1 = vector.load %arg2[%c0_1, %c0_2] : memref<144x32xbf16, #tpu.memory_space<vmem>>, vector<144x32xbf16>
    %cst = arith.constant dense<0.000000e+00> : vector<96x32xf32>
    %2 = tpu.matmul %0, %1, %cst {dimension_numbers = #tpu.dot_dimension_numbers<[1], [0], [0], [1], [0, 0, 1, 1], [], []>} : vector<96x144xbf16>, vector<144x32xbf16>, vector<96x32xf32> -> vector<96x32xf32>
    %c0_3 = arith.constant 0 : index
    %c0_4 = arith.constant 0 : index
    %3 = vector.load %arg3[%c0_3, %c0_4] : memref<1x32xf32, #tpu.memory_space<vmem>>, vector<1x32xf32>
    %4 = vector.broadcast %3 : vector<1x32xf32> to vector<96x32xf32>
    %5 = arith.addf %2, %4 : vector<96x32xf32>
    %cst_5 = arith.constant 0.000000e+00 : f32
    %6 = vector.broadcast %cst_5 : f32 to vector<96x32xf32>
    %7 = arith.cmpf oge, %5, %6 : vector<96x32xf32>
    %cst_6 = arith.constant 2.000000e-01 : f32
    %8 = vector.broadcast %cst_6 : f32 to vector<96x32xf32>
    %9 = arith.mulf %8, %5 : vector<96x32xf32>
    %10 = arith.select %7, %5, %9 : vector<96x32xi1>, vector<96x32xf32>
    %11 = arith.truncf %10 : vector<96x32xf32> to vector<96x32xbf16>
    %c0_7 = arith.constant 0 : index
    %c0_8 = arith.constant 0 : index
    %12 = vector.load %arg4[%c0_7, %c0_8] : memref<96x32xbf16, #tpu.memory_space<vmem>>, vector<96x32xbf16>
    tpu.vector_store %arg4[%c0_7, %c0_8], %11 {strides = array<i32>} : memref<96x32xbf16, #tpu.memory_space<vmem>>, vector<96x32xbf16>,
    return
  }
  func.func @transform_0(%arg0: i32) -> (i32, i32) {
    %c0_i32 = arith.constant 0 : i32
    %c0_i32_0 = arith.constant 0 : i32
    return %arg0, %c0_i32 : i32, i32
  }
  func.func @transform_1(%arg0: i32) -> (i32, i32) {
    %c0_i32 = arith.constant 0 : i32
    %c0_i32_0 = arith.constant 0 : i32
    %c0_i32_1 = arith.constant 0 : i32
    return %c0_i32, %c0_i32_0 : i32, i32
  }
  func.func @transform_2(%arg0: i32) -> (i32, i32) {
    %c0_i32 = arith.constant 0 : i32
    %c0_i32_0 = arith.constant 0 : i32
    %c0_i32_1 = arith.constant 0 : i32
    return %c0_i32, %c0_i32_0 : i32, i32
  }
  func.func @transform_3(%arg0: i32) -> (i32, i32) {
    %c0_i32 = arith.constant 0 : i32
    %c0_i32_0 = arith.constant 0 : i32
    return %arg0, %c0_i32 : i32, i32
  }
}

module attributes {stable_mosaic.version = 11 : i64} {
  func.func @_mm_kernel(%arg0: i32, %arg1: memref<96x288xbf16, #tpu.memory_space<vmem>>, %arg2: memref<288x32xbf16, #tpu.memory_space<vmem>>, %arg3: memref<1x32xf32, #tpu.memory_space<vmem>>, %arg4: memref<96x32xbf16, #tpu.memory_space<vmem>>) attributes {dimension_semantics = [#tpu.dimension_semantics<parallel>], iteration_bounds = array<i64: 1>, scalar_prefetch = 0 : i64, scratch_operands = 0 : i64, tpu.core_type = #tpu.core_type<tc>, window_params = [{transform_indices = @transform_0, window_bounds = array<i64: 96, 288>}, {pipeline_mode = #tpu.pipeline_mode<synchronous>, transform_indices = @transform_1, window_bounds = array<i64: 288, 32>}, {pipeline_mode = #tpu.pipeline_mode<synchronous>, transform_indices = @transform_2, window_bounds = array<i64: 1, 32>}, {transform_indices = @transform_3, window_bounds = array<i64: 96, 32>}]} {
    %c0 = arith.constant 0 : index
    %c0_0 = arith.constant 0 : index
    %0 = vector.load %arg1[%c0, %c0_0] : memref<96x288xbf16, #tpu.memory_space<vmem>>, vector<96x288xbf16>
    %c0_1 = arith.constant 0 : index
    %c0_2 = arith.constant 0 : index
    %1 = vector.load %arg2[%c0_1, %c0_2] : memref<288x32xbf16, #tpu.memory_space<vmem>>, vector<288x32xbf16>
    %cst = arith.constant dense<0.000000e+00> : vector<96x32xf32>
    %2 = tpu.matmul %0, %1, %cst {dimension_numbers = #tpu.dot_dimension_numbers<[1], [0], [0], [1], [0, 0, 1, 1], [], []>} : vector<96x288xbf16>, vector<288x32xbf16>, vector<96x32xf32> -> vector<96x32xf32>
    %c0_3 = arith.constant 0 : index
    %c0_4 = arith.constant 0 : index
    %3 = vector.load %arg3[%c0_3, %c0_4] : memref<1x32xf32, #tpu.memory_space<vmem>>, vector<1x32xf32>
    %4 = vector.broadcast %3 : vector<1x32xf32> to vector<96x32xf32>
    %5 = arith.addf %2, %4 : vector<96x32xf32>
    %cst_5 = arith.constant 0.000000e+00 : f32
    %6 = vector.broadcast %cst_5 : f32 to vector<96x32xf32>
    %7 = arith.maximumf %5, %6 : vector<96x32xf32>
    %8 = arith.truncf %7 : vector<96x32xf32> to vector<96x32xbf16>
    %c0_6 = arith.constant 0 : index
    %c0_7 = arith.constant 0 : index
    %9 = vector.load %arg4[%c0_6, %c0_7] : memref<96x32xbf16, #tpu.memory_space<vmem>>, vector<96x32xbf16>
    tpu.vector_store %arg4[%c0_6, %c0_7], %8 {strides = array<i32>} : memref<96x32xbf16, #tpu.memory_space<vmem>>, vector<96x32xbf16>,
    return
  }
  func.func @transform_0(%arg0: i32) -> (i32, i32) {
    %c0_i32 = arith.constant 0 : i32
    %c0_i32_0 = arith.constant 0 : i32
    return %arg0, %c0_i32 : i32, i32
  }
  func.func @transform_1(%arg0: i32) -> (i32, i32) {
    %c0_i32 = arith.constant 0 : i32
    %c0_i32_0 = arith.constant 0 : i32
    %c0_i32_1 = arith.constant 0 : i32
    return %c0_i32, %c0_i32_0 : i32, i32
  }
  func.func @transform_2(%arg0: i32) -> (i32, i32) {
    %c0_i32 = arith.constant 0 : i32
    %c0_i32_0 = arith.constant 0 : i32
    %c0_i32_1 = arith.constant 0 : i32
    return %c0_i32, %c0_i32_0 : i32, i32
  }
  func.func @transform_3(%arg0: i32) -> (i32, i32) {
    %c0_i32 = arith.constant 0 : i32
    %c0_i32_0 = arith.constant 0 : i32
    return %arg0, %c0_i32 : i32, i32
  }
}

module attributes {stable_mosaic.version = 11 : i64} {
  func.func @_mm_kernel(%arg0: i32, %arg1: memref<96x288xbf16, #tpu.memory_space<vmem>>, %arg2: memref<288x32xbf16, #tpu.memory_space<vmem>>, %arg3: memref<1x32xf32, #tpu.memory_space<vmem>>, %arg4: memref<96x32xbf16, #tpu.memory_space<vmem>>, %arg5: memref<96x32xbf16, #tpu.memory_space<vmem>>) attributes {dimension_semantics = [#tpu.dimension_semantics<parallel>], iteration_bounds = array<i64: 1>, scalar_prefetch = 0 : i64, scratch_operands = 0 : i64, tpu.core_type = #tpu.core_type<tc>, window_params = [{transform_indices = @transform_0, window_bounds = array<i64: 96, 288>}, {pipeline_mode = #tpu.pipeline_mode<synchronous>, transform_indices = @transform_1, window_bounds = array<i64: 288, 32>}, {pipeline_mode = #tpu.pipeline_mode<synchronous>, transform_indices = @transform_2, window_bounds = array<i64: 1, 32>}, {transform_indices = @transform_3, window_bounds = array<i64: 96, 32>}, {transform_indices = @transform_4, window_bounds = array<i64: 96, 32>}]} {
    %c0 = arith.constant 0 : index
    %c0_0 = arith.constant 0 : index
    %0 = vector.load %arg1[%c0, %c0_0] : memref<96x288xbf16, #tpu.memory_space<vmem>>, vector<96x288xbf16>
    %c0_1 = arith.constant 0 : index
    %c0_2 = arith.constant 0 : index
    %1 = vector.load %arg2[%c0_1, %c0_2] : memref<288x32xbf16, #tpu.memory_space<vmem>>, vector<288x32xbf16>
    %cst = arith.constant dense<0.000000e+00> : vector<96x32xf32>
    %2 = tpu.matmul %0, %1, %cst {dimension_numbers = #tpu.dot_dimension_numbers<[1], [0], [0], [1], [0, 0, 1, 1], [], []>} : vector<96x288xbf16>, vector<288x32xbf16>, vector<96x32xf32> -> vector<96x32xf32>
    %c0_3 = arith.constant 0 : index
    %c0_4 = arith.constant 0 : index
    %3 = vector.load %arg3[%c0_3, %c0_4] : memref<1x32xf32, #tpu.memory_space<vmem>>, vector<1x32xf32>
    %4 = vector.broadcast %3 : vector<1x32xf32> to vector<96x32xf32>
    %5 = arith.addf %2, %4 : vector<96x32xf32>
    %c0_5 = arith.constant 0 : index
    %c0_6 = arith.constant 0 : index
    %6 = vector.load %arg4[%c0_5, %c0_6] : memref<96x32xbf16, #tpu.memory_space<vmem>>, vector<96x32xbf16>
    %7 = arith.extf %6 : vector<96x32xbf16> to vector<96x32xf32>
    %8 = arith.addf %5, %7 : vector<96x32xf32>
    %9 = arith.truncf %8 : vector<96x32xf32> to vector<96x32xbf16>
    %c0_7 = arith.constant 0 : index
    %c0_8 = arith.constant 0 : index
    %10 = vector.load %arg5[%c0_7, %c0_8] : memref<96x32xbf16, #tpu.memory_space<vmem>>, vector<96x32xbf16>
    tpu.vector_store %arg5[%c0_7, %c0_8], %9 {strides = array<i32>} : memref<96x32xbf16, #tpu.memory_space<vmem>>, vector<96x32xbf16>,
    return
  }
  func.func @transform_0(%arg0: i32) -> (i32, i32) {
    %c0_i32 = arith.constant 0 : i32
    %c0_i32_0 = arith.constant 0 : i32
    return %arg0, %c0_i32 : i32, i32
  }
  func.func @transform_1(%arg0: i32) -> (i32, i32) {
    %c0_i32 = arith.constant 0 : i32
    %c0_i32_0 = arith.constant 0 : i32
    %c0_i32_1 = arith.constant 0 : i32
    return %c0_i32, %c0_i32_0 : i32, i32
  }
  func.func @transform_2(%arg0: i32) -> (i32, i32) {
    %c0_i32 = arith.constant 0 : i32
    %c0_i32_0 = arith.constant 0 : i32
    %c0_i32_1 = arith.constant 0 : i32
    return %c0_i32, %c0_i32_0 : i32, i32
  }
  func.func @transform_3(%arg0: i32) -> (i32, i32) {
    %c0_i32 = arith.constant 0 : i32
    %c0_i32_0 = arith.constant 0 : i32
    return %arg0, %c0_i32 : i32, i32
  }
  func.func @transform_4(%arg0: i32) -> (i32, i32) {
    %c0_i32 = arith.constant 0 : i32
    %c0_i32_0 = arith.constant 0 : i32
    return %arg0, %c0_i32 : i32, i32
  }
}

module attributes {stable_mosaic.version = 11 : i64} {
  func.func @_mm_kernel(%arg0: i32, %arg1: memref<96x32xbf16, #tpu.memory_space<vmem>>, %arg2: memref<32x8xbf16, #tpu.memory_space<vmem>>, %arg3: memref<1x8xf32, #tpu.memory_space<vmem>>, %arg4: memref<96x8xbf16, #tpu.memory_space<vmem>>) attributes {dimension_semantics = [#tpu.dimension_semantics<parallel>], iteration_bounds = array<i64: 1>, scalar_prefetch = 0 : i64, scratch_operands = 0 : i64, tpu.core_type = #tpu.core_type<tc>, window_params = [{transform_indices = @transform_0, window_bounds = array<i64: 96, 32>}, {pipeline_mode = #tpu.pipeline_mode<synchronous>, transform_indices = @transform_1, window_bounds = array<i64: 32, 8>}, {pipeline_mode = #tpu.pipeline_mode<synchronous>, transform_indices = @transform_2, window_bounds = array<i64: 1, 8>}, {transform_indices = @transform_3, window_bounds = array<i64: 96, 8>}]} {
    %c0 = arith.constant 0 : index
    %c0_0 = arith.constant 0 : index
    %0 = vector.load %arg1[%c0, %c0_0] : memref<96x32xbf16, #tpu.memory_space<vmem>>, vector<96x32xbf16>
    %c0_1 = arith.constant 0 : index
    %c0_2 = arith.constant 0 : index
    %1 = vector.load %arg2[%c0_1, %c0_2] : memref<32x8xbf16, #tpu.memory_space<vmem>>, vector<32x8xbf16>
    %cst = arith.constant dense<0.000000e+00> : vector<96x8xf32>
    %2 = tpu.matmul %0, %1, %cst {dimension_numbers = #tpu.dot_dimension_numbers<[1], [0], [0], [1], [0, 0, 1, 1], [], []>} : vector<96x32xbf16>, vector<32x8xbf16>, vector<96x8xf32> -> vector<96x8xf32>
    %c0_3 = arith.constant 0 : index
    %c0_4 = arith.constant 0 : index
    %3 = vector.load %arg3[%c0_3, %c0_4] : memref<1x8xf32, #tpu.memory_space<vmem>>, vector<1x8xf32>
    %4 = vector.broadcast %3 : vector<1x8xf32> to vector<96x8xf32>
    %5 = arith.addf %2, %4 : vector<96x8xf32>
    %cst_5 = arith.constant 0.000000e+00 : f32
    %6 = vector.broadcast %cst_5 : f32 to vector<96x8xf32>
    %7 = arith.cmpf oge, %5, %6 : vector<96x8xf32>
    %cst_6 = arith.constant 2.000000e-01 : f32
    %8 = vector.broadcast %cst_6 : f32 to vector<96x8xf32>
    %9 = arith.mulf %8, %5 : vector<96x8xf32>
    %10 = arith.select %7, %5, %9 : vector<96x8xi1>, vector<96x8xf32>
    %11 = arith.truncf %10 : vector<96x8xf32> to vector<96x8xbf16>
    %c0_7 = arith.constant 0 : index
    %c0_8 = arith.constant 0 : index
    %12 = vector.load %arg4[%c0_7, %c0_8] : memref<96x8xbf16, #tpu.memory_space<vmem>>, vector<96x8xbf16>
    tpu.vector_store %arg4[%c0_7, %c0_8], %11 {strides = array<i32>} : memref<96x8xbf16, #tpu.memory_space<vmem>>, vector<96x8xbf16>,
    return
  }
  func.func @transform_0(%arg0: i32) -> (i32, i32) {
    %c0_i32 = arith.constant 0 : i32
    %c0_i32_0 = arith.constant 0 : i32
    return %arg0, %c0_i32 : i32, i32
  }
  func.func @transform_1(%arg0: i32) -> (i32, i32) {
    %c0_i32 = arith.constant 0 : i32
    %c0_i32_0 = arith.constant 0 : i32
    %c0_i32_1 = arith.constant 0 : i32
    return %c0_i32, %c0_i32_0 : i32, i32
  }
  func.func @transform_2(%arg0: i32) -> (i32, i32) {
    %c0_i32 = arith.constant 0 : i32
    %c0_i32_0 = arith.constant 0 : i32
    %c0_i32_1 = arith.constant 0 : i32
    return %c0_i32, %c0_i32_0 : i32, i32
  }
  func.func @transform_3(%arg0: i32) -> (i32, i32) {
    %c0_i32 = arith.constant 0 : i32
    %c0_i32_0 = arith.constant 0 : i32
    return %arg0, %c0_i32 : i32, i32
  }
}

module attributes {stable_mosaic.version = 11 : i64} {
  func.func @_mm_kernel(%arg0: i32, %arg1: memref<32x32xbf16, #tpu.memory_space<vmem>>, %arg2: memref<32x8xbf16, #tpu.memory_space<vmem>>, %arg3: memref<1x8xf32, #tpu.memory_space<vmem>>, %arg4: memref<32x8xbf16, #tpu.memory_space<vmem>>) attributes {dimension_semantics = [#tpu.dimension_semantics<parallel>], iteration_bounds = array<i64: 1>, scalar_prefetch = 0 : i64, scratch_operands = 0 : i64, tpu.core_type = #tpu.core_type<tc>, window_params = [{transform_indices = @transform_0, window_bounds = array<i64: 32, 32>}, {pipeline_mode = #tpu.pipeline_mode<synchronous>, transform_indices = @transform_1, window_bounds = array<i64: 32, 8>}, {pipeline_mode = #tpu.pipeline_mode<synchronous>, transform_indices = @transform_2, window_bounds = array<i64: 1, 8>}, {transform_indices = @transform_3, window_bounds = array<i64: 32, 8>}]} {
    %c0 = arith.constant 0 : index
    %c0_0 = arith.constant 0 : index
    %0 = vector.load %arg1[%c0, %c0_0] : memref<32x32xbf16, #tpu.memory_space<vmem>>, vector<32x32xbf16>
    %c0_1 = arith.constant 0 : index
    %c0_2 = arith.constant 0 : index
    %1 = vector.load %arg2[%c0_1, %c0_2] : memref<32x8xbf16, #tpu.memory_space<vmem>>, vector<32x8xbf16>
    %cst = arith.constant dense<0.000000e+00> : vector<32x8xf32>
    %2 = tpu.matmul %0, %1, %cst {dimension_numbers = #tpu.dot_dimension_numbers<[1], [0], [0], [1], [0, 0, 1, 1], [], []>} : vector<32x32xbf16>, vector<32x8xbf16>, vector<32x8xf32> -> vector<32x8xf32>
    %c0_3 = arith.constant 0 : index
    %c0_4 = arith.constant 0 : index
    %3 = vector.load %arg3[%c0_3, %c0_4] : memref<1x8xf32, #tpu.memory_space<vmem>>, vector<1x8xf32>
    %4 = vector.broadcast %3 : vector<1x8xf32> to vector<32x8xf32>
    %5 = arith.addf %2, %4 : vector<32x8xf32>
    %cst_5 = arith.constant 0.000000e+00 : f32
    %6 = vector.broadcast %cst_5 : f32 to vector<32x8xf32>
    %7 = arith.cmpf oge, %5, %6 : vector<32x8xf32>
    %cst_6 = arith.constant 2.000000e-01 : f32
    %8 = vector.broadcast %cst_6 : f32 to vector<32x8xf32>
    %9 = arith.mulf %8, %5 : vector<32x8xf32>
    %10 = arith.select %7, %5, %9 : vector<32x8xi1>, vector<32x8xf32>
    %11 = arith.truncf %10 : vector<32x8xf32> to vector<32x8xbf16>
    %c0_7 = arith.constant 0 : index
    %c0_8 = arith.constant 0 : index
    %12 = vector.load %arg4[%c0_7, %c0_8] : memref<32x8xbf16, #tpu.memory_space<vmem>>, vector<32x8xbf16>
    tpu.vector_store %arg4[%c0_7, %c0_8], %11 {strides = array<i32>} : memref<32x8xbf16, #tpu.memory_space<vmem>>, vector<32x8xbf16>,
    return
  }
  func.func @transform_0(%arg0: i32) -> (i32, i32) {
    %c0_i32 = arith.constant 0 : i32
    %c0_i32_0 = arith.constant 0 : i32
    return %arg0, %c0_i32 : i32, i32
  }
  func.func @transform_1(%arg0: i32) -> (i32, i32) {
    %c0_i32 = arith.constant 0 : i32
    %c0_i32_0 = arith.constant 0 : i32
    %c0_i32_1 = arith.constant 0 : i32
    return %c0_i32, %c0_i32_0 : i32, i32
  }
  func.func @transform_2(%arg0: i32) -> (i32, i32) {
    %c0_i32 = arith.constant 0 : i32
    %c0_i32_0 = arith.constant 0 : i32
    %c0_i32_1 = arith.constant 0 : i32
    return %c0_i32, %c0_i32_0 : i32, i32
  }
  func.func @transform_3(%arg0: i32) -> (i32, i32) {
    %c0_i32 = arith.constant 0 : i32
    %c0_i32_0 = arith.constant 0 : i32
    return %arg0, %c0_i32 : i32, i32
  }
}

module attributes {stable_mosaic.version = 11 : i64} {
  func.func @_mm_kernel(%arg0: i32, %arg1: memref<96x144xbf16, #tpu.memory_space<vmem>>, %arg2: memref<144x24xbf16, #tpu.memory_space<vmem>>, %arg3: memref<1x24xf32, #tpu.memory_space<vmem>>, %arg4: memref<96x24xbf16, #tpu.memory_space<vmem>>) attributes {dimension_semantics = [#tpu.dimension_semantics<parallel>], iteration_bounds = array<i64: 1>, scalar_prefetch = 0 : i64, scratch_operands = 0 : i64, tpu.core_type = #tpu.core_type<tc>, window_params = [{transform_indices = @transform_0, window_bounds = array<i64: 96, 144>}, {pipeline_mode = #tpu.pipeline_mode<synchronous>, transform_indices = @transform_1, window_bounds = array<i64: 144, 24>}, {pipeline_mode = #tpu.pipeline_mode<synchronous>, transform_indices = @transform_2, window_bounds = array<i64: 1, 24>}, {transform_indices = @transform_3, window_bounds = array<i64: 96, 24>}]} {
    %c0 = arith.constant 0 : index
    %c0_0 = arith.constant 0 : index
    %0 = vector.load %arg1[%c0, %c0_0] : memref<96x144xbf16, #tpu.memory_space<vmem>>, vector<96x144xbf16>
    %c0_1 = arith.constant 0 : index
    %c0_2 = arith.constant 0 : index
    %1 = vector.load %arg2[%c0_1, %c0_2] : memref<144x24xbf16, #tpu.memory_space<vmem>>, vector<144x24xbf16>
    %cst = arith.constant dense<0.000000e+00> : vector<96x24xf32>
    %2 = tpu.matmul %0, %1, %cst {dimension_numbers = #tpu.dot_dimension_numbers<[1], [0], [0], [1], [0, 0, 1, 1], [], []>} : vector<96x144xbf16>, vector<144x24xbf16>, vector<96x24xf32> -> vector<96x24xf32>
    %c0_3 = arith.constant 0 : index
    %c0_4 = arith.constant 0 : index
    %3 = vector.load %arg3[%c0_3, %c0_4] : memref<1x24xf32, #tpu.memory_space<vmem>>, vector<1x24xf32>
    %4 = vector.broadcast %3 : vector<1x24xf32> to vector<96x24xf32>
    %5 = arith.addf %2, %4 : vector<96x24xf32>
    %cst_5 = arith.constant 0.000000e+00 : f32
    %6 = vector.broadcast %cst_5 : f32 to vector<96x24xf32>
    %7 = arith.cmpf oge, %5, %6 : vector<96x24xf32>
    %cst_6 = arith.constant 2.000000e-01 : f32
    %8 = vector.broadcast %cst_6 : f32 to vector<96x24xf32>
    %9 = arith.mulf %8, %5 : vector<96x24xf32>
    %10 = arith.select %7, %5, %9 : vector<96x24xi1>, vector<96x24xf32>
    %11 = arith.truncf %10 : vector<96x24xf32> to vector<96x24xbf16>
    %c0_7 = arith.constant 0 : index
    %c0_8 = arith.constant 0 : index
    %12 = vector.load %arg4[%c0_7, %c0_8] : memref<96x24xbf16, #tpu.memory_space<vmem>>, vector<96x24xbf16>
    tpu.vector_store %arg4[%c0_7, %c0_8], %11 {strides = array<i32>} : memref<96x24xbf16, #tpu.memory_space<vmem>>, vector<96x24xbf16>,
    return
  }
  func.func @transform_0(%arg0: i32) -> (i32, i32) {
    %c0_i32 = arith.constant 0 : i32
    %c0_i32_0 = arith.constant 0 : i32
    return %arg0, %c0_i32 : i32, i32
  }
  func.func @transform_1(%arg0: i32) -> (i32, i32) {
    %c0_i32 = arith.constant 0 : i32
    %c0_i32_0 = arith.constant 0 : i32
    %c0_i32_1 = arith.constant 0 : i32
    return %c0_i32, %c0_i32_0 : i32, i32
  }
  func.func @transform_2(%arg0: i32) -> (i32, i32) {
    %c0_i32 = arith.constant 0 : i32
    %c0_i32_0 = arith.constant 0 : i32
    %c0_i32_1 = arith.constant 0 : i32
    return %c0_i32, %c0_i32_0 : i32, i32
  }
  func.func @transform_3(%arg0: i32) -> (i32, i32) {
    %c0_i32 = arith.constant 0 : i32
    %c0_i32_0 = arith.constant 0 : i32
    return %arg0, %c0_i32 : i32, i32
  }
}

module attributes {stable_mosaic.version = 11 : i64} {
  func.func @_mm_kernel(%arg0: i32, %arg1: memref<32x216xbf16, #tpu.memory_space<vmem>>, %arg2: memref<216x32xbf16, #tpu.memory_space<vmem>>, %arg3: memref<1x32xf32, #tpu.memory_space<vmem>>, %arg4: memref<32x32xbf16, #tpu.memory_space<vmem>>) attributes {dimension_semantics = [#tpu.dimension_semantics<parallel>], iteration_bounds = array<i64: 1>, scalar_prefetch = 0 : i64, scratch_operands = 0 : i64, tpu.core_type = #tpu.core_type<tc>, window_params = [{transform_indices = @transform_0, window_bounds = array<i64: 32, 216>}, {pipeline_mode = #tpu.pipeline_mode<synchronous>, transform_indices = @transform_1, window_bounds = array<i64: 216, 32>}, {pipeline_mode = #tpu.pipeline_mode<synchronous>, transform_indices = @transform_2, window_bounds = array<i64: 1, 32>}, {transform_indices = @transform_3, window_bounds = array<i64: 32, 32>}]} {
    %c0 = arith.constant 0 : index
    %c0_0 = arith.constant 0 : index
    %0 = vector.load %arg1[%c0, %c0_0] : memref<32x216xbf16, #tpu.memory_space<vmem>>, vector<32x216xbf16>
    %c0_1 = arith.constant 0 : index
    %c0_2 = arith.constant 0 : index
    %1 = vector.load %arg2[%c0_1, %c0_2] : memref<216x32xbf16, #tpu.memory_space<vmem>>, vector<216x32xbf16>
    %cst = arith.constant dense<0.000000e+00> : vector<32x32xf32>
    %2 = tpu.matmul %0, %1, %cst {dimension_numbers = #tpu.dot_dimension_numbers<[1], [0], [0], [1], [0, 0, 1, 1], [], []>} : vector<32x216xbf16>, vector<216x32xbf16>, vector<32x32xf32> -> vector<32x32xf32>
    %c0_3 = arith.constant 0 : index
    %c0_4 = arith.constant 0 : index
    %3 = vector.load %arg3[%c0_3, %c0_4] : memref<1x32xf32, #tpu.memory_space<vmem>>, vector<1x32xf32>
    %4 = vector.broadcast %3 : vector<1x32xf32> to vector<32x32xf32>
    %5 = arith.addf %2, %4 : vector<32x32xf32>
    %cst_5 = arith.constant 0.000000e+00 : f32
    %6 = vector.broadcast %cst_5 : f32 to vector<32x32xf32>
    %7 = arith.cmpf oge, %5, %6 : vector<32x32xf32>
    %cst_6 = arith.constant 2.000000e-01 : f32
    %8 = vector.broadcast %cst_6 : f32 to vector<32x32xf32>
    %9 = arith.mulf %8, %5 : vector<32x32xf32>
    %10 = arith.select %7, %5, %9 : vector<32x32xi1>, vector<32x32xf32>
    %11 = arith.truncf %10 : vector<32x32xf32> to vector<32x32xbf16>
    %c0_7 = arith.constant 0 : index
    %c0_8 = arith.constant 0 : index
    %12 = vector.load %arg4[%c0_7, %c0_8] : memref<32x32xbf16, #tpu.memory_space<vmem>>, vector<32x32xbf16>
    tpu.vector_store %arg4[%c0_7, %c0_8], %11 {strides = array<i32>} : memref<32x32xbf16, #tpu.memory_space<vmem>>, vector<32x32xbf16>,
    return
  }
  func.func @transform_0(%arg0: i32) -> (i32, i32) {
    %c0_i32 = arith.constant 0 : i32
    %c0_i32_0 = arith.constant 0 : i32
    return %arg0, %c0_i32 : i32, i32
  }
  func.func @transform_1(%arg0: i32) -> (i32, i32) {
    %c0_i32 = arith.constant 0 : i32
    %c0_i32_0 = arith.constant 0 : i32
    %c0_i32_1 = arith.constant 0 : i32
    return %c0_i32, %c0_i32_0 : i32, i32
  }
  func.func @transform_2(%arg0: i32) -> (i32, i32) {
    %c0_i32 = arith.constant 0 : i32
    %c0_i32_0 = arith.constant 0 : i32
    %c0_i32_1 = arith.constant 0 : i32
    return %c0_i32, %c0_i32_0 : i32, i32
  }
  func.func @transform_3(%arg0: i32) -> (i32, i32) {
    %c0_i32 = arith.constant 0 : i32
    %c0_i32_0 = arith.constant 0 : i32
    return %arg0, %c0_i32 : i32, i32
  }
}

module attributes {stable_mosaic.version = 11 : i64} {
  func.func @_mm_kernel(%arg0: i32, %arg1: memref<32x288xbf16, #tpu.memory_space<vmem>>, %arg2: memref<288x32xbf16, #tpu.memory_space<vmem>>, %arg3: memref<1x32xf32, #tpu.memory_space<vmem>>, %arg4: memref<32x32xbf16, #tpu.memory_space<vmem>>) attributes {dimension_semantics = [#tpu.dimension_semantics<parallel>], iteration_bounds = array<i64: 1>, scalar_prefetch = 0 : i64, scratch_operands = 0 : i64, tpu.core_type = #tpu.core_type<tc>, window_params = [{transform_indices = @transform_0, window_bounds = array<i64: 32, 288>}, {pipeline_mode = #tpu.pipeline_mode<synchronous>, transform_indices = @transform_1, window_bounds = array<i64: 288, 32>}, {pipeline_mode = #tpu.pipeline_mode<synchronous>, transform_indices = @transform_2, window_bounds = array<i64: 1, 32>}, {transform_indices = @transform_3, window_bounds = array<i64: 32, 32>}]} {
    %c0 = arith.constant 0 : index
    %c0_0 = arith.constant 0 : index
    %0 = vector.load %arg1[%c0, %c0_0] : memref<32x288xbf16, #tpu.memory_space<vmem>>, vector<32x288xbf16>
    %c0_1 = arith.constant 0 : index
    %c0_2 = arith.constant 0 : index
    %1 = vector.load %arg2[%c0_1, %c0_2] : memref<288x32xbf16, #tpu.memory_space<vmem>>, vector<288x32xbf16>
    %cst = arith.constant dense<0.000000e+00> : vector<32x32xf32>
    %2 = tpu.matmul %0, %1, %cst {dimension_numbers = #tpu.dot_dimension_numbers<[1], [0], [0], [1], [0, 0, 1, 1], [], []>} : vector<32x288xbf16>, vector<288x32xbf16>, vector<32x32xf32> -> vector<32x32xf32>
    %c0_3 = arith.constant 0 : index
    %c0_4 = arith.constant 0 : index
    %3 = vector.load %arg3[%c0_3, %c0_4] : memref<1x32xf32, #tpu.memory_space<vmem>>, vector<1x32xf32>
    %4 = vector.broadcast %3 : vector<1x32xf32> to vector<32x32xf32>
    %5 = arith.addf %2, %4 : vector<32x32xf32>
    %cst_5 = arith.constant 0.000000e+00 : f32
    %6 = vector.broadcast %cst_5 : f32 to vector<32x32xf32>
    %7 = arith.cmpf oge, %5, %6 : vector<32x32xf32>
    %cst_6 = arith.constant 2.000000e-01 : f32
    %8 = vector.broadcast %cst_6 : f32 to vector<32x32xf32>
    %9 = arith.mulf %8, %5 : vector<32x32xf32>
    %10 = arith.select %7, %5, %9 : vector<32x32xi1>, vector<32x32xf32>
    %11 = arith.truncf %10 : vector<32x32xf32> to vector<32x32xbf16>
    %c0_7 = arith.constant 0 : index
    %c0_8 = arith.constant 0 : index
    %12 = vector.load %arg4[%c0_7, %c0_8] : memref<32x32xbf16, #tpu.memory_space<vmem>>, vector<32x32xbf16>
    tpu.vector_store %arg4[%c0_7, %c0_8], %11 {strides = array<i32>} : memref<32x32xbf16, #tpu.memory_space<vmem>>, vector<32x32xbf16>,
    return
  }
  func.func @transform_0(%arg0: i32) -> (i32, i32) {
    %c0_i32 = arith.constant 0 : i32
    %c0_i32_0 = arith.constant 0 : i32
    return %arg0, %c0_i32 : i32, i32
  }
  func.func @transform_1(%arg0: i32) -> (i32, i32) {
    %c0_i32 = arith.constant 0 : i32
    %c0_i32_0 = arith.constant 0 : i32
    %c0_i32_1 = arith.constant 0 : i32
    return %c0_i32, %c0_i32_0 : i32, i32
  }
  func.func @transform_2(%arg0: i32) -> (i32, i32) {
    %c0_i32 = arith.constant 0 : i32
    %c0_i32_0 = arith.constant 0 : i32
    %c0_i32_1 = arith.constant 0 : i32
    return %c0_i32, %c0_i32_0 : i32, i32
  }
  func.func @transform_3(%arg0: i32) -> (i32, i32) {
    %c0_i32 = arith.constant 0 : i32
    %c0_i32_0 = arith.constant 0 : i32
    return %arg0, %c0_i32 : i32, i32
  }
}

module attributes {stable_mosaic.version = 11 : i64} {
  func.func @_mm_kernel(%arg0: i32, %arg1: memref<32x288xbf16, #tpu.memory_space<vmem>>, %arg2: memref<288x16xbf16, #tpu.memory_space<vmem>>, %arg3: memref<1x16xf32, #tpu.memory_space<vmem>>, %arg4: memref<32x16xbf16, #tpu.memory_space<vmem>>) attributes {dimension_semantics = [#tpu.dimension_semantics<parallel>], iteration_bounds = array<i64: 1>, scalar_prefetch = 0 : i64, scratch_operands = 0 : i64, tpu.core_type = #tpu.core_type<tc>, window_params = [{transform_indices = @transform_0, window_bounds = array<i64: 32, 288>}, {pipeline_mode = #tpu.pipeline_mode<synchronous>, transform_indices = @transform_1, window_bounds = array<i64: 288, 16>}, {pipeline_mode = #tpu.pipeline_mode<synchronous>, transform_indices = @transform_2, window_bounds = array<i64: 1, 16>}, {transform_indices = @transform_3, window_bounds = array<i64: 32, 16>}]} {
    %c0 = arith.constant 0 : index
    %c0_0 = arith.constant 0 : index
    %0 = vector.load %arg1[%c0, %c0_0] : memref<32x288xbf16, #tpu.memory_space<vmem>>, vector<32x288xbf16>
    %c0_1 = arith.constant 0 : index
    %c0_2 = arith.constant 0 : index
    %1 = vector.load %arg2[%c0_1, %c0_2] : memref<288x16xbf16, #tpu.memory_space<vmem>>, vector<288x16xbf16>
    %cst = arith.constant dense<0.000000e+00> : vector<32x16xf32>
    %2 = tpu.matmul %0, %1, %cst {dimension_numbers = #tpu.dot_dimension_numbers<[1], [0], [0], [1], [0, 0, 1, 1], [], []>} : vector<32x288xbf16>, vector<288x16xbf16>, vector<32x16xf32> -> vector<32x16xf32>
    %c0_3 = arith.constant 0 : index
    %c0_4 = arith.constant 0 : index
    %3 = vector.load %arg3[%c0_3, %c0_4] : memref<1x16xf32, #tpu.memory_space<vmem>>, vector<1x16xf32>
    %4 = vector.broadcast %3 : vector<1x16xf32> to vector<32x16xf32>
    %5 = arith.addf %2, %4 : vector<32x16xf32>
    %cst_5 = arith.constant 0.000000e+00 : f32
    %6 = vector.broadcast %cst_5 : f32 to vector<32x16xf32>
    %7 = arith.cmpf oge, %5, %6 : vector<32x16xf32>
    %cst_6 = arith.constant 2.000000e-01 : f32
    %8 = vector.broadcast %cst_6 : f32 to vector<32x16xf32>
    %9 = arith.mulf %8, %5 : vector<32x16xf32>
    %10 = arith.select %7, %5, %9 : vector<32x16xi1>, vector<32x16xf32>
    %11 = arith.truncf %10 : vector<32x16xf32> to vector<32x16xbf16>
    %c0_7 = arith.constant 0 : index
    %c0_8 = arith.constant 0 : index
    %12 = vector.load %arg4[%c0_7, %c0_8] : memref<32x16xbf16, #tpu.memory_space<vmem>>, vector<32x16xbf16>
    tpu.vector_store %arg4[%c0_7, %c0_8], %11 {strides = array<i32>} : memref<32x16xbf16, #tpu.memory_space<vmem>>, vector<32x16xbf16>,
    return
  }
  func.func @transform_0(%arg0: i32) -> (i32, i32) {
    %c0_i32 = arith.constant 0 : i32
    %c0_i32_0 = arith.constant 0 : i32
    return %arg0, %c0_i32 : i32, i32
  }
  func.func @transform_1(%arg0: i32) -> (i32, i32) {
    %c0_i32 = arith.constant 0 : i32
    %c0_i32_0 = arith.constant 0 : i32
    %c0_i32_1 = arith.constant 0 : i32
    return %c0_i32, %c0_i32_0 : i32, i32
  }
  func.func @transform_2(%arg0: i32) -> (i32, i32) {
    %c0_i32 = arith.constant 0 : i32
    %c0_i32_0 = arith.constant 0 : i32
    %c0_i32_1 = arith.constant 0 : i32
    return %c0_i32, %c0_i32_0 : i32, i32
  }
  func.func @transform_3(%arg0: i32) -> (i32, i32) {
    %c0_i32 = arith.constant 0 : i32
    %c0_i32_0 = arith.constant 0 : i32
    return %arg0, %c0_i32 : i32, i32
  }
}

module attributes {stable_mosaic.version = 11 : i64} {
  func.func @_mm_kernel(%arg0: i32, %arg1: memref<96x144xbf16, #tpu.memory_space<vmem>>, %arg2: memref<144x8xbf16, #tpu.memory_space<vmem>>, %arg3: memref<1x8xf32, #tpu.memory_space<vmem>>, %arg4: memref<96x8xbf16, #tpu.memory_space<vmem>>) attributes {dimension_semantics = [#tpu.dimension_semantics<parallel>], iteration_bounds = array<i64: 1>, scalar_prefetch = 0 : i64, scratch_operands = 0 : i64, tpu.core_type = #tpu.core_type<tc>, window_params = [{transform_indices = @transform_0, window_bounds = array<i64: 96, 144>}, {pipeline_mode = #tpu.pipeline_mode<synchronous>, transform_indices = @transform_1, window_bounds = array<i64: 144, 8>}, {pipeline_mode = #tpu.pipeline_mode<synchronous>, transform_indices = @transform_2, window_bounds = array<i64: 1, 8>}, {transform_indices = @transform_3, window_bounds = array<i64: 96, 8>}]} {
    %c0 = arith.constant 0 : index
    %c0_0 = arith.constant 0 : index
    %0 = vector.load %arg1[%c0, %c0_0] : memref<96x144xbf16, #tpu.memory_space<vmem>>, vector<96x144xbf16>
    %c0_1 = arith.constant 0 : index
    %c0_2 = arith.constant 0 : index
    %1 = vector.load %arg2[%c0_1, %c0_2] : memref<144x8xbf16, #tpu.memory_space<vmem>>, vector<144x8xbf16>
    %cst = arith.constant dense<0.000000e+00> : vector<96x8xf32>
    %2 = tpu.matmul %0, %1, %cst {dimension_numbers = #tpu.dot_dimension_numbers<[1], [0], [0], [1], [0, 0, 1, 1], [], []>} : vector<96x144xbf16>, vector<144x8xbf16>, vector<96x8xf32> -> vector<96x8xf32>
    %c0_3 = arith.constant 0 : index
    %c0_4 = arith.constant 0 : index
    %3 = vector.load %arg3[%c0_3, %c0_4] : memref<1x8xf32, #tpu.memory_space<vmem>>, vector<1x8xf32>
    %4 = vector.broadcast %3 : vector<1x8xf32> to vector<96x8xf32>
    %5 = arith.addf %2, %4 : vector<96x8xf32>
    %cst_5 = arith.constant 0.000000e+00 : f32
    %6 = vector.broadcast %cst_5 : f32 to vector<96x8xf32>
    %7 = arith.cmpf oge, %5, %6 : vector<96x8xf32>
    %cst_6 = arith.constant 2.000000e-01 : f32
    %8 = vector.broadcast %cst_6 : f32 to vector<96x8xf32>
    %9 = arith.mulf %8, %5 : vector<96x8xf32>
    %10 = arith.select %7, %5, %9 : vector<96x8xi1>, vector<96x8xf32>
    %11 = arith.truncf %10 : vector<96x8xf32> to vector<96x8xbf16>
    %c0_7 = arith.constant 0 : index
    %c0_8 = arith.constant 0 : index
    %12 = vector.load %arg4[%c0_7, %c0_8] : memref<96x8xbf16, #tpu.memory_space<vmem>>, vector<96x8xbf16>
    tpu.vector_store %arg4[%c0_7, %c0_8], %11 {strides = array<i32>} : memref<96x8xbf16, #tpu.memory_space<vmem>>, vector<96x8xbf16>,
    return
  }
  func.func @transform_0(%arg0: i32) -> (i32, i32) {
    %c0_i32 = arith.constant 0 : i32
    %c0_i32_0 = arith.constant 0 : i32
    return %arg0, %c0_i32 : i32, i32
  }
  func.func @transform_1(%arg0: i32) -> (i32, i32) {
    %c0_i32 = arith.constant 0 : i32
    %c0_i32_0 = arith.constant 0 : i32
    %c0_i32_1 = arith.constant 0 : i32
    return %c0_i32, %c0_i32_0 : i32, i32
  }
  func.func @transform_2(%arg0: i32) -> (i32, i32) {
    %c0_i32 = arith.constant 0 : i32
    %c0_i32_0 = arith.constant 0 : i32
    %c0_i32_1 = arith.constant 0 : i32
    return %c0_i32, %c0_i32_0 : i32, i32
  }
  func.func @transform_3(%arg0: i32) -> (i32, i32) {
    %c0_i32 = arith.constant 0 : i32
    %c0_i32_0 = arith.constant 0 : i32
    return %arg0, %c0_i32 : i32, i32
  }
}

module attributes {stable_mosaic.version = 11 : i64} {
  func.func @_mm_kernel(%arg0: i32, %arg1: memref<96x72xbf16, #tpu.memory_space<vmem>>, %arg2: memref<72x1xbf16, #tpu.memory_space<vmem>>, %arg3: memref<1x1xf32, #tpu.memory_space<vmem>>, %arg4: memref<96x1xf32, #tpu.memory_space<vmem>>) attributes {dimension_semantics = [#tpu.dimension_semantics<parallel>], iteration_bounds = array<i64: 1>, scalar_prefetch = 0 : i64, scratch_operands = 0 : i64, tpu.core_type = #tpu.core_type<tc>, window_params = [{transform_indices = @transform_0, window_bounds = array<i64: 96, 72>}, {pipeline_mode = #tpu.pipeline_mode<synchronous>, transform_indices = @transform_1, window_bounds = array<i64: 72, 1>}, {pipeline_mode = #tpu.pipeline_mode<synchronous>, transform_indices = @transform_2, window_bounds = array<i64: 1, 1>}, {transform_indices = @transform_3, window_bounds = array<i64: 96, 1>}]} {
    %c0 = arith.constant 0 : index
    %c0_0 = arith.constant 0 : index
    %0 = vector.load %arg1[%c0, %c0_0] : memref<96x72xbf16, #tpu.memory_space<vmem>>, vector<96x72xbf16>
    %c0_1 = arith.constant 0 : index
    %c0_2 = arith.constant 0 : index
    %1 = vector.load %arg2[%c0_1, %c0_2] : memref<72x1xbf16, #tpu.memory_space<vmem>>, vector<72x1xbf16>
    %cst = arith.constant dense<0.000000e+00> : vector<96x1xf32>
    %2 = tpu.matmul %0, %1, %cst {dimension_numbers = #tpu.dot_dimension_numbers<[1], [0], [0], [1], [0, 0, 1, 1], [], []>} : vector<96x72xbf16>, vector<72x1xbf16>, vector<96x1xf32> -> vector<96x1xf32>
    %c0_3 = arith.constant 0 : index
    %c0_4 = arith.constant 0 : index
    %3 = vector.load %arg3[%c0_3, %c0_4] : memref<1x1xf32, #tpu.memory_space<vmem>>, vector<1x1xf32>
    %4 = vector.broadcast %3 : vector<1x1xf32> to vector<96x1xf32>
    %5 = arith.addf %2, %4 : vector<96x1xf32>
    %c0_5 = arith.constant 0 : index
    %c0_6 = arith.constant 0 : index
    %6 = vector.load %arg4[%c0_5, %c0_6] : memref<96x1xf32, #tpu.memory_space<vmem>>, vector<96x1xf32>
    tpu.vector_store %arg4[%c0_5, %c0_6], %5 {strides = array<i32>} : memref<96x1xf32, #tpu.memory_space<vmem>>, vector<96x1xf32>,
    return
  }
  func.func @transform_0(%arg0: i32) -> (i32, i32) {
    %c0_i32 = arith.constant 0 : i32
    %c0_i32_0 = arith.constant 0 : i32
    return %arg0, %c0_i32 : i32, i32
  }
  func.func @transform_1(%arg0: i32) -> (i32, i32) {
    %c0_i32 = arith.constant 0 : i32
    %c0_i32_0 = arith.constant 0 : i32
    %c0_i32_1 = arith.constant 0 : i32
    return %c0_i32, %c0_i32_0 : i32, i32
  }
  func.func @transform_2(%arg0: i32) -> (i32, i32) {
    %c0_i32 = arith.constant 0 : i32
    %c0_i32_0 = arith.constant 0 : i32
    %c0_i32_1 = arith.constant 0 : i32
    return %c0_i32, %c0_i32_0 : i32, i32
  }
  func.func @transform_3(%arg0: i32) -> (i32, i32) {
    %c0_i32 = arith.constant 0 : i32
    %c0_i32_0 = arith.constant 0 : i32
    return %arg0, %c0_i32 : i32, i32
  }
}

module attributes {stable_mosaic.version = 11 : i64} {
  func.func @_mm_kernel(%arg0: i32, %arg1: memref<128x576xbf16, #tpu.memory_space<vmem>>, %arg2: memref<576x16xbf16, #tpu.memory_space<vmem>>, %arg3: memref<1x16xf32, #tpu.memory_space<vmem>>, %arg4: memref<128x16xbf16, #tpu.memory_space<vmem>>) attributes {dimension_semantics = [#tpu.dimension_semantics<parallel>], iteration_bounds = array<i64: 1>, scalar_prefetch = 0 : i64, scratch_operands = 0 : i64, tpu.core_type = #tpu.core_type<tc>, window_params = [{transform_indices = @transform_0, window_bounds = array<i64: 128, 576>}, {pipeline_mode = #tpu.pipeline_mode<synchronous>, transform_indices = @transform_1, window_bounds = array<i64: 576, 16>}, {pipeline_mode = #tpu.pipeline_mode<synchronous>, transform_indices = @transform_2, window_bounds = array<i64: 1, 16>}, {transform_indices = @transform_3, window_bounds = array<i64: 128, 16>}]} {
    %c0 = arith.constant 0 : index
    %c0_0 = arith.constant 0 : index
    %0 = vector.load %arg1[%c0, %c0_0] : memref<128x576xbf16, #tpu.memory_space<vmem>>, vector<128x576xbf16>
    %c0_1 = arith.constant 0 : index
    %c0_2 = arith.constant 0 : index
    %1 = vector.load %arg2[%c0_1, %c0_2] : memref<576x16xbf16, #tpu.memory_space<vmem>>, vector<576x16xbf16>
    %cst = arith.constant dense<0.000000e+00> : vector<128x16xf32>
    %2 = tpu.matmul %0, %1, %cst {dimension_numbers = #tpu.dot_dimension_numbers<[1], [0], [0], [1], [0, 0, 1, 1], [], []>} : vector<128x576xbf16>, vector<576x16xbf16>, vector<128x16xf32> -> vector<128x16xf32>
    %c0_3 = arith.constant 0 : index
    %c0_4 = arith.constant 0 : index
    %3 = vector.load %arg3[%c0_3, %c0_4] : memref<1x16xf32, #tpu.memory_space<vmem>>, vector<1x16xf32>
    %4 = vector.broadcast %3 : vector<1x16xf32> to vector<128x16xf32>
    %5 = arith.addf %2, %4 : vector<128x16xf32>
    %cst_5 = arith.constant 0.000000e+00 : f32
    %6 = vector.broadcast %cst_5 : f32 to vector<128x16xf32>
    %7 = arith.cmpf oge, %5, %6 : vector<128x16xf32>
    %cst_6 = arith.constant 2.000000e-01 : f32
    %8 = vector.broadcast %cst_6 : f32 to vector<128x16xf32>
    %9 = arith.mulf %8, %5 : vector<128x16xf32>
    %10 = arith.select %7, %5, %9 : vector<128x16xi1>, vector<128x16xf32>
    %11 = arith.truncf %10 : vector<128x16xf32> to vector<128x16xbf16>
    %c0_7 = arith.constant 0 : index
    %c0_8 = arith.constant 0 : index
    %12 = vector.load %arg4[%c0_7, %c0_8] : memref<128x16xbf16, #tpu.memory_space<vmem>>, vector<128x16xbf16>
    tpu.vector_store %arg4[%c0_7, %c0_8], %11 {strides = array<i32>} : memref<128x16xbf16, #tpu.memory_space<vmem>>, vector<128x16xbf16>,
    return
  }
  func.func @transform_0(%arg0: i32) -> (i32, i32) {
    %c0_i32 = arith.constant 0 : i32
    %c0_i32_0 = arith.constant 0 : i32
    return %arg0, %c0_i32 : i32, i32
  }
  func.func @transform_1(%arg0: i32) -> (i32, i32) {
    %c0_i32 = arith.constant 0 : i32
    %c0_i32_0 = arith.constant 0 : i32
    %c0_i32_1 = arith.constant 0 : i32
    return %c0_i32, %c0_i32_0 : i32, i32
  }
  func.func @transform_2(%arg0: i32) -> (i32, i32) {
    %c0_i32 = arith.constant 0 : i32
    %c0_i32_0 = arith.constant 0 : i32
    %c0_i32_1 = arith.constant 0 : i32
    return %c0_i32, %c0_i32_0 : i32, i32
  }
  func.func @transform_3(%arg0: i32) -> (i32, i32) {
    %c0_i32 = arith.constant 0 : i32
    %c0_i32_0 = arith.constant 0 : i32
    return %arg0, %c0_i32 : i32, i32
  }
}

module attributes {stable_mosaic.version = 11 : i64} {
  func.func @_mm_kernel(%arg0: i32, %arg1: memref<128x144xbf16, #tpu.memory_space<vmem>>, %arg2: memref<144x16xbf16, #tpu.memory_space<vmem>>, %arg3: memref<1x16xf32, #tpu.memory_space<vmem>>, %arg4: memref<128x16xbf16, #tpu.memory_space<vmem>>) attributes {dimension_semantics = [#tpu.dimension_semantics<parallel>], iteration_bounds = array<i64: 1>, scalar_prefetch = 0 : i64, scratch_operands = 0 : i64, tpu.core_type = #tpu.core_type<tc>, window_params = [{transform_indices = @transform_0, window_bounds = array<i64: 128, 144>}, {pipeline_mode = #tpu.pipeline_mode<synchronous>, transform_indices = @transform_1, window_bounds = array<i64: 144, 16>}, {pipeline_mode = #tpu.pipeline_mode<synchronous>, transform_indices = @transform_2, window_bounds = array<i64: 1, 16>}, {transform_indices = @transform_3, window_bounds = array<i64: 128, 16>}]} {
    %c0 = arith.constant 0 : index
    %c0_0 = arith.constant 0 : index
    %0 = vector.load %arg1[%c0, %c0_0] : memref<128x144xbf16, #tpu.memory_space<vmem>>, vector<128x144xbf16>
    %c0_1 = arith.constant 0 : index
    %c0_2 = arith.constant 0 : index
    %1 = vector.load %arg2[%c0_1, %c0_2] : memref<144x16xbf16, #tpu.memory_space<vmem>>, vector<144x16xbf16>
    %cst = arith.constant dense<0.000000e+00> : vector<128x16xf32>
    %2 = tpu.matmul %0, %1, %cst {dimension_numbers = #tpu.dot_dimension_numbers<[1], [0], [0], [1], [0, 0, 1, 1], [], []>} : vector<128x144xbf16>, vector<144x16xbf16>, vector<128x16xf32> -> vector<128x16xf32>
    %c0_3 = arith.constant 0 : index
    %c0_4 = arith.constant 0 : index
    %3 = vector.load %arg3[%c0_3, %c0_4] : memref<1x16xf32, #tpu.memory_space<vmem>>, vector<1x16xf32>
    %4 = vector.broadcast %3 : vector<1x16xf32> to vector<128x16xf32>
    %5 = arith.addf %2, %4 : vector<128x16xf32>
    %cst_5 = arith.constant 0.000000e+00 : f32
    %6 = vector.broadcast %cst_5 : f32 to vector<128x16xf32>
    %7 = arith.cmpf oge, %5, %6 : vector<128x16xf32>
    %cst_6 = arith.constant 2.000000e-01 : f32
    %8 = vector.broadcast %cst_6 : f32 to vector<128x16xf32>
    %9 = arith.mulf %8, %5 : vector<128x16xf32>
    %10 = arith.select %7, %5, %9 : vector<128x16xi1>, vector<128x16xf32>
    %11 = arith.truncf %10 : vector<128x16xf32> to vector<128x16xbf16>
    %c0_7 = arith.constant 0 : index
    %c0_8 = arith.constant 0 : index
    %12 = vector.load %arg4[%c0_7, %c0_8] : memref<128x16xbf16, #tpu.memory_space<vmem>>, vector<128x16xbf16>
    tpu.vector_store %arg4[%c0_7, %c0_8], %11 {strides = array<i32>} : memref<128x16xbf16, #tpu.memory_space<vmem>>, vector<128x16xbf16>,
    return
  }
  func.func @transform_0(%arg0: i32) -> (i32, i32) {
    %c0_i32 = arith.constant 0 : i32
    %c0_i32_0 = arith.constant 0 : i32
    return %arg0, %c0_i32 : i32, i32
  }
  func.func @transform_1(%arg0: i32) -> (i32, i32) {
    %c0_i32 = arith.constant 0 : i32
    %c0_i32_0 = arith.constant 0 : i32
    %c0_i32_1 = arith.constant 0 : i32
    return %c0_i32, %c0_i32_0 : i32, i32
  }
  func.func @transform_2(%arg0: i32) -> (i32, i32) {
    %c0_i32 = arith.constant 0 : i32
    %c0_i32_0 = arith.constant 0 : i32
    %c0_i32_1 = arith.constant 0 : i32
    return %c0_i32, %c0_i32_0 : i32, i32
  }
  func.func @transform_3(%arg0: i32) -> (i32, i32) {
    %c0_i32 = arith.constant 0 : i32
    %c0_i32_0 = arith.constant 0 : i32
    return %arg0, %c0_i32 : i32, i32
  }
}

module attributes {stable_mosaic.version = 11 : i64} {
  func.func @_mm_kernel(%arg0: i32, %arg1: memref<512x288xbf16, #tpu.memory_space<vmem>>, %arg2: memref<288x8xbf16, #tpu.memory_space<vmem>>, %arg3: memref<1x8xf32, #tpu.memory_space<vmem>>, %arg4: memref<512x8xbf16, #tpu.memory_space<vmem>>) attributes {dimension_semantics = [#tpu.dimension_semantics<parallel>], iteration_bounds = array<i64: 1>, scalar_prefetch = 0 : i64, scratch_operands = 0 : i64, tpu.core_type = #tpu.core_type<tc>, window_params = [{transform_indices = @transform_0, window_bounds = array<i64: 512, 288>}, {pipeline_mode = #tpu.pipeline_mode<synchronous>, transform_indices = @transform_1, window_bounds = array<i64: 288, 8>}, {pipeline_mode = #tpu.pipeline_mode<synchronous>, transform_indices = @transform_2, window_bounds = array<i64: 1, 8>}, {transform_indices = @transform_3, window_bounds = array<i64: 512, 8>}]} {
    %c0 = arith.constant 0 : index
    %c0_0 = arith.constant 0 : index
    %0 = vector.load %arg1[%c0, %c0_0] : memref<512x288xbf16, #tpu.memory_space<vmem>>, vector<512x288xbf16>
    %c0_1 = arith.constant 0 : index
    %c0_2 = arith.constant 0 : index
    %1 = vector.load %arg2[%c0_1, %c0_2] : memref<288x8xbf16, #tpu.memory_space<vmem>>, vector<288x8xbf16>
    %cst = arith.constant dense<0.000000e+00> : vector<512x8xf32>
    %2 = tpu.matmul %0, %1, %cst {dimension_numbers = #tpu.dot_dimension_numbers<[1], [0], [0], [1], [0, 0, 1, 1], [], []>} : vector<512x288xbf16>, vector<288x8xbf16>, vector<512x8xf32> -> vector<512x8xf32>
    %c0_3 = arith.constant 0 : index
    %c0_4 = arith.constant 0 : index
    %3 = vector.load %arg3[%c0_3, %c0_4] : memref<1x8xf32, #tpu.memory_space<vmem>>, vector<1x8xf32>
    %4 = vector.broadcast %3 : vector<1x8xf32> to vector<512x8xf32>
    %5 = arith.addf %2, %4 : vector<512x8xf32>
    %cst_5 = arith.constant 0.000000e+00 : f32
    %6 = vector.broadcast %cst_5 : f32 to vector<512x8xf32>
    %7 = arith.cmpf oge, %5, %6 : vector<512x8xf32>
    %cst_6 = arith.constant 2.000000e-01 : f32
    %8 = vector.broadcast %cst_6 : f32 to vector<512x8xf32>
    %9 = arith.mulf %8, %5 : vector<512x8xf32>
    %10 = arith.select %7, %5, %9 : vector<512x8xi1>, vector<512x8xf32>
    %11 = arith.truncf %10 : vector<512x8xf32> to vector<512x8xbf16>
    %c0_7 = arith.constant 0 : index
    %c0_8 = arith.constant 0 : index
    %12 = vector.load %arg4[%c0_7, %c0_8] : memref<512x8xbf16, #tpu.memory_space<vmem>>, vector<512x8xbf16>
    tpu.vector_store %arg4[%c0_7, %c0_8], %11 {strides = array<i32>} : memref<512x8xbf16, #tpu.memory_space<vmem>>, vector<512x8xbf16>,
    return
  }
  func.func @transform_0(%arg0: i32) -> (i32, i32) {
    %c0_i32 = arith.constant 0 : i32
    %c0_i32_0 = arith.constant 0 : i32
    return %arg0, %c0_i32 : i32, i32
  }
  func.func @transform_1(%arg0: i32) -> (i32, i32) {
    %c0_i32 = arith.constant 0 : i32
    %c0_i32_0 = arith.constant 0 : i32
    %c0_i32_1 = arith.constant 0 : i32
    return %c0_i32, %c0_i32_0 : i32, i32
  }
  func.func @transform_2(%arg0: i32) -> (i32, i32) {
    %c0_i32 = arith.constant 0 : i32
    %c0_i32_0 = arith.constant 0 : i32
    %c0_i32_1 = arith.constant 0 : i32
    return %c0_i32, %c0_i32_0 : i32, i32
  }
  func.func @transform_3(%arg0: i32) -> (i32, i32) {
    %c0_i32 = arith.constant 0 : i32
    %c0_i32_0 = arith.constant 0 : i32
    return %arg0, %c0_i32 : i32, i32
  }
}

module attributes {stable_mosaic.version = 11 : i64} {
  func.func @_mm_kernel(%arg0: i32, %arg1: memref<512x72xbf16, #tpu.memory_space<vmem>>, %arg2: memref<72x4xbf16, #tpu.memory_space<vmem>>, %arg3: memref<1x4xf32, #tpu.memory_space<vmem>>, %arg4: memref<512x4xf32, #tpu.memory_space<vmem>>) attributes {dimension_semantics = [#tpu.dimension_semantics<parallel>], iteration_bounds = array<i64: 1>, scalar_prefetch = 0 : i64, scratch_operands = 0 : i64, tpu.core_type = #tpu.core_type<tc>, window_params = [{transform_indices = @transform_0, window_bounds = array<i64: 512, 72>}, {pipeline_mode = #tpu.pipeline_mode<synchronous>, transform_indices = @transform_1, window_bounds = array<i64: 72, 4>}, {pipeline_mode = #tpu.pipeline_mode<synchronous>, transform_indices = @transform_2, window_bounds = array<i64: 1, 4>}, {transform_indices = @transform_3, window_bounds = array<i64: 512, 4>}]} {
    %c0 = arith.constant 0 : index
    %c0_0 = arith.constant 0 : index
    %0 = vector.load %arg1[%c0, %c0_0] : memref<512x72xbf16, #tpu.memory_space<vmem>>, vector<512x72xbf16>
    %c0_1 = arith.constant 0 : index
    %c0_2 = arith.constant 0 : index
    %1 = vector.load %arg2[%c0_1, %c0_2] : memref<72x4xbf16, #tpu.memory_space<vmem>>, vector<72x4xbf16>
    %cst = arith.constant dense<0.000000e+00> : vector<512x4xf32>
    %2 = tpu.matmul %0, %1, %cst {dimension_numbers = #tpu.dot_dimension_numbers<[1], [0], [0], [1], [0, 0, 1, 1], [], []>} : vector<512x72xbf16>, vector<72x4xbf16>, vector<512x4xf32> -> vector<512x4xf32>
    %c0_3 = arith.constant 0 : index
    %c0_4 = arith.constant 0 : index
    %3 = vector.load %arg3[%c0_3, %c0_4] : memref<1x4xf32, #tpu.memory_space<vmem>>, vector<1x4xf32>
    %4 = vector.broadcast %3 : vector<1x4xf32> to vector<512x4xf32>
    %5 = arith.addf %2, %4 : vector<512x4xf32>
    %cst_5 = arith.constant 0.000000e+00 : f32
    %6 = vector.broadcast %cst_5 : f32 to vector<512x4xf32>
    %7 = arith.cmpf oge, %5, %6 : vector<512x4xf32>
    %cst_6 = arith.constant 2.000000e-01 : f32
    %8 = vector.broadcast %cst_6 : f32 to vector<512x4xf32>
    %9 = arith.mulf %8, %5 : vector<512x4xf32>
    %10 = arith.select %7, %5, %9 : vector<512x4xi1>, vector<512x4xf32>
    %c0_7 = arith.constant 0 : index
    %c0_8 = arith.constant 0 : index
    %11 = vector.load %arg4[%c0_7, %c0_8] : memref<512x4xf32, #tpu.memory_space<vmem>>, vector<512x4xf32>
    tpu.vector_store %arg4[%c0_7, %c0_8], %10 {strides = array<i32>} : memref<512x4xf32, #tpu.memory_space<vmem>>, vector<512x4xf32>,
    return
  }
  func.func @transform_0(%arg0: i32) -> (i32, i32) {
    %c0_i32 = arith.constant 0 : i32
    %c0_i32_0 = arith.constant 0 : i32
    return %arg0, %c0_i32 : i32, i32
  }
  func.func @transform_1(%arg0: i32) -> (i32, i32) {
    %c0_i32 = arith.constant 0 : i32
    %c0_i32_0 = arith.constant 0 : i32
    %c0_i32_1 = arith.constant 0 : i32
    return %c0_i32, %c0_i32_0 : i32, i32
  }
  func.func @transform_2(%arg0: i32) -> (i32, i32) {
    %c0_i32 = arith.constant 0 : i32
    %c0_i32_0 = arith.constant 0 : i32
    %c0_i32_1 = arith.constant 0 : i32
    return %c0_i32, %c0_i32_0 : i32, i32
  }
  func.func @transform_3(%arg0: i32) -> (i32, i32) {
    %c0_i32 = arith.constant 0 : i32
    %c0_i32_0 = arith.constant 0 : i32
    return %arg0, %c0_i32 : i32, i32
  }
}

module attributes {stable_mosaic.version = 11 : i64} {
  func.func @_mm_kernel(%arg0: i32, %arg1: memref<512x36xbf16, #tpu.memory_space<vmem>>, %arg2: memref<36x2xbf16, #tpu.memory_space<vmem>>, %arg3: memref<1x2xf32, #tpu.memory_space<vmem>>, %arg4: memref<512x2xf32, #tpu.memory_space<vmem>>) attributes {dimension_semantics = [#tpu.dimension_semantics<parallel>], iteration_bounds = array<i64: 1>, scalar_prefetch = 0 : i64, scratch_operands = 0 : i64, tpu.core_type = #tpu.core_type<tc>, window_params = [{transform_indices = @transform_0, window_bounds = array<i64: 512, 36>}, {pipeline_mode = #tpu.pipeline_mode<synchronous>, transform_indices = @transform_1, window_bounds = array<i64: 36, 2>}, {pipeline_mode = #tpu.pipeline_mode<synchronous>, transform_indices = @transform_2, window_bounds = array<i64: 1, 2>}, {transform_indices = @transform_3, window_bounds = array<i64: 512, 2>}]} {
    %c0 = arith.constant 0 : index
    %c0_0 = arith.constant 0 : index
    %0 = vector.load %arg1[%c0, %c0_0] : memref<512x36xbf16, #tpu.memory_space<vmem>>, vector<512x36xbf16>
    %c0_1 = arith.constant 0 : index
    %c0_2 = arith.constant 0 : index
    %1 = vector.load %arg2[%c0_1, %c0_2] : memref<36x2xbf16, #tpu.memory_space<vmem>>, vector<36x2xbf16>
    %cst = arith.constant dense<0.000000e+00> : vector<512x2xf32>
    %2 = tpu.matmul %0, %1, %cst {dimension_numbers = #tpu.dot_dimension_numbers<[1], [0], [0], [1], [0, 0, 1, 1], [], []>} : vector<512x36xbf16>, vector<36x2xbf16>, vector<512x2xf32> -> vector<512x2xf32>
    %c0_3 = arith.constant 0 : index
    %c0_4 = arith.constant 0 : index
    %3 = vector.load %arg3[%c0_3, %c0_4] : memref<1x2xf32, #tpu.memory_space<vmem>>, vector<1x2xf32>
    %4 = vector.broadcast %3 : vector<1x2xf32> to vector<512x2xf32>
    %5 = arith.addf %2, %4 : vector<512x2xf32>
    %c0_5 = arith.constant 0 : index
    %c0_6 = arith.constant 0 : index
    %6 = vector.load %arg4[%c0_5, %c0_6] : memref<512x2xf32, #tpu.memory_space<vmem>>, vector<512x2xf32>
    tpu.vector_store %arg4[%c0_5, %c0_6], %5 {strides = array<i32>} : memref<512x2xf32, #tpu.memory_space<vmem>>, vector<512x2xf32>,
    return
  }
  func.func @transform_0(%arg0: i32) -> (i32, i32) {
    %c0_i32 = arith.constant 0 : i32
    %c0_i32_0 = arith.constant 0 : i32
    return %arg0, %c0_i32 : i32, i32
  }
  func.func @transform_1(%arg0: i32) -> (i32, i32) {
    %c0_i32 = arith.constant 0 : i32
    %c0_i32_0 = arith.constant 0 : i32
    %c0_i32_1 = arith.constant 0 : i32
    return %c0_i32, %c0_i32_0 : i32, i32
  }
  func.func @transform_2(%arg0: i32) -> (i32, i32) {
    %c0_i32 = arith.constant 0 : i32
    %c0_i32_0 = arith.constant 0 : i32
    %c0_i32_1 = arith.constant 0 : i32
    return %c0_i32, %c0_i32_0 : i32, i32
  }
  func.func @transform_3(%arg0: i32) -> (i32, i32) {
    %c0_i32 = arith.constant 0 : i32
    %c0_i32_0 = arith.constant 0 : i32
    return %arg0, %c0_i32 : i32, i32
  }
}

</mosaic_0001>

<bundles_post_ra>
// kernel: tpu_custom_call.1
= control target key start
LH: loop header
LB: loop body
LE: loop exit
PB: predicated region body
PF: predicated region fallthrough
CT: control target
= control target key end

     0   :  { %s432_s0 = inlined_call_operand.vmem [shape: s32[2,4,16], index: 0, kind: input, shape index: {}]   ;;  %s433_s2 = inlined_call_operand.vmem [shape: f32[2,16,8], index: 2, kind: input, shape index: {}]   ;;  %s434_s3 = inlined_call_operand.vmem [shape: f32[2,16,8], index: 3, kind: output, shape index: {}]   ;;  %s435_s1 = inlined_call_operand.vmem [shape: f32[2,4,16], index: 1, kind: input, shape index: {}]  }
   0x1   :  { %s8_s14 = sshll.u32 %s432_s0, 4  ;;  %s12_s17 = sshll.u32 %s435_s1, 4  ;;  %s9_s14 = int_to_ptr.vmem [resolvable:$true] %s8_s14  ;;  %s13_s17 = int_to_ptr.vmem [resolvable:$true] %s12_s17 }
   0x2   :  { %s295_s18 = scalar_lea.vmem %s9_s14, 128  ;;  %p300_p1 = scmp.lt.s32.totalorder %s9_s14, %s9_s14 }
   0x3   :  { %p296_p0 = scmp.ne.s32.totalorder %s9_s14, %s295_s18  ;;  %p301_p2 = scmp.lt.s32.totalorder %s295_s18, %s295_s18 }
   0x5   :  { %p302_p3 = por %p301_p2, %p300_p1 }
   0x7   :  { %p303_p4 = pnand %p302_p3, %p296_p0 }
   0x9   :  { %306 = shalt.err (!%p303_p4)  }
   0xa   :  { %s337_s19 = smov [#allocation3]   ;;  %s307_s20 = scalar_lea.vmem %s13_s17, 128 }
   0xb   :  { %11 = dma.vmem_to_smem %s9_s14, 128, %s337_s19, [#allocation2] }
   0xc   :  { %p308_p5 = scmp.ne.s32.totalorder %s13_s17, %s307_s20  ;;  %p312_p6 = scmp.lt.s32.totalorder %s13_s17, %s13_s17 }
   0xd   :  { %p313_p7 = scmp.lt.s32.totalorder %s307_s20, %s307_s20 }
   0xf   :  { %p314_p8 = por %p313_p7, %p312_p6 }
  0x11   :  { %p315_p9 = pnand %p314_p8, %p308_p5 }
  0x13   :  { %318 = shalt.err (!%p315_p9)  }
  0x14   :  { %s338_s0 = smov [#allocation4]  }
  0x15   :  { %15 = dma.vmem_to_smem %s13_s17, 128, %s338_s0, [#allocation2] }
  0x16   :  { %327 = dma.done.wait [#allocation2], 256 }
  0x17   :  { %328 = vsyncadd [#allocation2], 4294967040 }
  0x18   :  { %17 = sfence }
  0x19   :  { %s366_s1 = smov 0  }
  0x1a LB: > { %s372_s21 = sadd.s32 4294967295, %s331_s1   ;;  %p262_p10 = scmp.ge.s32.totalorder %s331_s1, 1  ;;  %s331_s1 = sphi %s366_s1, %s23_s1  }
  0x1b   : > { %p99_p11 = scmp.lt.s32.totalorder %s331_s1, 3 }
  0x1d   : > { %p100_p12 = pnand %p262_p10, %p99_p11 }
  0x1e   : > { %p119_p13 = scmp.lt.s32.totalorder (!%p100_p12), %s372_s21, 1  ;;  %s390_s30 = smov (!%p100_p12), 0  }
  0x1f   : > { %103 = sbr.rel (%p100_p12) target bundleno = 88 (0x58), region = 24 }
  0x24   : > { %s120_s22 = scalar_select %p119_p13, %s372_s21, 1  ;;  %vm129_vm0 = vcmask 64512   ;;  %v339_v0 = vmov 0.0  }
  0x26   : > { %s274_s23 = sshll.u32 %s120_s22, 4 }
  0x27   : > { %s381_s26 = scalar_lea.vmem %s433_s2, %s274_s23  ;;  %s386_s29 = scalar_lea.vmem %s434_s3, %s274_s23 }
  0x28   : > { %130 = vst.msk [vmem:[%s386_s29] sm:$0xff] %vm129_vm0, %v339_v0  ;;  %131 = vst.msk [vmem:[%s386_s29 + $0x8] sm:$0xff] %vm129_vm0, %v339_v0 }
  0x29 LB: >> { %s396_s4 = sshll.u32 %s372_s21, 2  ;;  %s399_s5 = sshra.s32 %s335_s30, 7  ;;  %vm155_vm1 = vcmask 57344   ;;  %s335_s30 = sphi %s390_s30, %s137_s30  }
  0x2a   : >> { %s143_s6 = sadd.s32 %s396_s4, %s399_s5  ;;  %s404_s7 = sand.u32 127, %s335_s30 }
  0x2b   : >> { %s268_s8 = sshll.u32 %s143_s6, 7  ;;  %s138_s12 = scalar_lea.vmem %s381_s26, %s335_s30 }
  0x2c   : >> { %s147_s9 = sadd.s32 %s268_s8, %s404_s7  ;;  %s169_s13 = sadd.s32 2, %s399_s5  ;;  %v139_v1 = vld [vmem:[%s138_s12] sm:$0x1] }
  0x2d   : >> { %s148_s10 = sld [smem:[#allocation3 + %s147_s9]]  ;;  %s157_s14 = sadd.s32 1, %s399_s5 }
  0x2e   : >> { %s149_s11 = sld [smem:[#allocation4 + %s147_s9]]  ;;  %s158_s15 = sadd.s32 %s396_s4, %s157_s14 }
  0x2f   : >> { %s170_s17 = sadd.s32 %s396_s4, %s169_s13  ;;  %s269_s18 = sshll.u32 %s158_s15, 7 }
  0x30   : >> { %s160_s19 = sadd.s32 %s269_s18, %s404_s7  ;;  %s270_s20 = sshll.u32 %s170_s17, 7 }
  0x31   : >> { %s161_s0 = sld [smem:[#allocation3 + %s160_s19]]  ;;  %s172_s23 = sadd.s32 %s270_s20, %s404_s7 }
  0x32   : >> { %s162_s22 = sld [smem:[#allocation4 + %s160_s19]]  ;;  %s181_s24 = sadd.s32 3, %s399_s5 }
  0x33   : >> { %s150_s16 = scalar_lea.vmem %s386_s29, %s148_s10  ;;  %s174_s25 = sld [smem:[#allocation4 + %s172_s23]] }
  0x34   : >> { %v151_v2 = vld [vmem:[%s150_s16] sm:$0x1]  ;;  %v152_v3 = vstv %s149_s11  ;;  %s182_s27 = sadd.s32 %s396_s4, %s181_s24  ;;  %s173_s6 = sld [smem:[#allocation3 + %s172_s23]] }
  0x35   : >> { %v153_v4 = vmul.f32 %v152_v3, %v139_v1  ;;  %s271_s8 = sshll.u32 %s182_s27, 7  ;;  %s137_s30 = sadd.s32 1, %s335_s30  }
  0x36   : >> { %s184_s9 = sadd.s32 %s271_s8, %s404_s7  ;;  %p134_p0 = scmp.ge.s32.totalorder %s137_s30, 16  }
  0x37   : >> { %v154_v5 = vadd.f32 %v153_v4, %v151_v2  ;;  %s163_s28 = scalar_lea.vmem %s386_s29, %s161_s0  ;;  %s186_s10 = sld [smem:[#allocation4 + %s184_s9]] }
  0x38   : >> { %v165_v6 = vstv %s162_s22  ;;  %s185_s12 = sld [smem:[#allocation3 + %s184_s9]] }
  0x39   : >> { %156 = vst.msk [vmem:[%s150_s16] sm:$0x1] %vm155_vm1, %v154_v5  ;;  %v166_v7 = vmul.f32 %v165_v6, %v139_v1  ;;  %v177_v10 = vstv %s174_s25 }
  0x3a   : >> { %v178_v11 = vmul.f32 %v177_v10, %v139_v1  ;;  %s175_s11 = scalar_lea.vmem %s386_s29, %s173_s6 }
  0x3d   : >> { %v189_v14 = vstv %s186_s10 }
  0x3e   : >> { %s187_s4 = scalar_lea.vmem %s386_s29, %s185_s12  ;;  %v190_v15 = vmul.f32 %v189_v14, %v139_v1 }
  0x40   : >> { %v164_v8 = vld [vmem:[%s163_s28] sm:$0x1] }
  0x41   : >> { %v167_v9 = vadd.f32 %v166_v7, %v164_v8 }
  0x43   : >> { %168 = vst.msk [vmem:[%s163_s28] sm:$0x1] %vm155_vm1, %v167_v9 }
  0x4a   : >> { %v176_v12 = vld [vmem:[%s175_s11] sm:$0x1] }
  0x4b   : >> { %v179_v13 = vadd.f32 %v178_v11, %v176_v12 }
  0x4d   : >> { %180 = vst.msk [vmem:[%s175_s11] sm:$0x1] %vm155_vm1, %v179_v13 }
  0x53   : > { %136 = sbr.rel (!%p134_p0) target bundleno = 41 (0x29), region = 66 }
  0x54   : >> { %v188_v16 = vld [vmem:[%s187_s4] sm:$0x1] }
  0x55   : >> { %v191_v17 = vadd.f32 %v190_v15, %v188_v16 }
  0x57   : >> { %192 = vst.msk [vmem:[%s187_s4] sm:$0x1] %vm155_vm1, %v191_v17 }
  0x58 PF: > { %s23_s1 = sadd.s32 1, %s331_s1  }
  0x59   : > { %p20_p1 = scmp.ge.s32.totalorder %s23_s1, 4  }
  0x5b   :  { %22 = sbr.rel (!%p20_p1) target bundleno = 26 (0x1a), region = 77 }

// kernel: _lambda_.26
= control target key start
LH: loop header
LB: loop body
LE: loop exit
PB: predicated region body
PF: predicated region fallthrough
CT: control target
= control target key end

     0   :  { %s1458_s12 = smov 0   ;;  %s1700_s0 = inlined_call_operand.vmem [shape: bf16[1536,75], index: 0, kind: input, shape index: {}]   ;;  %s1701_s1 = inlined_call_operand.vmem [shape: bf16[75,8], index: 1, kind: input, shape index: {}]   ;;  %s1702_s2 = inlined_call_operand.vmem [shape: f32[1,8], index: 2, kind: input, shape index: {}]   ;;  %s1703_s3 = inlined_call_operand.vmem [shape: bf16[1536,8], index: 3, kind: output, shape index: {}]  }
   0x1 LB: > { %s1135_s13 = sadd.s32 4294967295, %s1435_s12   ;;  %p1139_p0 = scmp.ge.s32.totalorder %s1435_s12, 1  ;;  %s1435_s12 = sphi %s1458_s12, %s13_s12  }
   0x2   : > { %p138_p1 = scmp.lt.s32.totalorder %s1435_s12, 5 }
   0x4   : > { %p139_p2 = pnand %p1139_p0, %p138_p1 }
   0x5   : > { %s162_s18 = smul.u32 (!%p139_p2), 48, %s1135_s13 }
   0x6   : > { %142 = sbr.rel (%p139_p2) target bundleno = 295 (0x127), region = 32 }
   0x7   : > { %p163_p3 = scmp.lt.s32.totalorder (!%p139_p2), %s162_s18, 191 }
   0xb   : > { %v1400_v0 = vld [vmem:[%s1701_s1 + $0x20] sm:$0x3f]   ;;  %vm462_vm0 = vcmask 1044480   ;;  %vm463_vm1 = vcmask 1045504   ;;  %v1437_v1 = vmov 65535   ;;  %v1401_v4 = vld [vmem:[%s1701_s1 + $0x18] sm:$0xff]  }
   0xc   : > { %v464_v2 = vsel %vm462_vm0, 4294967295, %v1437_v1  ;;  %v1402_v6 = vld [vmem:[%s1701_s1 + $0x10] sm:$0xff]   ;;  %s1705_s18 = smov (!%p163_p3, %s162_s18), 191  ;;  %v1403_v7 = vld [vmem:[%s1701_s1 + $0x8] sm:$0xff]   ;;  %vm389_vm2 = vcmask 613376   ;;  %v1404_v10 = vld [vmem:[%s1701_s1] sm:$0xff]  }
   0xd   : > { %v465_v3 = vsel %vm463_vm1, %v464_v2, 0  ;;  %s1140_s21 = sshll.u32 %s1705_s18, 2  ;;  %v1542_v33 = vld [vmem:[%s1702_s2] ss:$0 sm:$0xff]  ;;  %vm1030_vm5 = vcmask 60416  }
   0xe   : > { %v467_v5 = vand.u32 %v1400_v0, %v465_v3  ;;  %s1486_s26 = scalar_lea.vmem %s1700_s0, %s1140_s21  ;;  %s1553_s6 = scalar_lea.vmem %s1703_s3, %s1140_s21 }
   0xf   : > { %v1405_v8 = vld [vmem:[%s1486_s26] sm:$0xff]   ;;  %v1407_v11 = vld [vmem:[%s1486_s26 + $0x8] sm:$0xff]   ;;  %v1409_v13 = vld [vmem:[%s1486_s26 + $0x10] sm:$0xff]  }
  0x10   : > { %1323 = vmatprep.subr.bf16.mxu0 %v467_v5  ;;  %1381 = vmatprep.subr.bf16.mxu1 %v467_v5  ;;  %v1406_v9 = vld [vmem:[%s1486_s26 + $0x60] sm:$0xff]   ;;  %v1408_v12 = vld [vmem:[%s1486_s26 + $0x68] sm:$0xff]   ;;  %v1410_v14 = vld [vmem:[%s1486_s26 + $0x70] sm:$0xff]  }
  0x11   : > { %1324 = vmatpush3.bf16.msra.mxu0 %v467_v5  ;;  %1386 = vmatpush3.bf16.msra.mxu1 %v467_v5  ;;  %v1411_v15 = vld [vmem:[%s1486_s26 + $0x18] sm:$0xff]   ;;  %v1413_v17 = vld [vmem:[%s1486_s26 + $0x20] sm:$0xff]   ;;  %v1415_v19 = vld [vmem:[%s1486_s26 + $0x28] sm:$0xff]  }
  0x12   : > { %1325 = vmatprep.subr.bf16.mxu0 %v1401_v4  ;;  %1382 = vmatprep.subr.bf16.mxu1 %v1401_v4  ;;  %v1412_v16 = vld [vmem:[%s1486_s26 + $0x78] sm:$0xff]   ;;  %v1414_v18 = vld [vmem:[%s1486_s26 + $0x80] sm:$0xff]   ;;  %v1416_v20 = vld [vmem:[%s1486_s26 + $0x88] sm:$0xff]  }
  0x13   : > { %1333 = vmatprep.mubr.msk.bf16.mxu0 %vm389_vm2, %v1405_v8  ;;  %1357 = vmatprep.mubr.msk.bf16.mxu1 %vm389_vm2, %v1406_v9  ;;  %v1417_v21 = vld [vmem:[%s1486_s26 + $0x30] sm:$0xff]   ;;  %v1419_v23 = vld [vmem:[%s1486_s26 + $0x38] sm:$0xff]   ;;  %v1421_v25 = vld [vmem:[%s1486_s26 + $0x40] sm:$0xff]  }
  0x14   : > { %v1418_v22 = vld [vmem:[%s1486_s26 + $0x90] sm:$0xff]   ;;  %v1420_v24 = vld [vmem:[%s1486_s26 + $0x98] sm:$0xff]   ;;  %v1422_v26 = vld [vmem:[%s1486_s26 + $0xa0] sm:$0xff]  }
  0x15   : > { %1326 = vmatpush3.bf16.msra.mxu0 %v1401_v4  ;;  %1387 = vmatpush3.bf16.msra.mxu1 %v1401_v4  ;;  %v1423_v27 = vld [vmem:[%s1486_s26 + $0x48] sm:$0xff]   ;;  %v1425_v29 = vld [vmem:[%s1486_s26 + $0x50] sm:$0xff]   ;;  %v1427_v31 = vld [vmem:[%s1486_s26 + $0x58] sm:$0xff]  }
  0x16   : > { %1327 = vmatprep.subr.bf16.mxu0 %v1402_v6  ;;  %1383 = vmatprep.subr.bf16.mxu1 %v1402_v6  ;;  %v1424_v28 = vld [vmem:[%s1486_s26 + $0xa8] sm:$0xff]   ;;  %v1426_v30 = vld [vmem:[%s1486_s26 + $0xb0] sm:$0xff]   ;;  %v1428_v32 = vld [vmem:[%s1486_s26 + $0xb8] sm:$0xff]  }
  0x19   : > { %1328 = vmatpush3.bf16.msra.mxu0 %v1402_v6  ;;  %1388 = vmatpush3.bf16.msra.mxu1 %v1402_v6 }
  0x1a   : > { %1329 = vmatprep.subr.bf16.mxu0 %v1403_v7  ;;  %1384 = vmatprep.subr.bf16.mxu1 %v1403_v7 }
  0x1d   : > { %1330 = vmatpush3.bf16.msra.mxu0 %v1403_v7  ;;  %1389 = vmatpush3.bf16.msra.mxu1 %v1403_v7 }
  0x1e   : > { %1331 = vmatprep.subr.bf16.mxu0 %v1404_v10  ;;  %1385 = vmatprep.subr.bf16.mxu1 %v1404_v10 }
  0x21   : > { %1332 = vmatpush3.bf16.msra.mxu0 %v1404_v10  ;;  %1390 = vmatpush3.bf16.msra.mxu1 %v1404_v10 }
  0x24   : > { %1334 = vmatmul.mubr.msk.bf16.vlgmr.msra.gmra.mxu0 %vm389_vm2, %v1407_v11  ;;  %1358 = vmatmul.mubr.msk.bf16.vlgmr.msra.gmra.mxu1 %vm389_vm2, %v1408_v12 }
  0x25   : > { %1337 = vmatprep.mubr.msk.bf16.mxu0 %vm389_vm2, %v1409_v13  ;;  %1361 = vmatprep.mubr.msk.bf16.mxu1 %vm389_vm2, %v1410_v14 }
  0x2c   : > { %1338 = vmatmul.mubr.msk.bf16.gmra.mxu0 %vm389_vm2, %v1411_v15  ;;  %1362 = vmatmul.mubr.msk.bf16.gmra.mxu1 %vm389_vm2, %v1412_v16 }
  0x2d   : > { %1341 = vmatprep.mubr.msk.bf16.mxu0 %vm389_vm2, %v1413_v17  ;;  %1365 = vmatprep.mubr.msk.bf16.mxu1 %vm389_vm2, %v1414_v18 }
  0x34   : > { %1342 = vmatmul.mubr.msk.bf16.gmra.mxu0 %vm389_vm2, %v1415_v19  ;;  %1366 = vmatmul.mubr.msk.bf16.gmra.mxu1 %vm389_vm2, %v1416_v20 }
  0x35   : > { %1345 = vmatprep.mubr.msk.bf16.mxu0 %vm389_vm2, %v1417_v21  ;;  %1369 = vmatprep.mubr.msk.bf16.mxu1 %vm389_vm2, %v1418_v22 }
  0x3c   : > { %1346 = vmatmul.mubr.msk.bf16.gmra.mxu0 %vm389_vm2, %v1419_v23  ;;  %1370 = vmatmul.mubr.msk.bf16.gmra.mxu1 %vm389_vm2, %v1420_v24 }
  0x3d   : > { %1349 = vmatprep.mubr.msk.bf16.mxu0 %vm389_vm2, %v1421_v25  ;;  %1373 = vmatprep.mubr.msk.bf16.mxu1 %vm389_vm2, %v1422_v26 }
  0x44   : > { %1350 = vmatmul.mubr.msk.bf16.gmra.mxu0 %vm389_vm2, %v1423_v27  ;;  %1374 = vmatmul.mubr.msk.bf16.gmra.mxu1 %vm389_vm2, %v1424_v28 }
  0x45   : > { %1353 = vmatprep.mubr.msk.bf16.mxu0 %vm389_vm2, %v1425_v29  ;;  %1377 = vmatprep.mubr.msk.bf16.mxu1 %vm389_vm2, %v1426_v30 }
  0x4c   : > { %1354 = vmatmul.mubr.msk.bf16.gmra.mxu0 %vm389_vm2, %v1427_v31  ;;  %1378 = vmatmul.mubr.msk.bf16.gmra.mxu1 %vm389_vm2, %v1428_v32 }
  0xe4   : > { %v1335_v34 = vpop.f32.mrf.mxu0  ;;  %v1359_v35 = vpop.f32.mrf.mxu1 }
  0xe5   : > { %v512_v36 = vadd.f32 %v1335_v34, %v1542_v33  ;;  %v608_v37 = vadd.f32 %v1359_v35, %v1542_v33 }
  0xe6   : > { %v503_v38 = vpop.f32.mrf.mxu0  ;;  %v599_v39 = vpop.f32.mrf.mxu1 }
  0xe7   : > { %vm696_vm3 = vcmp.ge.f32.partialorder %v512_v36, 0.0  ;;  %v744_v40 = vmul.f32 0.2, %v512_v36  ;;  %vm720_vm4 = vcmp.ge.f32.partialorder %v608_v37, 0.0  ;;  %v768_v41 = vmul.f32 0.2, %v608_v37 }
  0xe8   : > { %v504_v42 = vadd.f32 %v1542_v33, %v503_v38  ;;  %v600_v43 = vadd.f32 %v1542_v33, %v599_v39  ;;  %v1336_v44 = vpop.f32.mrf.mxu0  ;;  %v1360_v45 = vpop.f32.mrf.mxu1 }
  0xe9   : > { %v792_v46 = vsel %vm696_vm3, %v512_v36, %v744_v40  ;;  %v816_v47 = vsel %vm720_vm4, %v608_v37, %v768_v41  ;;  %v515_v48 = vadd.f32 %v1336_v44, %v1542_v33  ;;  %v611_v49 = vadd.f32 %v1360_v45, %v1542_v33 }
  0xea   : > { %v1248_v50 = vpack.c.bf16 %v792_v46, %v792_v46  ;;  %v1272_v51 = vpack.c.bf16 %v816_v47, %v816_v47  ;;  %vm694_vm6 = vcmp.ge.f32.partialorder %v504_v42, 0.0  ;;  %v742_v52 = vmul.f32 0.2, %v504_v42  ;;  %v506_v53 = vpop.f32.mrf.mxu0  ;;  %v602_v54 = vpop.f32.mrf.mxu1 }
  0xeb   : > { %vm718_vm7 = vcmp.ge.f32.partialorder %v600_v43, 0.0  ;;  %v766_v55 = vmul.f32 0.2, %v600_v43  ;;  %vm697_vm8 = vcmp.ge.f32.partialorder %v515_v48, 0.0  ;;  %v745_v56 = vmul.f32 0.2, %v515_v48 }
  0xec   : > { %1033 = vst.msk [vmem:[%s1553_s6 + $0x8] sm:$0xf] %vm1030_vm5, %v1248_v50  ;;  %1057 = vst.msk [vmem:[%s1553_s6 + $0x68] sm:$0xf] %vm1030_vm5, %v1272_v51  ;;  %v790_v57 = vsel %vm694_vm6, %v504_v42, %v742_v52  ;;  %vm721_vm9 = vcmp.ge.f32.partialorder %v611_v49, 0.0  ;;  %v507_v59 = vadd.f32 %v1542_v33, %v506_v53  ;;  %v1339_v60 = vpop.f32.mrf.mxu0  ;;  %v1363_v61 = vpop.f32.mrf.mxu1  ;;  %v603_v1 = vadd.f32 %v1542_v33, %v602_v54 }
  0xed   : > { %v769_v58 = vmul.f32 0.2, %v611_v49  ;;  %v1246_v62 = vpack.c.bf16 %v790_v57, %v790_v57  ;;  %v814_v63 = vsel %vm718_vm7, %v600_v43, %v766_v55  ;;  %v793_v0 = vsel %vm697_vm8, %v515_v48, %v745_v56 }
  0xee   : > { %v1270_v2 = vpack.c.bf16 %v814_v63, %v814_v63  ;;  %v1249_v3 = vpack.c.bf16 %v793_v0, %v793_v0  ;;  %vm695_vm10 = vcmp.ge.f32.partialorder %v507_v59, 0.0  ;;  %v519_v5 = vpop.f32.mrf.mxu0  ;;  %v615_v6 = vpop.f32.mrf.mxu1  ;;  %v743_v8 = vmul.f32 0.2, %v507_v59 }
  0xef   : > { %v817_v4 = vsel %vm721_vm9, %v611_v49, %v769_v58  ;;  %1031 = vst.msk [vmem:[%s1553_s6] sm:$0xf] %vm1030_vm5, %v1246_v62  ;;  %vm719_vm11 = vcmp.ge.f32.partialorder %v603_v1, 0.0  ;;  %v767_v9 = vmul.f32 0.2, %v603_v1  ;;  %v528_v10 = vadd.f32 %v1339_v60, %v1542_v33 }
  0xf0   : > { %v1273_v7 = vpack.c.bf16 %v817_v4, %v817_v4  ;;  %1055 = vst.msk [vmem:[%s1553_s6 + $0x60] sm:$0xf] %vm1030_vm5, %v1270_v2  ;;  %1034 = vst.msk [vmem:[%s1553_s6 + $0xc] sm:$0xf] %vm1030_vm5, %v1249_v3  ;;  %v624_v11 = vadd.f32 %v1363_v61, %v1542_v33  ;;  %v520_v12 = vadd.f32 %v1542_v33, %v519_v5  ;;  %v1340_v14 = vpop.f32.mrf.mxu0  ;;  %v1364_v15 = vpop.f32.mrf.mxu1 }
  0xf1   : > { %v616_v13 = vadd.f32 %v1542_v33, %v615_v6  ;;  %v791_v16 = vsel %vm695_vm10, %v507_v59, %v743_v8  ;;  %v815_v17 = vsel %vm719_vm11, %v603_v1, %v767_v9  ;;  %v531_v18 = vadd.f32 %v1340_v14, %v1542_v33 }
  0xf2   : > { %1058 = vst.msk [vmem:[%s1553_s6 + $0x6c] sm:$0xf] %vm1030_vm5, %v1273_v7  ;;  %v627_v19 = vadd.f32 %v1364_v15, %v1542_v33  ;;  %v1247_v20 = vpack.c.bf16 %v791_v16, %v791_v16  ;;  %v1271_v21 = vpack.c.bf16 %v815_v17, %v815_v17  ;;  %vm700_vm12 = vcmp.ge.f32.partialorder %v528_v10, 0.0  ;;  %v522_v23 = vpop.f32.mrf.mxu0  ;;  %v618_v24 = vpop.f32.mrf.mxu1 }
  0xf3   : > { %v748_v22 = vmul.f32 0.2, %v528_v10  ;;  %vm724_vm13 = vcmp.ge.f32.partialorder %v624_v11, 0.0  ;;  %v772_v25 = vmul.f32 0.2, %v624_v11  ;;  %vm698_vm14 = vcmp.ge.f32.partialorder %v520_v12, 0.0 }
  0xf4   : > { %v746_v26 = vmul.f32 0.2, %v520_v12  ;;  %1032 = vst.msk [vmem:[%s1553_s6 + $0x4] sm:$0xf] %vm1030_vm5, %v1247_v20  ;;  %1056 = vst.msk [vmem:[%s1553_s6 + $0x64] sm:$0xf] %vm1030_vm5, %v1271_v21  ;;  %v1343_v29 = vpop.f32.mrf.mxu0  ;;  %v1367_v30 = vpop.f32.mrf.mxu1  ;;  %v523_v44 = vadd.f32 %v1542_v33, %v522_v23  ;;  %v619_v46 = vadd.f32 %v1542_v33, %v618_v24 }
  0xf5   : > { %v796_v27 = vsel %vm700_vm12, %v528_v10, %v748_v22  ;;  %vm722_vm15 = vcmp.ge.f32.partialorder %v616_v13, 0.0  ;;  %v770_v28 = vmul.f32 0.2, %v616_v13  ;;  %vm701_vm0 = vcmp.ge.f32.partialorder %v531_v18, 0.0 }
  0xf6   : > { %v1252_v31 = vpack.c.bf16 %v796_v27, %v796_v27  ;;  %v820_v32 = vsel %vm724_vm13, %v624_v11, %v772_v25  ;;  %v794_v34 = vsel %vm698_vm14, %v520_v12, %v746_v26  ;;  %v749_v35 = vmul.f32 0.2, %v531_v18  ;;  %v535_v39 = vpop.f32.mrf.mxu0  ;;  %v631_v40 = vpop.f32.mrf.mxu1 }
  0xf7   : > { %v1276_v36 = vpack.c.bf16 %v820_v32, %v820_v32  ;;  %v1250_v37 = vpack.c.bf16 %v794_v34, %v794_v34  ;;  %v818_v38 = vsel %vm722_vm15, %v616_v13, %v770_v28  ;;  %vm725_vm1 = vcmp.ge.f32.partialorder %v627_v19, 0.0 }
  0xf8   : > { %1037 = vst.msk [vmem:[%s1553_s6 + $0x18] sm:$0xf] %vm1030_vm5, %v1252_v31  ;;  %v1274_v41 = vpack.c.bf16 %v818_v38, %v818_v38  ;;  %v797_v42 = vsel %vm701_vm0, %v531_v18, %v749_v35  ;;  %v773_v43 = vmul.f32 0.2, %v627_v19  ;;  %v544_v47 = vadd.f32 %v1343_v29, %v1542_v33  ;;  %v1344_v49 = vpop.f32.mrf.mxu0  ;;  %v1368_v50 = vpop.f32.mrf.mxu1 }
  0xf9   : > { %1061 = vst.msk [vmem:[%s1553_s6 + $0x78] sm:$0xf] %vm1030_vm5, %v1276_v36  ;;  %1035 = vst.msk [vmem:[%s1553_s6 + $0x10] sm:$0xf] %vm1030_vm5, %v1250_v37  ;;  %v1253_v45 = vpack.c.bf16 %v797_v42, %v797_v42  ;;  %v640_v48 = vadd.f32 %v1367_v30, %v1542_v33  ;;  %vm699_vm2 = vcmp.ge.f32.partialorder %v523_v44, 0.0  ;;  %v536_v53 = vadd.f32 %v1542_v33, %v535_v39 }
  0xfa   : > { %1059 = vst.msk [vmem:[%s1553_s6 + $0x70] sm:$0xf] %vm1030_vm5, %v1274_v41  ;;  %v821_v51 = vsel %vm725_vm1, %v627_v19, %v773_v43  ;;  %v747_v52 = vmul.f32 0.2, %v523_v44  ;;  %vm723_vm3 = vcmp.ge.f32.partialorder %v619_v46, 0.0  ;;  %vm704_vm4 = vcmp.ge.f32.partialorder %v544_v47, 0.0  ;;  %v538_v56 = vpop.f32.mrf.mxu0  ;;  %v634_v57 = vpop.f32.mrf.mxu1 }
  0xfb   : > { %1038 = vst.msk [vmem:[%s1553_s6 + $0x1c] sm:$0xf] %vm1030_vm5, %v1253_v45  ;;  %v1277_v54 = vpack.c.bf16 %v821_v51, %v821_v51  ;;  %v771_v55 = vmul.f32 0.2, %v619_v46  ;;  %v752_v59 = vmul.f32 0.2, %v544_v47  ;;  %v632_v5 = vadd.f32 %v1542_v33, %v631_v40 }
  0xfc   : > { %v795_v58 = vsel %vm699_vm2, %v523_v44, %v747_v52  ;;  %vm728_vm6 = vcmp.ge.f32.partialorder %v640_v48, 0.0  ;;  %v776_v60 = vmul.f32 0.2, %v640_v48  ;;  %vm702_vm7 = vcmp.ge.f32.partialorder %v536_v53, 0.0  ;;  %v1347_v0 = vpop.f32.mrf.mxu0  ;;  %v1371_v1 = vpop.f32.mrf.mxu1 }
  0xfd   : > { %1062 = vst.msk [vmem:[%s1553_s6 + $0x7c] sm:$0xf] %vm1030_vm5, %v1277_v54  ;;  %v1251_v61 = vpack.c.bf16 %v795_v58, %v795_v58  ;;  %v819_v62 = vsel %vm723_vm3, %v619_v46, %v771_v55  ;;  %v750_v63 = vmul.f32 0.2, %v536_v53  ;;  %v800_v3 = vsel %vm704_vm4, %v544_v47, %v752_v59 }
  0xfe   : > { %v1275_v2 = vpack.c.bf16 %v819_v62, %v819_v62  ;;  %v824_v4 = vsel %vm728_vm6, %v640_v48, %v776_v60  ;;  %v1256_v6 = vpack.c.bf16 %v800_v3, %v800_v3  ;;  %v547_v9 = vadd.f32 %v1344_v49, %v1542_v33  ;;  %v551_v10 = vpop.f32.mrf.mxu0  ;;  %v647_v11 = vpop.f32.mrf.mxu1 }
  0xff   : > { %1036 = vst.msk [vmem:[%s1553_s6 + $0x14] sm:$0xf] %vm1030_vm5, %v1251_v61  ;;  %v1280_v7 = vpack.c.bf16 %v824_v4, %v824_v4  ;;  %v798_v8 = vsel %vm702_vm7, %v536_v53, %v750_v63  ;;  %vm726_vm8 = vcmp.ge.f32.partialorder %v632_v5, 0.0  ;;  %v774_v13 = vmul.f32 0.2, %v632_v5 }
 0x100   : > { %1060 = vst.msk [vmem:[%s1553_s6 + $0x74] sm:$0xf] %vm1030_vm5, %v1275_v2  ;;  %v1254_v12 = vpack.c.bf16 %v798_v8, %v798_v8  ;;  %v643_v14 = vadd.f32 %v1368_v50, %v1542_v33  ;;  %1041 = vst.msk [vmem:[%s1553_s6 + $0x28] sm:$0xf] %vm1030_vm5, %v1256_v6  ;;  %vm705_vm9 = vcmp.ge.f32.partialorder %v547_v9, 0.0  ;;  %v539_v16 = vadd.f32 %v1542_v33, %v538_v56  ;;  %v1348_v18 = vpop.f32.mrf.mxu0  ;;  %v1372_v19 = vpop.f32.mrf.mxu1 }
 0x101   : > { %1065 = vst.msk [vmem:[%s1553_s6 + $0x88] sm:$0xf] %vm1030_vm5, %v1280_v7  ;;  %v753_v15 = vmul.f32 0.2, %v547_v9  ;;  %v635_v17 = vadd.f32 %v1542_v33, %v634_v57  ;;  %v822_v20 = vsel %vm726_vm8, %v632_v5, %v774_v13  ;;  %v560_v22 = vadd.f32 %v1347_v0, %v1542_v33 }
 0x102   : > { %1039 = vst.msk [vmem:[%s1553_s6 + $0x20] sm:$0xf] %vm1030_vm5, %v1254_v12  ;;  %vm729_vm10 = vcmp.ge.f32.partialorder %v643_v14, 0.0  ;;  %v777_v21 = vmul.f32 0.2, %v643_v14  ;;  %v1278_v23 = vpack.c.bf16 %v822_v20, %v822_v20  ;;  %vm703_vm11 = vcmp.ge.f32.partialorder %v539_v16, 0.0  ;;  %v554_v26 = vpop.f32.mrf.mxu0  ;;  %v650_v27 = vpop.f32.mrf.mxu1 }
 0x103   : > { %v801_v24 = vsel %vm705_vm9, %v547_v9, %v753_v15  ;;  %v751_v25 = vmul.f32 0.2, %v539_v16  ;;  %vm727_vm12 = vcmp.ge.f32.partialorder %v635_v17, 0.0  ;;  %v775_v30 = vmul.f32 0.2, %v635_v17 }
 0x104   : > { %v1257_v28 = vpack.c.bf16 %v801_v24, %v801_v24  ;;  %v825_v29 = vsel %vm729_vm10, %v643_v14, %v777_v21  ;;  %1063 = vst.msk [vmem:[%s1553_s6 + $0x80] sm:$0xf] %vm1030_vm5, %v1278_v23  ;;  %vm708_vm13 = vcmp.ge.f32.partialorder %v560_v22, 0.0  ;;  %v756_v34 = vmul.f32 0.2, %v560_v22  ;;  %v1351_v35 = vpop.f32.mrf.mxu0  ;;  %v1375_v36 = vpop.f32.mrf.mxu1 }
 0x105   : > { %v1281_v31 = vpack.c.bf16 %v825_v29, %v825_v29  ;;  %v799_v32 = vsel %vm703_vm11, %v539_v16, %v751_v25  ;;  %v823_v38 = vsel %vm727_vm12, %v635_v17, %v775_v30  ;;  %v656_v39 = vadd.f32 %v1371_v1, %v1542_v33 }
 0x106   : > { %1042 = vst.msk [vmem:[%s1553_s6 + $0x2c] sm:$0xf] %vm1030_vm5, %v1257_v28  ;;  %v1255_v37 = vpack.c.bf16 %v799_v32, %v799_v32  ;;  %v552_v40 = vadd.f32 %v1542_v33, %v551_v10  ;;  %v1279_v41 = vpack.c.bf16 %v823_v38, %v823_v38  ;;  %v804_v42 = vsel %vm708_vm13, %v560_v22, %v756_v34  ;;  %v567_v45 = vpop.f32.mrf.mxu0  ;;  %v663_v46 = vpop.f32.mrf.mxu1 }
 0x107   : > { %1066 = vst.msk [vmem:[%s1553_s6 + $0x8c] sm:$0xf] %vm1030_vm5, %v1281_v31  ;;  %v648_v43 = vadd.f32 %v1542_v33, %v647_v11  ;;  %v563_v44 = vadd.f32 %v1348_v18, %v1542_v33  ;;  %v1260_v47 = vpack.c.bf16 %v804_v42, %v804_v42  ;;  %vm732_vm14 = vcmp.ge.f32.partialorder %v656_v39, 0.0 }
 0x108   : > { %1040 = vst.msk [vmem:[%s1553_s6 + $0x24] sm:$0xf] %vm1030_vm5, %v1255_v37  ;;  %v780_v48 = vmul.f32 0.2, %v656_v39  ;;  %vm706_vm15 = vcmp.ge.f32.partialorder %v552_v40, 0.0  ;;  %v1352_v51 = vpop.f32.mrf.mxu0  ;;  %v1376_v52 = vpop.f32.mrf.mxu1  ;;  %v659_v55 = vadd.f32 %v1372_v19, %v1542_v33  ;;  %v555_v56 = vadd.f32 %v1542_v33, %v554_v26 }
 0x109   : > { %1064 = vst.msk [vmem:[%s1553_s6 + $0x84] sm:$0xf] %vm1030_vm5, %v1279_v41  ;;  %v754_v49 = vmul.f32 0.2, %v552_v40  ;;  %vm730_vm0 = vcmp.ge.f32.partialorder %v648_v43, 0.0  ;;  %vm709_vm1 = vcmp.ge.f32.partialorder %v563_v44, 0.0  ;;  %v651_v60 = vadd.f32 %v1542_v33, %v650_v27 }
 0x10a   : > { %v778_v50 = vmul.f32 0.2, %v648_v43  ;;  %1045 = vst.msk [vmem:[%s1553_s6 + $0x38] sm:$0xf] %vm1030_vm5, %v1260_v47  ;;  %v828_v53 = vsel %vm732_vm14, %v656_v39, %v780_v48  ;;  %v757_v54 = vmul.f32 0.2, %v563_v44  ;;  %v570_v0 = vpop.f32.mrf.mxu0  ;;  %v666_v1 = vpop.f32.mrf.mxu1  ;;  %v576_v6 = vadd.f32 %v1351_v35, %v1542_v33 }
 0x10b   : > { %v1284_v57 = vpack.c.bf16 %v828_v53, %v828_v53  ;;  %v802_v58 = vsel %vm706_vm15, %v552_v40, %v754_v49  ;;  %vm733_vm2 = vcmp.ge.f32.partialorder %v659_v55, 0.0  ;;  %v781_v3 = vmul.f32 0.2, %v659_v55 }
 0x10c   : > { %v826_v59 = vsel %vm730_vm0, %v648_v43, %v778_v50  ;;  %v1258_v61 = vpack.c.bf16 %v802_v58, %v802_v58  ;;  %v805_v63 = vsel %vm709_vm1, %v563_v44, %v757_v54  ;;  %vm707_vm3 = vcmp.ge.f32.partialorder %v555_v56, 0.0  ;;  %v1355_v15 = vpop.f32.mrf.mxu0  ;;  %v1379_v16 = vpop.f32.mrf.mxu1 }
 0x10d   : > { %v1282_v62 = vpack.c.bf16 %v826_v59, %v826_v59  ;;  %1069 = vst.msk [vmem:[%s1553_s6 + $0x98] sm:$0xf] %vm1030_vm5, %v1284_v57  ;;  %v1261_v2 = vpack.c.bf16 %v805_v63, %v805_v63  ;;  %v755_v4 = vmul.f32 0.2, %v555_v56  ;;  %vm731_vm4 = vcmp.ge.f32.partialorder %v651_v60, 0.0 }
 0x10e   : > { %1043 = vst.msk [vmem:[%s1553_s6 + $0x30] sm:$0xf] %vm1030_vm5, %v1258_v61  ;;  %v779_v5 = vmul.f32 0.2, %v651_v60  ;;  %v672_v7 = vadd.f32 %v1375_v36, %v1542_v33  ;;  %v829_v8 = vsel %vm733_vm2, %v659_v55, %v781_v3  ;;  %v568_v10 = vadd.f32 %v1542_v33, %v567_v45  ;;  %v583_v30 = vpop.f32.mrf.mxu0  ;;  %v679_v31 = vpop.f32.mrf.mxu1 }
 0x10f   : > { %1067 = vst.msk [vmem:[%s1553_s6 + $0x90] sm:$0xf] %vm1030_vm5, %v1282_v62  ;;  %1046 = vst.msk [vmem:[%s1553_s6 + $0x3c] sm:$0xf] %vm1030_vm5, %v1261_v2  ;;  %v803_v9 = vsel %vm707_vm3, %v555_v56, %v755_v4  ;;  %v664_v11 = vadd.f32 %v1542_v33, %v663_v46  ;;  %v1285_v12 = vpack.c.bf16 %v829_v8, %v829_v8  ;;  %vm712_vm6 = vcmp.ge.f32.partialorder %v576_v6, 0.0 }
 0x110   : > { %v1259_v13 = vpack.c.bf16 %v803_v9, %v803_v9  ;;  %v827_v14 = vsel %vm731_vm4, %v651_v60, %v779_v5  ;;  %v760_v18 = vmul.f32 0.2, %v576_v6  ;;  %vm736_vm7 = vcmp.ge.f32.partialorder %v672_v7, 0.0  ;;  %v1356_v46 = vpop.f32.mrf.mxu0  ;;  %v1380_v47 = vpop.f32.mrf.mxu1 }
 0x111   : > { %v1283_v17 = vpack.c.bf16 %v827_v14, %v827_v14  ;;  %v784_v19 = vmul.f32 0.2, %v672_v7  ;;  %1070 = vst.msk [vmem:[%s1553_s6 + $0x9c] sm:$0xf] %vm1030_vm5, %v1285_v12  ;;  %vm710_vm8 = vcmp.ge.f32.partialorder %v568_v10, 0.0  ;;  %vm734_vm9 = vcmp.ge.f32.partialorder %v664_v11, 0.0 }
 0x112   : > { %1044 = vst.msk [vmem:[%s1553_s6 + $0x34] sm:$0xf] %vm1030_vm5, %v1259_v13  ;;  %v758_v20 = vmul.f32 0.2, %v568_v10  ;;  %v782_v21 = vmul.f32 0.2, %v664_v11  ;;  %v808_v22 = vsel %vm712_vm6, %v576_v6, %v760_v18  ;;  %v579_v24 = vadd.f32 %v1352_v51, %v1542_v33  ;;  %v586_v60 = vpop.f32.mrf.mxu0  ;;  %v682_v61 = vpop.f32.mrf.mxu1 }
 0x113   : > { %1068 = vst.msk [vmem:[%s1553_s6 + $0x94] sm:$0xf] %vm1030_vm5, %v1283_v17  ;;  %v832_v23 = vsel %vm736_vm7, %v672_v7, %v784_v19  ;;  %v675_v25 = vadd.f32 %v1376_v52, %v1542_v33  ;;  %v1264_v26 = vpack.c.bf16 %v808_v22, %v808_v22  ;;  %v571_v37 = vadd.f32 %v1542_v33, %v570_v0 }
 0x114   : > { %v1288_v27 = vpack.c.bf16 %v832_v23, %v832_v23  ;;  %v806_v28 = vsel %vm710_vm8, %v568_v10, %v758_v20  ;;  %v830_v29 = vsel %vm734_vm9, %v664_v11, %v782_v21  ;;  %vm713_vm10 = vcmp.ge.f32.partialorder %v579_v24, 0.0 }
 0x115   : > { %v1262_v32 = vpack.c.bf16 %v806_v28, %v806_v28  ;;  %v1286_v34 = vpack.c.bf16 %v830_v29, %v830_v29  ;;  %v761_v35 = vmul.f32 0.2, %v579_v24  ;;  %1049 = vst.msk [vmem:[%s1553_s6 + $0x48] sm:$0xf] %vm1030_vm5, %v1264_v26  ;;  %vm737_vm11 = vcmp.ge.f32.partialorder %v675_v25, 0.0 }
 0x116   : > { %1073 = vst.msk [vmem:[%s1553_s6 + $0xa8] sm:$0xf] %vm1030_vm5, %v1288_v27  ;;  %v785_v36 = vmul.f32 0.2, %v675_v25  ;;  %v667_v38 = vadd.f32 %v1542_v33, %v666_v1  ;;  %v592_v40 = vadd.f32 %v1355_v15, %v1542_v33  ;;  %v688_v41 = vadd.f32 %v1379_v16, %v1542_v33 }
 0x117   : > { %1047 = vst.msk [vmem:[%s1553_s6 + $0x40] sm:$0xf] %vm1030_vm5, %v1262_v32  ;;  %1071 = vst.msk [vmem:[%s1553_s6 + $0xa0] sm:$0xf] %vm1030_vm5, %v1286_v34  ;;  %v809_v39 = vsel %vm713_vm10, %v579_v24, %v761_v35  ;;  %v584_v42 = vadd.f32 %v1542_v33, %v583_v30  ;;  %vm711_vm12 = vcmp.ge.f32.partialorder %v571_v37, 0.0  ;;  %v680_v59 = vadd.f32 %v1542_v33, %v679_v31 }
 0x118   : > { %v1265_v43 = vpack.c.bf16 %v809_v39, %v809_v39  ;;  %v833_v44 = vsel %vm737_vm11, %v675_v25, %v785_v36  ;;  %v759_v45 = vmul.f32 0.2, %v571_v37  ;;  %vm735_vm13 = vcmp.ge.f32.partialorder %v667_v38, 0.0 }
 0x119   : > { %v1289_v48 = vpack.c.bf16 %v833_v44, %v833_v44  ;;  %v783_v49 = vmul.f32 0.2, %v667_v38  ;;  %vm716_vm14 = vcmp.ge.f32.partialorder %v592_v40, 0.0  ;;  %v764_v51 = vmul.f32 0.2, %v592_v40 }
 0x11a   : > { %1050 = vst.msk [vmem:[%s1553_s6 + $0x4c] sm:$0xf] %vm1030_vm5, %v1265_v43  ;;  %v807_v50 = vsel %vm711_vm12, %v571_v37, %v759_v45  ;;  %vm740_vm15 = vcmp.ge.f32.partialorder %v688_v41, 0.0  ;;  %v788_v52 = vmul.f32 0.2, %v688_v41  ;;  %vm714_vm0 = vcmp.ge.f32.partialorder %v584_v42, 0.0 }
 0x11b   : > { %1074 = vst.msk [vmem:[%s1553_s6 + $0xac] sm:$0xf] %vm1030_vm5, %v1289_v48  ;;  %v1263_v53 = vpack.c.bf16 %v807_v50, %v807_v50  ;;  %v831_v54 = vsel %vm735_vm13, %v667_v38, %v783_v49  ;;  %v762_v55 = vmul.f32 0.2, %v584_v42  ;;  %v812_v57 = vsel %vm716_vm14, %v592_v40, %v764_v51 }
 0x11c   : > { %v1287_v56 = vpack.c.bf16 %v831_v54, %v831_v54  ;;  %v836_v58 = vsel %vm740_vm15, %v688_v41, %v788_v52  ;;  %v1268_v62 = vpack.c.bf16 %v812_v57, %v812_v57  ;;  %v595_v1 = vadd.f32 %v1356_v46, %v1542_v33 }
 0x11d   : > { %1048 = vst.msk [vmem:[%s1553_s6 + $0x44] sm:$0xf] %vm1030_vm5, %v1263_v53  ;;  %v1292_v63 = vpack.c.bf16 %v836_v58, %v836_v58  ;;  %v810_v0 = vsel %vm714_vm0, %v584_v42, %v762_v55  ;;  %vm738_vm1 = vcmp.ge.f32.partialorder %v680_v59, 0.0  ;;  %v786_v3 = vmul.f32 0.2, %v680_v59 }
 0x11e   : > { %1072 = vst.msk [vmem:[%s1553_s6 + $0xa4] sm:$0xf] %vm1030_vm5, %v1287_v56  ;;  %v1266_v2 = vpack.c.bf16 %v810_v0, %v810_v0  ;;  %v691_v4 = vadd.f32 %v1380_v47, %v1542_v33  ;;  %1053 = vst.msk [vmem:[%s1553_s6 + $0x58] sm:$0xf] %vm1030_vm5, %v1268_v62  ;;  %vm717_vm2 = vcmp.ge.f32.partialorder %v595_v1, 0.0  ;;  %v587_v6 = vadd.f32 %v1542_v33, %v586_v60 }
 0x11f   : > { %1077 = vst.msk [vmem:[%s1553_s6 + $0xb8] sm:$0xf] %vm1030_vm5, %v1292_v63  ;;  %v765_v5 = vmul.f32 0.2, %v595_v1  ;;  %v683_v7 = vadd.f32 %v1542_v33, %v682_v61  ;;  %v834_v8 = vsel %vm738_vm1, %v680_v59, %v786_v3 }
 0x120   : > { %1051 = vst.msk [vmem:[%s1553_s6 + $0x50] sm:$0xf] %vm1030_vm5, %v1266_v2  ;;  %vm741_vm3 = vcmp.ge.f32.partialorder %v691_v4, 0.0  ;;  %v789_v9 = vmul.f32 0.2, %v691_v4  ;;  %v1290_v10 = vpack.c.bf16 %v834_v8, %v834_v8  ;;  %vm715_vm4 = vcmp.ge.f32.partialorder %v587_v6, 0.0 }
 0x121   : > { %v813_v11 = vsel %vm717_vm2, %v595_v1, %v765_v5  ;;  %v763_v12 = vmul.f32 0.2, %v587_v6  ;;  %vm739_vm6 = vcmp.ge.f32.partialorder %v683_v7, 0.0  ;;  %v787_v15 = vmul.f32 0.2, %v683_v7 }
 0x122   : > { %v1269_v13 = vpack.c.bf16 %v813_v11, %v813_v11  ;;  %v837_v14 = vsel %vm741_vm3, %v691_v4, %v789_v9  ;;  %1075 = vst.msk [vmem:[%s1553_s6 + $0xb0] sm:$0xf] %vm1030_vm5, %v1290_v10 }
 0x123   : > { %v1293_v33 = vpack.c.bf16 %v837_v14, %v837_v14  ;;  %v811_v16 = vsel %vm715_vm4, %v587_v6, %v763_v12  ;;  %v835_v18 = vsel %vm739_vm6, %v683_v7, %v787_v15 }
 0x124   : > { %1054 = vst.msk [vmem:[%s1553_s6 + $0x5c] sm:$0xf] %vm1030_vm5, %v1269_v13  ;;  %v1267_v17 = vpack.c.bf16 %v811_v16, %v811_v16  ;;  %v1291_v19 = vpack.c.bf16 %v835_v18, %v835_v18 }
 0x125   : > { %1078 = vst.msk [vmem:[%s1553_s6 + $0xbc] sm:$0xf] %vm1030_vm5, %v1293_v33 }
 0x126   : > { %1052 = vst.msk [vmem:[%s1553_s6 + $0x54] sm:$0xf] %vm1030_vm5, %v1267_v17  ;;  %1076 = vst.msk [vmem:[%s1553_s6 + $0xb4] sm:$0xf] %vm1030_vm5, %v1291_v19 }
 0x127 PF: > { %s13_s12 = sadd.s32 1, %s1435_s12  }
 0x128   : > { %p10_p4 = scmp.ge.s32.totalorder %s13_s12, 6  }
 0x12a   :  { %12 = sbr.rel (!%p10_p4) target bundleno = 1 (0x1), region = 62 }

// kernel: _lambda_.27
= control target key start
LH: loop header
LB: loop body
LE: loop exit
PB: predicated region body
PF: predicated region fallthrough
CT: control target
= control target key end

     0   :  { %vm299_vm0 = vcmask 1043456   ;;  %vm226_vm1 = vcmask 588800   ;;  %vm864_vm4 = vcmask 125952   ;;  %s1573_s1 = inlined_call_operand.vmem [shape: bf16[72,16], index: 1, kind: input, shape index: {}]   ;;  %s1574_s0 = inlined_call_operand.vmem [shape: bf16[384,72], index: 0, kind: input, shape index: {}]   ;;  %s1575_s2 = inlined_call_operand.vmem [shape: f32[1,16], index: 2, kind: input, shape index: {}]   ;;  %s1576_s3 = inlined_call_operand.vmem [shape: bf16[384,16], index: 3, kind: output, shape index: {}]  }
   0x1   :  { %v1166_v0 = vld [vmem:[%s1573_s1 + $0x20] ss:$0 sps:$4 sm:$0xff]   ;;  %v1167_v1 = vld [vmem:[%s1573_s1 + $0x18] sm:$0xff]   ;;  %v1168_v3 = vld [vmem:[%s1573_s1 + $0x10] sm:$0xff]  }
   0x2   :  { %1164 = vmatprep.subr.msk.bf16.mxu0 %vm299_vm0, %v1166_v0  ;;  %1165 = vmatprep.subr.msk.bf16.mxu1 %vm299_vm0, %v1166_v0  ;;  %v301_v2 = vsel %vm299_vm0, %v1166_v0, 0  ;;  %v1171_v4 = vld [vmem:[%s1574_s0] sm:$0xff]   ;;  %v1169_v6 = vld [vmem:[%s1573_s1 + $0x8] sm:$0xff]   ;;  %v1175_v10 = vld [vmem:[%s1574_s0 + $0x10] sm:$0xff]  }
   0x3   :  { %1097 = vmatpush3.bf16.msra.mxu0 %v301_v2  ;;  %1159 = vmatpush3.bf16.msra.mxu1 %v301_v2  ;;  %v1172_v5 = vld [vmem:[%s1574_s0 + $0x60] sm:$0xff]   ;;  %v1173_v8 = vld [vmem:[%s1574_s0 + $0x8] sm:$0xff]   ;;  %v1176_v11 = vld [vmem:[%s1574_s0 + $0x70] sm:$0xff]  }
   0x4   :  { %1098 = vmatprep.subr.bf16.mxu0 %v1167_v1  ;;  %1155 = vmatprep.subr.bf16.mxu1 %v1167_v1  ;;  %v1170_v7 = vld [vmem:[%s1573_s1] sm:$0xff]   ;;  %v1174_v9 = vld [vmem:[%s1574_s0 + $0x68] sm:$0xff]   ;;  %v1177_v12 = vld [vmem:[%s1574_s0 + $0x18] sm:$0xff]  }
   0x5   :  { %1106 = vmatprep.mubr.msk.bf16.mxu0 %vm226_vm1, %v1171_v4  ;;  %1130 = vmatprep.mubr.msk.bf16.mxu1 %vm226_vm1, %v1172_v5  ;;  %v1178_v13 = vld [vmem:[%s1574_s0 + $0x78] sm:$0xff]   ;;  %v1179_v14 = vld [vmem:[%s1574_s0 + $0x20] sm:$0xff]   ;;  %v1181_v16 = vld [vmem:[%s1574_s0 + $0x28] sm:$0xff]  }
   0x6   :  { %v1180_v15 = vld [vmem:[%s1574_s0 + $0x80] sm:$0xff]   ;;  %v1182_v17 = vld [vmem:[%s1574_s0 + $0x88] sm:$0xff]   ;;  %v1183_v18 = vld [vmem:[%s1574_s0 + $0x30] sm:$0xff]  }
   0x7   :  { %1099 = vmatpush3.bf16.msra.mxu0 %v1167_v1  ;;  %1160 = vmatpush3.bf16.msra.mxu1 %v1167_v1  ;;  %v1184_v19 = vld [vmem:[%s1574_s0 + $0x90] sm:$0xff]   ;;  %v1185_v20 = vld [vmem:[%s1574_s0 + $0x38] sm:$0xff]   ;;  %v1187_v22 = vld [vmem:[%s1574_s0 + $0x40] sm:$0xff]  }
   0x8   :  { %1100 = vmatprep.subr.bf16.mxu0 %v1168_v3  ;;  %1156 = vmatprep.subr.bf16.mxu1 %v1168_v3  ;;  %v1186_v21 = vld [vmem:[%s1574_s0 + $0x98] sm:$0xff]   ;;  %v1188_v23 = vld [vmem:[%s1574_s0 + $0xa0] sm:$0xff]   ;;  %v1189_v24 = vld [vmem:[%s1574_s0 + $0x48] sm:$0xff]  }
   0x9   :  { %v1190_v25 = vld [vmem:[%s1574_s0 + $0xa8] sm:$0xff]   ;;  %v1191_v26 = vld [vmem:[%s1574_s0 + $0x50] sm:$0xff]   ;;  %v1193_v28 = vld [vmem:[%s1574_s0 + $0x58] sm:$0xff]  }
   0xa   :  { %v1192_v27 = vld [vmem:[%s1574_s0 + $0xb0] sm:$0xff]   ;;  %v1194_v29 = vld [vmem:[%s1574_s0 + $0xb8] sm:$0xff]   ;;  %v1329_v30 = vld [vmem:[%s1575_s2] ss:$0 sm:$0xff] }
   0xb   :  { %1101 = vmatpush3.bf16.msra.mxu0 %v1168_v3  ;;  %1161 = vmatpush3.bf16.msra.mxu1 %v1168_v3 }
   0xc   :  { %1102 = vmatprep.subr.bf16.mxu0 %v1169_v6  ;;  %1157 = vmatprep.subr.bf16.mxu1 %v1169_v6 }
   0xf   :  { %1103 = vmatpush3.bf16.msra.mxu0 %v1169_v6  ;;  %1162 = vmatpush3.bf16.msra.mxu1 %v1169_v6 }
  0x10   :  { %1104 = vmatprep.subr.bf16.mxu0 %v1170_v7  ;;  %1158 = vmatprep.subr.bf16.mxu1 %v1170_v7 }
  0x13   :  { %1105 = vmatpush3.bf16.msra.mxu0 %v1170_v7  ;;  %1163 = vmatpush3.bf16.msra.mxu1 %v1170_v7 }
  0x16   :  { %1107 = vmatmul.mubr.msk.bf16.vlgmr.msra.gmra.mxu0 %vm226_vm1, %v1173_v8  ;;  %1131 = vmatmul.mubr.msk.bf16.vlgmr.msra.gmra.mxu1 %vm226_vm1, %v1174_v9 }
  0x17   :  { %1110 = vmatprep.mubr.msk.bf16.mxu0 %vm226_vm1, %v1175_v10  ;;  %1134 = vmatprep.mubr.msk.bf16.mxu1 %vm226_vm1, %v1176_v11 }
  0x1e   :  { %1111 = vmatmul.mubr.msk.bf16.gmra.mxu0 %vm226_vm1, %v1177_v12  ;;  %1135 = vmatmul.mubr.msk.bf16.gmra.mxu1 %vm226_vm1, %v1178_v13 }
  0x1f   :  { %1114 = vmatprep.mubr.msk.bf16.mxu0 %vm226_vm1, %v1179_v14  ;;  %1138 = vmatprep.mubr.msk.bf16.mxu1 %vm226_vm1, %v1180_v15 }
  0x26   :  { %1115 = vmatmul.mubr.msk.bf16.gmra.mxu0 %vm226_vm1, %v1181_v16  ;;  %1139 = vmatmul.mubr.msk.bf16.gmra.mxu1 %vm226_vm1, %v1182_v17 }
  0x27   :  { %1118 = vmatprep.mubr.msk.bf16.mxu0 %vm226_vm1, %v1183_v18  ;;  %1142 = vmatprep.mubr.msk.bf16.mxu1 %vm226_vm1, %v1184_v19 }
  0x2e   :  { %1119 = vmatmul.mubr.msk.bf16.gmra.mxu0 %vm226_vm1, %v1185_v20  ;;  %1143 = vmatmul.mubr.msk.bf16.gmra.mxu1 %vm226_vm1, %v1186_v21 }
  0x2f   :  { %1122 = vmatprep.mubr.msk.bf16.mxu0 %vm226_vm1, %v1187_v22  ;;  %1146 = vmatprep.mubr.msk.bf16.mxu1 %vm226_vm1, %v1188_v23 }
  0x36   :  { %1123 = vmatmul.mubr.msk.bf16.gmra.mxu0 %vm226_vm1, %v1189_v24  ;;  %1147 = vmatmul.mubr.msk.bf16.gmra.mxu1 %vm226_vm1, %v1190_v25 }
  0x37   :  { %1126 = vmatprep.mubr.msk.bf16.mxu0 %vm226_vm1, %v1191_v26  ;;  %1150 = vmatprep.mubr.msk.bf16.mxu1 %vm226_vm1, %v1192_v27 }
  0x3e   :  { %1127 = vmatmul.mubr.msk.bf16.gmra.mxu0 %vm226_vm1, %v1193_v28  ;;  %1151 = vmatmul.mubr.msk.bf16.gmra.mxu1 %vm226_vm1, %v1194_v29 }
  0xd6   :  { %v1108_v31 = vpop.f32.mrf.mxu0  ;;  %v1132_v32 = vpop.f32.mrf.mxu1 }
  0xd7   :  { %v346_v33 = vadd.f32 %v1108_v31, %v1329_v30  ;;  %v442_v34 = vadd.f32 %v1132_v32, %v1329_v30 }
  0xd8   :  { %v337_v35 = vpop.f32.mrf.mxu0  ;;  %v433_v36 = vpop.f32.mrf.mxu1 }
  0xd9   :  { %vm530_vm2 = vcmp.ge.f32.partialorder %v346_v33, 0.0  ;;  %v578_v37 = vmul.f32 0.2, %v346_v33  ;;  %vm554_vm3 = vcmp.ge.f32.partialorder %v442_v34, 0.0  ;;  %v602_v38 = vmul.f32 0.2, %v442_v34 }
  0xda   :  { %v338_v39 = vadd.f32 %v1329_v30, %v337_v35  ;;  %v434_v40 = vadd.f32 %v1329_v30, %v433_v36  ;;  %v1109_v41 = vpop.f32.mrf.mxu0  ;;  %v1133_v42 = vpop.f32.mrf.mxu1 }
  0xdb   :  { %v626_v43 = vsel %vm530_vm2, %v346_v33, %v578_v37  ;;  %v650_v44 = vsel %vm554_vm3, %v442_v34, %v602_v38  ;;  %v349_v45 = vadd.f32 %v1109_v41, %v1329_v30  ;;  %v445_v46 = vadd.f32 %v1133_v42, %v1329_v30 }
  0xdc   :  { %v1021_v47 = vpack.c.bf16 %v626_v43, %v626_v43  ;;  %v1045_v48 = vpack.c.bf16 %v650_v44, %v650_v44  ;;  %vm528_vm5 = vcmp.ge.f32.partialorder %v338_v39, 0.0  ;;  %v576_v49 = vmul.f32 0.2, %v338_v39  ;;  %v340_v50 = vpop.f32.mrf.mxu0  ;;  %v436_v51 = vpop.f32.mrf.mxu1 }
  0xdd   :  { %vm552_vm6 = vcmp.ge.f32.partialorder %v434_v40, 0.0  ;;  %v600_v52 = vmul.f32 0.2, %v434_v40  ;;  %vm531_vm7 = vcmp.ge.f32.partialorder %v349_v45, 0.0  ;;  %v579_v53 = vmul.f32 0.2, %v349_v45 }
  0xde   :  { %867 = vst.msk [vmem:[%s1576_s3 + $0x8] sm:$0xf] %vm864_vm4, %v1021_v47  ;;  %891 = vst.msk [vmem:[%s1576_s3 + $0x68] sm:$0xf] %vm864_vm4, %v1045_v48  ;;  %v624_v54 = vsel %vm528_vm5, %v338_v39, %v576_v49  ;;  %vm555_vm8 = vcmp.ge.f32.partialorder %v445_v46, 0.0  ;;  %v341_v56 = vadd.f32 %v1329_v30, %v340_v50  ;;  %v1112_v57 = vpop.f32.mrf.mxu0  ;;  %v1136_v58 = vpop.f32.mrf.mxu1  ;;  %v437_v62 = vadd.f32 %v1329_v30, %v436_v51 }
  0xdf   :  { %v603_v55 = vmul.f32 0.2, %v445_v46  ;;  %v1019_v59 = vpack.c.bf16 %v624_v54, %v624_v54  ;;  %v648_v60 = vsel %vm552_vm6, %v434_v40, %v600_v52  ;;  %v627_v61 = vsel %vm531_vm7, %v349_v45, %v579_v53 }
  0xe0   :  { %v1043_v63 = vpack.c.bf16 %v648_v60, %v648_v60  ;;  %v1022_v0 = vpack.c.bf16 %v627_v61, %v627_v61  ;;  %vm529_vm9 = vcmp.ge.f32.partialorder %v341_v56, 0.0  ;;  %v353_v2 = vpop.f32.mrf.mxu0  ;;  %v449_v3 = vpop.f32.mrf.mxu1  ;;  %v577_v5 = vmul.f32 0.2, %v341_v56 }
  0xe1   :  { %v651_v1 = vsel %vm555_vm8, %v445_v46, %v603_v55  ;;  %865 = vst.msk [vmem:[%s1576_s3] sm:$0xf] %vm864_vm4, %v1019_v59  ;;  %vm553_vm10 = vcmp.ge.f32.partialorder %v437_v62, 0.0  ;;  %v601_v6 = vmul.f32 0.2, %v437_v62  ;;  %v362_v7 = vadd.f32 %v1112_v57, %v1329_v30 }
  0xe2   :  { %v1046_v4 = vpack.c.bf16 %v651_v1, %v651_v1  ;;  %889 = vst.msk [vmem:[%s1576_s3 + $0x60] sm:$0xf] %vm864_vm4, %v1043_v63  ;;  %868 = vst.msk [vmem:[%s1576_s3 + $0xc] sm:$0xf] %vm864_vm4, %v1022_v0  ;;  %v458_v8 = vadd.f32 %v1136_v58, %v1329_v30  ;;  %v354_v9 = vadd.f32 %v1329_v30, %v353_v2  ;;  %v1113_v11 = vpop.f32.mrf.mxu0  ;;  %v1137_v12 = vpop.f32.mrf.mxu1 }
  0xe3   :  { %v450_v10 = vadd.f32 %v1329_v30, %v449_v3  ;;  %v625_v13 = vsel %vm529_vm9, %v341_v56, %v577_v5  ;;  %v649_v14 = vsel %vm553_vm10, %v437_v62, %v601_v6  ;;  %v365_v15 = vadd.f32 %v1113_v11, %v1329_v30 }
  0xe4   :  { %892 = vst.msk [vmem:[%s1576_s3 + $0x6c] sm:$0xf] %vm864_vm4, %v1046_v4  ;;  %v461_v16 = vadd.f32 %v1137_v12, %v1329_v30  ;;  %v1020_v17 = vpack.c.bf16 %v625_v13, %v625_v13  ;;  %v1044_v18 = vpack.c.bf16 %v649_v14, %v649_v14  ;;  %vm534_vm11 = vcmp.ge.f32.partialorder %v362_v7, 0.0  ;;  %v356_v20 = vpop.f32.mrf.mxu0  ;;  %v452_v21 = vpop.f32.mrf.mxu1 }
  0xe5   :  { %v582_v19 = vmul.f32 0.2, %v362_v7  ;;  %vm558_vm12 = vcmp.ge.f32.partialorder %v458_v8, 0.0  ;;  %v606_v22 = vmul.f32 0.2, %v458_v8  ;;  %vm532_vm13 = vcmp.ge.f32.partialorder %v354_v9, 0.0 }
  0xe6   :  { %v580_v23 = vmul.f32 0.2, %v354_v9  ;;  %866 = vst.msk [vmem:[%s1576_s3 + $0x4] sm:$0xf] %vm864_vm4, %v1020_v17  ;;  %890 = vst.msk [vmem:[%s1576_s3 + $0x64] sm:$0xf] %vm864_vm4, %v1044_v18  ;;  %v1116_v26 = vpop.f32.mrf.mxu0  ;;  %v1140_v27 = vpop.f32.mrf.mxu1  ;;  %v357_v41 = vadd.f32 %v1329_v30, %v356_v20  ;;  %v453_v43 = vadd.f32 %v1329_v30, %v452_v21 }
  0xe7   :  { %v630_v24 = vsel %vm534_vm11, %v362_v7, %v582_v19  ;;  %vm556_vm14 = vcmp.ge.f32.partialorder %v450_v10, 0.0  ;;  %v604_v25 = vmul.f32 0.2, %v450_v10  ;;  %vm535_vm15 = vcmp.ge.f32.partialorder %v365_v15, 0.0 }
  0xe8   :  { %v1025_v28 = vpack.c.bf16 %v630_v24, %v630_v24  ;;  %v654_v29 = vsel %vm558_vm12, %v458_v8, %v606_v22  ;;  %v628_v31 = vsel %vm532_vm13, %v354_v9, %v580_v23  ;;  %v583_v32 = vmul.f32 0.2, %v365_v15  ;;  %v369_v36 = vpop.f32.mrf.mxu0  ;;  %v465_v37 = vpop.f32.mrf.mxu1 }
  0xe9   :  { %v1049_v33 = vpack.c.bf16 %v654_v29, %v654_v29  ;;  %v1023_v34 = vpack.c.bf16 %v628_v31, %v628_v31  ;;  %v652_v35 = vsel %vm556_vm14, %v450_v10, %v604_v25  ;;  %vm559_vm0 = vcmp.ge.f32.partialorder %v461_v16, 0.0 }
  0xea   :  { %871 = vst.msk [vmem:[%s1576_s3 + $0x18] sm:$0xf] %vm864_vm4, %v1025_v28  ;;  %v1047_v38 = vpack.c.bf16 %v652_v35, %v652_v35  ;;  %v631_v39 = vsel %vm535_vm15, %v365_v15, %v583_v32  ;;  %v607_v40 = vmul.f32 0.2, %v461_v16  ;;  %v378_v44 = vadd.f32 %v1116_v26, %v1329_v30  ;;  %v1117_v46 = vpop.f32.mrf.mxu0  ;;  %v1141_v47 = vpop.f32.mrf.mxu1 }
  0xeb   :  { %895 = vst.msk [vmem:[%s1576_s3 + $0x78] sm:$0xf] %vm864_vm4, %v1049_v33  ;;  %869 = vst.msk [vmem:[%s1576_s3 + $0x10] sm:$0xf] %vm864_vm4, %v1023_v34  ;;  %v1026_v42 = vpack.c.bf16 %v631_v39, %v631_v39  ;;  %v474_v45 = vadd.f32 %v1140_v27, %v1329_v30  ;;  %vm533_vm1 = vcmp.ge.f32.partialorder %v357_v41, 0.0  ;;  %v370_v50 = vadd.f32 %v1329_v30, %v369_v36 }
  0xec   :  { %893 = vst.msk [vmem:[%s1576_s3 + $0x70] sm:$0xf] %vm864_vm4, %v1047_v38  ;;  %v655_v48 = vsel %vm559_vm0, %v461_v16, %v607_v40  ;;  %v581_v49 = vmul.f32 0.2, %v357_v41  ;;  %vm557_vm2 = vcmp.ge.f32.partialorder %v453_v43, 0.0  ;;  %vm538_vm3 = vcmp.ge.f32.partialorder %v378_v44, 0.0  ;;  %v372_v53 = vpop.f32.mrf.mxu0  ;;  %v468_v54 = vpop.f32.mrf.mxu1 }
  0xed   :  { %872 = vst.msk [vmem:[%s1576_s3 + $0x1c] sm:$0xf] %vm864_vm4, %v1026_v42  ;;  %v1050_v51 = vpack.c.bf16 %v655_v48, %v655_v48  ;;  %v605_v52 = vmul.f32 0.2, %v453_v43  ;;  %v586_v56 = vmul.f32 0.2, %v378_v44  ;;  %v466_v2 = vadd.f32 %v1329_v30, %v465_v37 }
  0xee   :  { %v629_v55 = vsel %vm533_vm1, %v357_v41, %v581_v49  ;;  %vm562_vm5 = vcmp.ge.f32.partialorder %v474_v45, 0.0  ;;  %v610_v57 = vmul.f32 0.2, %v474_v45  ;;  %vm536_vm6 = vcmp.ge.f32.partialorder %v370_v50, 0.0  ;;  %v1120_v61 = vpop.f32.mrf.mxu0  ;;  %v1144_v62 = vpop.f32.mrf.mxu1 }
  0xef   :  { %896 = vst.msk [vmem:[%s1576_s3 + $0x7c] sm:$0xf] %vm864_vm4, %v1050_v51  ;;  %v1024_v58 = vpack.c.bf16 %v629_v55, %v629_v55  ;;  %v653_v59 = vsel %vm557_vm2, %v453_v43, %v605_v52  ;;  %v584_v60 = vmul.f32 0.2, %v370_v50  ;;  %v634_v0 = vsel %vm538_vm3, %v378_v44, %v586_v56 }
  0xf0   :  { %v1048_v63 = vpack.c.bf16 %v653_v59, %v653_v59  ;;  %v658_v1 = vsel %vm562_vm5, %v474_v45, %v610_v57  ;;  %v1029_v3 = vpack.c.bf16 %v634_v0, %v634_v0  ;;  %v381_v6 = vadd.f32 %v1117_v46, %v1329_v30  ;;  %v385_v7 = vpop.f32.mrf.mxu0  ;;  %v481_v8 = vpop.f32.mrf.mxu1 }
  0xf1   :  { %870 = vst.msk [vmem:[%s1576_s3 + $0x14] sm:$0xf] %vm864_vm4, %v1024_v58  ;;  %v1053_v4 = vpack.c.bf16 %v658_v1, %v658_v1  ;;  %v632_v5 = vsel %vm536_vm6, %v370_v50, %v584_v60  ;;  %vm560_vm7 = vcmp.ge.f32.partialorder %v466_v2, 0.0  ;;  %v608_v10 = vmul.f32 0.2, %v466_v2 }
  0xf2   :  { %894 = vst.msk [vmem:[%s1576_s3 + $0x74] sm:$0xf] %vm864_vm4, %v1048_v63  ;;  %v1027_v9 = vpack.c.bf16 %v632_v5, %v632_v5  ;;  %v477_v11 = vadd.f32 %v1141_v47, %v1329_v30  ;;  %875 = vst.msk [vmem:[%s1576_s3 + $0x28] sm:$0xf] %vm864_vm4, %v1029_v3  ;;  %vm539_vm8 = vcmp.ge.f32.partialorder %v381_v6, 0.0  ;;  %v373_v13 = vadd.f32 %v1329_v30, %v372_v53  ;;  %v1121_v15 = vpop.f32.mrf.mxu0  ;;  %v1145_v16 = vpop.f32.mrf.mxu1 }
  0xf3   :  { %899 = vst.msk [vmem:[%s1576_s3 + $0x88] sm:$0xf] %vm864_vm4, %v1053_v4  ;;  %v587_v12 = vmul.f32 0.2, %v381_v6  ;;  %v469_v14 = vadd.f32 %v1329_v30, %v468_v54  ;;  %v656_v17 = vsel %vm560_vm7, %v466_v2, %v608_v10  ;;  %v394_v19 = vadd.f32 %v1120_v61, %v1329_v30 }
  0xf4   :  { %873 = vst.msk [vmem:[%s1576_s3 + $0x20] sm:$0xf] %vm864_vm4, %v1027_v9  ;;  %vm563_vm9 = vcmp.ge.f32.partialorder %v477_v11, 0.0  ;;  %v611_v18 = vmul.f32 0.2, %v477_v11  ;;  %v1051_v20 = vpack.c.bf16 %v656_v17, %v656_v17  ;;  %vm537_vm10 = vcmp.ge.f32.partialorder %v373_v13, 0.0  ;;  %v388_v23 = vpop.f32.mrf.mxu0  ;;  %v484_v24 = vpop.f32.mrf.mxu1 }
  0xf5   :  { %v635_v21 = vsel %vm539_vm8, %v381_v6, %v587_v12  ;;  %v585_v22 = vmul.f32 0.2, %v373_v13  ;;  %vm561_vm11 = vcmp.ge.f32.partialorder %v469_v14, 0.0  ;;  %v609_v27 = vmul.f32 0.2, %v469_v14 }
  0xf6   :  { %v1030_v25 = vpack.c.bf16 %v635_v21, %v635_v21  ;;  %v659_v26 = vsel %vm563_vm9, %v477_v11, %v611_v18  ;;  %897 = vst.msk [vmem:[%s1576_s3 + $0x80] sm:$0xf] %vm864_vm4, %v1051_v20  ;;  %vm542_vm12 = vcmp.ge.f32.partialorder %v394_v19, 0.0  ;;  %v590_v31 = vmul.f32 0.2, %v394_v19  ;;  %v1124_v32 = vpop.f32.mrf.mxu0  ;;  %v1148_v33 = vpop.f32.mrf.mxu1 }
  0xf7   :  { %v1054_v28 = vpack.c.bf16 %v659_v26, %v659_v26  ;;  %v633_v29 = vsel %vm537_vm10, %v373_v13, %v585_v22  ;;  %v657_v35 = vsel %vm561_vm11, %v469_v14, %v609_v27  ;;  %v490_v36 = vadd.f32 %v1144_v62, %v1329_v30 }
  0xf8   :  { %876 = vst.msk [vmem:[%s1576_s3 + $0x2c] sm:$0xf] %vm864_vm4, %v1030_v25  ;;  %v1028_v34 = vpack.c.bf16 %v633_v29, %v633_v29  ;;  %v386_v37 = vadd.f32 %v1329_v30, %v385_v7  ;;  %v1052_v38 = vpack.c.bf16 %v657_v35, %v657_v35  ;;  %v638_v39 = vsel %vm542_vm12, %v394_v19, %v590_v31  ;;  %v401_v42 = vpop.f32.mrf.mxu0  ;;  %v497_v43 = vpop.f32.mrf.mxu1 }
  0xf9   :  { %900 = vst.msk [vmem:[%s1576_s3 + $0x8c] sm:$0xf] %vm864_vm4, %v1054_v28  ;;  %v482_v40 = vadd.f32 %v1329_v30, %v481_v8  ;;  %v397_v41 = vadd.f32 %v1121_v15, %v1329_v30  ;;  %v1033_v44 = vpack.c.bf16 %v638_v39, %v638_v39  ;;  %vm566_vm13 = vcmp.ge.f32.partialorder %v490_v36, 0.0 }
  0xfa   :  { %874 = vst.msk [vmem:[%s1576_s3 + $0x24] sm:$0xf] %vm864_vm4, %v1028_v34  ;;  %v614_v45 = vmul.f32 0.2, %v490_v36  ;;  %vm540_vm14 = vcmp.ge.f32.partialorder %v386_v37, 0.0  ;;  %v1125_v48 = vpop.f32.mrf.mxu0  ;;  %v1149_v49 = vpop.f32.mrf.mxu1  ;;  %v493_v52 = vadd.f32 %v1145_v16, %v1329_v30  ;;  %v389_v53 = vadd.f32 %v1329_v30, %v388_v23 }
  0xfb   :  { %898 = vst.msk [vmem:[%s1576_s3 + $0x84] sm:$0xf] %vm864_vm4, %v1052_v38  ;;  %v588_v46 = vmul.f32 0.2, %v386_v37  ;;  %vm564_vm15 = vcmp.ge.f32.partialorder %v482_v40, 0.0  ;;  %vm543_vm0 = vcmp.ge.f32.partialorder %v397_v41, 0.0  ;;  %v485_v57 = vadd.f32 %v1329_v30, %v484_v24 }
  0xfc   :  { %v612_v47 = vmul.f32 0.2, %v482_v40  ;;  %879 = vst.msk [vmem:[%s1576_s3 + $0x38] sm:$0xf] %vm864_vm4, %v1033_v44  ;;  %v662_v50 = vsel %vm566_vm13, %v490_v36, %v614_v45  ;;  %v591_v51 = vmul.f32 0.2, %v397_v41  ;;  %v404_v61 = vpop.f32.mrf.mxu0  ;;  %v500_v62 = vpop.f32.mrf.mxu1  ;;  %v410_v3 = vadd.f32 %v1124_v32, %v1329_v30 }
  0xfd   :  { %v1057_v54 = vpack.c.bf16 %v662_v50, %v662_v50  ;;  %v636_v55 = vsel %vm540_vm14, %v386_v37, %v588_v46  ;;  %vm567_vm1 = vcmp.ge.f32.partialorder %v493_v52, 0.0  ;;  %v615_v0 = vmul.f32 0.2, %v493_v52 }
  0xfe   :  { %v660_v56 = vsel %vm564_vm15, %v482_v40, %v612_v47  ;;  %v1031_v58 = vpack.c.bf16 %v636_v55, %v636_v55  ;;  %v639_v60 = vsel %vm543_vm0, %v397_v41, %v591_v51  ;;  %vm541_vm2 = vcmp.ge.f32.partialorder %v389_v53, 0.0  ;;  %v1128_v12 = vpop.f32.mrf.mxu0  ;;  %v1152_v13 = vpop.f32.mrf.mxu1 }
  0xff   :  { %v1055_v59 = vpack.c.bf16 %v660_v56, %v660_v56  ;;  %903 = vst.msk [vmem:[%s1576_s3 + $0x98] sm:$0xf] %vm864_vm4, %v1057_v54  ;;  %v1034_v63 = vpack.c.bf16 %v639_v60, %v639_v60  ;;  %v589_v1 = vmul.f32 0.2, %v389_v53  ;;  %vm565_vm3 = vcmp.ge.f32.partialorder %v485_v57, 0.0 }
 0x100   :  { %877 = vst.msk [vmem:[%s1576_s3 + $0x30] sm:$0xf] %vm864_vm4, %v1031_v58  ;;  %v613_v2 = vmul.f32 0.2, %v485_v57  ;;  %v506_v4 = vadd.f32 %v1148_v33, %v1329_v30  ;;  %v663_v5 = vsel %vm567_vm1, %v493_v52, %v615_v0  ;;  %v402_v7 = vadd.f32 %v1329_v30, %v401_v42  ;;  %v417_v27 = vpop.f32.mrf.mxu0  ;;  %v513_v28 = vpop.f32.mrf.mxu1 }
 0x101   :  { %901 = vst.msk [vmem:[%s1576_s3 + $0x90] sm:$0xf] %vm864_vm4, %v1055_v59  ;;  %880 = vst.msk [vmem:[%s1576_s3 + $0x3c] sm:$0xf] %vm864_vm4, %v1034_v63  ;;  %v637_v6 = vsel %vm541_vm2, %v389_v53, %v589_v1  ;;  %v498_v8 = vadd.f32 %v1329_v30, %v497_v43  ;;  %v1058_v9 = vpack.c.bf16 %v663_v5, %v663_v5  ;;  %vm546_vm5 = vcmp.ge.f32.partialorder %v410_v3, 0.0 }
 0x102   :  { %v1032_v10 = vpack.c.bf16 %v637_v6, %v637_v6  ;;  %v661_v11 = vsel %vm565_vm3, %v485_v57, %v613_v2  ;;  %v594_v15 = vmul.f32 0.2, %v410_v3  ;;  %vm570_vm6 = vcmp.ge.f32.partialorder %v506_v4, 0.0  ;;  %v1129_v43 = vpop.f32.mrf.mxu0  ;;  %v1153_v44 = vpop.f32.mrf.mxu1 }
 0x103   :  { %v1056_v14 = vpack.c.bf16 %v661_v11, %v661_v11  ;;  %v618_v16 = vmul.f32 0.2, %v506_v4  ;;  %904 = vst.msk [vmem:[%s1576_s3 + $0x9c] sm:$0xf] %vm864_vm4, %v1058_v9  ;;  %vm544_vm7 = vcmp.ge.f32.partialorder %v402_v7, 0.0  ;;  %vm568_vm8 = vcmp.ge.f32.partialorder %v498_v8, 0.0 }
 0x104   :  { %878 = vst.msk [vmem:[%s1576_s3 + $0x34] sm:$0xf] %vm864_vm4, %v1032_v10  ;;  %v592_v17 = vmul.f32 0.2, %v402_v7  ;;  %v616_v18 = vmul.f32 0.2, %v498_v8  ;;  %v642_v19 = vsel %vm546_vm5, %v410_v3, %v594_v15  ;;  %v413_v21 = vadd.f32 %v1125_v48, %v1329_v30  ;;  %v420_v57 = vpop.f32.mrf.mxu0  ;;  %v516_v58 = vpop.f32.mrf.mxu1 }
 0x105   :  { %902 = vst.msk [vmem:[%s1576_s3 + $0x94] sm:$0xf] %vm864_vm4, %v1056_v14  ;;  %v666_v20 = vsel %vm570_vm6, %v506_v4, %v618_v16  ;;  %v509_v22 = vadd.f32 %v1149_v49, %v1329_v30  ;;  %v1037_v23 = vpack.c.bf16 %v642_v19, %v642_v19  ;;  %v405_v34 = vadd.f32 %v1329_v30, %v404_v61 }
 0x106   :  { %v1061_v24 = vpack.c.bf16 %v666_v20, %v666_v20  ;;  %v640_v25 = vsel %vm544_vm7, %v402_v7, %v592_v17  ;;  %v664_v26 = vsel %vm568_vm8, %v498_v8, %v616_v18  ;;  %vm547_vm9 = vcmp.ge.f32.partialorder %v413_v21, 0.0 }
 0x107   :  { %v1035_v29 = vpack.c.bf16 %v640_v25, %v640_v25  ;;  %v1059_v31 = vpack.c.bf16 %v664_v26, %v664_v26  ;;  %v595_v32 = vmul.f32 0.2, %v413_v21  ;;  %883 = vst.msk [vmem:[%s1576_s3 + $0x48] sm:$0xf] %vm864_vm4, %v1037_v23  ;;  %vm571_vm10 = vcmp.ge.f32.partialorder %v509_v22, 0.0 }
 0x108   :  { %907 = vst.msk [vmem:[%s1576_s3 + $0xa8] sm:$0xf] %vm864_vm4, %v1061_v24  ;;  %v619_v33 = vmul.f32 0.2, %v509_v22  ;;  %v501_v35 = vadd.f32 %v1329_v30, %v500_v62  ;;  %v426_v37 = vadd.f32 %v1128_v12, %v1329_v30  ;;  %v522_v38 = vadd.f32 %v1152_v13, %v1329_v30 }
 0x109   :  { %881 = vst.msk [vmem:[%s1576_s3 + $0x40] sm:$0xf] %vm864_vm4, %v1035_v29  ;;  %905 = vst.msk [vmem:[%s1576_s3 + $0xa0] sm:$0xf] %vm864_vm4, %v1059_v31  ;;  %v643_v36 = vsel %vm547_vm9, %v413_v21, %v595_v32  ;;  %v418_v39 = vadd.f32 %v1329_v30, %v417_v27  ;;  %vm545_vm11 = vcmp.ge.f32.partialorder %v405_v34, 0.0  ;;  %v514_v56 = vadd.f32 %v1329_v30, %v513_v28 }
 0x10a   :  { %v1038_v40 = vpack.c.bf16 %v643_v36, %v643_v36  ;;  %v667_v41 = vsel %vm571_vm10, %v509_v22, %v619_v33  ;;  %v593_v42 = vmul.f32 0.2, %v405_v34  ;;  %vm569_vm12 = vcmp.ge.f32.partialorder %v501_v35, 0.0 }
 0x10b   :  { %v1062_v45 = vpack.c.bf16 %v667_v41, %v667_v41  ;;  %v617_v46 = vmul.f32 0.2, %v501_v35  ;;  %vm550_vm13 = vcmp.ge.f32.partialorder %v426_v37, 0.0  ;;  %v598_v48 = vmul.f32 0.2, %v426_v37 }
 0x10c   :  { %884 = vst.msk [vmem:[%s1576_s3 + $0x4c] sm:$0xf] %vm864_vm4, %v1038_v40  ;;  %v641_v47 = vsel %vm545_vm11, %v405_v34, %v593_v42  ;;  %vm574_vm14 = vcmp.ge.f32.partialorder %v522_v38, 0.0  ;;  %v622_v49 = vmul.f32 0.2, %v522_v38  ;;  %vm548_vm15 = vcmp.ge.f32.partialorder %v418_v39, 0.0 }
 0x10d   :  { %908 = vst.msk [vmem:[%s1576_s3 + $0xac] sm:$0xf] %vm864_vm4, %v1062_v45  ;;  %v1036_v50 = vpack.c.bf16 %v641_v47, %v641_v47  ;;  %v665_v51 = vsel %vm569_vm12, %v501_v35, %v617_v46  ;;  %v596_v52 = vmul.f32 0.2, %v418_v39  ;;  %v646_v54 = vsel %vm550_vm13, %v426_v37, %v598_v48 }
 0x10e   :  { %v1060_v53 = vpack.c.bf16 %v665_v51, %v665_v51  ;;  %v670_v55 = vsel %vm574_vm14, %v522_v38, %v622_v49  ;;  %v1041_v59 = vpack.c.bf16 %v646_v54, %v646_v54  ;;  %v429_v62 = vadd.f32 %v1129_v43, %v1329_v30 }
 0x10f   :  { %882 = vst.msk [vmem:[%s1576_s3 + $0x44] sm:$0xf] %vm864_vm4, %v1036_v50  ;;  %v1065_v60 = vpack.c.bf16 %v670_v55, %v670_v55  ;;  %v644_v61 = vsel %vm548_vm15, %v418_v39, %v596_v52  ;;  %vm572_vm0 = vcmp.ge.f32.partialorder %v514_v56, 0.0  ;;  %v620_v0 = vmul.f32 0.2, %v514_v56 }
 0x110   :  { %906 = vst.msk [vmem:[%s1576_s3 + $0xa4] sm:$0xf] %vm864_vm4, %v1060_v53  ;;  %v1039_v63 = vpack.c.bf16 %v644_v61, %v644_v61  ;;  %v525_v1 = vadd.f32 %v1153_v44, %v1329_v30  ;;  %887 = vst.msk [vmem:[%s1576_s3 + $0x58] sm:$0xf] %vm864_vm4, %v1041_v59  ;;  %vm551_vm1 = vcmp.ge.f32.partialorder %v429_v62, 0.0  ;;  %v421_v3 = vadd.f32 %v1329_v30, %v420_v57 }
 0x111   :  { %911 = vst.msk [vmem:[%s1576_s3 + $0xb8] sm:$0xf] %vm864_vm4, %v1065_v60  ;;  %v599_v2 = vmul.f32 0.2, %v429_v62  ;;  %v517_v4 = vadd.f32 %v1329_v30, %v516_v58  ;;  %v668_v5 = vsel %vm572_vm0, %v514_v56, %v620_v0 }
 0x112   :  { %885 = vst.msk [vmem:[%s1576_s3 + $0x50] sm:$0xf] %vm864_vm4, %v1039_v63  ;;  %vm575_vm2 = vcmp.ge.f32.partialorder %v525_v1, 0.0  ;;  %v623_v6 = vmul.f32 0.2, %v525_v1  ;;  %v1063_v7 = vpack.c.bf16 %v668_v5, %v668_v5  ;;  %vm549_vm3 = vcmp.ge.f32.partialorder %v421_v3, 0.0 }
 0x113   :  { %v647_v8 = vsel %vm551_vm1, %v429_v62, %v599_v2  ;;  %v597_v9 = vmul.f32 0.2, %v421_v3  ;;  %vm573_vm5 = vcmp.ge.f32.partialorder %v517_v4, 0.0  ;;  %v621_v12 = vmul.f32 0.2, %v517_v4 }
 0x114   :  { %v1042_v10 = vpack.c.bf16 %v647_v8, %v647_v8  ;;  %v671_v11 = vsel %vm575_vm2, %v525_v1, %v623_v6  ;;  %909 = vst.msk [vmem:[%s1576_s3 + $0xb0] sm:$0xf] %vm864_vm4, %v1063_v7 }
 0x115   :  { %v1066_v30 = vpack.c.bf16 %v671_v11, %v671_v11  ;;  %v645_v13 = vsel %vm549_vm3, %v421_v3, %v597_v9  ;;  %v669_v15 = vsel %vm573_vm5, %v517_v4, %v621_v12 }
 0x116   :  { %888 = vst.msk [vmem:[%s1576_s3 + $0x5c] sm:$0xf] %vm864_vm4, %v1042_v10  ;;  %v1040_v14 = vpack.c.bf16 %v645_v13, %v645_v13  ;;  %v1064_v16 = vpack.c.bf16 %v669_v15, %v669_v15 }
 0x117   :  { %912 = vst.msk [vmem:[%s1576_s3 + $0xbc] sm:$0xf] %vm864_vm4, %v1066_v30 }
 0x118   :  { %886 = vst.msk [vmem:[%s1576_s3 + $0x54] sm:$0xf] %vm864_vm4, %v1040_v14  ;;  %910 = vst.msk [vmem:[%s1576_s3 + $0xb4] sm:$0xf] %vm864_vm4, %v1064_v16 }

// kernel: _lambda_.28
= control target key start
LH: loop header
LB: loop body
LE: loop exit
PB: predicated region body
PF: predicated region fallthrough
CT: control target
= control target key end

     0   :  { %v1323_v0 = vmov 0   ;;  %vm358_vm0 = vcmask 130048   ;;  %vm992_vm3 = vcmask 125952   ;;  %s1784_s1 = inlined_call_operand.vmem [shape: bf16[144,16], index: 1, kind: input, shape index: {}]   ;;  %s1785_s0 = inlined_call_operand.vmem [shape: bf16[384,144], index: 0, kind: input, shape index: {}]   ;;  %s1786_s2 = inlined_call_operand.vmem [shape: f32[1,16], index: 2, kind: input, shape index: {}]   ;;  %s1787_s3 = inlined_call_operand.vmem [shape: bf16[384,16], index: 3, kind: output, shape index: {}]  }
   0x1   :  { %431 = vmatprep.subr.bf16.mxu0 %v1323_v0  ;;  %1223 = vmatprep.subr.bf16.mxu1 %v1323_v0  ;;  %v1242_v1 = vld [vmem:[%s1784_s1 + $0x38] sm:$0xff]   ;;  %v1243_v2 = vld [vmem:[%s1784_s1 + $0x30] sm:$0xff]   ;;  %v1244_v3 = vld [vmem:[%s1784_s1 + $0x28] sm:$0xff]  }
   0x2   :  { %432 = vmatpush1.bf16.msra.mxu0 %v1242_v1  ;;  %1232 = vmatpush1.bf16.msra.mxu1 %v1242_v1  ;;  %v1245_v4 = vld [vmem:[%s1784_s1 + $0x20] sm:$0xff]   ;;  %v1246_v7 = vld [vmem:[%s1784_s1 + $0x18] sm:$0xff]   ;;  %v1247_v8 = vld [vmem:[%s1784_s1 + $0x10] sm:$0xff]  }
   0x3   :  { %433 = vmatprep.subr.bf16.mxu0 %v1323_v0  ;;  %1224 = vmatprep.subr.bf16.mxu1 %v1323_v0  ;;  %v1253_v5 = vld [vmem:[%s1785_s0 + $0x4] ss:$8 sps:$4 sm:$0xff]   ;;  %v1251_v12 = vld [vmem:[%s1785_s0] ss:$8 sps:$4 sm:$0xff]   ;;  %v1257_v14 = vld [vmem:[%s1785_s0 + $0x14] ss:$8 sps:$4 sm:$0xff]  }
   0x4   :  { %v1256_v6 = vld [vmem:[%s1785_s0 + $0xc4] ss:$8 sps:$4 sm:$0xff]   ;;  %1103 = vmatprep.mubr.msk.bf16.mxu0 %vm358_vm0, %v1253_v5  ;;  %v1254_v13 = vld [vmem:[%s1785_s0 + $0xc0] ss:$8 sps:$4 sm:$0xff]   ;;  %v1259_v15 = vld [vmem:[%s1785_s0 + $0xd4] ss:$8 sps:$4 sm:$0xff]  }
   0x5   :  { %1115 = vmatprep.mubr.msk.bf16.mxu1 %vm358_vm0, %v1256_v6  ;;  %v1248_v9 = vld [vmem:[%s1784_s1 + $0x8] sm:$0xff]   ;;  %v1249_v10 = vld [vmem:[%s1784_s1] sm:$0xff]   ;;  %v1261_v16 = vld [vmem:[%s1785_s0 + $0x10] ss:$8 sps:$4 sm:$0xff]  }
   0x6   :  { %434 = vmatpush1.bf16.msra.mxu0 %v1243_v2  ;;  %1233 = vmatpush1.bf16.msra.mxu1 %v1243_v2  ;;  %v1250_v11 = vld [vmem:[%s1784_s1 + $0x40] sm:$0xff]   ;;  %v1262_v17 = vld [vmem:[%s1785_s0 + $0xd0] ss:$8 sps:$4 sm:$0xff]   ;;  %v1269_v22 = vld [vmem:[%s1785_s0 + $0x34] ss:$8 sps:$4 sm:$0xff]  }
   0x7   :  { %435 = vmatprep.subr.bf16.mxu0 %v1323_v0  ;;  %1225 = vmatprep.subr.bf16.mxu1 %v1323_v0  ;;  %v1263_v18 = vld [vmem:[%s1785_s0 + $0x24] ss:$8 sps:$4 sm:$0xff]   ;;  %v1267_v20 = vld [vmem:[%s1785_s0 + $0x20] ss:$8 sps:$4 sm:$0xff]   ;;  %v1271_v23 = vld [vmem:[%s1785_s0 + $0xf4] ss:$8 sps:$4 sm:$0xff]  }
   0x8   :  { %v1265_v19 = vld [vmem:[%s1785_s0 + $0xe4] ss:$8 sps:$4 sm:$0xff]   ;;  %v1268_v21 = vld [vmem:[%s1785_s0 + $0xe0] ss:$8 sps:$4 sm:$0xff]   ;;  %v1273_v24 = vld [vmem:[%s1785_s0 + $0x30] ss:$8 sps:$4 sm:$0xff]  }
   0x9   :  { %v1274_v25 = vld [vmem:[%s1785_s0 + $0xf0] ss:$8 sps:$4 sm:$0xff]   ;;  %v1275_v26 = vld [vmem:[%s1785_s0 + $0x44] ss:$8 sps:$4 sm:$0xff]   ;;  %v1279_v28 = vld [vmem:[%s1785_s0 + $0x40] ss:$8 sps:$4 sm:$0xff]  }
   0xa   :  { %436 = vmatpush1.bf16.msra.mxu0 %v1244_v3  ;;  %1234 = vmatpush1.bf16.msra.mxu1 %v1244_v3  ;;  %v1277_v27 = vld [vmem:[%s1785_s0 + $0x104] ss:$8 sps:$4 sm:$0xff]   ;;  %v1280_v29 = vld [vmem:[%s1785_s0 + $0x100] ss:$8 sps:$4 sm:$0xff]   ;;  %v1281_v30 = vld [vmem:[%s1785_s0 + $0x54] ss:$8 sps:$4 sm:$0xff]  }
   0xb   :  { %437 = vmatprep.subr.bf16.mxu0 %v1323_v0  ;;  %1226 = vmatprep.subr.bf16.mxu1 %v1323_v0  ;;  %v1283_v31 = vld [vmem:[%s1785_s0 + $0x114] ss:$8 sps:$4 sm:$0xff]   ;;  %v1285_v32 = vld [vmem:[%s1785_s0 + $0x50] ss:$8 sps:$4 sm:$0xff]   ;;  %v1287_v34 = vld [vmem:[%s1785_s0 + $0x64] ss:$8 sps:$4 sm:$0xff]  }
   0xc   :  { %v1286_v33 = vld [vmem:[%s1785_s0 + $0x110] ss:$8 sps:$4 sm:$0xff]   ;;  %v1289_v35 = vld [vmem:[%s1785_s0 + $0x124] ss:$8 sps:$4 sm:$0xff]   ;;  %v1291_v36 = vld [vmem:[%s1785_s0 + $0x60] ss:$8 sps:$4 sm:$0xff]  }
   0xd   :  { %v1292_v37 = vld [vmem:[%s1785_s0 + $0x120] ss:$8 sps:$4 sm:$0xff]   ;;  %v1293_v38 = vld [vmem:[%s1785_s0 + $0x74] ss:$8 sps:$4 sm:$0xff]   ;;  %v1297_v40 = vld [vmem:[%s1785_s0 + $0x70] ss:$8 sps:$4 sm:$0xff]  }
   0xe   :  { %438 = vmatpush1.bf16.msra.mxu0 %v1245_v4  ;;  %1235 = vmatpush1.bf16.msra.mxu1 %v1245_v4  ;;  %v1295_v39 = vld [vmem:[%s1785_s0 + $0x134] ss:$8 sps:$4 sm:$0xff]   ;;  %v1298_v41 = vld [vmem:[%s1785_s0 + $0x130] ss:$8 sps:$4 sm:$0xff]   ;;  %v1299_v42 = vld [vmem:[%s1785_s0 + $0x84] ss:$8 sps:$4 sm:$0xff]  }
   0xf   :  { %439 = vmatprep.subr.bf16.mxu0 %v1323_v0  ;;  %1227 = vmatprep.subr.bf16.mxu1 %v1323_v0  ;;  %v1301_v43 = vld [vmem:[%s1785_s0 + $0x144] ss:$8 sps:$4 sm:$0xff]   ;;  %v1303_v44 = vld [vmem:[%s1785_s0 + $0x80] ss:$8 sps:$4 sm:$0xff]   ;;  %v1305_v46 = vld [vmem:[%s1785_s0 + $0x94] ss:$8 sps:$4 sm:$0xff]  }
  0x10   :  { %v1304_v45 = vld [vmem:[%s1785_s0 + $0x140] ss:$8 sps:$4 sm:$0xff]   ;;  %v1307_v47 = vld [vmem:[%s1785_s0 + $0x154] ss:$8 sps:$4 sm:$0xff]   ;;  %v1309_v48 = vld [vmem:[%s1785_s0 + $0x90] ss:$8 sps:$4 sm:$0xff]  }
  0x11   :  { %v1310_v49 = vld [vmem:[%s1785_s0 + $0x150] ss:$8 sps:$4 sm:$0xff]   ;;  %v1311_v50 = vld [vmem:[%s1785_s0 + $0xa4] ss:$8 sps:$4 sm:$0xff]   ;;  %v1315_v52 = vld [vmem:[%s1785_s0 + $0xa0] ss:$8 sps:$4 sm:$0xff]  }
  0x12   :  { %440 = vmatpush1.bf16.msra.mxu0 %v1246_v7  ;;  %1236 = vmatpush1.bf16.msra.mxu1 %v1246_v7  ;;  %v1313_v51 = vld [vmem:[%s1785_s0 + $0x164] ss:$8 sps:$4 sm:$0xff]   ;;  %v1316_v53 = vld [vmem:[%s1785_s0 + $0x160] ss:$8 sps:$4 sm:$0xff]   ;;  %v1317_v54 = vld [vmem:[%s1785_s0 + $0xb4] ss:$8 sps:$4 sm:$0xff]  }
  0x13   :  { %441 = vmatprep.subr.bf16.mxu0 %v1323_v0  ;;  %1228 = vmatprep.subr.bf16.mxu1 %v1323_v0  ;;  %v1319_v55 = vld [vmem:[%s1785_s0 + $0x174] ss:$8 sps:$4 sm:$0xff]   ;;  %v1321_v56 = vld [vmem:[%s1785_s0 + $0xb0] ss:$8 sps:$4 sm:$0xff]   ;;  %v1542_v58 = vld [vmem:[%s1786_s2] ss:$0 sm:$0xff] }
  0x14   :  { %v1322_v57 = vld [vmem:[%s1785_s0 + $0x170] ss:$8 sps:$4 sm:$0xff]  }
  0x16   :  { %442 = vmatpush1.bf16.msra.mxu0 %v1247_v8  ;;  %1237 = vmatpush1.bf16.msra.mxu1 %v1247_v8 }
  0x17   :  { %443 = vmatprep.subr.bf16.mxu0 %v1323_v0  ;;  %1229 = vmatprep.subr.bf16.mxu1 %v1323_v0 }
  0x1a   :  { %444 = vmatpush1.bf16.msra.mxu0 %v1248_v9  ;;  %1238 = vmatpush1.bf16.msra.mxu1 %v1248_v9 }
  0x1b   :  { %445 = vmatprep.subr.bf16.mxu0 %v1323_v0  ;;  %1230 = vmatprep.subr.bf16.mxu1 %v1323_v0 }
  0x1e   :  { %446 = vmatpush1.bf16.msra.mxu0 %v1249_v10  ;;  %1239 = vmatpush1.bf16.msra.mxu1 %v1249_v10 }
  0x1f   :  { %461 = vmatprep.subr.bf16.mxu0 %v1323_v0  ;;  %1231 = vmatprep.subr.bf16.mxu1 %v1323_v0 }
  0x22   :  { %462 = vmatpush2.bf16.msra.mxu0 %v1250_v11  ;;  %1240 = vmatpush2.bf16.msra.mxu1 %v1250_v11 }
  0x25   :  { %464 = vmatmul.mubr.bf16.vlgmr.msra.gmra.mxu0 %v1251_v12  ;;  %560 = vmatmul.mubr.bf16.vlgmr.msra.gmra.mxu1 %v1254_v13 }
  0x26   :  { %1104 = vmatprep.mubr.msk.bf16.mxu0 %vm358_vm0, %v1257_v14  ;;  %1116 = vmatprep.mubr.msk.bf16.mxu1 %vm358_vm0, %v1259_v15 }
  0x2d   :  { %472 = vmatmul.mubr.bf16.gmra.mxu0 %v1261_v16  ;;  %568 = vmatmul.mubr.bf16.gmra.mxu1 %v1262_v17 }
  0x2e   :  { %1105 = vmatprep.mubr.msk.bf16.mxu0 %vm358_vm0, %v1263_v18  ;;  %1117 = vmatprep.mubr.msk.bf16.mxu1 %vm358_vm0, %v1265_v19 }
  0x35   :  { %480 = vmatmul.mubr.bf16.gmra.mxu0 %v1267_v20  ;;  %576 = vmatmul.mubr.bf16.gmra.mxu1 %v1268_v21 }
  0x36   :  { %1106 = vmatprep.mubr.msk.bf16.mxu0 %vm358_vm0, %v1269_v22  ;;  %1118 = vmatprep.mubr.msk.bf16.mxu1 %vm358_vm0, %v1271_v23 }
  0x3d   :  { %488 = vmatmul.mubr.bf16.gmra.mxu0 %v1273_v24  ;;  %584 = vmatmul.mubr.bf16.gmra.mxu1 %v1274_v25 }
  0x3e   :  { %1107 = vmatprep.mubr.msk.bf16.mxu0 %vm358_vm0, %v1275_v26  ;;  %1119 = vmatprep.mubr.msk.bf16.mxu1 %vm358_vm0, %v1277_v27 }
  0x45   :  { %496 = vmatmul.mubr.bf16.gmra.mxu0 %v1279_v28  ;;  %592 = vmatmul.mubr.bf16.gmra.mxu1 %v1280_v29 }
  0x46   :  { %1108 = vmatprep.mubr.msk.bf16.mxu0 %vm358_vm0, %v1281_v30  ;;  %1120 = vmatprep.mubr.msk.bf16.mxu1 %vm358_vm0, %v1283_v31 }
  0x4d   :  { %504 = vmatmul.mubr.bf16.gmra.mxu0 %v1285_v32  ;;  %600 = vmatmul.mubr.bf16.gmra.mxu1 %v1286_v33 }
  0x4e   :  { %1109 = vmatprep.mubr.msk.bf16.mxu0 %vm358_vm0, %v1287_v34  ;;  %1121 = vmatprep.mubr.msk.bf16.mxu1 %vm358_vm0, %v1289_v35 }
  0x55   :  { %512 = vmatmul.mubr.bf16.gmra.mxu0 %v1291_v36  ;;  %608 = vmatmul.mubr.bf16.gmra.mxu1 %v1292_v37 }
  0x56   :  { %1110 = vmatprep.mubr.msk.bf16.mxu0 %vm358_vm0, %v1293_v38  ;;  %1122 = vmatprep.mubr.msk.bf16.mxu1 %vm358_vm0, %v1295_v39 }
  0x5d   :  { %520 = vmatmul.mubr.bf16.gmra.mxu0 %v1297_v40  ;;  %616 = vmatmul.mubr.bf16.gmra.mxu1 %v1298_v41 }
  0x5e   :  { %1111 = vmatprep.mubr.msk.bf16.mxu0 %vm358_vm0, %v1299_v42  ;;  %1123 = vmatprep.mubr.msk.bf16.mxu1 %vm358_vm0, %v1301_v43 }
  0x65   :  { %528 = vmatmul.mubr.bf16.gmra.mxu0 %v1303_v44  ;;  %624 = vmatmul.mubr.bf16.gmra.mxu1 %v1304_v45 }
  0x66   :  { %1112 = vmatprep.mubr.msk.bf16.mxu0 %vm358_vm0, %v1305_v46  ;;  %1124 = vmatprep.mubr.msk.bf16.mxu1 %vm358_vm0, %v1307_v47 }
  0x6d   :  { %536 = vmatmul.mubr.bf16.gmra.mxu0 %v1309_v48  ;;  %632 = vmatmul.mubr.bf16.gmra.mxu1 %v1310_v49 }
  0x6e   :  { %1113 = vmatprep.mubr.msk.bf16.mxu0 %vm358_vm0, %v1311_v50  ;;  %1125 = vmatprep.mubr.msk.bf16.mxu1 %vm358_vm0, %v1313_v51 }
  0x75   :  { %544 = vmatmul.mubr.bf16.gmra.mxu0 %v1315_v52  ;;  %640 = vmatmul.mubr.bf16.gmra.mxu1 %v1316_v53 }
  0x76   :  { %1114 = vmatprep.mubr.msk.bf16.mxu0 %vm358_vm0, %v1317_v54  ;;  %1126 = vmatprep.mubr.msk.bf16.mxu1 %vm358_vm0, %v1319_v55 }
  0x7d   :  { %552 = vmatmul.mubr.bf16.gmra.mxu0 %v1321_v56  ;;  %648 = vmatmul.mubr.bf16.gmra.mxu1 %v1322_v57 }
  0xe5   :  { %v465_v59 = vpop.f32.mrf.mxu0  ;;  %v561_v60 = vpop.f32.mrf.mxu1 }
  0xe6   :  { %v466_v61 = vadd.f32 %v1542_v58, %v465_v59  ;;  %v562_v62 = vadd.f32 %v1542_v58, %v561_v60 }
  0xe7   :  { %v467_v63 = vpop.f32.mrf.mxu0  ;;  %v563_v0 = vpop.f32.mrf.mxu1 }
  0xe8   :  { %vm656_vm1 = vcmp.ge.f32.partialorder %v466_v61, 0.0  ;;  %v704_v1 = vmul.f32 0.2, %v466_v61  ;;  %vm680_vm2 = vcmp.ge.f32.partialorder %v562_v62, 0.0  ;;  %v728_v2 = vmul.f32 0.2, %v562_v62 }
  0xe9   :  { %v468_v3 = vpop.f32.mrf.mxu0  ;;  %v564_v4 = vpop.f32.mrf.mxu1 }
  0xea   :  { %v752_v5 = vsel %vm656_vm1, %v466_v61, %v704_v1  ;;  %v776_v6 = vsel %vm680_vm2, %v562_v62, %v728_v2  ;;  %v469_v7 = vadd.f32 %v1542_v58, %v468_v3  ;;  %v565_v8 = vadd.f32 %v1542_v58, %v564_v4 }
  0xeb   :  { %v1175_v9 = vpack.c.bf16 %v752_v5, %v752_v5  ;;  %v1199_v10 = vpack.c.bf16 %v776_v6, %v776_v6  ;;  %v470_v11 = vpop.f32.mrf.mxu0  ;;  %v566_v12 = vpop.f32.mrf.mxu1 }
  0xec   :  { %vm657_vm4 = vcmp.ge.f32.partialorder %v469_v7, 0.0  ;;  %v705_v13 = vmul.f32 0.2, %v469_v7  ;;  %vm681_vm5 = vcmp.ge.f32.partialorder %v565_v8, 0.0  ;;  %v729_v14 = vmul.f32 0.2, %v565_v8 }
  0xed   :  { %993 = vst.msk [vmem:[%s1787_s3] sm:$0xf] %vm992_vm3, %v1175_v9  ;;  %1017 = vst.msk [vmem:[%s1787_s3 + $0x60] sm:$0xf] %vm992_vm3, %v1199_v10  ;;  %v473_v15 = vpop.f32.mrf.mxu0  ;;  %v569_v16 = vpop.f32.mrf.mxu1 }
  0xee   :  { %v753_v17 = vsel %vm657_vm4, %v469_v7, %v705_v13  ;;  %v777_v18 = vsel %vm681_vm5, %v565_v8, %v729_v14  ;;  %v474_v19 = vadd.f32 %v1542_v58, %v473_v15  ;;  %v570_v20 = vadd.f32 %v1542_v58, %v569_v16 }
  0xef   :  { %v1176_v21 = vpack.c.bf16 %v753_v17, %v753_v17  ;;  %v1200_v22 = vpack.c.bf16 %v777_v18, %v777_v18  ;;  %v475_v23 = vpop.f32.mrf.mxu0  ;;  %v571_v24 = vpop.f32.mrf.mxu1 }
  0xf0   :  { %vm658_vm6 = vcmp.ge.f32.partialorder %v474_v19, 0.0  ;;  %v706_v25 = vmul.f32 0.2, %v474_v19  ;;  %vm682_vm7 = vcmp.ge.f32.partialorder %v570_v20, 0.0  ;;  %v730_v26 = vmul.f32 0.2, %v570_v20 }
  0xf1   :  { %994 = vst.msk [vmem:[%s1787_s3 + $0x4] sm:$0xf] %vm992_vm3, %v1176_v21  ;;  %1018 = vst.msk [vmem:[%s1787_s3 + $0x64] sm:$0xf] %vm992_vm3, %v1200_v22  ;;  %v476_v27 = vpop.f32.mrf.mxu0  ;;  %v572_v28 = vpop.f32.mrf.mxu1 }
  0xf2   :  { %v754_v29 = vsel %vm658_vm6, %v474_v19, %v706_v25  ;;  %v778_v30 = vsel %vm682_vm7, %v570_v20, %v730_v26  ;;  %v477_v31 = vadd.f32 %v1542_v58, %v476_v27  ;;  %v573_v32 = vadd.f32 %v1542_v58, %v572_v28 }
  0xf3   :  { %v1177_v33 = vpack.c.bf16 %v754_v29, %v754_v29  ;;  %v1201_v34 = vpack.c.bf16 %v778_v30, %v778_v30  ;;  %v478_v35 = vpop.f32.mrf.mxu0  ;;  %v574_v36 = vpop.f32.mrf.mxu1 }
  0xf4   :  { %vm659_vm8 = vcmp.ge.f32.partialorder %v477_v31, 0.0  ;;  %v707_v37 = vmul.f32 0.2, %v477_v31  ;;  %vm683_vm9 = vcmp.ge.f32.partialorder %v573_v32, 0.0  ;;  %v731_v38 = vmul.f32 0.2, %v573_v32 }
  0xf5   :  { %995 = vst.msk [vmem:[%s1787_s3 + $0x8] sm:$0xf] %vm992_vm3, %v1177_v33  ;;  %1019 = vst.msk [vmem:[%s1787_s3 + $0x68] sm:$0xf] %vm992_vm3, %v1201_v34  ;;  %v481_v39 = vpop.f32.mrf.mxu0  ;;  %v577_v40 = vpop.f32.mrf.mxu1 }
  0xf6   :  { %v755_v41 = vsel %vm659_vm8, %v477_v31, %v707_v37  ;;  %v779_v42 = vsel %vm683_vm9, %v573_v32, %v731_v38  ;;  %v482_v43 = vadd.f32 %v1542_v58, %v481_v39  ;;  %v578_v44 = vadd.f32 %v1542_v58, %v577_v40 }
  0xf7   :  { %v1178_v45 = vpack.c.bf16 %v755_v41, %v755_v41  ;;  %v1202_v46 = vpack.c.bf16 %v779_v42, %v779_v42  ;;  %v483_v47 = vpop.f32.mrf.mxu0  ;;  %v579_v48 = vpop.f32.mrf.mxu1 }
  0xf8   :  { %vm660_vm10 = vcmp.ge.f32.partialorder %v482_v43, 0.0  ;;  %v708_v49 = vmul.f32 0.2, %v482_v43  ;;  %vm684_vm11 = vcmp.ge.f32.partialorder %v578_v44, 0.0  ;;  %v732_v50 = vmul.f32 0.2, %v578_v44 }
  0xf9   :  { %996 = vst.msk [vmem:[%s1787_s3 + $0xc] sm:$0xf] %vm992_vm3, %v1178_v45  ;;  %1020 = vst.msk [vmem:[%s1787_s3 + $0x6c] sm:$0xf] %vm992_vm3, %v1202_v46  ;;  %v484_v51 = vpop.f32.mrf.mxu0  ;;  %v580_v52 = vpop.f32.mrf.mxu1 }
  0xfa   :  { %v756_v53 = vsel %vm660_vm10, %v482_v43, %v708_v49  ;;  %v780_v54 = vsel %vm684_vm11, %v578_v44, %v732_v50  ;;  %v485_v55 = vadd.f32 %v1542_v58, %v484_v51  ;;  %v581_v56 = vadd.f32 %v1542_v58, %v580_v52 }
  0xfb   :  { %v1179_v57 = vpack.c.bf16 %v756_v53, %v756_v53  ;;  %v1203_v59 = vpack.c.bf16 %v780_v54, %v780_v54  ;;  %v486_v60 = vpop.f32.mrf.mxu0  ;;  %v582_v61 = vpop.f32.mrf.mxu1 }
  0xfc   :  { %vm661_vm12 = vcmp.ge.f32.partialorder %v485_v55, 0.0  ;;  %v709_v62 = vmul.f32 0.2, %v485_v55  ;;  %vm685_vm13 = vcmp.ge.f32.partialorder %v581_v56, 0.0  ;;  %v733_v63 = vmul.f32 0.2, %v581_v56 }
  0xfd   :  { %997 = vst.msk [vmem:[%s1787_s3 + $0x10] sm:$0xf] %vm992_vm3, %v1179_v57  ;;  %1021 = vst.msk [vmem:[%s1787_s3 + $0x70] sm:$0xf] %vm992_vm3, %v1203_v59  ;;  %v489_v0 = vpop.f32.mrf.mxu0  ;;  %v585_v1 = vpop.f32.mrf.mxu1 }
  0xfe   :  { %v757_v2 = vsel %vm661_vm12, %v485_v55, %v709_v62  ;;  %v781_v3 = vsel %vm685_vm13, %v581_v56, %v733_v63  ;;  %v490_v4 = vadd.f32 %v1542_v58, %v489_v0  ;;  %v586_v5 = vadd.f32 %v1542_v58, %v585_v1 }
  0xff   :  { %v1180_v6 = vpack.c.bf16 %v757_v2, %v757_v2  ;;  %v1204_v7 = vpack.c.bf16 %v781_v3, %v781_v3  ;;  %v491_v8 = vpop.f32.mrf.mxu0  ;;  %v587_v9 = vpop.f32.mrf.mxu1 }
 0x100   :  { %vm662_vm14 = vcmp.ge.f32.partialorder %v490_v4, 0.0  ;;  %v710_v10 = vmul.f32 0.2, %v490_v4  ;;  %vm686_vm15 = vcmp.ge.f32.partialorder %v586_v5, 0.0  ;;  %v734_v11 = vmul.f32 0.2, %v586_v5 }
 0x101   :  { %998 = vst.msk [vmem:[%s1787_s3 + $0x14] sm:$0xf] %vm992_vm3, %v1180_v6  ;;  %1022 = vst.msk [vmem:[%s1787_s3 + $0x74] sm:$0xf] %vm992_vm3, %v1204_v7  ;;  %v492_v12 = vpop.f32.mrf.mxu0  ;;  %v588_v13 = vpop.f32.mrf.mxu1 }
 0x102   :  { %v758_v14 = vsel %vm662_vm14, %v490_v4, %v710_v10  ;;  %v782_v15 = vsel %vm686_vm15, %v586_v5, %v734_v11  ;;  %v493_v16 = vadd.f32 %v1542_v58, %v492_v12  ;;  %v589_v17 = vadd.f32 %v1542_v58, %v588_v13 }
 0x103   :  { %v1181_v18 = vpack.c.bf16 %v758_v14, %v758_v14  ;;  %v1205_v19 = vpack.c.bf16 %v782_v15, %v782_v15  ;;  %v494_v20 = vpop.f32.mrf.mxu0  ;;  %v590_v21 = vpop.f32.mrf.mxu1 }
 0x104   :  { %vm663_vm0 = vcmp.ge.f32.partialorder %v493_v16, 0.0  ;;  %v711_v22 = vmul.f32 0.2, %v493_v16  ;;  %vm687_vm1 = vcmp.ge.f32.partialorder %v589_v17, 0.0  ;;  %v735_v23 = vmul.f32 0.2, %v589_v17 }
 0x105   :  { %999 = vst.msk [vmem:[%s1787_s3 + $0x18] sm:$0xf] %vm992_vm3, %v1181_v18  ;;  %1023 = vst.msk [vmem:[%s1787_s3 + $0x78] sm:$0xf] %vm992_vm3, %v1205_v19  ;;  %v497_v24 = vpop.f32.mrf.mxu0  ;;  %v593_v25 = vpop.f32.mrf.mxu1 }
 0x106   :  { %v759_v26 = vsel %vm663_vm0, %v493_v16, %v711_v22  ;;  %v783_v27 = vsel %vm687_vm1, %v589_v17, %v735_v23  ;;  %v498_v28 = vadd.f32 %v1542_v58, %v497_v24  ;;  %v594_v29 = vadd.f32 %v1542_v58, %v593_v25 }
 0x107   :  { %v1182_v30 = vpack.c.bf16 %v759_v26, %v759_v26  ;;  %v1206_v31 = vpack.c.bf16 %v783_v27, %v783_v27  ;;  %v499_v32 = vpop.f32.mrf.mxu0  ;;  %v595_v33 = vpop.f32.mrf.mxu1 }
 0x108   :  { %vm664_vm2 = vcmp.ge.f32.partialorder %v498_v28, 0.0  ;;  %v712_v34 = vmul.f32 0.2, %v498_v28  ;;  %vm688_vm4 = vcmp.ge.f32.partialorder %v594_v29, 0.0  ;;  %v736_v35 = vmul.f32 0.2, %v594_v29 }
 0x109   :  { %1000 = vst.msk [vmem:[%s1787_s3 + $0x1c] sm:$0xf] %vm992_vm3, %v1182_v30  ;;  %1024 = vst.msk [vmem:[%s1787_s3 + $0x7c] sm:$0xf] %vm992_vm3, %v1206_v31  ;;  %v500_v36 = vpop.f32.mrf.mxu0  ;;  %v596_v37 = vpop.f32.mrf.mxu1 }
 0x10a   :  { %v760_v38 = vsel %vm664_vm2, %v498_v28, %v712_v34  ;;  %v784_v39 = vsel %vm688_vm4, %v594_v29, %v736_v35  ;;  %v501_v40 = vadd.f32 %v1542_v58, %v500_v36  ;;  %v597_v41 = vadd.f32 %v1542_v58, %v596_v37 }
 0x10b   :  { %v1183_v42 = vpack.c.bf16 %v760_v38, %v760_v38  ;;  %v1207_v43 = vpack.c.bf16 %v784_v39, %v784_v39  ;;  %v502_v44 = vpop.f32.mrf.mxu0  ;;  %v598_v45 = vpop.f32.mrf.mxu1 }
 0x10c   :  { %vm665_vm5 = vcmp.ge.f32.partialorder %v501_v40, 0.0  ;;  %v713_v46 = vmul.f32 0.2, %v501_v40  ;;  %vm689_vm6 = vcmp.ge.f32.partialorder %v597_v41, 0.0  ;;  %v737_v47 = vmul.f32 0.2, %v597_v41 }
 0x10d   :  { %1001 = vst.msk [vmem:[%s1787_s3 + $0x20] sm:$0xf] %vm992_vm3, %v1183_v42  ;;  %1025 = vst.msk [vmem:[%s1787_s3 + $0x80] sm:$0xf] %vm992_vm3, %v1207_v43  ;;  %v505_v48 = vpop.f32.mrf.mxu0  ;;  %v601_v49 = vpop.f32.mrf.mxu1 }
 0x10e   :  { %v761_v50 = vsel %vm665_vm5, %v501_v40, %v713_v46  ;;  %v785_v51 = vsel %vm689_vm6, %v597_v41, %v737_v47  ;;  %v506_v52 = vadd.f32 %v1542_v58, %v505_v48  ;;  %v602_v53 = vadd.f32 %v1542_v58, %v601_v49 }
 0x10f   :  { %v1184_v54 = vpack.c.bf16 %v761_v50, %v761_v50  ;;  %v1208_v55 = vpack.c.bf16 %v785_v51, %v785_v51  ;;  %v507_v56 = vpop.f32.mrf.mxu0  ;;  %v603_v57 = vpop.f32.mrf.mxu1 }
 0x110   :  { %vm666_vm7 = vcmp.ge.f32.partialorder %v506_v52, 0.0  ;;  %v714_v59 = vmul.f32 0.2, %v506_v52  ;;  %vm690_vm8 = vcmp.ge.f32.partialorder %v602_v53, 0.0  ;;  %v738_v60 = vmul.f32 0.2, %v602_v53 }
 0x111   :  { %1002 = vst.msk [vmem:[%s1787_s3 + $0x24] sm:$0xf] %vm992_vm3, %v1184_v54  ;;  %1026 = vst.msk [vmem:[%s1787_s3 + $0x84] sm:$0xf] %vm992_vm3, %v1208_v55  ;;  %v508_v61 = vpop.f32.mrf.mxu0  ;;  %v604_v62 = vpop.f32.mrf.mxu1 }
 0x112   :  { %v762_v63 = vsel %vm666_vm7, %v506_v52, %v714_v59  ;;  %v786_v0 = vsel %vm690_vm8, %v602_v53, %v738_v60  ;;  %v509_v1 = vadd.f32 %v1542_v58, %v508_v61  ;;  %v605_v2 = vadd.f32 %v1542_v58, %v604_v62 }
 0x113   :  { %v1185_v3 = vpack.c.bf16 %v762_v63, %v762_v63  ;;  %v1209_v4 = vpack.c.bf16 %v786_v0, %v786_v0  ;;  %v510_v5 = vpop.f32.mrf.mxu0  ;;  %v606_v6 = vpop.f32.mrf.mxu1 }
 0x114   :  { %vm667_vm9 = vcmp.ge.f32.partialorder %v509_v1, 0.0  ;;  %v715_v7 = vmul.f32 0.2, %v509_v1  ;;  %vm691_vm10 = vcmp.ge.f32.partialorder %v605_v2, 0.0  ;;  %v739_v8 = vmul.f32 0.2, %v605_v2 }
 0x115   :  { %1003 = vst.msk [vmem:[%s1787_s3 + $0x28] sm:$0xf] %vm992_vm3, %v1185_v3  ;;  %1027 = vst.msk [vmem:[%s1787_s3 + $0x88] sm:$0xf] %vm992_vm3, %v1209_v4  ;;  %v513_v9 = vpop.f32.mrf.mxu0  ;;  %v609_v10 = vpop.f32.mrf.mxu1 }
 0x116   :  { %v763_v11 = vsel %vm667_vm9, %v509_v1, %v715_v7  ;;  %v787_v12 = vsel %vm691_vm10, %v605_v2, %v739_v8  ;;  %v514_v13 = vadd.f32 %v1542_v58, %v513_v9  ;;  %v610_v14 = vadd.f32 %v1542_v58, %v609_v10 }
 0x117   :  { %v1186_v15 = vpack.c.bf16 %v763_v11, %v763_v11  ;;  %v1210_v16 = vpack.c.bf16 %v787_v12, %v787_v12  ;;  %v515_v17 = vpop.f32.mrf.mxu0  ;;  %v611_v18 = vpop.f32.mrf.mxu1 }
 0x118   :  { %vm668_vm11 = vcmp.ge.f32.partialorder %v514_v13, 0.0  ;;  %v716_v19 = vmul.f32 0.2, %v514_v13  ;;  %vm692_vm12 = vcmp.ge.f32.partialorder %v610_v14, 0.0  ;;  %v740_v20 = vmul.f32 0.2, %v610_v14 }
 0x119   :  { %1004 = vst.msk [vmem:[%s1787_s3 + $0x2c] sm:$0xf] %vm992_vm3, %v1186_v15  ;;  %1028 = vst.msk [vmem:[%s1787_s3 + $0x8c] sm:$0xf] %vm992_vm3, %v1210_v16  ;;  %v516_v21 = vpop.f32.mrf.mxu0  ;;  %v612_v22 = vpop.f32.mrf.mxu1 }
 0x11a   :  { %v764_v23 = vsel %vm668_vm11, %v514_v13, %v716_v19  ;;  %v788_v24 = vsel %vm692_vm12, %v610_v14, %v740_v20  ;;  %v517_v25 = vadd.f32 %v1542_v58, %v516_v21  ;;  %v613_v26 = vadd.f32 %v1542_v58, %v612_v22 }
 0x11b   :  { %v1187_v27 = vpack.c.bf16 %v764_v23, %v764_v23  ;;  %v1211_v28 = vpack.c.bf16 %v788_v24, %v788_v24  ;;  %v518_v29 = vpop.f32.mrf.mxu0  ;;  %v614_v30 = vpop.f32.mrf.mxu1 }
 0x11c   :  { %vm669_vm13 = vcmp.ge.f32.partialorder %v517_v25, 0.0  ;;  %v717_v31 = vmul.f32 0.2, %v517_v25  ;;  %vm693_vm14 = vcmp.ge.f32.partialorder %v613_v26, 0.0  ;;  %v741_v32 = vmul.f32 0.2, %v613_v26 }
 0x11d   :  { %1005 = vst.msk [vmem:[%s1787_s3 + $0x30] sm:$0xf] %vm992_vm3, %v1187_v27  ;;  %1029 = vst.msk [vmem:[%s1787_s3 + $0x90] sm:$0xf] %vm992_vm3, %v1211_v28  ;;  %v521_v33 = vpop.f32.mrf.mxu0  ;;  %v617_v34 = vpop.f32.mrf.mxu1 }
 0x11e   :  { %v765_v35 = vsel %vm669_vm13, %v517_v25, %v717_v31  ;;  %v789_v36 = vsel %vm693_vm14, %v613_v26, %v741_v32  ;;  %v522_v37 = vadd.f32 %v1542_v58, %v521_v33  ;;  %v618_v38 = vadd.f32 %v1542_v58, %v617_v34 }
 0x11f   :  { %v1188_v39 = vpack.c.bf16 %v765_v35, %v765_v35  ;;  %v1212_v40 = vpack.c.bf16 %v789_v36, %v789_v36  ;;  %v523_v41 = vpop.f32.mrf.mxu0  ;;  %v619_v42 = vpop.f32.mrf.mxu1 }
 0x120   :  { %vm670_vm15 = vcmp.ge.f32.partialorder %v522_v37, 0.0  ;;  %v718_v43 = vmul.f32 0.2, %v522_v37  ;;  %vm694_vm0 = vcmp.ge.f32.partialorder %v618_v38, 0.0  ;;  %v742_v44 = vmul.f32 0.2, %v618_v38 }
 0x121   :  { %1006 = vst.msk [vmem:[%s1787_s3 + $0x34] sm:$0xf] %vm992_vm3, %v1188_v39  ;;  %1030 = vst.msk [vmem:[%s1787_s3 + $0x94] sm:$0xf] %vm992_vm3, %v1212_v40  ;;  %v524_v45 = vpop.f32.mrf.mxu0  ;;  %v620_v46 = vpop.f32.mrf.mxu1 }
 0x122   :  { %v766_v47 = vsel %vm670_vm15, %v522_v37, %v718_v43  ;;  %v790_v48 = vsel %vm694_vm0, %v618_v38, %v742_v44  ;;  %v525_v49 = vadd.f32 %v1542_v58, %v524_v45  ;;  %v621_v50 = vadd.f32 %v1542_v58, %v620_v46 }
 0x123   :  { %v1189_v51 = vpack.c.bf16 %v766_v47, %v766_v47  ;;  %v1213_v52 = vpack.c.bf16 %v790_v48, %v790_v48  ;;  %v526_v53 = vpop.f32.mrf.mxu0  ;;  %v622_v54 = vpop.f32.mrf.mxu1 }
 0x124   :  { %vm671_vm1 = vcmp.ge.f32.partialorder %v525_v49, 0.0  ;;  %v719_v55 = vmul.f32 0.2, %v525_v49  ;;  %vm695_vm2 = vcmp.ge.f32.partialorder %v621_v50, 0.0  ;;  %v743_v56 = vmul.f32 0.2, %v621_v50 }
 0x125   :  { %1007 = vst.msk [vmem:[%s1787_s3 + $0x38] sm:$0xf] %vm992_vm3, %v1189_v51  ;;  %1031 = vst.msk [vmem:[%s1787_s3 + $0x98] sm:$0xf] %vm992_vm3, %v1213_v52  ;;  %v529_v57 = vpop.f32.mrf.mxu0  ;;  %v625_v59 = vpop.f32.mrf.mxu1 }
 0x126   :  { %v767_v60 = vsel %vm671_vm1, %v525_v49, %v719_v55  ;;  %v791_v61 = vsel %vm695_vm2, %v621_v50, %v743_v56  ;;  %v530_v62 = vadd.f32 %v1542_v58, %v529_v57  ;;  %v626_v63 = vadd.f32 %v1542_v58, %v625_v59 }
 0x127   :  { %v1190_v0 = vpack.c.bf16 %v767_v60, %v767_v60  ;;  %v1214_v1 = vpack.c.bf16 %v791_v61, %v791_v61  ;;  %v531_v2 = vpop.f32.mrf.mxu0  ;;  %v627_v3 = vpop.f32.mrf.mxu1 }
 0x128   :  { %vm672_vm4 = vcmp.ge.f32.partialorder %v530_v62, 0.0  ;;  %v720_v4 = vmul.f32 0.2, %v530_v62  ;;  %vm696_vm5 = vcmp.ge.f32.partialorder %v626_v63, 0.0  ;;  %v744_v5 = vmul.f32 0.2, %v626_v63 }
 0x129   :  { %1008 = vst.msk [vmem:[%s1787_s3 + $0x3c] sm:$0xf] %vm992_vm3, %v1190_v0  ;;  %1032 = vst.msk [vmem:[%s1787_s3 + $0x9c] sm:$0xf] %vm992_vm3, %v1214_v1  ;;  %v532_v6 = vpop.f32.mrf.mxu0  ;;  %v628_v7 = vpop.f32.mrf.mxu1 }
 0x12a   :  { %v768_v8 = vsel %vm672_vm4, %v530_v62, %v720_v4  ;;  %v792_v9 = vsel %vm696_vm5, %v626_v63, %v744_v5  ;;  %v533_v10 = vadd.f32 %v1542_v58, %v532_v6  ;;  %v629_v11 = vadd.f32 %v1542_v58, %v628_v7 }
 0x12b   :  { %v1191_v12 = vpack.c.bf16 %v768_v8, %v768_v8  ;;  %v1215_v13 = vpack.c.bf16 %v792_v9, %v792_v9  ;;  %v534_v14 = vpop.f32.mrf.mxu0  ;;  %v630_v15 = vpop.f32.mrf.mxu1 }
 0x12c   :  { %vm673_vm6 = vcmp.ge.f32.partialorder %v533_v10, 0.0  ;;  %v721_v16 = vmul.f32 0.2, %v533_v10  ;;  %vm697_vm7 = vcmp.ge.f32.partialorder %v629_v11, 0.0  ;;  %v745_v17 = vmul.f32 0.2, %v629_v11 }
 0x12d   :  { %1009 = vst.msk [vmem:[%s1787_s3 + $0x40] sm:$0xf] %vm992_vm3, %v1191_v12  ;;  %1033 = vst.msk [vmem:[%s1787_s3 + $0xa0] sm:$0xf] %vm992_vm3, %v1215_v13  ;;  %v537_v18 = vpop.f32.mrf.mxu0  ;;  %v633_v19 = vpop.f32.mrf.mxu1 }
 0x12e   :  { %v769_v20 = vsel %vm673_vm6, %v533_v10, %v721_v16  ;;  %v793_v21 = vsel %vm697_vm7, %v629_v11, %v745_v17  ;;  %v538_v22 = vadd.f32 %v1542_v58, %v537_v18  ;;  %v634_v23 = vadd.f32 %v1542_v58, %v633_v19 }
 0x12f   :  { %v1192_v24 = vpack.c.bf16 %v769_v20, %v769_v20  ;;  %v1216_v25 = vpack.c.bf16 %v793_v21, %v793_v21  ;;  %v539_v26 = vpop.f32.mrf.mxu0  ;;  %v635_v27 = vpop.f32.mrf.mxu1 }
 0x130   :  { %vm674_vm8 = vcmp.ge.f32.partialorder %v538_v22, 0.0  ;;  %v722_v28 = vmul.f32 0.2, %v538_v22  ;;  %vm698_vm9 = vcmp.ge.f32.partialorder %v634_v23, 0.0  ;;  %v746_v29 = vmul.f32 0.2, %v634_v23 }
 0x131   :  { %1010 = vst.msk [vmem:[%s1787_s3 + $0x44] sm:$0xf] %vm992_vm3, %v1192_v24  ;;  %1034 = vst.msk [vmem:[%s1787_s3 + $0xa4] sm:$0xf] %vm992_vm3, %v1216_v25  ;;  %v540_v30 = vpop.f32.mrf.mxu0  ;;  %v636_v31 = vpop.f32.mrf.mxu1 }
 0x132   :  { %v770_v32 = vsel %vm674_vm8, %v538_v22, %v722_v28  ;;  %v794_v33 = vsel %vm698_vm9, %v634_v23, %v746_v29  ;;  %v541_v34 = vadd.f32 %v1542_v58, %v540_v30  ;;  %v637_v35 = vadd.f32 %v1542_v58, %v636_v31 }
 0x133   :  { %v1193_v36 = vpack.c.bf16 %v770_v32, %v770_v32  ;;  %v1217_v37 = vpack.c.bf16 %v794_v33, %v794_v33  ;;  %v542_v38 = vpop.f32.mrf.mxu0  ;;  %v638_v39 = vpop.f32.mrf.mxu1 }
 0x134   :  { %vm675_vm10 = vcmp.ge.f32.partialorder %v541_v34, 0.0  ;;  %v723_v40 = vmul.f32 0.2, %v541_v34  ;;  %vm699_vm11 = vcmp.ge.f32.partialorder %v637_v35, 0.0  ;;  %v747_v41 = vmul.f32 0.2, %v637_v35 }
 0x135   :  { %1011 = vst.msk [vmem:[%s1787_s3 + $0x48] sm:$0xf] %vm992_vm3, %v1193_v36  ;;  %1035 = vst.msk [vmem:[%s1787_s3 + $0xa8] sm:$0xf] %vm992_vm3, %v1217_v37  ;;  %v545_v42 = vpop.f32.mrf.mxu0  ;;  %v641_v43 = vpop.f32.mrf.mxu1 }
 0x136   :  { %v771_v44 = vsel %vm675_vm10, %v541_v34, %v723_v40  ;;  %v795_v45 = vsel %vm699_vm11, %v637_v35, %v747_v41  ;;  %v546_v46 = vadd.f32 %v1542_v58, %v545_v42  ;;  %v642_v47 = vadd.f32 %v1542_v58, %v641_v43 }
 0x137   :  { %v1194_v48 = vpack.c.bf16 %v771_v44, %v771_v44  ;;  %v1218_v49 = vpack.c.bf16 %v795_v45, %v795_v45  ;;  %v547_v50 = vpop.f32.mrf.mxu0  ;;  %v643_v51 = vpop.f32.mrf.mxu1 }
 0x138   :  { %vm676_vm12 = vcmp.ge.f32.partialorder %v546_v46, 0.0  ;;  %v724_v52 = vmul.f32 0.2, %v546_v46  ;;  %vm700_vm13 = vcmp.ge.f32.partialorder %v642_v47, 0.0  ;;  %v748_v53 = vmul.f32 0.2, %v642_v47 }
 0x139   :  { %1012 = vst.msk [vmem:[%s1787_s3 + $0x4c] sm:$0xf] %vm992_vm3, %v1194_v48  ;;  %1036 = vst.msk [vmem:[%s1787_s3 + $0xac] sm:$0xf] %vm992_vm3, %v1218_v49  ;;  %v548_v54 = vpop.f32.mrf.mxu0  ;;  %v644_v55 = vpop.f32.mrf.mxu1 }
 0x13a   :  { %v772_v56 = vsel %vm676_vm12, %v546_v46, %v724_v52  ;;  %v796_v57 = vsel %vm700_vm13, %v642_v47, %v748_v53  ;;  %v549_v59 = vadd.f32 %v1542_v58, %v548_v54  ;;  %v645_v60 = vadd.f32 %v1542_v58, %v644_v55 }
 0x13b   :  { %v1195_v61 = vpack.c.bf16 %v772_v56, %v772_v56  ;;  %v1219_v62 = vpack.c.bf16 %v796_v57, %v796_v57  ;;  %v550_v63 = vpop.f32.mrf.mxu0  ;;  %v646_v0 = vpop.f32.mrf.mxu1 }
 0x13c   :  { %vm677_vm14 = vcmp.ge.f32.partialorder %v549_v59, 0.0  ;;  %v725_v1 = vmul.f32 0.2, %v549_v59  ;;  %vm701_vm15 = vcmp.ge.f32.partialorder %v645_v60, 0.0  ;;  %v749_v2 = vmul.f32 0.2, %v645_v60 }
 0x13d   :  { %1013 = vst.msk [vmem:[%s1787_s3 + $0x50] sm:$0xf] %vm992_vm3, %v1195_v61  ;;  %1037 = vst.msk [vmem:[%s1787_s3 + $0xb0] sm:$0xf] %vm992_vm3, %v1219_v62  ;;  %v553_v3 = vpop.f32.mrf.mxu0  ;;  %v649_v4 = vpop.f32.mrf.mxu1 }
 0x13e   :  { %v773_v5 = vsel %vm677_vm14, %v549_v59, %v725_v1  ;;  %v797_v6 = vsel %vm701_vm15, %v645_v60, %v749_v2  ;;  %v554_v7 = vadd.f32 %v1542_v58, %v553_v3  ;;  %v650_v8 = vadd.f32 %v1542_v58, %v649_v4 }
 0x13f   :  { %v1196_v9 = vpack.c.bf16 %v773_v5, %v773_v5  ;;  %v1220_v10 = vpack.c.bf16 %v797_v6, %v797_v6  ;;  %v555_v11 = vpop.f32.mrf.mxu0  ;;  %v651_v12 = vpop.f32.mrf.mxu1 }
 0x140   :  { %vm678_vm0 = vcmp.ge.f32.partialorder %v554_v7, 0.0  ;;  %v726_v13 = vmul.f32 0.2, %v554_v7  ;;  %vm702_vm1 = vcmp.ge.f32.partialorder %v650_v8, 0.0  ;;  %v750_v14 = vmul.f32 0.2, %v650_v8 }
 0x141   :  { %1014 = vst.msk [vmem:[%s1787_s3 + $0x54] sm:$0xf] %vm992_vm3, %v1196_v9  ;;  %1038 = vst.msk [vmem:[%s1787_s3 + $0xb4] sm:$0xf] %vm992_vm3, %v1220_v10  ;;  %v556_v15 = vpop.f32.mrf.mxu0  ;;  %v652_v16 = vpop.f32.mrf.mxu1 }
 0x142   :  { %v774_v17 = vsel %vm678_vm0, %v554_v7, %v726_v13  ;;  %v798_v18 = vsel %vm702_vm1, %v650_v8, %v750_v14  ;;  %v557_v19 = vadd.f32 %v1542_v58, %v556_v15  ;;  %v653_v20 = vadd.f32 %v1542_v58, %v652_v16 }
 0x143   :  { %v1197_v21 = vpack.c.bf16 %v774_v17, %v774_v17  ;;  %v1221_v22 = vpack.c.bf16 %v798_v18, %v798_v18  ;;  %v558_v23 = vpop.f32.mrf.mxu0  ;;  %v654_v24 = vpop.f32.mrf.mxu1 }
 0x144   :  { %vm679_vm2 = vcmp.ge.f32.partialorder %v557_v19, 0.0  ;;  %v727_v25 = vmul.f32 0.2, %v557_v19  ;;  %vm703_vm4 = vcmp.ge.f32.partialorder %v653_v20, 0.0  ;;  %v751_v26 = vmul.f32 0.2, %v653_v20 }
 0x145   :  { %1015 = vst.msk [vmem:[%s1787_s3 + $0x58] sm:$0xf] %vm992_vm3, %v1197_v21  ;;  %1039 = vst.msk [vmem:[%s1787_s3 + $0xb8] sm:$0xf] %vm992_vm3, %v1221_v22 }
 0x146   :  { %v775_v27 = vsel %vm679_vm2, %v557_v19, %v727_v25  ;;  %v799_v58 = vsel %vm703_vm4, %v653_v20, %v751_v26 }
 0x147   :  { %v1198_v28 = vpack.c.bf16 %v775_v27, %v775_v27  ;;  %v1222_v29 = vpack.c.bf16 %v799_v58, %v799_v58 }
 0x149   :  { %1016 = vst.msk [vmem:[%s1787_s3 + $0x5c] sm:$0xf] %vm992_vm3, %v1198_v28  ;;  %1040 = vst.msk [vmem:[%s1787_s3 + $0xbc] sm:$0xf] %vm992_vm3, %v1222_v29 }

// kernel: _lambda_.29
= control target key start
LH: loop header
LB: loop body
LE: loop exit
PB: predicated region body
PF: predicated region fallthrough
CT: control target
= control target key end

     0   :  { %v459_v0 = vmov 0   ;;  %vm160_vm0 = vcmask 130048   ;;  %vm344_vm3 = vcmask 257024   ;;  %s614_s1 = inlined_call_operand.vmem [shape: bf16[144,32], index: 1, kind: input, shape index: {}]   ;;  %s615_s0 = inlined_call_operand.vmem [shape: bf16[96,144], index: 0, kind: input, shape index: {}]   ;;  %s616_s2 = inlined_call_operand.vmem [shape: f32[1,32], index: 2, kind: input, shape index: {}]   ;;  %s617_s3 = inlined_call_operand.vmem [shape: bf16[96,32], index: 3, kind: output, shape index: {}]  }
   0x1   :  { %179 = vmatprep.subr.bf16.mxu0 %v459_v0  ;;  %413 = vmatprep.subr.bf16.mxu1 %v459_v0  ;;  %v432_v1 = vld [vmem:[%s614_s1 + $0x38] sm:$0xff]   ;;  %v433_v2 = vld [vmem:[%s614_s1 + $0x30] sm:$0xff]   ;;  %v434_v3 = vld [vmem:[%s614_s1 + $0x28] sm:$0xff]  }
   0x2   :  { %180 = vmatpush1.bf16.msra.mxu0 %v432_v1  ;;  %422 = vmatpush1.bf16.msra.mxu1 %v432_v1  ;;  %v435_v4 = vld [vmem:[%s614_s1 + $0x20] sm:$0xff]   ;;  %v446_v6 = vld [vmem:[%s615_s0 + $0x34] ss:$8 sps:$4 sm:$0xff]   ;;  %v438_v9 = vld [vmem:[%s614_s1 + $0x8] sm:$0xff]  }
   0x3   :  { %181 = vmatprep.subr.bf16.mxu0 %v459_v0  ;;  %414 = vmatprep.subr.bf16.mxu1 %v459_v0  ;;  %v443_v5 = vld [vmem:[%s615_s0 + $0x4] ss:$8 sps:$4 sm:$0xff]   ;;  %v436_v7 = vld [vmem:[%s614_s1 + $0x18] sm:$0xff]   ;;  %v437_v8 = vld [vmem:[%s614_s1 + $0x10] sm:$0xff]  }
   0x4   :  { %383 = vmatprep.mubr.msk.bf16.mxu0 %vm160_vm0, %v443_v5  ;;  %386 = vmatprep.mubr.msk.bf16.mxu1 %vm160_vm0, %v446_v6  ;;  %v439_v10 = vld [vmem:[%s614_s1] sm:$0xff]   ;;  %v444_v13 = vld [vmem:[%s615_s0 + $0x30] ss:$8 sps:$4 sm:$0xff]   ;;  %v447_v14 = vld [vmem:[%s615_s0 + $0x14] ss:$8 sps:$4 sm:$0xff]  }
   0x5   :  { %v440_v11 = vld [vmem:[%s614_s1 + $0x40] sm:$0xff]   ;;  %v451_v16 = vld [vmem:[%s615_s0 + $0x10] ss:$8 sps:$4 sm:$0xff]   ;;  %v455_v19 = vld [vmem:[%s615_s0 + $0x54] ss:$8 sps:$4 sm:$0xff]  }
   0x6   :  { %182 = vmatpush1.bf16.msra.mxu0 %v433_v2  ;;  %423 = vmatpush1.bf16.msra.mxu1 %v433_v2  ;;  %v441_v12 = vld [vmem:[%s615_s0] ss:$8 sps:$4 sm:$0xff]   ;;  %v449_v15 = vld [vmem:[%s615_s0 + $0x44] ss:$8 sps:$4 sm:$0xff]   ;;  %v458_v21 = vld [vmem:[%s615_s0 + $0x50] ss:$8 sps:$4 sm:$0xff]  }
   0x7   :  { %183 = vmatprep.subr.bf16.mxu0 %v459_v0  ;;  %415 = vmatprep.subr.bf16.mxu1 %v459_v0  ;;  %v452_v17 = vld [vmem:[%s615_s0 + $0x40] ss:$8 sps:$4 sm:$0xff]   ;;  %v453_v18 = vld [vmem:[%s615_s0 + $0x24] ss:$8 sps:$4 sm:$0xff]  }
   0x8   :  { %v457_v20 = vld [vmem:[%s615_s0 + $0x20] ss:$8 sps:$4 sm:$0xff]  }
   0x9   :  { %v552_v22 = vld [vmem:[%s616_s2] ss:$0 sm:$0xff] }
   0xa   :  { %184 = vmatpush1.bf16.msra.mxu0 %v434_v3  ;;  %424 = vmatpush1.bf16.msra.mxu1 %v434_v3 }
   0xb   :  { %185 = vmatprep.subr.bf16.mxu0 %v459_v0  ;;  %416 = vmatprep.subr.bf16.mxu1 %v459_v0 }
   0xe   :  { %186 = vmatpush1.bf16.msra.mxu0 %v435_v4  ;;  %425 = vmatpush1.bf16.msra.mxu1 %v435_v4 }
   0xf   :  { %187 = vmatprep.subr.bf16.mxu0 %v459_v0  ;;  %417 = vmatprep.subr.bf16.mxu1 %v459_v0 }
  0x12   :  { %188 = vmatpush1.bf16.msra.mxu0 %v436_v7  ;;  %426 = vmatpush1.bf16.msra.mxu1 %v436_v7 }
  0x13   :  { %189 = vmatprep.subr.bf16.mxu0 %v459_v0  ;;  %418 = vmatprep.subr.bf16.mxu1 %v459_v0 }
  0x16   :  { %190 = vmatpush1.bf16.msra.mxu0 %v437_v8  ;;  %427 = vmatpush1.bf16.msra.mxu1 %v437_v8 }
  0x17   :  { %191 = vmatprep.subr.bf16.mxu0 %v459_v0  ;;  %419 = vmatprep.subr.bf16.mxu1 %v459_v0 }
  0x1a   :  { %192 = vmatpush1.bf16.msra.mxu0 %v438_v9  ;;  %428 = vmatpush1.bf16.msra.mxu1 %v438_v9 }
  0x1b   :  { %193 = vmatprep.subr.bf16.mxu0 %v459_v0  ;;  %420 = vmatprep.subr.bf16.mxu1 %v459_v0 }
  0x1e   :  { %194 = vmatpush1.bf16.msra.mxu0 %v439_v10  ;;  %429 = vmatpush1.bf16.msra.mxu1 %v439_v10 }
  0x1f   :  { %209 = vmatprep.subr.bf16.mxu0 %v459_v0  ;;  %421 = vmatprep.subr.bf16.mxu1 %v459_v0 }
  0x22   :  { %210 = vmatpush2.bf16.msra.mxu0 %v440_v11  ;;  %430 = vmatpush2.bf16.msra.mxu1 %v440_v11 }
  0x25   :  { %212 = vmatmul.mubr.bf16.vlgmr.msra.gmra.mxu0 %v441_v12  ;;  %236 = vmatmul.mubr.bf16.vlgmr.msra.gmra.mxu1 %v444_v13 }
  0x26   :  { %384 = vmatprep.mubr.msk.bf16.mxu0 %vm160_vm0, %v447_v14  ;;  %387 = vmatprep.mubr.msk.bf16.mxu1 %vm160_vm0, %v449_v15 }
  0x2d   :  { %220 = vmatmul.mubr.bf16.gmra.mxu0 %v451_v16  ;;  %244 = vmatmul.mubr.bf16.gmra.mxu1 %v452_v17 }
  0x2e   :  { %385 = vmatprep.mubr.msk.bf16.mxu0 %vm160_vm0, %v453_v18  ;;  %388 = vmatprep.mubr.msk.bf16.mxu1 %vm160_vm0, %v455_v19 }
  0x35   :  { %228 = vmatmul.mubr.bf16.gmra.mxu0 %v457_v20  ;;  %252 = vmatmul.mubr.bf16.gmra.mxu1 %v458_v21 }
  0xe5   :  { %v213_v23 = vpop.f32.mrf.mxu0  ;;  %v237_v24 = vpop.f32.mrf.mxu1 }
  0xe6   :  { %v214_v25 = vadd.f32 %v552_v22, %v213_v23  ;;  %v238_v26 = vadd.f32 %v552_v22, %v237_v24 }
  0xe7   :  { %v215_v27 = vpop.f32.mrf.mxu0  ;;  %v239_v28 = vpop.f32.mrf.mxu1 }
  0xe8   :  { %vm260_vm1 = vcmp.ge.f32.partialorder %v214_v25, 0.0  ;;  %v272_v29 = vmul.f32 0.2, %v214_v25  ;;  %vm266_vm2 = vcmp.ge.f32.partialorder %v238_v26, 0.0  ;;  %v278_v30 = vmul.f32 0.2, %v238_v26 }
  0xe9   :  { %v216_v31 = vpop.f32.mrf.mxu0  ;;  %v240_v32 = vpop.f32.mrf.mxu1 }
  0xea   :  { %v284_v33 = vsel %vm260_vm1, %v214_v25, %v272_v29  ;;  %v290_v34 = vsel %vm266_vm2, %v238_v26, %v278_v30  ;;  %v217_v35 = vadd.f32 %v552_v22, %v216_v31  ;;  %v241_v36 = vadd.f32 %v552_v22, %v240_v32 }
  0xeb   :  { %v401_v37 = vpack.c.bf16 %v284_v33, %v284_v33  ;;  %v407_v38 = vpack.c.bf16 %v290_v34, %v290_v34  ;;  %v218_v39 = vpop.f32.mrf.mxu0  ;;  %v242_v40 = vpop.f32.mrf.mxu1 }
  0xec   :  { %vm261_vm4 = vcmp.ge.f32.partialorder %v217_v35, 0.0  ;;  %v273_v41 = vmul.f32 0.2, %v217_v35  ;;  %vm267_vm5 = vcmp.ge.f32.partialorder %v241_v36, 0.0  ;;  %v279_v42 = vmul.f32 0.2, %v241_v36 }
  0xed   :  { %345 = vst.msk [vmem:[%s617_s3] sm:$0xf] %vm344_vm3, %v401_v37  ;;  %351 = vst.msk [vmem:[%s617_s3 + $0x18] sm:$0xf] %vm344_vm3, %v407_v38  ;;  %v221_v43 = vpop.f32.mrf.mxu0  ;;  %v245_v44 = vpop.f32.mrf.mxu1 }
  0xee   :  { %v285_v45 = vsel %vm261_vm4, %v217_v35, %v273_v41  ;;  %v291_v46 = vsel %vm267_vm5, %v241_v36, %v279_v42  ;;  %v222_v47 = vadd.f32 %v552_v22, %v221_v43  ;;  %v246_v48 = vadd.f32 %v552_v22, %v245_v44 }
  0xef   :  { %v402_v49 = vpack.c.bf16 %v285_v45, %v285_v45  ;;  %v408_v50 = vpack.c.bf16 %v291_v46, %v291_v46  ;;  %v223_v51 = vpop.f32.mrf.mxu0  ;;  %v247_v52 = vpop.f32.mrf.mxu1 }
  0xf0   :  { %vm262_vm6 = vcmp.ge.f32.partialorder %v222_v47, 0.0  ;;  %v274_v53 = vmul.f32 0.2, %v222_v47  ;;  %vm268_vm7 = vcmp.ge.f32.partialorder %v246_v48, 0.0  ;;  %v280_v54 = vmul.f32 0.2, %v246_v48 }
  0xf1   :  { %346 = vst.msk [vmem:[%s617_s3 + $0x4] sm:$0xf] %vm344_vm3, %v402_v49  ;;  %352 = vst.msk [vmem:[%s617_s3 + $0x1c] sm:$0xf] %vm344_vm3, %v408_v50  ;;  %v224_v55 = vpop.f32.mrf.mxu0  ;;  %v248_v56 = vpop.f32.mrf.mxu1 }
  0xf2   :  { %v286_v57 = vsel %vm262_vm6, %v222_v47, %v274_v53  ;;  %v292_v58 = vsel %vm268_vm7, %v246_v48, %v280_v54  ;;  %v225_v59 = vadd.f32 %v552_v22, %v224_v55  ;;  %v249_v60 = vadd.f32 %v552_v22, %v248_v56 }
  0xf3   :  { %v403_v61 = vpack.c.bf16 %v286_v57, %v286_v57  ;;  %v409_v62 = vpack.c.bf16 %v292_v58, %v292_v58  ;;  %v226_v63 = vpop.f32.mrf.mxu0  ;;  %v250_v0 = vpop.f32.mrf.mxu1 }
  0xf4   :  { %vm263_vm8 = vcmp.ge.f32.partialorder %v225_v59, 0.0  ;;  %v275_v1 = vmul.f32 0.2, %v225_v59  ;;  %vm269_vm9 = vcmp.ge.f32.partialorder %v249_v60, 0.0  ;;  %v281_v2 = vmul.f32 0.2, %v249_v60 }
  0xf5   :  { %347 = vst.msk [vmem:[%s617_s3 + $0x8] sm:$0xf] %vm344_vm3, %v403_v61  ;;  %353 = vst.msk [vmem:[%s617_s3 + $0x20] sm:$0xf] %vm344_vm3, %v409_v62  ;;  %v229_v3 = vpop.f32.mrf.mxu0  ;;  %v253_v4 = vpop.f32.mrf.mxu1 }
  0xf6   :  { %v287_v5 = vsel %vm263_vm8, %v225_v59, %v275_v1  ;;  %v293_v6 = vsel %vm269_vm9, %v249_v60, %v281_v2  ;;  %v230_v7 = vadd.f32 %v552_v22, %v229_v3  ;;  %v254_v8 = vadd.f32 %v552_v22, %v253_v4 }
  0xf7   :  { %v404_v9 = vpack.c.bf16 %v287_v5, %v287_v5  ;;  %v410_v10 = vpack.c.bf16 %v293_v6, %v293_v6  ;;  %v231_v11 = vpop.f32.mrf.mxu0  ;;  %v255_v12 = vpop.f32.mrf.mxu1 }
  0xf8   :  { %vm264_vm10 = vcmp.ge.f32.partialorder %v230_v7, 0.0  ;;  %v276_v13 = vmul.f32 0.2, %v230_v7  ;;  %vm270_vm11 = vcmp.ge.f32.partialorder %v254_v8, 0.0  ;;  %v282_v14 = vmul.f32 0.2, %v254_v8 }
  0xf9   :  { %348 = vst.msk [vmem:[%s617_s3 + $0xc] sm:$0xf] %vm344_vm3, %v404_v9  ;;  %354 = vst.msk [vmem:[%s617_s3 + $0x24] sm:$0xf] %vm344_vm3, %v410_v10  ;;  %v232_v15 = vpop.f32.mrf.mxu0  ;;  %v256_v16 = vpop.f32.mrf.mxu1 }
  0xfa   :  { %v288_v17 = vsel %vm264_vm10, %v230_v7, %v276_v13  ;;  %v294_v18 = vsel %vm270_vm11, %v254_v8, %v282_v14  ;;  %v233_v19 = vadd.f32 %v552_v22, %v232_v15  ;;  %v257_v20 = vadd.f32 %v552_v22, %v256_v16 }
  0xfb   :  { %v405_v21 = vpack.c.bf16 %v288_v17, %v288_v17  ;;  %v411_v23 = vpack.c.bf16 %v294_v18, %v294_v18  ;;  %v234_v24 = vpop.f32.mrf.mxu0  ;;  %v258_v25 = vpop.f32.mrf.mxu1 }
  0xfc   :  { %vm265_vm12 = vcmp.ge.f32.partialorder %v233_v19, 0.0  ;;  %v277_v26 = vmul.f32 0.2, %v233_v19  ;;  %vm271_vm13 = vcmp.ge.f32.partialorder %v257_v20, 0.0  ;;  %v283_v27 = vmul.f32 0.2, %v257_v20 }
  0xfd   :  { %349 = vst.msk [vmem:[%s617_s3 + $0x10] sm:$0xf] %vm344_vm3, %v405_v21  ;;  %355 = vst.msk [vmem:[%s617_s3 + $0x28] sm:$0xf] %vm344_vm3, %v411_v23 }
  0xfe   :  { %v289_v28 = vsel %vm265_vm12, %v233_v19, %v277_v26  ;;  %v295_v22 = vsel %vm271_vm13, %v257_v20, %v283_v27 }
  0xff   :  { %v406_v29 = vpack.c.bf16 %v289_v28, %v289_v28  ;;  %v412_v30 = vpack.c.bf16 %v295_v22, %v295_v22 }
 0x101   :  { %350 = vst.msk [vmem:[%s617_s3 + $0x14] sm:$0xf] %vm344_vm3, %v406_v29  ;;  %356 = vst.msk [vmem:[%s617_s3 + $0x2c] sm:$0xf] %vm344_vm3, %v412_v30 }

// kernel: _lambda_.30
= control target key start
LH: loop header
LB: loop body
LE: loop exit
PB: predicated region body
PF: predicated region fallthrough
CT: control target
= control target key end

     0   :  { %vm280_vm0 = vcmask 261120   ;;  %vm521_vm1 = vcmask 257024   ;;  %s938_s1 = inlined_call_operand.vmem [shape: bf16[288,32], index: 1, kind: input, shape index: {}]   ;;  %s939_s0 = inlined_call_operand.vmem [shape: bf16[96,288], index: 0, kind: input, shape index: {}]   ;;  %s940_s2 = inlined_call_operand.vmem [shape: f32[1,32], index: 2, kind: input, shape index: {}]   ;;  %s941_s3 = inlined_call_operand.vmem [shape: bf16[96,32], index: 3, kind: output, shape index: {}]  }
   0x1   :  { %v697_v0 = vld [vmem:[%s938_s1 + $0x78] sm:$0xff]   ;;  %v699_v2 = vld [vmem:[%s938_s1 + $0x70] sm:$0xff]   ;;  %v701_v4 = vld [vmem:[%s938_s1 + $0x68] sm:$0xff]  }
   0x2   :  { %v698_v1 = vld [vmem:[%s938_s1 + $0x38] sm:$0xff]   ;;  %605 = vmatprep.subr.bf16.mxu0 %v697_v0  ;;  %681 = vmatprep.subr.bf16.mxu1 %v697_v0  ;;  %v700_v3 = vld [vmem:[%s938_s1 + $0x30] sm:$0xff]   ;;  %v702_v5 = vld [vmem:[%s938_s1 + $0x28] sm:$0xff]  }
   0x3   :  { %606 = vmatpush3.bf16.msra.mxu0 %v698_v1  ;;  %689 = vmatpush3.bf16.msra.mxu1 %v698_v1  ;;  %v703_v6 = vld [vmem:[%s938_s1 + $0x60] sm:$0xff]   ;;  %v705_v8 = vld [vmem:[%s938_s1 + $0x58] sm:$0xff]   ;;  %v707_v10 = vld [vmem:[%s938_s1 + $0x50] sm:$0xff]  }
   0x4   :  { %607 = vmatprep.subr.bf16.mxu0 %v699_v2  ;;  %682 = vmatprep.subr.bf16.mxu1 %v699_v2  ;;  %v704_v7 = vld [vmem:[%s938_s1 + $0x20] sm:$0xff]   ;;  %v706_v9 = vld [vmem:[%s938_s1 + $0x18] sm:$0xff]   ;;  %v708_v13 = vld [vmem:[%s938_s1 + $0x10] sm:$0xff]  }
   0x5   :  { %v715_v11 = vld [vmem:[%s939_s0 + $0x4] ss:$12 sps:$4 sm:$0xff]   ;;  %v718_v12 = vld [vmem:[%s939_s0 + $0x7c] ss:$12 sps:$4 sm:$0xff]   ;;  %v713_v19 = vld [vmem:[%s939_s0] ss:$12 sps:$4 sm:$0xff]  }
   0x6   :  { %v709_v14 = vld [vmem:[%s938_s1 + $0x48] sm:$0xff]   ;;  %331 = vmatprep.mubr.bf16.mxu0 %v715_v11  ;;  %371 = vmatprep.mubr.bf16.mxu1 %v718_v12  ;;  %v711_v16 = vld [vmem:[%s938_s1 + $0x40] sm:$0xff]   ;;  %v729_v28 = vld [vmem:[%s939_s0 + $0x30] ss:$12 sps:$4 sm:$0xff]  }
   0x7   :  { %608 = vmatpush3.bf16.msra.mxu0 %v700_v3  ;;  %690 = vmatpush3.bf16.msra.mxu1 %v700_v3  ;;  %v710_v15 = vld [vmem:[%s938_s1 + $0x8] sm:$0xff]   ;;  %v712_v17 = vld [vmem:[%s938_s1] sm:$0xff]   ;;  %v730_v29 = vld [vmem:[%s939_s0 + $0x50] ss:$12 sps:$4 sm:$0xff]  }
   0x8   :  { %609 = vmatprep.subr.bf16.mxu0 %v701_v4  ;;  %683 = vmatprep.subr.bf16.mxu1 %v701_v4  ;;  %v719_v18 = vld [vmem:[%s938_s1 + $0x88] sm:$0xff]   ;;  %v716_v20 = vld [vmem:[%s939_s0 + $0x78] ss:$12 sps:$4 sm:$0xff]   ;;  %v726_v26 = vld [vmem:[%s939_s0 + $0x34] ss:$12 sps:$4 sm:$0xff]  }
   0x9   :  { %v721_v21 = vld [vmem:[%s939_s0 + $0x1c] ss:$12 sps:$4 sm:$0xff]   ;;  %v720_v22 = vld [vmem:[%s938_s1 + $0x80] sm:$0xff]   ;;  %v731_v30 = vld [vmem:[%s939_s0 + $0x4c] ss:$12 sps:$4 sm:$0xff]  }
   0xa   :  { %v723_v23 = vld [vmem:[%s939_s0 + $0x8] ss:$12 sps:$4 sm:$0xff]   ;;  %v724_v24 = vld [vmem:[%s939_s0 + $0x18] ss:$12 sps:$4 sm:$0xff]   ;;  %v725_v25 = vld [vmem:[%s939_s0 + $0x20] ss:$12 sps:$4 sm:$0xff]  }
   0xb   :  { %610 = vmatpush3.bf16.msra.mxu0 %v702_v5  ;;  %691 = vmatpush3.bf16.msra.mxu1 %v702_v5  ;;  %v728_v27 = vld [vmem:[%s939_s0 + $0x38] ss:$12 sps:$4 sm:$0xff]   ;;  %v733_v31 = vld [vmem:[%s939_s0 + $0x68] ss:$12 sps:$4 sm:$0xff]   ;;  %v735_v33 = vld [vmem:[%s939_s0 + $0x80] ss:$12 sps:$4 sm:$0xff]  }
   0xc   :  { %611 = vmatprep.subr.bf16.mxu0 %v703_v6  ;;  %684 = vmatprep.subr.bf16.mxu1 %v703_v6  ;;  %v734_v32 = vld [vmem:[%s939_s0 + $0x48] ss:$12 sps:$4 sm:$0xff]   ;;  %v736_v34 = vld [vmem:[%s939_s0 + $0x64] ss:$12 sps:$4 sm:$0xff]   ;;  %v738_v35 = vld [vmem:[%s939_s0 + $0x60] ss:$12 sps:$4 sm:$0xff]  }
   0xd   :  { %v876_v45 = vld [vmem:[%s940_s2] ss:$0 sm:$0xff] }
   0xf   :  { %612 = vmatpush3.bf16.msra.mxu0 %v704_v7  ;;  %692 = vmatpush3.bf16.msra.mxu1 %v704_v7 }
  0x10   :  { %613 = vmatprep.subr.bf16.mxu0 %v705_v8  ;;  %685 = vmatprep.subr.bf16.mxu1 %v705_v8 }
  0x13   :  { %614 = vmatpush3.bf16.msra.mxu0 %v706_v9  ;;  %693 = vmatpush3.bf16.msra.mxu1 %v706_v9 }
  0x14   :  { %615 = vmatprep.subr.bf16.mxu0 %v707_v10  ;;  %686 = vmatprep.subr.bf16.mxu1 %v707_v10 }
  0x17   :  { %616 = vmatpush3.bf16.msra.mxu0 %v708_v13  ;;  %694 = vmatpush3.bf16.msra.mxu1 %v708_v13 }
  0x18   :  { %617 = vmatprep.subr.bf16.mxu0 %v709_v14  ;;  %687 = vmatprep.subr.bf16.mxu1 %v709_v14 }
  0x1b   :  { %618 = vmatpush3.bf16.msra.mxu0 %v710_v15  ;;  %695 = vmatpush3.bf16.msra.mxu1 %v710_v15 }
  0x1c   :  { %619 = vmatprep.subr.bf16.mxu0 %v711_v16  ;;  %688 = vmatprep.subr.bf16.mxu1 %v711_v16 }
  0x1f   :  { %620 = vmatpush3.bf16.msra.mxu0 %v712_v17  ;;  %696 = vmatpush3.bf16.msra.mxu1 %v712_v17 }
  0x20   :  { %665 = vmatprep.subr.bf16.mxu1 %v719_v18 }
  0x22   :  { %332 = vmatmul.mubr.bf16.vlgmr.msra.gmra.mxu0 %v713_v19  ;;  %372 = vmatmul.mubr.bf16.vlgmr.msra.gmra.mxu1 %v716_v20 }
  0x23   :  { %666 = vmatpush3.bf16.msra.mxu1 %v719_v18  ;;  %339 = vmatprep.mubr.bf16.mxu0 %v721_v21 }
  0x24   :  { %667 = vmatprep.subr.bf16.mxu1 %v720_v22  ;;  %669 = vmatprep.mubr.msk.bf16.mxu1 %vm280_vm0, %v723_v23 }
  0x27   :  { %668 = vmatpush3.bf16.msra.mxu1 %v720_v22 }
  0x2a   :  { %340 = vmatmul.mubr.bf16.gmra.mxu0 %v724_v24  ;;  %670 = vmatmul.mubr.msk.bf16.vlgmr.msra.gmra.mxu1 %vm280_vm0, %v725_v25 }
  0x2b   :  { %347 = vmatprep.mubr.bf16.mxu0 %v726_v26  ;;  %673 = vmatprep.mubr.msk.bf16.mxu1 %vm280_vm0, %v728_v27 }
  0x32   :  { %348 = vmatmul.mubr.bf16.gmra.mxu0 %v729_v28  ;;  %674 = vmatmul.mubr.msk.bf16.gmra.mxu1 %vm280_vm0, %v730_v29 }
  0x33   :  { %355 = vmatprep.mubr.bf16.mxu0 %v731_v30  ;;  %677 = vmatprep.mubr.msk.bf16.mxu1 %vm280_vm0, %v733_v31 }
  0x3a   :  { %356 = vmatmul.mubr.bf16.gmra.mxu0 %v734_v32  ;;  %678 = vmatmul.mubr.msk.bf16.gmra.mxu1 %vm280_vm0, %v735_v33 }
  0x3b   :  { %363 = vmatprep.mubr.bf16.mxu0 %v736_v34 }
  0x42   :  { %364 = vmatmul.mubr.bf16.gmra.mxu0 %v738_v35 }
  0xe2   :  { %v621_v36 = vpop.f32.mrf.mxu0  ;;  %v651_v37 = vpop.f32.mrf.mxu1 }
  0xe4   :  { %v622_v38 = vpop.f32.mrf.mxu0  ;;  %v652_v39 = vpop.f32.mrf.mxu1 }
  0xe5   :  { %v623_v42 = vadd.f32 %v622_v38, %v621_v36  ;;  %v653_v6 = vadd.f32 %v652_v39, %v651_v37 }
  0xe6   :  { %v624_v40 = vpop.f32.mrf.mxu0  ;;  %v654_v41 = vpop.f32.mrf.mxu1 }
  0xe7   :  { %v334_v49 = vadd.f32 %v623_v42, %v876_v45  ;;  %v374_v23 = vadd.f32 %v653_v6, %v876_v45 }
  0xe8   :  { %v625_v43 = vpop.f32.mrf.mxu0  ;;  %v655_v44 = vpop.f32.mrf.mxu1 }
  0xe9   :  { %v626_v48 = vadd.f32 %v625_v43, %v624_v40  ;;  %v656_v17 = vadd.f32 %v655_v44, %v654_v41 }
  0xea   :  { %v627_v46 = vpop.f32.mrf.mxu0  ;;  %v671_v47 = vpop.f32.mrf.mxu1 }
  0xeb   :  { %v337_v58 = vadd.f32 %v626_v48, %v876_v45  ;;  %v377_v31 = vadd.f32 %v656_v17, %v876_v45 }
  0xec   :  { %v628_v50 = vpop.f32.mrf.mxu0  ;;  %v414_v51 = vpop.f32.mrf.mxu1 }
  0xed   :  { %v629_v52 = vadd.f32 %v628_v50, %v627_v46  ;;  %v415_v53 = vadd.f32 %v414_v51, %v334_v49 }
  0xee   :  { %v630_v54 = vpop.f32.mrf.mxu0  ;;  %v672_v55 = vpop.f32.mrf.mxu1 }
  0xef   :  { %v342_v56 = vadd.f32 %v629_v52, %v876_v45  ;;  %v461_v57 = vmax.f32 %v415_v53, 0.0 }
  0xf0   :  { %v631_v59 = vpop.f32.mrf.mxu0  ;;  %v417_v60 = vpop.f32.mrf.mxu1 }
  0xf1   :  { %v423_v61 = vadd.f32 %v671_v47, %v342_v56  ;;  %v593_v62 = vpack.c.bf16 %v461_v57, %v461_v57  ;;  %v632_v63 = vadd.f32 %v631_v59, %v630_v54  ;;  %v418_v0 = vadd.f32 %v417_v60, %v337_v58 }
  0xf2   :  { %v633_v1 = vpop.f32.mrf.mxu0  ;;  %v675_v2 = vpop.f32.mrf.mxu1 }
  0xf3   :  { %v463_v3 = vmax.f32 %v423_v61, 0.0  ;;  %522 = vst.msk [vmem:[%s941_s3] sm:$0xf] %vm521_vm1, %v593_v62  ;;  %v345_v4 = vadd.f32 %v632_v63, %v876_v45  ;;  %v462_v5 = vmax.f32 %v418_v0, 0.0 }
  0xf4   :  { %v634_v7 = vpop.f32.mrf.mxu0  ;;  %v430_v8 = vpop.f32.mrf.mxu1 }
  0xf5   :  { %v595_v9 = vpack.c.bf16 %v463_v3, %v463_v3  ;;  %v426_v10 = vadd.f32 %v672_v55, %v345_v4  ;;  %v594_v11 = vpack.c.bf16 %v462_v5, %v462_v5  ;;  %v635_v12 = vadd.f32 %v634_v7, %v633_v1 }
  0xf6   :  { %v636_v13 = vpop.f32.mrf.mxu0  ;;  %v676_v14 = vpop.f32.mrf.mxu1 }
  0xf7   :  { %524 = vst.msk [vmem:[%s941_s3 + $0x8] sm:$0xf] %vm521_vm1, %v595_v9  ;;  %v464_v15 = vmax.f32 %v426_v10, 0.0  ;;  %523 = vst.msk [vmem:[%s941_s3 + $0x4] sm:$0xf] %vm521_vm1, %v594_v11  ;;  %v350_v16 = vadd.f32 %v635_v12, %v876_v45 }
  0xf8   :  { %v637_v18 = vpop.f32.mrf.mxu0  ;;  %v433_v19 = vpop.f32.mrf.mxu1 }
  0xf9   :  { %v596_v20 = vpack.c.bf16 %v464_v15, %v464_v15  ;;  %v431_v21 = vadd.f32 %v430_v8, %v350_v16  ;;  %v638_v22 = vadd.f32 %v637_v18, %v636_v13 }
  0xfa   :  { %v639_v24 = vpop.f32.mrf.mxu0  ;;  %v679_v25 = vpop.f32.mrf.mxu1 }
  0xfb   :  { %525 = vst.msk [vmem:[%s941_s3 + $0xc] sm:$0xf] %vm521_vm1, %v596_v20  ;;  %v465_v26 = vmax.f32 %v431_v21, 0.0  ;;  %v353_v27 = vadd.f32 %v638_v22, %v876_v45  ;;  %v455_v28 = vadd.f32 %v679_v25, %v374_v23 }
  0xfc   :  { %v640_v29 = vpop.f32.mrf.mxu0  ;;  %v446_v30 = vpop.f32.mrf.mxu1 }
  0xfd   :  { %v597_v32 = vpack.c.bf16 %v465_v26, %v465_v26  ;;  %v434_v33 = vadd.f32 %v433_v19, %v353_v27  ;;  %v471_v34 = vmax.f32 %v455_v28, 0.0  ;;  %v641_v35 = vadd.f32 %v640_v29, %v639_v24 }
  0xfe   :  { %v642_v36 = vpop.f32.mrf.mxu0  ;;  %v680_v37 = vpop.f32.mrf.mxu1 }
  0xff   :  { %526 = vst.msk [vmem:[%s941_s3 + $0x10] sm:$0xf] %vm521_vm1, %v597_v32  ;;  %v466_v38 = vmax.f32 %v434_v33, 0.0  ;;  %v603_v39 = vpack.c.bf16 %v471_v34, %v471_v34  ;;  %v358_v40 = vadd.f32 %v641_v35, %v876_v45  ;;  %v458_v41 = vadd.f32 %v680_v37, %v377_v31 }
 0x100   :  { %v643_v42 = vpop.f32.mrf.mxu0  ;;  %v449_v1 = vpop.f32.mrf.mxu1 }
 0x101   :  { %v598_v43 = vpack.c.bf16 %v466_v38, %v466_v38  ;;  %532 = vst.msk [vmem:[%s941_s3 + $0x28] sm:$0xf] %vm521_vm1, %v603_v39  ;;  %v439_v44 = vadd.f32 %v675_v2, %v358_v40  ;;  %v472_v46 = vmax.f32 %v458_v41, 0.0  ;;  %v644_v47 = vadd.f32 %v643_v42, %v642_v36 }
 0x102   :  { %v645_v48 = vpop.f32.mrf.mxu0 }
 0x103   :  { %527 = vst.msk [vmem:[%s941_s3 + $0x14] sm:$0xf] %vm521_vm1, %v598_v43  ;;  %v467_v49 = vmax.f32 %v439_v44, 0.0  ;;  %v604_v50 = vpack.c.bf16 %v472_v46, %v472_v46  ;;  %v361_v51 = vadd.f32 %v644_v47, %v876_v45 }
 0x104   :  { %v646_v52 = vpop.f32.mrf.mxu0 }
 0x105   :  { %v599_v53 = vpack.c.bf16 %v467_v49, %v467_v49  ;;  %533 = vst.msk [vmem:[%s941_s3 + $0x2c] sm:$0xf] %vm521_vm1, %v604_v50  ;;  %v442_v54 = vadd.f32 %v676_v14, %v361_v51  ;;  %v647_v55 = vadd.f32 %v646_v52, %v645_v48 }
 0x106   :  { %v648_v56 = vpop.f32.mrf.mxu0 }
 0x107   :  { %528 = vst.msk [vmem:[%s941_s3 + $0x18] sm:$0xf] %vm521_vm1, %v599_v53  ;;  %v468_v57 = vmax.f32 %v442_v54, 0.0  ;;  %v366_v58 = vadd.f32 %v647_v55, %v876_v45 }
 0x108   :  { %v649_v59 = vpop.f32.mrf.mxu0 }
 0x109   :  { %v600_v60 = vpack.c.bf16 %v468_v57, %v468_v57  ;;  %v447_v61 = vadd.f32 %v446_v30, %v366_v58  ;;  %v650_v62 = vadd.f32 %v649_v59, %v648_v56 }
 0x10b   :  { %529 = vst.msk [vmem:[%s941_s3 + $0x1c] sm:$0xf] %vm521_vm1, %v600_v60  ;;  %v469_v63 = vmax.f32 %v447_v61, 0.0  ;;  %v369_v0 = vadd.f32 %v650_v62, %v876_v45 }
 0x10d   :  { %v601_v2 = vpack.c.bf16 %v469_v63, %v469_v63  ;;  %v450_v3 = vadd.f32 %v449_v1, %v369_v0 }
 0x10f   :  { %530 = vst.msk [vmem:[%s941_s3 + $0x20] sm:$0xf] %vm521_vm1, %v601_v2  ;;  %v470_v4 = vmax.f32 %v450_v3, 0.0 }
 0x111   :  { %v602_v5 = vpack.c.bf16 %v470_v4, %v470_v4 }
 0x113   :  { %531 = vst.msk [vmem:[%s941_s3 + $0x24] sm:$0xf] %vm521_vm1, %v602_v5 }

// kernel: _lambda_.31
= control target key start
LH: loop header
LB: loop body
LE: loop exit
PB: predicated region body
PF: predicated region fallthrough
CT: control target
= control target key end

     0   :  { %vm283_vm0 = vcmask 261120   ;;  %vm548_vm1 = vcmask 257024   ;;  %s1017_s1 = inlined_call_operand.vmem [shape: bf16[288,32], index: 1, kind: input, shape index: {}]   ;;  %s1018_s0 = inlined_call_operand.vmem [shape: bf16[96,288], index: 0, kind: input, shape index: {}]   ;;  %s1019_s2 = inlined_call_operand.vmem [shape: f32[1,32], index: 2, kind: input, shape index: {}]   ;;  %s1020_s3 = inlined_call_operand.vmem [shape: bf16[96,32], index: 3, kind: input, shape index: {}]   ;;  %s1021_s4 = inlined_call_operand.vmem [shape: bf16[96,32], index: 4, kind: output, shape index: {}]  }
   0x1   :  { %v753_v0 = vld [vmem:[%s1017_s1 + $0x78] sm:$0xff]   ;;  %v755_v2 = vld [vmem:[%s1017_s1 + $0x70] sm:$0xff]   ;;  %v757_v4 = vld [vmem:[%s1017_s1 + $0x68] sm:$0xff]  }
   0x2   :  { %v754_v1 = vld [vmem:[%s1017_s1 + $0x38] sm:$0xff]   ;;  %661 = vmatprep.subr.bf16.mxu0 %v753_v0  ;;  %737 = vmatprep.subr.bf16.mxu1 %v753_v0  ;;  %v756_v3 = vld [vmem:[%s1017_s1 + $0x30] sm:$0xff]   ;;  %v758_v5 = vld [vmem:[%s1017_s1 + $0x28] sm:$0xff]  }
   0x3   :  { %662 = vmatpush3.bf16.msra.mxu0 %v754_v1  ;;  %745 = vmatpush3.bf16.msra.mxu1 %v754_v1  ;;  %v759_v6 = vld [vmem:[%s1017_s1 + $0x60] sm:$0xff]   ;;  %v761_v8 = vld [vmem:[%s1017_s1 + $0x58] sm:$0xff]   ;;  %v763_v10 = vld [vmem:[%s1017_s1 + $0x50] sm:$0xff]  }
   0x4   :  { %663 = vmatprep.subr.bf16.mxu0 %v755_v2  ;;  %738 = vmatprep.subr.bf16.mxu1 %v755_v2  ;;  %v760_v7 = vld [vmem:[%s1017_s1 + $0x20] sm:$0xff]   ;;  %v762_v9 = vld [vmem:[%s1017_s1 + $0x18] sm:$0xff]   ;;  %v764_v13 = vld [vmem:[%s1017_s1 + $0x10] sm:$0xff]  }
   0x5   :  { %v771_v11 = vld [vmem:[%s1018_s0 + $0x4] ss:$12 sps:$4 sm:$0xff]   ;;  %v774_v12 = vld [vmem:[%s1018_s0 + $0x7c] ss:$12 sps:$4 sm:$0xff]   ;;  %v769_v19 = vld [vmem:[%s1018_s0] ss:$12 sps:$4 sm:$0xff]  }
   0x6   :  { %v765_v14 = vld [vmem:[%s1017_s1 + $0x48] sm:$0xff]   ;;  %334 = vmatprep.mubr.bf16.mxu0 %v771_v11  ;;  %374 = vmatprep.mubr.bf16.mxu1 %v774_v12  ;;  %v767_v16 = vld [vmem:[%s1017_s1 + $0x40] sm:$0xff]   ;;  %v785_v28 = vld [vmem:[%s1018_s0 + $0x30] ss:$12 sps:$4 sm:$0xff]  }
   0x7   :  { %664 = vmatpush3.bf16.msra.mxu0 %v756_v3  ;;  %746 = vmatpush3.bf16.msra.mxu1 %v756_v3  ;;  %v766_v15 = vld [vmem:[%s1017_s1 + $0x8] sm:$0xff]   ;;  %v768_v17 = vld [vmem:[%s1017_s1] sm:$0xff]   ;;  %v786_v29 = vld [vmem:[%s1018_s0 + $0x50] ss:$12 sps:$4 sm:$0xff]  }
   0x8   :  { %665 = vmatprep.subr.bf16.mxu0 %v757_v4  ;;  %739 = vmatprep.subr.bf16.mxu1 %v757_v4  ;;  %v775_v18 = vld [vmem:[%s1017_s1 + $0x88] sm:$0xff]   ;;  %v772_v20 = vld [vmem:[%s1018_s0 + $0x78] ss:$12 sps:$4 sm:$0xff]   ;;  %v782_v26 = vld [vmem:[%s1018_s0 + $0x34] ss:$12 sps:$4 sm:$0xff]  }
   0x9   :  { %v777_v21 = vld [vmem:[%s1018_s0 + $0x1c] ss:$12 sps:$4 sm:$0xff]   ;;  %v776_v22 = vld [vmem:[%s1017_s1 + $0x80] sm:$0xff]   ;;  %v787_v30 = vld [vmem:[%s1018_s0 + $0x4c] ss:$12 sps:$4 sm:$0xff]  }
   0xa   :  { %v779_v23 = vld [vmem:[%s1018_s0 + $0x8] ss:$12 sps:$4 sm:$0xff]   ;;  %v780_v24 = vld [vmem:[%s1018_s0 + $0x18] ss:$12 sps:$4 sm:$0xff]   ;;  %v781_v25 = vld [vmem:[%s1018_s0 + $0x20] ss:$12 sps:$4 sm:$0xff]  }
   0xb   :  { %666 = vmatpush3.bf16.msra.mxu0 %v758_v5  ;;  %747 = vmatpush3.bf16.msra.mxu1 %v758_v5  ;;  %v784_v27 = vld [vmem:[%s1018_s0 + $0x38] ss:$12 sps:$4 sm:$0xff]   ;;  %v789_v31 = vld [vmem:[%s1018_s0 + $0x68] ss:$12 sps:$4 sm:$0xff]   ;;  %v791_v33 = vld [vmem:[%s1018_s0 + $0x80] ss:$12 sps:$4 sm:$0xff]  }
   0xc   :  { %667 = vmatprep.subr.bf16.mxu0 %v759_v6  ;;  %740 = vmatprep.subr.bf16.mxu1 %v759_v6  ;;  %v790_v32 = vld [vmem:[%s1018_s0 + $0x48] ss:$12 sps:$4 sm:$0xff]   ;;  %v792_v34 = vld [vmem:[%s1018_s0 + $0x64] ss:$12 sps:$4 sm:$0xff]   ;;  %v794_v35 = vld [vmem:[%s1018_s0 + $0x60] ss:$12 sps:$4 sm:$0xff]  }
   0xd   :  { %v937_v45 = vld [vmem:[%s1019_s2] ss:$0 sm:$0xff]  ;;  %v656_v50 = vld [vmem:[%s1020_s3 + $0x8] sm:$0xff]  }
   0xe   :  { %v633_v46 = vld [vmem:[%s1020_s3] sm:$0xff]   ;;  %v638_v57 = vunpack.c.l.bf16 %v656_v50 }
   0xf   :  { %668 = vmatpush3.bf16.msra.mxu0 %v760_v7  ;;  %748 = vmatpush3.bf16.msra.mxu1 %v760_v7  ;;  %v634_v52 = vunpack.c.l.bf16 %v633_v46  ;;  %v635_v63 = vunpack.c.h.bf16 %v633_v46 }
  0x10   :  { %669 = vmatprep.subr.bf16.mxu0 %v761_v8  ;;  %741 = vmatprep.subr.bf16.mxu1 %v761_v8 }
  0x13   :  { %670 = vmatpush3.bf16.msra.mxu0 %v762_v9  ;;  %749 = vmatpush3.bf16.msra.mxu1 %v762_v9 }
  0x14   :  { %671 = vmatprep.subr.bf16.mxu0 %v763_v10  ;;  %742 = vmatprep.subr.bf16.mxu1 %v763_v10  ;;  %v639_v10 = vunpack.c.h.bf16 %v656_v50 }
  0x17   :  { %672 = vmatpush3.bf16.msra.mxu0 %v764_v13  ;;  %750 = vmatpush3.bf16.msra.mxu1 %v764_v13 }
  0x18   :  { %673 = vmatprep.subr.bf16.mxu0 %v765_v14  ;;  %743 = vmatprep.subr.bf16.mxu1 %v765_v14 }
  0x1b   :  { %674 = vmatpush3.bf16.msra.mxu0 %v766_v15  ;;  %751 = vmatpush3.bf16.msra.mxu1 %v766_v15  ;;  %v657_v15 = vld [vmem:[%s1020_s3 + $0x10] sm:$0xff]  }
  0x1c   :  { %675 = vmatprep.subr.bf16.mxu0 %v767_v16  ;;  %744 = vmatprep.subr.bf16.mxu1 %v767_v16 }
  0x1f   :  { %676 = vmatpush3.bf16.msra.mxu0 %v768_v17  ;;  %752 = vmatpush3.bf16.msra.mxu1 %v768_v17 }
  0x20   :  { %721 = vmatprep.subr.bf16.mxu1 %v775_v18 }
  0x22   :  { %335 = vmatmul.mubr.bf16.vlgmr.msra.gmra.mxu0 %v769_v19  ;;  %375 = vmatmul.mubr.bf16.vlgmr.msra.gmra.mxu1 %v772_v20  ;;  %v660_v20 = vld [vmem:[%s1020_s3 + $0x28] sm:$0xff]  }
  0x23   :  { %722 = vmatpush3.bf16.msra.mxu1 %v775_v18  ;;  %342 = vmatprep.mubr.bf16.mxu0 %v777_v21 }
  0x24   :  { %723 = vmatprep.subr.bf16.mxu1 %v776_v22  ;;  %725 = vmatprep.mubr.msk.bf16.mxu1 %vm283_vm0, %v779_v23 }
  0x27   :  { %724 = vmatpush3.bf16.msra.mxu1 %v776_v22 }
  0x2a   :  { %343 = vmatmul.mubr.bf16.gmra.mxu0 %v780_v24  ;;  %726 = vmatmul.mubr.msk.bf16.vlgmr.msra.gmra.mxu1 %vm283_vm0, %v781_v25  ;;  %v642_v25 = vunpack.c.l.bf16 %v657_v15 }
  0x2b   :  { %350 = vmatprep.mubr.bf16.mxu0 %v782_v26  ;;  %729 = vmatprep.mubr.msk.bf16.mxu1 %vm283_vm0, %v784_v27 }
  0x32   :  { %351 = vmatmul.mubr.bf16.gmra.mxu0 %v785_v28  ;;  %730 = vmatmul.mubr.msk.bf16.gmra.mxu1 %vm283_vm0, %v786_v29  ;;  %v654_v29 = vunpack.c.l.bf16 %v660_v20 }
  0x33   :  { %358 = vmatprep.mubr.bf16.mxu0 %v787_v30  ;;  %733 = vmatprep.mubr.msk.bf16.mxu1 %vm283_vm0, %v789_v31 }
  0x3a   :  { %359 = vmatmul.mubr.bf16.gmra.mxu0 %v790_v32  ;;  %734 = vmatmul.mubr.msk.bf16.gmra.mxu1 %vm283_vm0, %v791_v33 }
  0x3b   :  { %366 = vmatprep.mubr.bf16.mxu0 %v792_v34 }
  0x42   :  { %367 = vmatmul.mubr.bf16.gmra.mxu0 %v794_v35 }
  0xe2   :  { %v677_v36 = vpop.f32.mrf.mxu0  ;;  %v707_v37 = vpop.f32.mrf.mxu1 }
  0xe4   :  { %v678_v38 = vpop.f32.mrf.mxu0  ;;  %v708_v39 = vpop.f32.mrf.mxu1 }
  0xe5   :  { %v679_v42 = vadd.f32 %v678_v38, %v677_v36  ;;  %v709_v12 = vadd.f32 %v708_v39, %v707_v37  ;;  %v643_v38 = vunpack.c.h.bf16 %v657_v15 }
  0xe6   :  { %v680_v40 = vpop.f32.mrf.mxu0  ;;  %v710_v41 = vpop.f32.mrf.mxu1 }
  0xe7   :  { %v337_v51 = vadd.f32 %v679_v42, %v937_v45  ;;  %v377_v33 = vadd.f32 %v709_v12, %v937_v45 }
  0xe8   :  { %v681_v43 = vpop.f32.mrf.mxu0  ;;  %v711_v44 = vpop.f32.mrf.mxu1 }
  0xe9   :  { %v682_v49 = vadd.f32 %v681_v43, %v680_v40  ;;  %v712_v26 = vadd.f32 %v711_v44, %v710_v41  ;;  %v658_v40 = vld [vmem:[%s1020_s3 + $0x18] sm:$0xff]   ;;  %v655_v44 = vunpack.c.h.bf16 %v660_v20 }
  0xea   :  { %v683_v47 = vpop.f32.mrf.mxu0  ;;  %v727_v48 = vpop.f32.mrf.mxu1  ;;  %v646_v50 = vunpack.c.l.bf16 %v658_v40 }
  0xeb   :  { %v340_v62 = vadd.f32 %v682_v49, %v937_v45  ;;  %v380_v43 = vadd.f32 %v712_v26, %v937_v45 }
  0xec   :  { %v684_v53 = vpop.f32.mrf.mxu0  ;;  %v417_v54 = vpop.f32.mrf.mxu1 }
  0xed   :  { %v685_v55 = vadd.f32 %v684_v53, %v683_v47  ;;  %v418_v56 = vadd.f32 %v417_v54, %v337_v51 }
  0xee   :  { %v686_v58 = vpop.f32.mrf.mxu0  ;;  %v728_v59 = vpop.f32.mrf.mxu1 }
  0xef   :  { %v345_v60 = vadd.f32 %v685_v55, %v937_v45  ;;  %v488_v61 = vadd.f32 %v634_v52, %v418_v56 }
  0xf0   :  { %v687_v0 = vpop.f32.mrf.mxu0  ;;  %v420_v1 = vpop.f32.mrf.mxu1 }
  0xf1   :  { %v426_v2 = vadd.f32 %v727_v48, %v345_v60  ;;  %v620_v3 = vpack.c.bf16 %v488_v61, %v488_v61  ;;  %v688_v4 = vadd.f32 %v687_v0, %v686_v58  ;;  %v421_v5 = vadd.f32 %v420_v1, %v340_v62 }
  0xf2   :  { %v689_v6 = vpop.f32.mrf.mxu0  ;;  %v731_v7 = vpop.f32.mrf.mxu1 }
  0xf3   :  { %v490_v8 = vadd.f32 %v638_v57, %v426_v2  ;;  %549 = vst.msk [vmem:[%s1021_s4] sm:$0xf] %vm548_vm1, %v620_v3  ;;  %v348_v9 = vadd.f32 %v688_v4, %v937_v45  ;;  %v489_v11 = vadd.f32 %v635_v63, %v421_v5  ;;  %v647_v2 = vunpack.c.h.bf16 %v658_v40  ;;  %v659_v4 = vld [vmem:[%s1020_s3 + $0x20] sm:$0xff]  }
  0xf4   :  { %v690_v13 = vpop.f32.mrf.mxu0  ;;  %v433_v14 = vpop.f32.mrf.mxu1 }
  0xf5   :  { %v622_v16 = vpack.c.bf16 %v490_v8, %v490_v8  ;;  %v429_v17 = vadd.f32 %v728_v59, %v348_v9  ;;  %v621_v18 = vpack.c.bf16 %v489_v11, %v489_v11  ;;  %v691_v19 = vadd.f32 %v690_v13, %v689_v6 }
  0xf6   :  { %v692_v21 = vpop.f32.mrf.mxu0  ;;  %v732_v22 = vpop.f32.mrf.mxu1  ;;  %v650_v11 = vunpack.c.l.bf16 %v659_v4 }
  0xf7   :  { %551 = vst.msk [vmem:[%s1021_s4 + $0x8] sm:$0xf] %vm548_vm1, %v622_v16  ;;  %v491_v23 = vadd.f32 %v639_v10, %v429_v17  ;;  %550 = vst.msk [vmem:[%s1021_s4 + $0x4] sm:$0xf] %vm548_vm1, %v621_v18  ;;  %v353_v24 = vadd.f32 %v691_v19, %v937_v45  ;;  %v651_v18 = vunpack.c.h.bf16 %v659_v4 }
  0xf8   :  { %v693_v27 = vpop.f32.mrf.mxu0  ;;  %v436_v28 = vpop.f32.mrf.mxu1 }
  0xf9   :  { %v623_v30 = vpack.c.bf16 %v491_v23, %v491_v23  ;;  %v434_v31 = vadd.f32 %v433_v14, %v353_v24  ;;  %v694_v32 = vadd.f32 %v693_v27, %v692_v21 }
  0xfa   :  { %v695_v34 = vpop.f32.mrf.mxu0  ;;  %v735_v35 = vpop.f32.mrf.mxu1 }
  0xfb   :  { %552 = vst.msk [vmem:[%s1021_s4 + $0xc] sm:$0xf] %vm548_vm1, %v623_v30  ;;  %v492_v36 = vadd.f32 %v642_v25, %v434_v31  ;;  %v356_v37 = vadd.f32 %v694_v32, %v937_v45  ;;  %v458_v39 = vadd.f32 %v735_v35, %v377_v33 }
  0xfc   :  { %v696_v41 = vpop.f32.mrf.mxu0  ;;  %v449_v42 = vpop.f32.mrf.mxu1 }
  0xfd   :  { %v624_v46 = vpack.c.bf16 %v492_v36, %v492_v36  ;;  %v437_v47 = vadd.f32 %v436_v28, %v356_v37  ;;  %v498_v48 = vadd.f32 %v654_v29, %v458_v39  ;;  %v697_v49 = vadd.f32 %v696_v41, %v695_v34 }
  0xfe   :  { %v698_v51 = vpop.f32.mrf.mxu0  ;;  %v736_v52 = vpop.f32.mrf.mxu1 }
  0xff   :  { %553 = vst.msk [vmem:[%s1021_s4 + $0x10] sm:$0xf] %vm548_vm1, %v624_v46  ;;  %v493_v53 = vadd.f32 %v643_v38, %v437_v47  ;;  %v630_v54 = vpack.c.bf16 %v498_v48, %v498_v48  ;;  %v361_v55 = vadd.f32 %v697_v49, %v937_v45  ;;  %v461_v56 = vadd.f32 %v736_v52, %v380_v43 }
 0x100   :  { %v699_v57 = vpop.f32.mrf.mxu0  ;;  %v452_v19 = vpop.f32.mrf.mxu1 }
 0x101   :  { %v625_v58 = vpack.c.bf16 %v493_v53, %v493_v53  ;;  %559 = vst.msk [vmem:[%s1021_s4 + $0x28] sm:$0xf] %vm548_vm1, %v630_v54  ;;  %v442_v59 = vadd.f32 %v731_v7, %v361_v55  ;;  %v499_v60 = vadd.f32 %v655_v44, %v461_v56  ;;  %v700_v61 = vadd.f32 %v699_v57, %v698_v51 }
 0x102   :  { %v701_v62 = vpop.f32.mrf.mxu0 }
 0x103   :  { %554 = vst.msk [vmem:[%s1021_s4 + $0x14] sm:$0xf] %vm548_vm1, %v625_v58  ;;  %v494_v63 = vadd.f32 %v646_v50, %v442_v59  ;;  %v631_v0 = vpack.c.bf16 %v499_v60, %v499_v60  ;;  %v364_v1 = vadd.f32 %v700_v61, %v937_v45 }
 0x104   :  { %v702_v3 = vpop.f32.mrf.mxu0 }
 0x105   :  { %v626_v5 = vpack.c.bf16 %v494_v63, %v494_v63  ;;  %560 = vst.msk [vmem:[%s1021_s4 + $0x2c] sm:$0xf] %vm548_vm1, %v631_v0  ;;  %v445_v6 = vadd.f32 %v732_v22, %v364_v1  ;;  %v703_v7 = vadd.f32 %v702_v3, %v701_v62 }
 0x106   :  { %v704_v8 = vpop.f32.mrf.mxu0 }
 0x107   :  { %555 = vst.msk [vmem:[%s1021_s4 + $0x18] sm:$0xf] %vm548_vm1, %v626_v5  ;;  %v495_v9 = vadd.f32 %v647_v2, %v445_v6  ;;  %v369_v10 = vadd.f32 %v703_v7, %v937_v45 }
 0x108   :  { %v705_v12 = vpop.f32.mrf.mxu0 }
 0x109   :  { %v627_v13 = vpack.c.bf16 %v495_v9, %v495_v9  ;;  %v450_v14 = vadd.f32 %v449_v42, %v369_v10  ;;  %v706_v15 = vadd.f32 %v705_v12, %v704_v8 }
 0x10b   :  { %556 = vst.msk [vmem:[%s1021_s4 + $0x1c] sm:$0xf] %vm548_vm1, %v627_v13  ;;  %v496_v16 = vadd.f32 %v650_v11, %v450_v14  ;;  %v372_v17 = vadd.f32 %v706_v15, %v937_v45 }
 0x10d   :  { %v628_v20 = vpack.c.bf16 %v496_v16, %v496_v16  ;;  %v453_v21 = vadd.f32 %v452_v19, %v372_v17 }
 0x10f   :  { %557 = vst.msk [vmem:[%s1021_s4 + $0x20] sm:$0xf] %vm548_vm1, %v628_v20  ;;  %v497_v22 = vadd.f32 %v651_v18, %v453_v21 }
 0x111   :  { %v629_v23 = vpack.c.bf16 %v497_v22, %v497_v22 }
 0x113   :  { %558 = vst.msk [vmem:[%s1021_s4 + $0x24] sm:$0xf] %vm548_vm1, %v629_v23 }

// kernel: _lambda_.35
= control target key start
LH: loop header
LB: loop body
LE: loop exit
PB: predicated region body
PF: predicated region fallthrough
CT: control target
= control target key end

     0   :  { %vm80_vm0 = vcmask 261120   ;;  %vm264_vm3 = vcmask 60416   ;;  %s471_s1 = inlined_call_operand.vmem [shape: bf16[32,8], index: 1, kind: input, shape index: {}]   ;;  %s472_s0 = inlined_call_operand.vmem [shape: bf16[96,32], index: 0, kind: input, shape index: {}]   ;;  %s473_s2 = inlined_call_operand.vmem [shape: f32[1,8], index: 2, kind: input, shape index: {}]   ;;  %s474_s3 = inlined_call_operand.vmem [shape: bf16[96,8], index: 3, kind: output, shape index: {}]  }
   0x1   :  { %v348_v0 = vld [vmem:[%s471_s1 + $0x8] sm:$0xff]   ;;  %v349_v1 = vld [vmem:[%s471_s1] sm:$0xff]   ;;  %v351_v3 = vld [vmem:[%s472_s0 + $0x10] sm:$0xff]  }
   0x2   :  { %328 = vmatprep.subr.bf16.mxu0 %v348_v0  ;;  %344 = vmatprep.subr.bf16.mxu1 %v348_v0  ;;  %v350_v2 = vld [vmem:[%s472_s0] sm:$0xff]   ;;  %v352_v4 = vld [vmem:[%s472_s0 + $0x8] sm:$0xff]   ;;  %v353_v5 = vld [vmem:[%s472_s0 + $0x18] sm:$0xff]  }
   0x3   :  { %329 = vmatpush3.bf16.msra.mxu0 %v348_v0  ;;  %346 = vmatpush3.bf16.msra.mxu1 %v348_v0  ;;  %v354_v6 = vld [vmem:[%s472_s0 + $0x20] sm:$0xff]   ;;  %v355_v7 = vld [vmem:[%s472_s0 + $0x28] sm:$0xff]  }
   0x4   :  { %330 = vmatprep.subr.bf16.mxu0 %v349_v1  ;;  %345 = vmatprep.subr.bf16.mxu1 %v349_v1  ;;  %v409_v8 = vld [vmem:[%s473_s2] ss:$0 sm:$0xff] }
   0x5   :  { %332 = vmatprep.mubr.msk.bf16.mxu0 %vm80_vm0, %v350_v2  ;;  %336 = vmatprep.mubr.msk.bf16.mxu1 %vm80_vm0, %v351_v3 }
   0x7   :  { %331 = vmatpush3.bf16.msra.mxu0 %v349_v1  ;;  %347 = vmatpush3.bf16.msra.mxu1 %v349_v1 }
   0xa   :  { %333 = vmatmul.mubr.msk.bf16.vlgmr.msra.gmra.mxu0 %vm80_vm0, %v352_v4  ;;  %337 = vmatmul.mubr.msk.bf16.vlgmr.msra.gmra.mxu1 %vm80_vm0, %v353_v5 }
   0xb   :  { %340 = vmatprep.mubr.msk.bf16.mxu1 %vm80_vm0, %v354_v6 }
  0x12   :  { %341 = vmatmul.mubr.msk.bf16.gmra.mxu1 %vm80_vm0, %v355_v7 }
  0xca   :  { %v334_v9 = vpop.f32.mrf.mxu0  ;;  %v338_v10 = vpop.f32.mrf.mxu1 }
  0xcb   :  { %v142_v11 = vadd.f32 %v334_v9, %v409_v8  ;;  %v158_v12 = vadd.f32 %v338_v10, %v409_v8 }
  0xcc   :  { %v133_v13 = vpop.f32.mrf.mxu0  ;;  %v149_v14 = vpop.f32.mrf.mxu1 }
  0xcd   :  { %vm182_vm1 = vcmp.ge.f32.partialorder %v142_v11, 0.0  ;;  %v194_v15 = vmul.f32 0.2, %v142_v11  ;;  %vm186_vm2 = vcmp.ge.f32.partialorder %v158_v12, 0.0  ;;  %v198_v16 = vmul.f32 0.2, %v158_v12 }
  0xce   :  { %v134_v17 = vadd.f32 %v409_v8, %v133_v13  ;;  %v150_v18 = vadd.f32 %v409_v8, %v149_v14  ;;  %v335_v19 = vpop.f32.mrf.mxu0  ;;  %v339_v20 = vpop.f32.mrf.mxu1 }
  0xcf   :  { %v206_v21 = vsel %vm182_vm1, %v142_v11, %v194_v15  ;;  %v210_v22 = vsel %vm186_vm2, %v158_v12, %v198_v16  ;;  %v145_v23 = vadd.f32 %v335_v19, %v409_v8  ;;  %v161_v24 = vadd.f32 %v339_v20, %v409_v8 }
  0xd0   :  { %v310_v25 = vpack.c.bf16 %v206_v21, %v206_v21  ;;  %v314_v26 = vpack.c.bf16 %v210_v22, %v210_v22  ;;  %vm180_vm4 = vcmp.ge.f32.partialorder %v134_v17, 0.0  ;;  %v192_v27 = vmul.f32 0.2, %v134_v17  ;;  %v136_v28 = vpop.f32.mrf.mxu0  ;;  %v152_v29 = vpop.f32.mrf.mxu1 }
  0xd1   :  { %vm184_vm5 = vcmp.ge.f32.partialorder %v150_v18, 0.0  ;;  %v196_v30 = vmul.f32 0.2, %v150_v18  ;;  %vm183_vm6 = vcmp.ge.f32.partialorder %v145_v23, 0.0  ;;  %v195_v31 = vmul.f32 0.2, %v145_v23 }
  0xd2   :  { %267 = vst.msk [vmem:[%s474_s3 + $0x8] sm:$0xf] %vm264_vm3, %v310_v25  ;;  %271 = vst.msk [vmem:[%s474_s3 + $0x18] sm:$0xf] %vm264_vm3, %v314_v26  ;;  %v204_v32 = vsel %vm180_vm4, %v134_v17, %v192_v27  ;;  %vm187_vm7 = vcmp.ge.f32.partialorder %v161_v24, 0.0  ;;  %v137_v34 = vadd.f32 %v409_v8, %v136_v28  ;;  %v342_v35 = vpop.f32.mrf.mxu1  ;;  %v153_v39 = vadd.f32 %v409_v8, %v152_v29 }
  0xd3   :  { %v199_v33 = vmul.f32 0.2, %v161_v24  ;;  %v308_v36 = vpack.c.bf16 %v204_v32, %v204_v32  ;;  %v208_v37 = vsel %vm184_vm5, %v150_v18, %v196_v30  ;;  %v207_v38 = vsel %vm183_vm6, %v145_v23, %v195_v31 }
  0xd4   :  { %v312_v40 = vpack.c.bf16 %v208_v37, %v208_v37  ;;  %v311_v41 = vpack.c.bf16 %v207_v38, %v207_v38  ;;  %vm181_vm8 = vcmp.ge.f32.partialorder %v137_v34, 0.0  ;;  %v165_v43 = vpop.f32.mrf.mxu1  ;;  %v193_v45 = vmul.f32 0.2, %v137_v34 }
  0xd5   :  { %v211_v42 = vsel %vm187_vm7, %v161_v24, %v199_v33  ;;  %265 = vst.msk [vmem:[%s474_s3] sm:$0xf] %vm264_vm3, %v308_v36  ;;  %vm185_vm9 = vcmp.ge.f32.partialorder %v153_v39, 0.0  ;;  %v197_v46 = vmul.f32 0.2, %v153_v39  ;;  %v174_v47 = vadd.f32 %v342_v35, %v409_v8 }
  0xd6   :  { %v315_v44 = vpack.c.bf16 %v211_v42, %v211_v42  ;;  %269 = vst.msk [vmem:[%s474_s3 + $0x10] sm:$0xf] %vm264_vm3, %v312_v40  ;;  %268 = vst.msk [vmem:[%s474_s3 + $0xc] sm:$0xf] %vm264_vm3, %v311_v41  ;;  %v166_v48 = vadd.f32 %v409_v8, %v165_v43  ;;  %v343_v49 = vpop.f32.mrf.mxu1  ;;  %v205_v50 = vsel %vm181_vm8, %v137_v34, %v193_v45 }
  0xd7   :  { %v209_v51 = vsel %vm185_vm9, %v153_v39, %v197_v46  ;;  %v177_v52 = vadd.f32 %v343_v49, %v409_v8  ;;  %v309_v53 = vpack.c.bf16 %v205_v50, %v205_v50  ;;  %vm190_vm10 = vcmp.ge.f32.partialorder %v174_v47, 0.0 }
  0xd8   :  { %272 = vst.msk [vmem:[%s474_s3 + $0x1c] sm:$0xf] %vm264_vm3, %v315_v44  ;;  %v313_v54 = vpack.c.bf16 %v209_v51, %v209_v51  ;;  %v202_v55 = vmul.f32 0.2, %v174_v47  ;;  %v168_v56 = vpop.f32.mrf.mxu1  ;;  %vm188_vm11 = vcmp.ge.f32.partialorder %v166_v48, 0.0 }
  0xd9   :  { %v200_v57 = vmul.f32 0.2, %v166_v48  ;;  %vm191_vm12 = vcmp.ge.f32.partialorder %v177_v52, 0.0  ;;  %v203_v58 = vmul.f32 0.2, %v177_v52  ;;  %v169_v60 = vadd.f32 %v409_v8, %v168_v56 }
  0xda   :  { %266 = vst.msk [vmem:[%s474_s3 + $0x4] sm:$0xf] %vm264_vm3, %v309_v53  ;;  %270 = vst.msk [vmem:[%s474_s3 + $0x14] sm:$0xf] %vm264_vm3, %v313_v54  ;;  %v214_v59 = vsel %vm190_vm10, %v174_v47, %v202_v55 }
  0xdb   :  { %v318_v61 = vpack.c.bf16 %v214_v59, %v214_v59  ;;  %v212_v62 = vsel %vm188_vm11, %v166_v48, %v200_v57  ;;  %v215_v63 = vsel %vm191_vm12, %v177_v52, %v203_v58  ;;  %vm189_vm13 = vcmp.ge.f32.partialorder %v169_v60, 0.0 }
  0xdc   :  { %v316_v0 = vpack.c.bf16 %v212_v62, %v212_v62  ;;  %v319_v1 = vpack.c.bf16 %v215_v63, %v215_v63  ;;  %v201_v2 = vmul.f32 0.2, %v169_v60 }
  0xdd   :  { %275 = vst.msk [vmem:[%s474_s3 + $0x28] sm:$0xf] %vm264_vm3, %v318_v61 }
  0xde   :  { %273 = vst.msk [vmem:[%s474_s3 + $0x20] sm:$0xf] %vm264_vm3, %v316_v0  ;;  %276 = vst.msk [vmem:[%s474_s3 + $0x2c] sm:$0xf] %vm264_vm3, %v319_v1  ;;  %v213_v3 = vsel %vm189_vm13, %v169_v60, %v201_v2 }
  0xdf   :  { %v317_v4 = vpack.c.bf16 %v213_v3, %v213_v3 }
  0xe1   :  { %274 = vst.msk [vmem:[%s474_s3 + $0x24] sm:$0xf] %vm264_vm3, %v317_v4 }

// kernel: _lambda_.34
= control target key start
LH: loop header
LB: loop body
LE: loop exit
PB: predicated region body
PF: predicated region fallthrough
CT: control target
= control target key end

     0   :  { %vm52_vm0 = vcmask 261120   ;;  %vm136_vm2 = vcmask 60416   ;;  %s227_s1 = inlined_call_operand.vmem [shape: bf16[32,8], index: 1, kind: input, shape index: {}]   ;;  %s228_s0 = inlined_call_operand.vmem [shape: bf16[32,32], index: 0, kind: input, shape index: {}]   ;;  %s229_s2 = inlined_call_operand.vmem [shape: f32[1,8], index: 2, kind: input, shape index: {}]   ;;  %s230_s3 = inlined_call_operand.vmem [shape: bf16[32,8], index: 3, kind: output, shape index: {}]  }
   0x1   :  { %v172_v0 = vld [vmem:[%s227_s1 + $0x8] sm:$0xff]   ;;  %v173_v1 = vld [vmem:[%s227_s1] sm:$0xff]  }
   0x2   :  { %164 = vmatprep.subr.bf16.mxu0 %v172_v0  ;;  %v174_v2 = vld [vmem:[%s228_s0] sm:$0xff]   ;;  %v175_v3 = vld [vmem:[%s228_s0 + $0x8] sm:$0xff]  }
   0x3   :  { %165 = vmatpush3.bf16.msra.mxu0 %v172_v0  ;;  %168 = vmatprep.mubr.msk.bf16.mxu0 %vm52_vm0, %v174_v2  ;;  %v145_v4 = vld [vmem:[%s229_s2] ss:$0 sm:$0xff] }
   0x4   :  { %166 = vmatprep.subr.bf16.mxu0 %v173_v1 }
   0x7   :  { %167 = vmatpush3.bf16.msra.mxu0 %v173_v1 }
   0xa   :  { %169 = vmatmul.mubr.msk.bf16.vlgmr.msra.gmra.mxu0 %vm52_vm0, %v175_v3 }
  0xca   :  { %v170_v5 = vpop.f32.mrf.mxu0 }
  0xcb   :  { %v102_v6 = vadd.f32 %v170_v5, %v145_v4 }
  0xcc   :  { %v93_v7 = vpop.f32.mrf.mxu0 }
  0xcd   :  { %vm110_vm1 = vcmp.ge.f32.partialorder %v102_v6, 0.0  ;;  %v114_v8 = vmul.f32 0.2, %v102_v6  ;;  %v94_v9 = vadd.f32 %v145_v4, %v93_v7 }
  0xce   :  { %v171_v10 = vpop.f32.mrf.mxu0 }
  0xcf   :  { %v118_v11 = vsel %vm110_vm1, %v102_v6, %v114_v8  ;;  %vm108_vm3 = vcmp.ge.f32.partialorder %v94_v9, 0.0  ;;  %v112_v12 = vmul.f32 0.2, %v94_v9  ;;  %v105_v13 = vadd.f32 %v171_v10, %v145_v4 }
  0xd0   :  { %v158_v14 = vpack.c.bf16 %v118_v11, %v118_v11  ;;  %v96_v15 = vpop.f32.mrf.mxu0 }
  0xd1   :  { %v116_v16 = vsel %vm108_vm3, %v94_v9, %v112_v12  ;;  %vm111_vm4 = vcmp.ge.f32.partialorder %v105_v13, 0.0  ;;  %v115_v17 = vmul.f32 0.2, %v105_v13  ;;  %v97_v18 = vadd.f32 %v145_v4, %v96_v15 }
  0xd2   :  { %139 = vst.msk [vmem:[%s230_s3 + $0x8] sm:$0xf] %vm136_vm2, %v158_v14  ;;  %v156_v19 = vpack.c.bf16 %v116_v16, %v116_v16 }
  0xd3   :  { %v119_v20 = vsel %vm111_vm4, %v105_v13, %v115_v17  ;;  %vm109_vm5 = vcmp.ge.f32.partialorder %v97_v18, 0.0  ;;  %v113_v21 = vmul.f32 0.2, %v97_v18 }
  0xd4   :  { %137 = vst.msk [vmem:[%s230_s3] sm:$0xf] %vm136_vm2, %v156_v19  ;;  %v159_v22 = vpack.c.bf16 %v119_v20, %v119_v20 }
  0xd5   :  { %v117_v23 = vsel %vm109_vm5, %v97_v18, %v113_v21 }
  0xd6   :  { %140 = vst.msk [vmem:[%s230_s3 + $0xc] sm:$0xf] %vm136_vm2, %v159_v22  ;;  %v157_v24 = vpack.c.bf16 %v117_v23, %v117_v23 }
  0xd8   :  { %138 = vst.msk [vmem:[%s230_s3 + $0x4] sm:$0xf] %vm136_vm2, %v157_v24 }

// kernel: _lambda_.36
= control target key start
LH: loop header
LB: loop body
LE: loop exit
PB: predicated region body
PF: predicated region fallthrough
CT: control target
= control target key end

     0   :  { %v459_v0 = vmov 0   ;;  %vm160_vm0 = vcmask 130048   ;;  %vm344_vm3 = vcmask 191488   ;;  %s614_s1 = inlined_call_operand.vmem [shape: bf16[144,24], index: 1, kind: input, shape index: {}]   ;;  %s615_s0 = inlined_call_operand.vmem [shape: bf16[96,144], index: 0, kind: input, shape index: {}]   ;;  %s616_s2 = inlined_call_operand.vmem [shape: f32[1,24], index: 2, kind: input, shape index: {}]   ;;  %s617_s3 = inlined_call_operand.vmem [shape: bf16[96,24], index: 3, kind: output, shape index: {}]  }
   0x1   :  { %179 = vmatprep.subr.bf16.mxu0 %v459_v0  ;;  %413 = vmatprep.subr.bf16.mxu1 %v459_v0  ;;  %v432_v1 = vld [vmem:[%s614_s1 + $0x38] sm:$0xff]   ;;  %v433_v2 = vld [vmem:[%s614_s1 + $0x30] sm:$0xff]   ;;  %v434_v3 = vld [vmem:[%s614_s1 + $0x28] sm:$0xff]  }
   0x2   :  { %180 = vmatpush1.bf16.msra.mxu0 %v432_v1  ;;  %422 = vmatpush1.bf16.msra.mxu1 %v432_v1  ;;  %v435_v4 = vld [vmem:[%s614_s1 + $0x20] sm:$0xff]   ;;  %v446_v6 = vld [vmem:[%s615_s0 + $0x34] ss:$8 sps:$4 sm:$0xff]   ;;  %v438_v9 = vld [vmem:[%s614_s1 + $0x8] sm:$0xff]  }
   0x3   :  { %181 = vmatprep.subr.bf16.mxu0 %v459_v0  ;;  %414 = vmatprep.subr.bf16.mxu1 %v459_v0  ;;  %v443_v5 = vld [vmem:[%s615_s0 + $0x4] ss:$8 sps:$4 sm:$0xff]   ;;  %v436_v7 = vld [vmem:[%s614_s1 + $0x18] sm:$0xff]   ;;  %v437_v8 = vld [vmem:[%s614_s1 + $0x10] sm:$0xff]  }
   0x4   :  { %383 = vmatprep.mubr.msk.bf16.mxu0 %vm160_vm0, %v443_v5  ;;  %386 = vmatprep.mubr.msk.bf16.mxu1 %vm160_vm0, %v446_v6  ;;  %v439_v10 = vld [vmem:[%s614_s1] sm:$0xff]   ;;  %v444_v13 = vld [vmem:[%s615_s0 + $0x30] ss:$8 sps:$4 sm:$0xff]   ;;  %v447_v14 = vld [vmem:[%s615_s0 + $0x14] ss:$8 sps:$4 sm:$0xff]  }
   0x5   :  { %v440_v11 = vld [vmem:[%s614_s1 + $0x40] sm:$0xff]   ;;  %v451_v16 = vld [vmem:[%s615_s0 + $0x10] ss:$8 sps:$4 sm:$0xff]   ;;  %v455_v19 = vld [vmem:[%s615_s0 + $0x54] ss:$8 sps:$4 sm:$0xff]  }
   0x6   :  { %182 = vmatpush1.bf16.msra.mxu0 %v433_v2  ;;  %423 = vmatpush1.bf16.msra.mxu1 %v433_v2  ;;  %v441_v12 = vld [vmem:[%s615_s0] ss:$8 sps:$4 sm:$0xff]   ;;  %v449_v15 = vld [vmem:[%s615_s0 + $0x44] ss:$8 sps:$4 sm:$0xff]   ;;  %v458_v21 = vld [vmem:[%s615_s0 + $0x50] ss:$8 sps:$4 sm:$0xff]  }
   0x7   :  { %183 = vmatprep.subr.bf16.mxu0 %v459_v0  ;;  %415 = vmatprep.subr.bf16.mxu1 %v459_v0  ;;  %v452_v17 = vld [vmem:[%s615_s0 + $0x40] ss:$8 sps:$4 sm:$0xff]   ;;  %v453_v18 = vld [vmem:[%s615_s0 + $0x24] ss:$8 sps:$4 sm:$0xff]  }
   0x8   :  { %v457_v20 = vld [vmem:[%s615_s0 + $0x20] ss:$8 sps:$4 sm:$0xff]  }
   0x9   :  { %v552_v22 = vld [vmem:[%s616_s2] ss:$0 sm:$0xff] }
   0xa   :  { %184 = vmatpush1.bf16.msra.mxu0 %v434_v3  ;;  %424 = vmatpush1.bf16.msra.mxu1 %v434_v3 }
   0xb   :  { %185 = vmatprep.subr.bf16.mxu0 %v459_v0  ;;  %416 = vmatprep.subr.bf16.mxu1 %v459_v0 }
   0xe   :  { %186 = vmatpush1.bf16.msra.mxu0 %v435_v4  ;;  %425 = vmatpush1.bf16.msra.mxu1 %v435_v4 }
   0xf   :  { %187 = vmatprep.subr.bf16.mxu0 %v459_v0  ;;  %417 = vmatprep.subr.bf16.mxu1 %v459_v0 }
  0x12   :  { %188 = vmatpush1.bf16.msra.mxu0 %v436_v7  ;;  %426 = vmatpush1.bf16.msra.mxu1 %v436_v7 }
  0x13   :  { %189 = vmatprep.subr.bf16.mxu0 %v459_v0  ;;  %418 = vmatprep.subr.bf16.mxu1 %v459_v0 }
  0x16   :  { %190 = vmatpush1.bf16.msra.mxu0 %v437_v8  ;;  %427 = vmatpush1.bf16.msra.mxu1 %v437_v8 }
  0x17   :  { %191 = vmatprep.subr.bf16.mxu0 %v459_v0  ;;  %419 = vmatprep.subr.bf16.mxu1 %v459_v0 }
  0x1a   :  { %192 = vmatpush1.bf16.msra.mxu0 %v438_v9  ;;  %428 = vmatpush1.bf16.msra.mxu1 %v438_v9 }
  0x1b   :  { %193 = vmatprep.subr.bf16.mxu0 %v459_v0  ;;  %420 = vmatprep.subr.bf16.mxu1 %v459_v0 }
  0x1e   :  { %194 = vmatpush1.bf16.msra.mxu0 %v439_v10  ;;  %429 = vmatpush1.bf16.msra.mxu1 %v439_v10 }
  0x1f   :  { %209 = vmatprep.subr.bf16.mxu0 %v459_v0  ;;  %421 = vmatprep.subr.bf16.mxu1 %v459_v0 }
  0x22   :  { %210 = vmatpush2.bf16.msra.mxu0 %v440_v11  ;;  %430 = vmatpush2.bf16.msra.mxu1 %v440_v11 }
  0x25   :  { %212 = vmatmul.mubr.bf16.vlgmr.msra.gmra.mxu0 %v441_v12  ;;  %236 = vmatmul.mubr.bf16.vlgmr.msra.gmra.mxu1 %v444_v13 }
  0x26   :  { %384 = vmatprep.mubr.msk.bf16.mxu0 %vm160_vm0, %v447_v14  ;;  %387 = vmatprep.mubr.msk.bf16.mxu1 %vm160_vm0, %v449_v15 }
  0x2d   :  { %220 = vmatmul.mubr.bf16.gmra.mxu0 %v451_v16  ;;  %244 = vmatmul.mubr.bf16.gmra.mxu1 %v452_v17 }
  0x2e   :  { %385 = vmatprep.mubr.msk.bf16.mxu0 %vm160_vm0, %v453_v18  ;;  %388 = vmatprep.mubr.msk.bf16.mxu1 %vm160_vm0, %v455_v19 }
  0x35   :  { %228 = vmatmul.mubr.bf16.gmra.mxu0 %v457_v20  ;;  %252 = vmatmul.mubr.bf16.gmra.mxu1 %v458_v21 }
  0xe5   :  { %v213_v23 = vpop.f32.mrf.mxu0  ;;  %v237_v24 = vpop.f32.mrf.mxu1 }
  0xe6   :  { %v214_v25 = vadd.f32 %v552_v22, %v213_v23  ;;  %v238_v26 = vadd.f32 %v552_v22, %v237_v24 }
  0xe7   :  { %v215_v27 = vpop.f32.mrf.mxu0  ;;  %v239_v28 = vpop.f32.mrf.mxu1 }
  0xe8   :  { %vm260_vm1 = vcmp.ge.f32.partialorder %v214_v25, 0.0  ;;  %v272_v29 = vmul.f32 0.2, %v214_v25  ;;  %vm266_vm2 = vcmp.ge.f32.partialorder %v238_v26, 0.0  ;;  %v278_v30 = vmul.f32 0.2, %v238_v26 }
  0xe9   :  { %v216_v31 = vpop.f32.mrf.mxu0  ;;  %v240_v32 = vpop.f32.mrf.mxu1 }
  0xea   :  { %v284_v33 = vsel %vm260_vm1, %v214_v25, %v272_v29  ;;  %v290_v34 = vsel %vm266_vm2, %v238_v26, %v278_v30  ;;  %v217_v35 = vadd.f32 %v552_v22, %v216_v31  ;;  %v241_v36 = vadd.f32 %v552_v22, %v240_v32 }
  0xeb   :  { %v401_v37 = vpack.c.bf16 %v284_v33, %v284_v33  ;;  %v407_v38 = vpack.c.bf16 %v290_v34, %v290_v34  ;;  %v218_v39 = vpop.f32.mrf.mxu0  ;;  %v242_v40 = vpop.f32.mrf.mxu1 }
  0xec   :  { %vm261_vm4 = vcmp.ge.f32.partialorder %v217_v35, 0.0  ;;  %v273_v41 = vmul.f32 0.2, %v217_v35  ;;  %vm267_vm5 = vcmp.ge.f32.partialorder %v241_v36, 0.0  ;;  %v279_v42 = vmul.f32 0.2, %v241_v36 }
  0xed   :  { %345 = vst.msk [vmem:[%s617_s3] sm:$0xf] %vm344_vm3, %v401_v37  ;;  %351 = vst.msk [vmem:[%s617_s3 + $0x18] sm:$0xf] %vm344_vm3, %v407_v38  ;;  %v221_v43 = vpop.f32.mrf.mxu0  ;;  %v245_v44 = vpop.f32.mrf.mxu1 }
  0xee   :  { %v285_v45 = vsel %vm261_vm4, %v217_v35, %v273_v41  ;;  %v291_v46 = vsel %vm267_vm5, %v241_v36, %v279_v42  ;;  %v222_v47 = vadd.f32 %v552_v22, %v221_v43  ;;  %v246_v48 = vadd.f32 %v552_v22, %v245_v44 }
  0xef   :  { %v402_v49 = vpack.c.bf16 %v285_v45, %v285_v45  ;;  %v408_v50 = vpack.c.bf16 %v291_v46, %v291_v46  ;;  %v223_v51 = vpop.f32.mrf.mxu0  ;;  %v247_v52 = vpop.f32.mrf.mxu1 }
  0xf0   :  { %vm262_vm6 = vcmp.ge.f32.partialorder %v222_v47, 0.0  ;;  %v274_v53 = vmul.f32 0.2, %v222_v47  ;;  %vm268_vm7 = vcmp.ge.f32.partialorder %v246_v48, 0.0  ;;  %v280_v54 = vmul.f32 0.2, %v246_v48 }
  0xf1   :  { %346 = vst.msk [vmem:[%s617_s3 + $0x4] sm:$0xf] %vm344_vm3, %v402_v49  ;;  %352 = vst.msk [vmem:[%s617_s3 + $0x1c] sm:$0xf] %vm344_vm3, %v408_v50  ;;  %v224_v55 = vpop.f32.mrf.mxu0  ;;  %v248_v56 = vpop.f32.mrf.mxu1 }
  0xf2   :  { %v286_v57 = vsel %vm262_vm6, %v222_v47, %v274_v53  ;;  %v292_v58 = vsel %vm268_vm7, %v246_v48, %v280_v54  ;;  %v225_v59 = vadd.f32 %v552_v22, %v224_v55  ;;  %v249_v60 = vadd.f32 %v552_v22, %v248_v56 }
  0xf3   :  { %v403_v61 = vpack.c.bf16 %v286_v57, %v286_v57  ;;  %v409_v62 = vpack.c.bf16 %v292_v58, %v292_v58  ;;  %v226_v63 = vpop.f32.mrf.mxu0  ;;  %v250_v0 = vpop.f32.mrf.mxu1 }
  0xf4   :  { %vm263_vm8 = vcmp.ge.f32.partialorder %v225_v59, 0.0  ;;  %v275_v1 = vmul.f32 0.2, %v225_v59  ;;  %vm269_vm9 = vcmp.ge.f32.partialorder %v249_v60, 0.0  ;;  %v281_v2 = vmul.f32 0.2, %v249_v60 }
  0xf5   :  { %347 = vst.msk [vmem:[%s617_s3 + $0x8] sm:$0xf] %vm344_vm3, %v403_v61  ;;  %353 = vst.msk [vmem:[%s617_s3 + $0x20] sm:$0xf] %vm344_vm3, %v409_v62  ;;  %v229_v3 = vpop.f32.mrf.mxu0  ;;  %v253_v4 = vpop.f32.mrf.mxu1 }
  0xf6   :  { %v287_v5 = vsel %vm263_vm8, %v225_v59, %v275_v1  ;;  %v293_v6 = vsel %vm269_vm9, %v249_v60, %v281_v2  ;;  %v230_v7 = vadd.f32 %v552_v22, %v229_v3  ;;  %v254_v8 = vadd.f32 %v552_v22, %v253_v4 }
  0xf7   :  { %v404_v9 = vpack.c.bf16 %v287_v5, %v287_v5  ;;  %v410_v10 = vpack.c.bf16 %v293_v6, %v293_v6  ;;  %v231_v11 = vpop.f32.mrf.mxu0  ;;  %v255_v12 = vpop.f32.mrf.mxu1 }
  0xf8   :  { %vm264_vm10 = vcmp.ge.f32.partialorder %v230_v7, 0.0  ;;  %v276_v13 = vmul.f32 0.2, %v230_v7  ;;  %vm270_vm11 = vcmp.ge.f32.partialorder %v254_v8, 0.0  ;;  %v282_v14 = vmul.f32 0.2, %v254_v8 }
  0xf9   :  { %348 = vst.msk [vmem:[%s617_s3 + $0xc] sm:$0xf] %vm344_vm3, %v404_v9  ;;  %354 = vst.msk [vmem:[%s617_s3 + $0x24] sm:$0xf] %vm344_vm3, %v410_v10  ;;  %v232_v15 = vpop.f32.mrf.mxu0  ;;  %v256_v16 = vpop.f32.mrf.mxu1 }
  0xfa   :  { %v288_v17 = vsel %vm264_vm10, %v230_v7, %v276_v13  ;;  %v294_v18 = vsel %vm270_vm11, %v254_v8, %v282_v14  ;;  %v233_v19 = vadd.f32 %v552_v22, %v232_v15  ;;  %v257_v20 = vadd.f32 %v552_v22, %v256_v16 }
  0xfb   :  { %v405_v21 = vpack.c.bf16 %v288_v17, %v288_v17  ;;  %v411_v23 = vpack.c.bf16 %v294_v18, %v294_v18  ;;  %v234_v24 = vpop.f32.mrf.mxu0  ;;  %v258_v25 = vpop.f32.mrf.mxu1 }
  0xfc   :  { %vm265_vm12 = vcmp.ge.f32.partialorder %v233_v19, 0.0  ;;  %v277_v26 = vmul.f32 0.2, %v233_v19  ;;  %vm271_vm13 = vcmp.ge.f32.partialorder %v257_v20, 0.0  ;;  %v283_v27 = vmul.f32 0.2, %v257_v20 }
  0xfd   :  { %349 = vst.msk [vmem:[%s617_s3 + $0x10] sm:$0xf] %vm344_vm3, %v405_v21  ;;  %355 = vst.msk [vmem:[%s617_s3 + $0x28] sm:$0xf] %vm344_vm3, %v411_v23 }
  0xfe   :  { %v289_v28 = vsel %vm265_vm12, %v233_v19, %v277_v26  ;;  %v295_v22 = vsel %vm271_vm13, %v257_v20, %v283_v27 }
  0xff   :  { %v406_v29 = vpack.c.bf16 %v289_v28, %v289_v28  ;;  %v412_v30 = vpack.c.bf16 %v295_v22, %v295_v22 }
 0x101   :  { %350 = vst.msk [vmem:[%s617_s3 + $0x14] sm:$0xf] %vm344_vm3, %v406_v29  ;;  %356 = vst.msk [vmem:[%s617_s3 + $0x2c] sm:$0xf] %vm344_vm3, %v412_v30 }

// kernel: _lambda_.37
= control target key start
LH: loop header
LB: loop body
LE: loop exit
PB: predicated region body
PF: predicated region fallthrough
CT: control target
= control target key end

     0   :  { %v327_v0 = vmov 0   ;;  %vm152_vm0 = vcmask 719872   ;;  %vm159_vm1 = vcmask 1043456   ;;  %vm240_vm4 = vcmask 257024   ;;  %s449_s1 = inlined_call_operand.vmem [shape: bf16[216,32], index: 1, kind: input, shape index: {}]   ;;  %s450_s0 = inlined_call_operand.vmem [shape: bf16[32,216], index: 0, kind: input, shape index: {}]   ;;  %s451_s2 = inlined_call_operand.vmem [shape: f32[1,32], index: 2, kind: input, shape index: {}]   ;;  %s452_s3 = inlined_call_operand.vmem [shape: bf16[32,32], index: 3, kind: output, shape index: {}]  }
   0x1   :  { %163 = vmatprep.subr.bf16.mxu0 %v327_v0  ;;  %278 = vmatprep.subr.bf16.mxu1 %v327_v0  ;;  %v307_v1 = vld [vmem:[%s449_s1 + $0x38] sm:$0xff]   ;;  %v308_v2 = vld [vmem:[%s449_s1 + $0x30] sm:$0xff]   ;;  %v309_v3 = vld [vmem:[%s449_s1 + $0x28] sm:$0xff]  }
   0x2   :  { %164 = vmatpush1.bf16.msra.mxu0 %v307_v1  ;;  %292 = vmatpush1.bf16.msra.mxu1 %v307_v1  ;;  %v310_v4 = vld [vmem:[%s449_s1 + $0x20] sm:$0xff]   ;;  %v311_v5 = vld [vmem:[%s449_s1 + $0x18] sm:$0xff]   ;;  %v312_v8 = vld [vmem:[%s449_s1 + $0x10] sm:$0xff]  }
   0x3   :  { %165 = vmatprep.subr.bf16.mxu0 %v327_v0  ;;  %279 = vmatprep.subr.bf16.mxu1 %v327_v0  ;;  %v323_v6 = vld [vmem:[%s450_s0 + $0x4] ss:$8 sps:$4 sm:$0xff]   ;;  %v326_v7 = vld [vmem:[%s450_s0 + $0x14] ss:$8 sps:$4 sm:$0xff]   ;;  %v315_v11 = vld [vmem:[%s449_s1 + $0x68] ss:$0 sps:$4 sm:$0xff]  }
   0x4   :  { %268 = vmatprep.mubr.msk.bf16.mxu0 %vm152_vm0, %v323_v6  ;;  %269 = vmatprep.mubr.msk.bf16.mxu1 %vm152_vm0, %v326_v7  ;;  %v313_v9 = vld [vmem:[%s449_s1 + $0x8] sm:$0xff]   ;;  %v314_v10 = vld [vmem:[%s449_s1] sm:$0xff]   ;;  %v161_v12 = vsel %vm159_vm1, %v315_v11, 0  ;;  %v317_v14 = vld [vmem:[%s449_s1 + $0x58] sm:$0xff]  }
   0x5   :  { %v316_v13 = vld [vmem:[%s449_s1 + $0x60] sm:$0xff]   ;;  %v318_v15 = vld [vmem:[%s449_s1 + $0x50] sm:$0xff]   ;;  %v319_v16 = vld [vmem:[%s449_s1 + $0x48] sm:$0xff]  }
   0x6   :  { %166 = vmatpush1.bf16.msra.mxu0 %v308_v2  ;;  %293 = vmatpush1.bf16.msra.mxu1 %v308_v2  ;;  %v320_v17 = vld [vmem:[%s449_s1 + $0x40] sm:$0xff]   ;;  %v324_v19 = vld [vmem:[%s450_s0 + $0x10] ss:$8 sps:$4 sm:$0xff]  }
   0x7   :  { %167 = vmatprep.subr.bf16.mxu0 %v327_v0  ;;  %280 = vmatprep.subr.bf16.mxu1 %v327_v0  ;;  %v321_v18 = vld [vmem:[%s450_s0] ss:$8 sps:$4 sm:$0xff]  }
   0x8   :  { %v249_v20 = vld [vmem:[%s451_s2] ss:$0 sm:$0xff] }
   0xa   :  { %168 = vmatpush1.bf16.msra.mxu0 %v309_v3  ;;  %294 = vmatpush1.bf16.msra.mxu1 %v309_v3 }
   0xb   :  { %169 = vmatprep.subr.bf16.mxu0 %v327_v0  ;;  %281 = vmatprep.subr.bf16.mxu1 %v327_v0 }
   0xe   :  { %170 = vmatpush1.bf16.msra.mxu0 %v310_v4  ;;  %295 = vmatpush1.bf16.msra.mxu1 %v310_v4 }
   0xf   :  { %171 = vmatprep.subr.bf16.mxu0 %v327_v0  ;;  %282 = vmatprep.subr.bf16.mxu1 %v327_v0 }
  0x12   :  { %172 = vmatpush1.bf16.msra.mxu0 %v311_v5  ;;  %296 = vmatpush1.bf16.msra.mxu1 %v311_v5 }
  0x13   :  { %173 = vmatprep.subr.bf16.mxu0 %v327_v0  ;;  %283 = vmatprep.subr.bf16.mxu1 %v327_v0 }
  0x16   :  { %174 = vmatpush1.bf16.msra.mxu0 %v312_v8  ;;  %297 = vmatpush1.bf16.msra.mxu1 %v312_v8 }
  0x17   :  { %175 = vmatprep.subr.bf16.mxu0 %v327_v0  ;;  %284 = vmatprep.subr.bf16.mxu1 %v327_v0 }
  0x1a   :  { %176 = vmatpush1.bf16.msra.mxu0 %v313_v9  ;;  %298 = vmatpush1.bf16.msra.mxu1 %v313_v9 }
  0x1b   :  { %177 = vmatprep.subr.bf16.mxu0 %v327_v0  ;;  %285 = vmatprep.subr.bf16.mxu1 %v327_v0 }
  0x1e   :  { %178 = vmatpush1.bf16.msra.mxu0 %v314_v10  ;;  %299 = vmatpush1.bf16.msra.mxu1 %v314_v10 }
  0x1f   :  { %183 = vmatprep.subr.bf16.mxu0 %v327_v0  ;;  %286 = vmatprep.subr.bf16.mxu1 %v327_v0 }
  0x22   :  { %184 = vmatpush2.bf16.msra.mxu0 %v161_v12  ;;  %300 = vmatpush2.bf16.msra.mxu1 %v161_v12 }
  0x23   :  { %185 = vmatprep.subr.bf16.mxu0 %v327_v0  ;;  %287 = vmatprep.subr.bf16.mxu1 %v327_v0 }
  0x26   :  { %186 = vmatpush2.bf16.msra.mxu0 %v316_v13  ;;  %301 = vmatpush2.bf16.msra.mxu1 %v316_v13 }
  0x27   :  { %187 = vmatprep.subr.bf16.mxu0 %v327_v0  ;;  %288 = vmatprep.subr.bf16.mxu1 %v327_v0 }
  0x2a   :  { %188 = vmatpush2.bf16.msra.mxu0 %v317_v14  ;;  %302 = vmatpush2.bf16.msra.mxu1 %v317_v14 }
  0x2b   :  { %189 = vmatprep.subr.bf16.mxu0 %v327_v0  ;;  %289 = vmatprep.subr.bf16.mxu1 %v327_v0 }
  0x2e   :  { %190 = vmatpush2.bf16.msra.mxu0 %v318_v15  ;;  %303 = vmatpush2.bf16.msra.mxu1 %v318_v15 }
  0x2f   :  { %191 = vmatprep.subr.bf16.mxu0 %v327_v0  ;;  %290 = vmatprep.subr.bf16.mxu1 %v327_v0 }
  0x32   :  { %192 = vmatpush2.bf16.msra.mxu0 %v319_v16  ;;  %304 = vmatpush2.bf16.msra.mxu1 %v319_v16 }
  0x33   :  { %193 = vmatprep.subr.bf16.mxu0 %v327_v0  ;;  %291 = vmatprep.subr.bf16.mxu1 %v327_v0 }
  0x36   :  { %194 = vmatpush2.bf16.msra.mxu0 %v320_v17  ;;  %305 = vmatpush2.bf16.msra.mxu1 %v320_v17 }
  0x39   :  { %196 = vmatmul.mubr.bf16.vlgmr.msra.gmra.mxu0 %v321_v18  ;;  %204 = vmatmul.mubr.bf16.vlgmr.msra.gmra.mxu1 %v324_v19 }
  0xf9   :  { %v197_v21 = vpop.f32.mrf.mxu0  ;;  %v205_v22 = vpop.f32.mrf.mxu1 }
  0xfa   :  { %v198_v23 = vadd.f32 %v249_v20, %v197_v21  ;;  %v206_v24 = vadd.f32 %v249_v20, %v205_v22 }
  0xfb   :  { %v199_v25 = vpop.f32.mrf.mxu0  ;;  %v207_v26 = vpop.f32.mrf.mxu1 }
  0xfc   :  { %vm212_vm2 = vcmp.ge.f32.partialorder %v198_v23, 0.0  ;;  %v216_v27 = vmul.f32 0.2, %v198_v23  ;;  %vm214_vm3 = vcmp.ge.f32.partialorder %v206_v24, 0.0  ;;  %v218_v28 = vmul.f32 0.2, %v206_v24 }
  0xfd   :  { %v200_v29 = vpop.f32.mrf.mxu0  ;;  %v208_v30 = vpop.f32.mrf.mxu1 }
  0xfe   :  { %v220_v31 = vsel %vm212_vm2, %v198_v23, %v216_v27  ;;  %v222_v32 = vsel %vm214_vm3, %v206_v24, %v218_v28  ;;  %v201_v33 = vadd.f32 %v249_v20, %v200_v29  ;;  %v209_v34 = vadd.f32 %v249_v20, %v208_v30 }
  0xff   :  { %v274_v35 = vpack.c.bf16 %v220_v31, %v220_v31  ;;  %v276_v36 = vpack.c.bf16 %v222_v32, %v222_v32  ;;  %v202_v37 = vpop.f32.mrf.mxu0  ;;  %v210_v38 = vpop.f32.mrf.mxu1 }
 0x100   :  { %vm213_vm5 = vcmp.ge.f32.partialorder %v201_v33, 0.0  ;;  %v217_v39 = vmul.f32 0.2, %v201_v33  ;;  %vm215_vm6 = vcmp.ge.f32.partialorder %v209_v34, 0.0  ;;  %v219_v40 = vmul.f32 0.2, %v209_v34 }
 0x101   :  { %241 = vst.msk [vmem:[%s452_s3] sm:$0xf] %vm240_vm4, %v274_v35  ;;  %243 = vst.msk [vmem:[%s452_s3 + $0x8] sm:$0xf] %vm240_vm4, %v276_v36 }
 0x102   :  { %v221_v41 = vsel %vm213_vm5, %v201_v33, %v217_v39  ;;  %v223_v42 = vsel %vm215_vm6, %v209_v34, %v219_v40 }
 0x103   :  { %v275_v43 = vpack.c.bf16 %v221_v41, %v221_v41  ;;  %v277_v44 = vpack.c.bf16 %v223_v42, %v223_v42 }
 0x105   :  { %242 = vst.msk [vmem:[%s452_s3 + $0x4] sm:$0xf] %vm240_vm4, %v275_v43  ;;  %244 = vst.msk [vmem:[%s452_s3 + $0xc] sm:$0xf] %vm240_vm4, %v277_v44 }

// kernel: _lambda_.39
= control target key start
LH: loop header
LB: loop body
LE: loop exit
PB: predicated region body
PF: predicated region fallthrough
CT: control target
= control target key end

     0   :  { %vm204_vm0 = vcmask 261120   ;;  %vm337_vm2 = vcmask 125952   ;;  %s558_s1 = inlined_call_operand.vmem [shape: bf16[288,16], index: 1, kind: input, shape index: {}]   ;;  %s559_s0 = inlined_call_operand.vmem [shape: bf16[32,288], index: 0, kind: input, shape index: {}]   ;;  %s560_s2 = inlined_call_operand.vmem [shape: f32[1,16], index: 2, kind: input, shape index: {}]   ;;  %s561_s3 = inlined_call_operand.vmem [shape: bf16[32,16], index: 3, kind: output, shape index: {}]  }
   0x1   :  { %v421_v0 = vld [vmem:[%s558_s1 + $0x78] sm:$0xff]   ;;  %v423_v2 = vld [vmem:[%s558_s1 + $0x70] sm:$0xff]   ;;  %v425_v4 = vld [vmem:[%s558_s1 + $0x68] sm:$0xff]  }
   0x2   :  { %v422_v1 = vld [vmem:[%s558_s1 + $0x38] sm:$0xff]   ;;  %381 = vmatprep.subr.bf16.mxu0 %v421_v0  ;;  %v424_v3 = vld [vmem:[%s558_s1 + $0x30] sm:$0xff]   ;;  %v426_v5 = vld [vmem:[%s558_s1 + $0x28] sm:$0xff]  }
   0x3   :  { %382 = vmatpush3.bf16.msra.mxu0 %v422_v1  ;;  %v427_v6 = vld [vmem:[%s558_s1 + $0x60] sm:$0xff]   ;;  %v429_v8 = vld [vmem:[%s558_s1 + $0x58] sm:$0xff]   ;;  %v436_v10 = vld [vmem:[%s558_s1 + $0x88] sm:$0xff]  }
   0x4   :  { %383 = vmatprep.subr.bf16.mxu0 %v423_v2  ;;  %v428_v7 = vld [vmem:[%s558_s1 + $0x20] sm:$0xff]   ;;  %v430_v9 = vld [vmem:[%s558_s1 + $0x18] sm:$0xff]   ;;  %v431_v11 = vld [vmem:[%s558_s1 + $0x50] sm:$0xff]   ;;  %413 = vmatprep.subr.bf16.mxu1 %v436_v10 }
   0x5   :  { %v432_v12 = vld [vmem:[%s558_s1 + $0x10] sm:$0xff]   ;;  %v433_v13 = vld [vmem:[%s558_s1 + $0x48] sm:$0xff]   ;;  %414 = vmatpush3.bf16.msra.mxu1 %v436_v10  ;;  %v441_v15 = vld [vmem:[%s558_s1 + $0x80] sm:$0xff]  }
   0x6   :  { %v440_v14 = vld [vmem:[%s559_s0 + $0x4] ss:$12 sps:$4 sm:$0xff]   ;;  %v442_v16 = vld [vmem:[%s559_s0 + $0x8] ss:$12 sps:$4 sm:$0xff]   ;;  %415 = vmatprep.subr.bf16.mxu1 %v441_v15  ;;  %v443_v17 = vld [vmem:[%s559_s0 + $0x20] ss:$12 sps:$4 sm:$0xff]  }
   0x7   :  { %384 = vmatpush3.bf16.msra.mxu0 %v424_v3  ;;  %243 = vmatprep.mubr.bf16.mxu0 %v440_v14  ;;  %v434_v18 = vld [vmem:[%s558_s1 + $0x8] sm:$0xff]   ;;  %v435_v19 = vld [vmem:[%s558_s1 + $0x40] sm:$0xff]  }
   0x8   :  { %385 = vmatprep.subr.bf16.mxu0 %v425_v4  ;;  %417 = vmatprep.mubr.msk.bf16.mxu1 %vm204_vm0, %v442_v16  ;;  %v437_v20 = vld [vmem:[%s558_s1] sm:$0xff]   ;;  %v444_v22 = vld [vmem:[%s559_s0 + $0x1c] ss:$12 sps:$4 sm:$0xff]  }
   0x9   :  { %416 = vmatpush3.bf16.msra.mxu1 %v441_v15  ;;  %v438_v21 = vld [vmem:[%s559_s0] ss:$12 sps:$4 sm:$0xff]   ;;  %v446_v23 = vld [vmem:[%s559_s0 + $0x18] ss:$12 sps:$4 sm:$0xff]  }
   0xa   :  { %v346_v28 = vld [vmem:[%s560_s2] ss:$0 sm:$0xff] }
   0xb   :  { %386 = vmatpush3.bf16.msra.mxu0 %v426_v5 }
   0xc   :  { %387 = vmatprep.subr.bf16.mxu0 %v427_v6  ;;  %418 = vmatmul.mubr.msk.bf16.vlgmr.msra.gmra.mxu1 %vm204_vm0, %v443_v17 }
   0xf   :  { %388 = vmatpush3.bf16.msra.mxu0 %v428_v7 }
  0x10   :  { %389 = vmatprep.subr.bf16.mxu0 %v429_v8 }
  0x13   :  { %390 = vmatpush3.bf16.msra.mxu0 %v430_v9 }
  0x14   :  { %391 = vmatprep.subr.bf16.mxu0 %v431_v11 }
  0x17   :  { %392 = vmatpush3.bf16.msra.mxu0 %v432_v12 }
  0x18   :  { %393 = vmatprep.subr.bf16.mxu0 %v433_v13 }
  0x1b   :  { %394 = vmatpush3.bf16.msra.mxu0 %v434_v18 }
  0x1c   :  { %395 = vmatprep.subr.bf16.mxu0 %v435_v19 }
  0x1f   :  { %396 = vmatpush3.bf16.msra.mxu0 %v437_v20 }
  0x22   :  { %244 = vmatmul.mubr.bf16.vlgmr.msra.gmra.mxu0 %v438_v21 }
  0x23   :  { %251 = vmatprep.mubr.bf16.mxu0 %v444_v22 }
  0x2a   :  { %252 = vmatmul.mubr.bf16.gmra.mxu0 %v446_v23 }
  0xcc   :  { %v419_v24 = vpop.f32.mrf.mxu1 }
  0xce   :  { %v294_v26 = vpop.f32.mrf.mxu1 }
  0xd0   :  { %v420_v31 = vpop.f32.mrf.mxu1 }
  0xd2   :  { %v297_v37 = vpop.f32.mrf.mxu1 }
  0xe2   :  { %v397_v25 = vpop.f32.mrf.mxu0 }
  0xe4   :  { %v398_v27 = vpop.f32.mrf.mxu0 }
  0xe5   :  { %v399_v29 = vadd.f32 %v398_v27, %v397_v25 }
  0xe6   :  { %v400_v30 = vpop.f32.mrf.mxu0 }
  0xe7   :  { %v246_v32 = vadd.f32 %v399_v29, %v346_v28 }
  0xe8   :  { %v401_v33 = vpop.f32.mrf.mxu0 }
  0xe9   :  { %v402_v34 = vadd.f32 %v401_v33, %v400_v30  ;;  %v295_v35 = vadd.f32 %v294_v26, %v246_v32 }
  0xea   :  { %v403_v36 = vpop.f32.mrf.mxu0 }
  0xeb   :  { %vm309_vm1 = vcmp.ge.f32.partialorder %v295_v35, 0.0  ;;  %v313_v38 = vmul.f32 0.2, %v295_v35  ;;  %v249_v39 = vadd.f32 %v402_v34, %v346_v28 }
  0xec   :  { %v404_v40 = vpop.f32.mrf.mxu0 }
  0xed   :  { %v317_v41 = vsel %vm309_vm1, %v295_v35, %v313_v38  ;;  %v405_v42 = vadd.f32 %v404_v40, %v403_v36  ;;  %v298_v43 = vadd.f32 %v297_v37, %v249_v39 }
  0xee   :  { %v377_v44 = vpack.c.bf16 %v317_v41, %v317_v41  ;;  %v406_v45 = vpop.f32.mrf.mxu0 }
  0xef   :  { %v254_v46 = vadd.f32 %v405_v42, %v346_v28  ;;  %vm310_vm3 = vcmp.ge.f32.partialorder %v298_v43, 0.0  ;;  %v314_v47 = vmul.f32 0.2, %v298_v43 }
  0xf0   :  { %338 = vst.msk [vmem:[%s561_s3] sm:$0xf] %vm337_vm2, %v377_v44  ;;  %v407_v48 = vpop.f32.mrf.mxu0 }
  0xf1   :  { %v303_v49 = vadd.f32 %v419_v24, %v254_v46  ;;  %v318_v50 = vsel %vm310_vm3, %v298_v43, %v314_v47  ;;  %v408_v51 = vadd.f32 %v407_v48, %v406_v45 }
  0xf2   :  { %v378_v52 = vpack.c.bf16 %v318_v50, %v318_v50 }
  0xf3   :  { %vm311_vm4 = vcmp.ge.f32.partialorder %v303_v49, 0.0  ;;  %v315_v53 = vmul.f32 0.2, %v303_v49  ;;  %v257_v54 = vadd.f32 %v408_v51, %v346_v28 }
  0xf4   :  { %339 = vst.msk [vmem:[%s561_s3 + $0x4] sm:$0xf] %vm337_vm2, %v378_v52 }
  0xf5   :  { %v319_v55 = vsel %vm311_vm4, %v303_v49, %v315_v53  ;;  %v306_v56 = vadd.f32 %v420_v31, %v257_v54 }
  0xf6   :  { %v379_v57 = vpack.c.bf16 %v319_v55, %v319_v55 }
  0xf7   :  { %vm312_vm5 = vcmp.ge.f32.partialorder %v306_v56, 0.0  ;;  %v316_v58 = vmul.f32 0.2, %v306_v56 }
  0xf8   :  { %340 = vst.msk [vmem:[%s561_s3 + $0x8] sm:$0xf] %vm337_vm2, %v379_v57 }
  0xf9   :  { %v320_v59 = vsel %vm312_vm5, %v306_v56, %v316_v58 }
  0xfa   :  { %v380_v60 = vpack.c.bf16 %v320_v59, %v320_v59 }
  0xfc   :  { %341 = vst.msk [vmem:[%s561_s3 + $0xc] sm:$0xf] %vm337_vm2, %v380_v60 }

// kernel: _lambda_.38
= control target key start
LH: loop header
LB: loop body
LE: loop exit
PB: predicated region body
PF: predicated region fallthrough
CT: control target
= control target key end

     0   :  { %vm204_vm0 = vcmask 261120   ;;  %vm337_vm2 = vcmask 257024   ;;  %s558_s1 = inlined_call_operand.vmem [shape: bf16[288,32], index: 1, kind: input, shape index: {}]   ;;  %s559_s0 = inlined_call_operand.vmem [shape: bf16[32,288], index: 0, kind: input, shape index: {}]   ;;  %s560_s2 = inlined_call_operand.vmem [shape: f32[1,32], index: 2, kind: input, shape index: {}]   ;;  %s561_s3 = inlined_call_operand.vmem [shape: bf16[32,32], index: 3, kind: output, shape index: {}]  }
   0x1   :  { %v421_v0 = vld [vmem:[%s558_s1 + $0x78] sm:$0xff]   ;;  %v423_v2 = vld [vmem:[%s558_s1 + $0x70] sm:$0xff]   ;;  %v425_v4 = vld [vmem:[%s558_s1 + $0x68] sm:$0xff]  }
   0x2   :  { %v422_v1 = vld [vmem:[%s558_s1 + $0x38] sm:$0xff]   ;;  %381 = vmatprep.subr.bf16.mxu0 %v421_v0  ;;  %v424_v3 = vld [vmem:[%s558_s1 + $0x30] sm:$0xff]   ;;  %v426_v5 = vld [vmem:[%s558_s1 + $0x28] sm:$0xff]  }
   0x3   :  { %382 = vmatpush3.bf16.msra.mxu0 %v422_v1  ;;  %v427_v6 = vld [vmem:[%s558_s1 + $0x60] sm:$0xff]   ;;  %v429_v8 = vld [vmem:[%s558_s1 + $0x58] sm:$0xff]   ;;  %v436_v10 = vld [vmem:[%s558_s1 + $0x88] sm:$0xff]  }
   0x4   :  { %383 = vmatprep.subr.bf16.mxu0 %v423_v2  ;;  %v428_v7 = vld [vmem:[%s558_s1 + $0x20] sm:$0xff]   ;;  %v430_v9 = vld [vmem:[%s558_s1 + $0x18] sm:$0xff]   ;;  %v431_v11 = vld [vmem:[%s558_s1 + $0x50] sm:$0xff]   ;;  %413 = vmatprep.subr.bf16.mxu1 %v436_v10 }
   0x5   :  { %v432_v12 = vld [vmem:[%s558_s1 + $0x10] sm:$0xff]   ;;  %v433_v13 = vld [vmem:[%s558_s1 + $0x48] sm:$0xff]   ;;  %414 = vmatpush3.bf16.msra.mxu1 %v436_v10  ;;  %v441_v15 = vld [vmem:[%s558_s1 + $0x80] sm:$0xff]  }
   0x6   :  { %v440_v14 = vld [vmem:[%s559_s0 + $0x4] ss:$12 sps:$4 sm:$0xff]   ;;  %v442_v16 = vld [vmem:[%s559_s0 + $0x8] ss:$12 sps:$4 sm:$0xff]   ;;  %415 = vmatprep.subr.bf16.mxu1 %v441_v15  ;;  %v443_v17 = vld [vmem:[%s559_s0 + $0x20] ss:$12 sps:$4 sm:$0xff]  }
   0x7   :  { %384 = vmatpush3.bf16.msra.mxu0 %v424_v3  ;;  %243 = vmatprep.mubr.bf16.mxu0 %v440_v14  ;;  %v434_v18 = vld [vmem:[%s558_s1 + $0x8] sm:$0xff]   ;;  %v435_v19 = vld [vmem:[%s558_s1 + $0x40] sm:$0xff]  }
   0x8   :  { %385 = vmatprep.subr.bf16.mxu0 %v425_v4  ;;  %417 = vmatprep.mubr.msk.bf16.mxu1 %vm204_vm0, %v442_v16  ;;  %v437_v20 = vld [vmem:[%s558_s1] sm:$0xff]   ;;  %v444_v22 = vld [vmem:[%s559_s0 + $0x1c] ss:$12 sps:$4 sm:$0xff]  }
   0x9   :  { %416 = vmatpush3.bf16.msra.mxu1 %v441_v15  ;;  %v438_v21 = vld [vmem:[%s559_s0] ss:$12 sps:$4 sm:$0xff]   ;;  %v446_v23 = vld [vmem:[%s559_s0 + $0x18] ss:$12 sps:$4 sm:$0xff]  }
   0xa   :  { %v346_v28 = vld [vmem:[%s560_s2] ss:$0 sm:$0xff] }
   0xb   :  { %386 = vmatpush3.bf16.msra.mxu0 %v426_v5 }
   0xc   :  { %387 = vmatprep.subr.bf16.mxu0 %v427_v6  ;;  %418 = vmatmul.mubr.msk.bf16.vlgmr.msra.gmra.mxu1 %vm204_vm0, %v443_v17 }
   0xf   :  { %388 = vmatpush3.bf16.msra.mxu0 %v428_v7 }
  0x10   :  { %389 = vmatprep.subr.bf16.mxu0 %v429_v8 }
  0x13   :  { %390 = vmatpush3.bf16.msra.mxu0 %v430_v9 }
  0x14   :  { %391 = vmatprep.subr.bf16.mxu0 %v431_v11 }
  0x17   :  { %392 = vmatpush3.bf16.msra.mxu0 %v432_v12 }
  0x18   :  { %393 = vmatprep.subr.bf16.mxu0 %v433_v13 }
  0x1b   :  { %394 = vmatpush3.bf16.msra.mxu0 %v434_v18 }
  0x1c   :  { %395 = vmatprep.subr.bf16.mxu0 %v435_v19 }
  0x1f   :  { %396 = vmatpush3.bf16.msra.mxu0 %v437_v20 }
  0x22   :  { %244 = vmatmul.mubr.bf16.vlgmr.msra.gmra.mxu0 %v438_v21 }
  0x23   :  { %251 = vmatprep.mubr.bf16.mxu0 %v444_v22 }
  0x2a   :  { %252 = vmatmul.mubr.bf16.gmra.mxu0 %v446_v23 }
  0xcc   :  { %v419_v24 = vpop.f32.mrf.mxu1 }
  0xce   :  { %v294_v26 = vpop.f32.mrf.mxu1 }
  0xd0   :  { %v420_v31 = vpop.f32.mrf.mxu1 }
  0xd2   :  { %v297_v37 = vpop.f32.mrf.mxu1 }
  0xe2   :  { %v397_v25 = vpop.f32.mrf.mxu0 }
  0xe4   :  { %v398_v27 = vpop.f32.mrf.mxu0 }
  0xe5   :  { %v399_v29 = vadd.f32 %v398_v27, %v397_v25 }
  0xe6   :  { %v400_v30 = vpop.f32.mrf.mxu0 }
  0xe7   :  { %v246_v32 = vadd.f32 %v399_v29, %v346_v28 }
  0xe8   :  { %v401_v33 = vpop.f32.mrf.mxu0 }
  0xe9   :  { %v402_v34 = vadd.f32 %v401_v33, %v400_v30  ;;  %v295_v35 = vadd.f32 %v294_v26, %v246_v32 }
  0xea   :  { %v403_v36 = vpop.f32.mrf.mxu0 }
  0xeb   :  { %vm309_vm1 = vcmp.ge.f32.partialorder %v295_v35, 0.0  ;;  %v313_v38 = vmul.f32 0.2, %v295_v35  ;;  %v249_v39 = vadd.f32 %v402_v34, %v346_v28 }
  0xec   :  { %v404_v40 = vpop.f32.mrf.mxu0 }
  0xed   :  { %v317_v41 = vsel %vm309_vm1, %v295_v35, %v313_v38  ;;  %v405_v42 = vadd.f32 %v404_v40, %v403_v36  ;;  %v298_v43 = vadd.f32 %v297_v37, %v249_v39 }
  0xee   :  { %v377_v44 = vpack.c.bf16 %v317_v41, %v317_v41  ;;  %v406_v45 = vpop.f32.mrf.mxu0 }
  0xef   :  { %v254_v46 = vadd.f32 %v405_v42, %v346_v28  ;;  %vm310_vm3 = vcmp.ge.f32.partialorder %v298_v43, 0.0  ;;  %v314_v47 = vmul.f32 0.2, %v298_v43 }
  0xf0   :  { %338 = vst.msk [vmem:[%s561_s3] sm:$0xf] %vm337_vm2, %v377_v44  ;;  %v407_v48 = vpop.f32.mrf.mxu0 }
  0xf1   :  { %v303_v49 = vadd.f32 %v419_v24, %v254_v46  ;;  %v318_v50 = vsel %vm310_vm3, %v298_v43, %v314_v47  ;;  %v408_v51 = vadd.f32 %v407_v48, %v406_v45 }
  0xf2   :  { %v378_v52 = vpack.c.bf16 %v318_v50, %v318_v50 }
  0xf3   :  { %vm311_vm4 = vcmp.ge.f32.partialorder %v303_v49, 0.0  ;;  %v315_v53 = vmul.f32 0.2, %v303_v49  ;;  %v257_v54 = vadd.f32 %v408_v51, %v346_v28 }
  0xf4   :  { %339 = vst.msk [vmem:[%s561_s3 + $0x4] sm:$0xf] %vm337_vm2, %v378_v52 }
  0xf5   :  { %v319_v55 = vsel %vm311_vm4, %v303_v49, %v315_v53  ;;  %v306_v56 = vadd.f32 %v420_v31, %v257_v54 }
  0xf6   :  { %v379_v57 = vpack.c.bf16 %v319_v55, %v319_v55 }
  0xf7   :  { %vm312_vm5 = vcmp.ge.f32.partialorder %v306_v56, 0.0  ;;  %v316_v58 = vmul.f32 0.2, %v306_v56 }
  0xf8   :  { %340 = vst.msk [vmem:[%s561_s3 + $0x8] sm:$0xf] %vm337_vm2, %v379_v57 }
  0xf9   :  { %v320_v59 = vsel %vm312_vm5, %v306_v56, %v316_v58 }
  0xfa   :  { %v380_v60 = vpack.c.bf16 %v320_v59, %v320_v59 }
  0xfc   :  { %341 = vst.msk [vmem:[%s561_s3 + $0xc] sm:$0xf] %vm337_vm2, %v380_v60 }

// kernel: _lambda_.40
= control target key start
LH: loop header
LB: loop body
LE: loop exit
PB: predicated region body
PF: predicated region fallthrough
CT: control target
= control target key end

     0   :  { %v459_v0 = vmov 0   ;;  %vm160_vm0 = vcmask 130048   ;;  %vm344_vm3 = vcmask 60416   ;;  %s614_s1 = inlined_call_operand.vmem [shape: bf16[144,8], index: 1, kind: input, shape index: {}]   ;;  %s615_s0 = inlined_call_operand.vmem [shape: bf16[96,144], index: 0, kind: input, shape index: {}]   ;;  %s616_s2 = inlined_call_operand.vmem [shape: f32[1,8], index: 2, kind: input, shape index: {}]   ;;  %s617_s3 = inlined_call_operand.vmem [shape: bf16[96,8], index: 3, kind: output, shape index: {}]  }
   0x1   :  { %179 = vmatprep.subr.bf16.mxu0 %v459_v0  ;;  %413 = vmatprep.subr.bf16.mxu1 %v459_v0  ;;  %v432_v1 = vld [vmem:[%s614_s1 + $0x38] sm:$0xff]   ;;  %v433_v2 = vld [vmem:[%s614_s1 + $0x30] sm:$0xff]   ;;  %v434_v3 = vld [vmem:[%s614_s1 + $0x28] sm:$0xff]  }
   0x2   :  { %180 = vmatpush1.bf16.msra.mxu0 %v432_v1  ;;  %422 = vmatpush1.bf16.msra.mxu1 %v432_v1  ;;  %v435_v4 = vld [vmem:[%s614_s1 + $0x20] sm:$0xff]   ;;  %v446_v6 = vld [vmem:[%s615_s0 + $0x34] ss:$8 sps:$4 sm:$0xff]   ;;  %v438_v9 = vld [vmem:[%s614_s1 + $0x8] sm:$0xff]  }
   0x3   :  { %181 = vmatprep.subr.bf16.mxu0 %v459_v0  ;;  %414 = vmatprep.subr.bf16.mxu1 %v459_v0  ;;  %v443_v5 = vld [vmem:[%s615_s0 + $0x4] ss:$8 sps:$4 sm:$0xff]   ;;  %v436_v7 = vld [vmem:[%s614_s1 + $0x18] sm:$0xff]   ;;  %v437_v8 = vld [vmem:[%s614_s1 + $0x10] sm:$0xff]  }
   0x4   :  { %383 = vmatprep.mubr.msk.bf16.mxu0 %vm160_vm0, %v443_v5  ;;  %386 = vmatprep.mubr.msk.bf16.mxu1 %vm160_vm0, %v446_v6  ;;  %v439_v10 = vld [vmem:[%s614_s1] sm:$0xff]   ;;  %v444_v13 = vld [vmem:[%s615_s0 + $0x30] ss:$8 sps:$4 sm:$0xff]   ;;  %v447_v14 = vld [vmem:[%s615_s0 + $0x14] ss:$8 sps:$4 sm:$0xff]  }
   0x5   :  { %v440_v11 = vld [vmem:[%s614_s1 + $0x40] sm:$0xff]   ;;  %v451_v16 = vld [vmem:[%s615_s0 + $0x10] ss:$8 sps:$4 sm:$0xff]   ;;  %v455_v19 = vld [vmem:[%s615_s0 + $0x54] ss:$8 sps:$4 sm:$0xff]  }
   0x6   :  { %182 = vmatpush1.bf16.msra.mxu0 %v433_v2  ;;  %423 = vmatpush1.bf16.msra.mxu1 %v433_v2  ;;  %v441_v12 = vld [vmem:[%s615_s0] ss:$8 sps:$4 sm:$0xff]   ;;  %v449_v15 = vld [vmem:[%s615_s0 + $0x44] ss:$8 sps:$4 sm:$0xff]   ;;  %v458_v21 = vld [vmem:[%s615_s0 + $0x50] ss:$8 sps:$4 sm:$0xff]  }
   0x7   :  { %183 = vmatprep.subr.bf16.mxu0 %v459_v0  ;;  %415 = vmatprep.subr.bf16.mxu1 %v459_v0  ;;  %v452_v17 = vld [vmem:[%s615_s0 + $0x40] ss:$8 sps:$4 sm:$0xff]   ;;  %v453_v18 = vld [vmem:[%s615_s0 + $0x24] ss:$8 sps:$4 sm:$0xff]  }
   0x8   :  { %v457_v20 = vld [vmem:[%s615_s0 + $0x20] ss:$8 sps:$4 sm:$0xff]  }
   0x9   :  { %v552_v22 = vld [vmem:[%s616_s2] ss:$0 sm:$0xff] }
   0xa   :  { %184 = vmatpush1.bf16.msra.mxu0 %v434_v3  ;;  %424 = vmatpush1.bf16.msra.mxu1 %v434_v3 }
   0xb   :  { %185 = vmatprep.subr.bf16.mxu0 %v459_v0  ;;  %416 = vmatprep.subr.bf16.mxu1 %v459_v0 }
   0xe   :  { %186 = vmatpush1.bf16.msra.mxu0 %v435_v4  ;;  %425 = vmatpush1.bf16.msra.mxu1 %v435_v4 }
   0xf   :  { %187 = vmatprep.subr.bf16.mxu0 %v459_v0  ;;  %417 = vmatprep.subr.bf16.mxu1 %v459_v0 }
  0x12   :  { %188 = vmatpush1.bf16.msra.mxu0 %v436_v7  ;;  %426 = vmatpush1.bf16.msra.mxu1 %v436_v7 }
  0x13   :  { %189 = vmatprep.subr.bf16.mxu0 %v459_v0  ;;  %418 = vmatprep.subr.bf16.mxu1 %v459_v0 }
  0x16   :  { %190 = vmatpush1.bf16.msra.mxu0 %v437_v8  ;;  %427 = vmatpush1.bf16.msra.mxu1 %v437_v8 }
  0x17   :  { %191 = vmatprep.subr.bf16.mxu0 %v459_v0  ;;  %419 = vmatprep.subr.bf16.mxu1 %v459_v0 }
  0x1a   :  { %192 = vmatpush1.bf16.msra.mxu0 %v438_v9  ;;  %428 = vmatpush1.bf16.msra.mxu1 %v438_v9 }
  0x1b   :  { %193 = vmatprep.subr.bf16.mxu0 %v459_v0  ;;  %420 = vmatprep.subr.bf16.mxu1 %v459_v0 }
  0x1e   :  { %194 = vmatpush1.bf16.msra.mxu0 %v439_v10  ;;  %429 = vmatpush1.bf16.msra.mxu1 %v439_v10 }
  0x1f   :  { %209 = vmatprep.subr.bf16.mxu0 %v459_v0  ;;  %421 = vmatprep.subr.bf16.mxu1 %v459_v0 }
  0x22   :  { %210 = vmatpush2.bf16.msra.mxu0 %v440_v11  ;;  %430 = vmatpush2.bf16.msra.mxu1 %v440_v11 }
  0x25   :  { %212 = vmatmul.mubr.bf16.vlgmr.msra.gmra.mxu0 %v441_v12  ;;  %236 = vmatmul.mubr.bf16.vlgmr.msra.gmra.mxu1 %v444_v13 }
  0x26   :  { %384 = vmatprep.mubr.msk.bf16.mxu0 %vm160_vm0, %v447_v14  ;;  %387 = vmatprep.mubr.msk.bf16.mxu1 %vm160_vm0, %v449_v15 }
  0x2d   :  { %220 = vmatmul.mubr.bf16.gmra.mxu0 %v451_v16  ;;  %244 = vmatmul.mubr.bf16.gmra.mxu1 %v452_v17 }
  0x2e   :  { %385 = vmatprep.mubr.msk.bf16.mxu0 %vm160_vm0, %v453_v18  ;;  %388 = vmatprep.mubr.msk.bf16.mxu1 %vm160_vm0, %v455_v19 }
  0x35   :  { %228 = vmatmul.mubr.bf16.gmra.mxu0 %v457_v20  ;;  %252 = vmatmul.mubr.bf16.gmra.mxu1 %v458_v21 }
  0xe5   :  { %v213_v23 = vpop.f32.mrf.mxu0  ;;  %v237_v24 = vpop.f32.mrf.mxu1 }
  0xe6   :  { %v214_v25 = vadd.f32 %v552_v22, %v213_v23  ;;  %v238_v26 = vadd.f32 %v552_v22, %v237_v24 }
  0xe7   :  { %v215_v27 = vpop.f32.mrf.mxu0  ;;  %v239_v28 = vpop.f32.mrf.mxu1 }
  0xe8   :  { %vm260_vm1 = vcmp.ge.f32.partialorder %v214_v25, 0.0  ;;  %v272_v29 = vmul.f32 0.2, %v214_v25  ;;  %vm266_vm2 = vcmp.ge.f32.partialorder %v238_v26, 0.0  ;;  %v278_v30 = vmul.f32 0.2, %v238_v26 }
  0xe9   :  { %v216_v31 = vpop.f32.mrf.mxu0  ;;  %v240_v32 = vpop.f32.mrf.mxu1 }
  0xea   :  { %v284_v33 = vsel %vm260_vm1, %v214_v25, %v272_v29  ;;  %v290_v34 = vsel %vm266_vm2, %v238_v26, %v278_v30  ;;  %v217_v35 = vadd.f32 %v552_v22, %v216_v31  ;;  %v241_v36 = vadd.f32 %v552_v22, %v240_v32 }
  0xeb   :  { %v401_v37 = vpack.c.bf16 %v284_v33, %v284_v33  ;;  %v407_v38 = vpack.c.bf16 %v290_v34, %v290_v34  ;;  %v218_v39 = vpop.f32.mrf.mxu0  ;;  %v242_v40 = vpop.f32.mrf.mxu1 }
  0xec   :  { %vm261_vm4 = vcmp.ge.f32.partialorder %v217_v35, 0.0  ;;  %v273_v41 = vmul.f32 0.2, %v217_v35  ;;  %vm267_vm5 = vcmp.ge.f32.partialorder %v241_v36, 0.0  ;;  %v279_v42 = vmul.f32 0.2, %v241_v36 }
  0xed   :  { %345 = vst.msk [vmem:[%s617_s3] sm:$0xf] %vm344_vm3, %v401_v37  ;;  %351 = vst.msk [vmem:[%s617_s3 + $0x18] sm:$0xf] %vm344_vm3, %v407_v38  ;;  %v221_v43 = vpop.f32.mrf.mxu0  ;;  %v245_v44 = vpop.f32.mrf.mxu1 }
  0xee   :  { %v285_v45 = vsel %vm261_vm4, %v217_v35, %v273_v41  ;;  %v291_v46 = vsel %vm267_vm5, %v241_v36, %v279_v42  ;;  %v222_v47 = vadd.f32 %v552_v22, %v221_v43  ;;  %v246_v48 = vadd.f32 %v552_v22, %v245_v44 }
  0xef   :  { %v402_v49 = vpack.c.bf16 %v285_v45, %v285_v45  ;;  %v408_v50 = vpack.c.bf16 %v291_v46, %v291_v46  ;;  %v223_v51 = vpop.f32.mrf.mxu0  ;;  %v247_v52 = vpop.f32.mrf.mxu1 }
  0xf0   :  { %vm262_vm6 = vcmp.ge.f32.partialorder %v222_v47, 0.0  ;;  %v274_v53 = vmul.f32 0.2, %v222_v47  ;;  %vm268_vm7 = vcmp.ge.f32.partialorder %v246_v48, 0.0  ;;  %v280_v54 = vmul.f32 0.2, %v246_v48 }
  0xf1   :  { %346 = vst.msk [vmem:[%s617_s3 + $0x4] sm:$0xf] %vm344_vm3, %v402_v49  ;;  %352 = vst.msk [vmem:[%s617_s3 + $0x1c] sm:$0xf] %vm344_vm3, %v408_v50  ;;  %v224_v55 = vpop.f32.mrf.mxu0  ;;  %v248_v56 = vpop.f32.mrf.mxu1 }
  0xf2   :  { %v286_v57 = vsel %vm262_vm6, %v222_v47, %v274_v53  ;;  %v292_v58 = vsel %vm268_vm7, %v246_v48, %v280_v54  ;;  %v225_v59 = vadd.f32 %v552_v22, %v224_v55  ;;  %v249_v60 = vadd.f32 %v552_v22, %v248_v56 }
  0xf3   :  { %v403_v61 = vpack.c.bf16 %v286_v57, %v286_v57  ;;  %v409_v62 = vpack.c.bf16 %v292_v58, %v292_v58  ;;  %v226_v63 = vpop.f32.mrf.mxu0  ;;  %v250_v0 = vpop.f32.mrf.mxu1 }
  0xf4   :  { %vm263_vm8 = vcmp.ge.f32.partialorder %v225_v59, 0.0  ;;  %v275_v1 = vmul.f32 0.2, %v225_v59  ;;  %vm269_vm9 = vcmp.ge.f32.partialorder %v249_v60, 0.0  ;;  %v281_v2 = vmul.f32 0.2, %v249_v60 }
  0xf5   :  { %347 = vst.msk [vmem:[%s617_s3 + $0x8] sm:$0xf] %vm344_vm3, %v403_v61  ;;  %353 = vst.msk [vmem:[%s617_s3 + $0x20] sm:$0xf] %vm344_vm3, %v409_v62  ;;  %v229_v3 = vpop.f32.mrf.mxu0  ;;  %v253_v4 = vpop.f32.mrf.mxu1 }
  0xf6   :  { %v287_v5 = vsel %vm263_vm8, %v225_v59, %v275_v1  ;;  %v293_v6 = vsel %vm269_vm9, %v249_v60, %v281_v2  ;;  %v230_v7 = vadd.f32 %v552_v22, %v229_v3  ;;  %v254_v8 = vadd.f32 %v552_v22, %v253_v4 }
  0xf7   :  { %v404_v9 = vpack.c.bf16 %v287_v5, %v287_v5  ;;  %v410_v10 = vpack.c.bf16 %v293_v6, %v293_v6  ;;  %v231_v11 = vpop.f32.mrf.mxu0  ;;  %v255_v12 = vpop.f32.mrf.mxu1 }
  0xf8   :  { %vm264_vm10 = vcmp.ge.f32.partialorder %v230_v7, 0.0  ;;  %v276_v13 = vmul.f32 0.2, %v230_v7  ;;  %vm270_vm11 = vcmp.ge.f32.partialorder %v254_v8, 0.0  ;;  %v282_v14 = vmul.f32 0.2, %v254_v8 }
  0xf9   :  { %348 = vst.msk [vmem:[%s617_s3 + $0xc] sm:$0xf] %vm344_vm3, %v404_v9  ;;  %354 = vst.msk [vmem:[%s617_s3 + $0x24] sm:$0xf] %vm344_vm3, %v410_v10  ;;  %v232_v15 = vpop.f32.mrf.mxu0  ;;  %v256_v16 = vpop.f32.mrf.mxu1 }
  0xfa   :  { %v288_v17 = vsel %vm264_vm10, %v230_v7, %v276_v13  ;;  %v294_v18 = vsel %vm270_vm11, %v254_v8, %v282_v14  ;;  %v233_v19 = vadd.f32 %v552_v22, %v232_v15  ;;  %v257_v20 = vadd.f32 %v552_v22, %v256_v16 }
  0xfb   :  { %v405_v21 = vpack.c.bf16 %v288_v17, %v288_v17  ;;  %v411_v23 = vpack.c.bf16 %v294_v18, %v294_v18  ;;  %v234_v24 = vpop.f32.mrf.mxu0  ;;  %v258_v25 = vpop.f32.mrf.mxu1 }
  0xfc   :  { %vm265_vm12 = vcmp.ge.f32.partialorder %v233_v19, 0.0  ;;  %v277_v26 = vmul.f32 0.2, %v233_v19  ;;  %vm271_vm13 = vcmp.ge.f32.partialorder %v257_v20, 0.0  ;;  %v283_v27 = vmul.f32 0.2, %v257_v20 }
  0xfd   :  { %349 = vst.msk [vmem:[%s617_s3 + $0x10] sm:$0xf] %vm344_vm3, %v405_v21  ;;  %355 = vst.msk [vmem:[%s617_s3 + $0x28] sm:$0xf] %vm344_vm3, %v411_v23 }
  0xfe   :  { %v289_v28 = vsel %vm265_vm12, %v233_v19, %v277_v26  ;;  %v295_v22 = vsel %vm271_vm13, %v257_v20, %v283_v27 }
  0xff   :  { %v406_v29 = vpack.c.bf16 %v289_v28, %v289_v28  ;;  %v412_v30 = vpack.c.bf16 %v295_v22, %v295_v22 }
 0x101   :  { %350 = vst.msk [vmem:[%s617_s3 + $0x14] sm:$0xf] %vm344_vm3, %v406_v29  ;;  %356 = vst.msk [vmem:[%s617_s3 + $0x2c] sm:$0xf] %vm344_vm3, %v412_v30 }

// kernel: _lambda_.41
= control target key start
LH: loop header
LB: loop body
LE: loop exit
PB: predicated region body
PF: predicated region fallthrough
CT: control target
= control target key end

     0   :  { %vm121_vm0 = vcmask 1043456   ;;  %vm102_vm1 = vcmask 588800   ;;  %vm206_vm2 = vcmask 7168   ;;  %s407_s1 = inlined_call_operand.vmem [shape: bf16[72,1], index: 1, kind: input, shape index: {}]   ;;  %s408_s2 = inlined_call_operand.<no memory space> [shape: f32[1,1], index: 2, kind: input, shape index: {}]   ;;  %s409_s0 = inlined_call_operand.vmem [shape: bf16[96,72], index: 0, kind: input, shape index: {}]   ;;  %s410_s3 = inlined_call_operand.vmem [shape: f32[96,1], index: 3, kind: output, shape index: {}]  }
   0x1   :  { %v286_v0 = vld [vmem:[%s407_s1 + $0x20] ss:$0 sps:$4 sm:$0xff]   ;;  %v8_v1 = vstv %s408_s2  ;;  %v287_v2 = vld [vmem:[%s407_s1 + $0x18] sm:$0xff]   ;;  %v288_v4 = vld [vmem:[%s407_s1 + $0x10] sm:$0xff]  }
   0x2   :  { %9 = vst [vmem:[#allocation2] sm:$0x1] %v8_v1  ;;  %285 = vmatprep.subr.msk.bf16.mxu1 %vm121_vm0, %v286_v0  ;;  %v123_v3 = vsel %vm121_vm0, %v286_v0, 0  ;;  %284 = vmatprep.subr.msk.bf16.mxu0 %vm121_vm0, %v286_v0  ;;  %v291_v5 = vld [vmem:[%s409_s0 + $0x10] sm:$0xff]   ;;  %v293_v6 = vld [vmem:[%s409_s0] sm:$0xff]   ;;  %v289_v7 = vld [vmem:[%s407_s1 + $0x8] sm:$0xff]  }
   0x3   :  { %279 = vmatpush3.bf16.msra.mxu1 %v123_v3  ;;  %253 = vmatpush3.bf16.msra.mxu0 %v123_v3  ;;  %v290_v8 = vld [vmem:[%s407_s1] sm:$0xff]   ;;  %v292_v9 = vld [vmem:[%s409_s0 + $0x18] sm:$0xff]   ;;  %v294_v10 = vld [vmem:[%s409_s0 + $0x8] sm:$0xff]  }
   0x4   :  { %275 = vmatprep.subr.bf16.mxu1 %v287_v2  ;;  %254 = vmatprep.subr.bf16.mxu0 %v287_v2  ;;  %v295_v11 = vld [vmem:[%s409_s0 + $0x20] sm:$0xff]   ;;  %v296_v12 = vld [vmem:[%s409_s0 + $0x28] sm:$0xff]  }
   0x5   :  { %266 = vmatprep.mubr.msk.bf16.mxu1 %vm102_vm1, %v291_v5  ;;  %262 = vmatprep.mubr.msk.bf16.mxu0 %vm102_vm1, %v293_v6 }
   0x7   :  { %280 = vmatpush3.bf16.msra.mxu1 %v287_v2  ;;  %255 = vmatpush3.bf16.msra.mxu0 %v287_v2 }
   0x8   :  { %276 = vmatprep.subr.bf16.mxu1 %v288_v4  ;;  %256 = vmatprep.subr.bf16.mxu0 %v288_v4 }
   0x9   :  { %v223_v13 = vld [vmem:[#allocation2] ss:$0 sm:$0xff] }
   0xb   :  { %281 = vmatpush3.bf16.msra.mxu1 %v288_v4  ;;  %257 = vmatpush3.bf16.msra.mxu0 %v288_v4 }
   0xc   :  { %277 = vmatprep.subr.bf16.mxu1 %v289_v7  ;;  %258 = vmatprep.subr.bf16.mxu0 %v289_v7 }
   0xf   :  { %282 = vmatpush3.bf16.msra.mxu1 %v289_v7  ;;  %259 = vmatpush3.bf16.msra.mxu0 %v289_v7 }
  0x10   :  { %278 = vmatprep.subr.bf16.mxu1 %v290_v8  ;;  %260 = vmatprep.subr.bf16.mxu0 %v290_v8 }
  0x13   :  { %283 = vmatpush3.bf16.msra.mxu1 %v290_v8  ;;  %261 = vmatpush3.bf16.msra.mxu0 %v290_v8 }
  0x16   :  { %267 = vmatmul.mubr.msk.bf16.vlgmr.msra.gmra.mxu1 %vm102_vm1, %v292_v9  ;;  %263 = vmatmul.mubr.msk.bf16.vlgmr.msra.gmra.mxu0 %vm102_vm1, %v294_v10 }
  0x17   :  { %270 = vmatprep.mubr.msk.bf16.mxu1 %vm102_vm1, %v295_v11 }
  0x1e   :  { %271 = vmatmul.mubr.msk.bf16.gmra.mxu1 %vm102_vm1, %v296_v12 }
  0xd6   :  { %v268_v14 = vpop.f32.mrf.mxu1  ;;  %v264_v15 = vpop.f32.mrf.mxu0 }
  0xd7   :  { %v184_v16 = vadd.f32 %v268_v14, %v223_v13  ;;  %v168_v17 = vadd.f32 %v264_v15, %v223_v13 }
  0xd8   :  { %v175_v18 = vpop.f32.mrf.mxu1  ;;  %v159_v19 = vpop.f32.mrf.mxu0 }
  0xd9   :  { %213 = vst.msk [vmem:[%s410_s3 + $0x30] sm:$0xff] %vm206_vm2, %v184_v16  ;;  %209 = vst.msk [vmem:[%s410_s3 + $0x10] sm:$0xff] %vm206_vm2, %v168_v17  ;;  %v176_v20 = vadd.f32 %v223_v13, %v175_v18  ;;  %v160_v21 = vadd.f32 %v223_v13, %v159_v19 }
  0xda   :  { %v269_v22 = vpop.f32.mrf.mxu1  ;;  %v265_v23 = vpop.f32.mrf.mxu0 }
  0xdb   :  { %211 = vst.msk [vmem:[%s410_s3 + $0x20] sm:$0xff] %vm206_vm2, %v176_v20  ;;  %207 = vst.msk [vmem:[%s410_s3] sm:$0xff] %vm206_vm2, %v160_v21  ;;  %v187_v24 = vadd.f32 %v269_v22, %v223_v13  ;;  %v171_v25 = vadd.f32 %v265_v23, %v223_v13 }
  0xdc   :  { %v178_v26 = vpop.f32.mrf.mxu1  ;;  %v162_v27 = vpop.f32.mrf.mxu0 }
  0xdd   :  { %214 = vst.msk [vmem:[%s410_s3 + $0x38] sm:$0xff] %vm206_vm2, %v187_v24  ;;  %210 = vst.msk [vmem:[%s410_s3 + $0x18] sm:$0xff] %vm206_vm2, %v171_v25  ;;  %v179_v28 = vadd.f32 %v223_v13, %v178_v26  ;;  %v163_v29 = vadd.f32 %v223_v13, %v162_v27 }
  0xde   :  { %v272_v30 = vpop.f32.mrf.mxu1 }
  0xdf   :  { %212 = vst.msk [vmem:[%s410_s3 + $0x28] sm:$0xff] %vm206_vm2, %v179_v28  ;;  %208 = vst.msk [vmem:[%s410_s3 + $0x8] sm:$0xff] %vm206_vm2, %v163_v29  ;;  %v200_v31 = vadd.f32 %v272_v30, %v223_v13 }
  0xe0   :  { %v191_v32 = vpop.f32.mrf.mxu1 }
  0xe1   :  { %217 = vst.msk [vmem:[%s410_s3 + $0x50] sm:$0xff] %vm206_vm2, %v200_v31  ;;  %v192_v33 = vadd.f32 %v223_v13, %v191_v32 }
  0xe2   :  { %v273_v34 = vpop.f32.mrf.mxu1 }
  0xe3   :  { %215 = vst.msk [vmem:[%s410_s3 + $0x40] sm:$0xff] %vm206_vm2, %v192_v33  ;;  %v203_v35 = vadd.f32 %v273_v34, %v223_v13 }
  0xe4   :  { %v194_v36 = vpop.f32.mrf.mxu1 }
  0xe5   :  { %218 = vst.msk [vmem:[%s410_s3 + $0x58] sm:$0xff] %vm206_vm2, %v203_v35  ;;  %v195_v37 = vadd.f32 %v223_v13, %v194_v36 }
  0xe7   :  { %216 = vst.msk [vmem:[%s410_s3 + $0x48] sm:$0xff] %vm206_vm2, %v195_v37 }

// kernel: _lambda_.46
= control target key start
LH: loop header
LB: loop body
LE: loop exit
PB: predicated region body
PF: predicated region fallthrough
CT: control target
= control target key end

     0   :  { %vm558_vm0 = vcmask 523264   ;;  %vm986_vm1 = vcmask 125952   ;;  %s1801_s1 = inlined_call_operand.vmem [shape: bf16[576,16], index: 1, kind: input, shape index: {}]   ;;  %s1802_s0 = inlined_call_operand.vmem [shape: bf16[128,576], index: 0, kind: input, shape index: {}]   ;;  %s1803_s2 = inlined_call_operand.vmem [shape: f32[1,16], index: 2, kind: input, shape index: {}]   ;;  %s1804_s3 = inlined_call_operand.vmem [shape: bf16[128,16], index: 3, kind: output, shape index: {}]  }
   0x1   :  { %v1296_v0 = vld [vmem:[%s1801_s1 + $0x78] sm:$0xff]   ;;  %v1300_v4 = vld [vmem:[%s1801_s1 + $0x70] sm:$0xff]   ;;  %v1304_v8 = vld [vmem:[%s1801_s1 + $0x68] sm:$0xff]  }
   0x2   :  { %v1297_v1 = vld [vmem:[%s1801_s1 + $0xf8] sm:$0xff]   ;;  %1124 = vmatprep.subr.bf16.mxu0 %v1296_v0  ;;  %v1301_v5 = vld [vmem:[%s1801_s1 + $0xf0] sm:$0xff]   ;;  %v1305_v9 = vld [vmem:[%s1801_s1 + $0xe8] sm:$0xff]  }
   0x3   :  { %v1298_v2 = vld [vmem:[%s1801_s1 + $0x38] sm:$0xff]   ;;  %1188 = vmatprep.subr.bf16.mxu1 %v1297_v1  ;;  %v1302_v6 = vld [vmem:[%s1801_s1 + $0x30] sm:$0xff]   ;;  %v1306_v10 = vld [vmem:[%s1801_s1 + $0x28] sm:$0xff]  }
   0x4   :  { %v1299_v3 = vld [vmem:[%s1801_s1 + $0xb8] sm:$0xff]   ;;  %1125 = vmatpush3.bf16.msra.mxu0 %v1298_v2  ;;  %v1303_v7 = vld [vmem:[%s1801_s1 + $0xb0] sm:$0xff]   ;;  %v1307_v11 = vld [vmem:[%s1801_s1 + $0xa8] sm:$0xff]  }
   0x5   :  { %1189 = vmatpush3.bf16.msra.mxu1 %v1299_v3  ;;  %1126 = vmatprep.subr.bf16.mxu0 %v1300_v4  ;;  %v1308_v12 = vld [vmem:[%s1801_s1 + $0x60] sm:$0xff]   ;;  %v1312_v16 = vld [vmem:[%s1801_s1 + $0x58] sm:$0xff]   ;;  %v1316_v20 = vld [vmem:[%s1801_s1 + $0x50] sm:$0xff]  }
   0x6   :  { %1190 = vmatprep.subr.bf16.mxu1 %v1301_v5  ;;  %v1309_v13 = vld [vmem:[%s1801_s1 + $0xe0] sm:$0xff]   ;;  %v1313_v17 = vld [vmem:[%s1801_s1 + $0xd8] sm:$0xff]   ;;  %v1317_v21 = vld [vmem:[%s1801_s1 + $0xd0] sm:$0xff]  }
   0x7   :  { %v1310_v14 = vld [vmem:[%s1801_s1 + $0x20] sm:$0xff]   ;;  %v1314_v18 = vld [vmem:[%s1801_s1 + $0x18] sm:$0xff]   ;;  %v1318_v22 = vld [vmem:[%s1801_s1 + $0x10] sm:$0xff]  }
   0x8   :  { %1127 = vmatpush3.bf16.msra.mxu0 %v1302_v6  ;;  %v1311_v15 = vld [vmem:[%s1801_s1 + $0xa0] sm:$0xff]   ;;  %v1315_v19 = vld [vmem:[%s1801_s1 + $0x98] sm:$0xff]   ;;  %v1319_v23 = vld [vmem:[%s1801_s1 + $0x90] sm:$0xff]  }
   0x9   :  { %1191 = vmatpush3.bf16.msra.mxu1 %v1303_v7  ;;  %1128 = vmatprep.subr.bf16.mxu0 %v1304_v8  ;;  %v1320_v24 = vld [vmem:[%s1801_s1 + $0x48] sm:$0xff]   ;;  %v1324_v28 = vld [vmem:[%s1801_s1 + $0x40] sm:$0xff]   ;;  %v1334_v36 = vld [vmem:[%s1801_s1 + $0x118] sm:$0xff]  }
   0xa   :  { %1192 = vmatprep.subr.bf16.mxu1 %v1305_v9  ;;  %v1321_v25 = vld [vmem:[%s1801_s1 + $0xc8] sm:$0xff]   ;;  %v1325_v29 = vld [vmem:[%s1801_s1 + $0xc0] sm:$0xff]   ;;  %v1347_v42 = vld [vmem:[%s1801_s1 + $0x110] sm:$0xff]  }
   0xb   :  { %v1322_v26 = vld [vmem:[%s1801_s1 + $0x8] sm:$0xff]   ;;  %v1326_v30 = vld [vmem:[%s1801_s1] sm:$0xff]   ;;  %v1343_v43 = vld [vmem:[%s1802_s0 + $0x5c] ss:$20 sps:$4 sm:$0xff]  }
   0xc   :  { %1129 = vmatpush3.bf16.msra.mxu0 %v1306_v10  ;;  %v1323_v27 = vld [vmem:[%s1801_s1 + $0x88] sm:$0xff]   ;;  %v1327_v31 = vld [vmem:[%s1801_s1 + $0x80] sm:$0xff]   ;;  %v1348_v47 = vld [vmem:[%s1802_s0 + $0x7c] ss:$20 sps:$4 sm:$0xff]  }
   0xd   :  { %1193 = vmatpush3.bf16.msra.mxu1 %v1307_v11  ;;  %1130 = vmatprep.subr.bf16.mxu0 %v1308_v12  ;;  %v1328_v32 = vld [vmem:[%s1802_s0] ss:$20 sps:$4 sm:$0xff]   ;;  %v1330_v33 = vld [vmem:[%s1802_s0 + $0x4] ss:$20 sps:$4 sm:$0xff]   ;;  %v1331_v34 = vld [vmem:[%s1802_s0 + $0x8] ss:$20 sps:$4 sm:$0xff]  }
   0xe   :  { %1194 = vmatprep.subr.bf16.mxu1 %v1309_v13  ;;  %v1333_v35 = vld [vmem:[%s1802_s0 + $0xc] ss:$20 sps:$4 sm:$0xff]   ;;  %615 = vmatprep.mubr.bf16.mxu0 %v1330_v33  ;;  %v1337_v38 = vld [vmem:[%s1802_s0 + $0x34] ss:$20 sps:$4 sm:$0xff]   ;;  %v1340_v40 = vld [vmem:[%s1802_s0 + $0x30] ss:$20 sps:$4 sm:$0xff]  }
   0xf   :  { %712 = vmatprep.mubr.bf16.mxu1 %v1333_v35  ;;  %v1335_v37 = vld [vmem:[%s1802_s0 + $0x2c] ss:$20 sps:$4 sm:$0xff]   ;;  %v1339_v39 = vld [vmem:[%s1802_s0 + $0x28] ss:$20 sps:$4 sm:$0xff]   ;;  %v1345_v44 = vld [vmem:[%s1802_s0 + $0x50] ss:$20 sps:$4 sm:$0xff]  }
  0x10   :  { %1131 = vmatpush3.bf16.msra.mxu0 %v1310_v14  ;;  %v1341_v41 = vld [vmem:[%s1802_s0 + $0x54] ss:$20 sps:$4 sm:$0xff]   ;;  %v1346_v45 = vld [vmem:[%s1802_s0 + $0x58] ss:$20 sps:$4 sm:$0xff]   ;;  %v1373_v49 = vld [vmem:[%s1801_s1 + $0x100] sm:$0xff]  }
  0x11   :  { %1195 = vmatpush3.bf16.msra.mxu1 %v1311_v15  ;;  %1132 = vmatprep.subr.bf16.mxu0 %v1312_v16  ;;  %v1360_v46 = vld [vmem:[%s1801_s1 + $0x108] sm:$0xff]   ;;  %v1350_v48 = vld [vmem:[%s1802_s0 + $0x84] ss:$20 sps:$4 sm:$0xff]   ;;  %v1353_v51 = vld [vmem:[%s1802_s0 + $0x80] ss:$20 sps:$4 sm:$0xff]  }
  0x12   :  { %1196 = vmatprep.subr.bf16.mxu1 %v1313_v17  ;;  %v1352_v50 = vld [vmem:[%s1802_s0 + $0x78] ss:$20 sps:$4 sm:$0xff]   ;;  %v1358_v54 = vld [vmem:[%s1802_s0 + $0xa0] ss:$20 sps:$4 sm:$0xff]   ;;  %v1359_v55 = vld [vmem:[%s1802_s0 + $0xa8] ss:$20 sps:$4 sm:$0xff]  }
  0x13   :  { %v1354_v52 = vld [vmem:[%s1802_s0 + $0xa4] ss:$20 sps:$4 sm:$0xff]   ;;  %v1356_v53 = vld [vmem:[%s1802_s0 + $0xac] ss:$20 sps:$4 sm:$0xff]   ;;  %v1363_v57 = vld [vmem:[%s1802_s0 + $0xd4] ss:$20 sps:$4 sm:$0xff]  }
  0x14   :  { %1133 = vmatpush3.bf16.msra.mxu0 %v1314_v18  ;;  %v1361_v56 = vld [vmem:[%s1802_s0 + $0xcc] ss:$20 sps:$4 sm:$0xff]   ;;  %v1365_v58 = vld [vmem:[%s1802_s0 + $0xc8] ss:$20 sps:$4 sm:$0xff]   ;;  %v1366_v59 = vld [vmem:[%s1802_s0 + $0xd0] ss:$20 sps:$4 sm:$0xff]  }
  0x15   :  { %1197 = vmatpush3.bf16.msra.mxu1 %v1315_v19  ;;  %1134 = vmatprep.subr.bf16.mxu0 %v1316_v20  ;;  %v1367_v60 = vld [vmem:[%s1802_s0 + $0xf4] ss:$20 sps:$4 sm:$0xff]   ;;  %v1369_v61 = vld [vmem:[%s1802_s0 + $0xfc] ss:$20 sps:$4 sm:$0xff]   ;;  %v1372_v63 = vld [vmem:[%s1802_s0 + $0xf8] ss:$20 sps:$4 sm:$0xff]  }
  0x16   :  { %1198 = vmatprep.subr.bf16.mxu1 %v1317_v21  ;;  %v1371_v62 = vld [vmem:[%s1802_s0 + $0xf0] ss:$20 sps:$4 sm:$0xff]   ;;  %v1378_v2 = vld [vmem:[%s1802_s0 + $0x118] ss:$20 sps:$4 sm:$0xff]   ;;  %v1379_v3 = vld [vmem:[%s1802_s0 + $0x120] ss:$20 sps:$4 sm:$0xff]  }
  0x17   :  { %v1374_v0 = vld [vmem:[%s1802_s0 + $0x11c] ss:$20 sps:$4 sm:$0xff]   ;;  %v1376_v1 = vld [vmem:[%s1802_s0 + $0x124] ss:$20 sps:$4 sm:$0xff]   ;;  %v1384_v8 = vld [vmem:[%s1802_s0 + $0x60] ss:$20 sps:$4 sm:$0xff]  }
  0x18   :  { %1135 = vmatpush3.bf16.msra.mxu0 %v1318_v22  ;;  %v1380_v4 = vld [vmem:[%s1802_s0 + $0x10] ss:$20 sps:$4 sm:$0xff]   ;;  %v1382_v6 = vld [vmem:[%s1802_s0 + $0x38] ss:$20 sps:$4 sm:$0xff]   ;;  %v1385_v9 = vld [vmem:[%s1802_s0 + $0x100] ss:$20 sps:$4 sm:$0xff]  }
  0x19   :  { %1199 = vmatpush3.bf16.msra.mxu1 %v1319_v23  ;;  %1136 = vmatprep.subr.bf16.mxu0 %v1320_v24  ;;  %v1381_v5 = vld [vmem:[%s1802_s0 + $0xb0] ss:$20 sps:$4 sm:$0xff]   ;;  %v1383_v7 = vld [vmem:[%s1802_s0 + $0xd8] ss:$20 sps:$4 sm:$0xff]   ;;  %v1386_v10 = vld [vmem:[%s1802_s0 + $0x88] ss:$20 sps:$4 sm:$0xff]  }
  0x1a   :  { %1200 = vmatprep.subr.bf16.mxu1 %v1321_v25  ;;  %v1387_v11 = vld [vmem:[%s1802_s0 + $0x128] ss:$20 sps:$4 sm:$0xff]  }
  0x1c   :  { %1137 = vmatpush3.bf16.msra.mxu0 %v1322_v26 }
  0x1d   :  { %1201 = vmatpush3.bf16.msra.mxu1 %v1323_v27  ;;  %1138 = vmatprep.subr.bf16.mxu0 %v1324_v28 }
  0x1e   :  { %1202 = vmatprep.subr.bf16.mxu1 %v1325_v29 }
  0x20   :  { %1139 = vmatpush3.bf16.msra.mxu0 %v1326_v30 }
  0x21   :  { %1203 = vmatpush3.bf16.msra.mxu1 %v1327_v31  ;;  %1264 = vmatprep.subr.bf16.mxu0 %v1334_v36 }
  0x22   :  { %1288 = vmatprep.subr.bf16.mxu1 %v1334_v36 }
  0x23   :  { %616 = vmatmul.mubr.bf16.vlgmr.msra.gmra.mxu0 %v1328_v32 }
  0x24   :  { %713 = vmatmul.mubr.bf16.vlgmr.msra.gmra.mxu1 %v1331_v34  ;;  %1265 = vmatpush3.bf16.msra.mxu0 %v1334_v36 }
  0x25   :  { %1292 = vmatpush3.bf16.msra.mxu1 %v1334_v36  ;;  %623 = vmatprep.mubr.bf16.mxu0 %v1335_v37 }
  0x26   :  { %720 = vmatprep.mubr.bf16.mxu1 %v1337_v38  ;;  %1266 = vmatprep.subr.bf16.mxu0 %v1347_v42 }
  0x27   :  { %1289 = vmatprep.subr.bf16.mxu1 %v1347_v42 }
  0x28   :  { %1267 = vmatpush3.bf16.msra.mxu0 %v1347_v42 }
  0x29   :  { %1293 = vmatpush3.bf16.msra.mxu1 %v1347_v42  ;;  %1268 = vmatprep.subr.bf16.mxu0 %v1360_v46 }
  0x2a   :  { %1290 = vmatprep.subr.bf16.mxu1 %v1360_v46 }
  0x2b   :  { %624 = vmatmul.mubr.bf16.gmra.mxu0 %v1339_v39 }
  0x2c   :  { %721 = vmatmul.mubr.bf16.gmra.mxu1 %v1340_v40  ;;  %631 = vmatprep.mubr.bf16.mxu0 %v1341_v41 }
  0x2d   :  { %728 = vmatprep.mubr.bf16.mxu1 %v1343_v43  ;;  %1269 = vmatpush3.bf16.msra.mxu0 %v1360_v46 }
  0x2e   :  { %1294 = vmatpush3.bf16.msra.mxu1 %v1360_v46  ;;  %1270 = vmatprep.subr.bf16.mxu0 %v1373_v49 }
  0x2f   :  { %1291 = vmatprep.subr.bf16.mxu1 %v1373_v49 }
  0x31   :  { %1271 = vmatpush3.bf16.msra.mxu0 %v1373_v49 }
  0x32   :  { %1295 = vmatpush3.bf16.msra.mxu1 %v1373_v49 }
  0x33   :  { %632 = vmatmul.mubr.bf16.gmra.mxu0 %v1345_v44 }
  0x34   :  { %729 = vmatmul.mubr.bf16.gmra.mxu1 %v1346_v45  ;;  %639 = vmatprep.mubr.bf16.mxu0 %v1348_v47 }
  0x35   :  { %736 = vmatprep.mubr.bf16.mxu1 %v1350_v48 }
  0x3b   :  { %640 = vmatmul.mubr.bf16.gmra.mxu0 %v1352_v50 }
  0x3c   :  { %737 = vmatmul.mubr.bf16.gmra.mxu1 %v1353_v51  ;;  %647 = vmatprep.mubr.bf16.mxu0 %v1354_v52 }
  0x3d   :  { %744 = vmatprep.mubr.bf16.mxu1 %v1356_v53 }
  0x43   :  { %648 = vmatmul.mubr.bf16.gmra.mxu0 %v1358_v54 }
  0x44   :  { %745 = vmatmul.mubr.bf16.gmra.mxu1 %v1359_v55  ;;  %655 = vmatprep.mubr.bf16.mxu0 %v1361_v56 }
  0x45   :  { %752 = vmatprep.mubr.bf16.mxu1 %v1363_v57 }
  0x4b   :  { %656 = vmatmul.mubr.bf16.gmra.mxu0 %v1365_v58 }
  0x4c   :  { %753 = vmatmul.mubr.bf16.gmra.mxu1 %v1366_v59  ;;  %663 = vmatprep.mubr.bf16.mxu0 %v1367_v60  ;;  %v1677_v60 = vld [vmem:[%s1803_s2] ss:$0 sm:$0xff] }
  0x4d   :  { %760 = vmatprep.mubr.bf16.mxu1 %v1369_v61 }
  0x53   :  { %664 = vmatmul.mubr.bf16.gmra.mxu0 %v1371_v62 }
  0x54   :  { %761 = vmatmul.mubr.bf16.gmra.mxu1 %v1372_v63  ;;  %671 = vmatprep.mubr.bf16.mxu0 %v1374_v0 }
  0x55   :  { %768 = vmatprep.mubr.bf16.mxu1 %v1376_v1 }
  0x5b   :  { %672 = vmatmul.mubr.bf16.gmra.mxu0 %v1378_v2 }
  0x5c   :  { %769 = vmatmul.mubr.bf16.gmra.mxu1 %v1379_v3  ;;  %1272 = vmatprep.mubr.msk.bf16.mxu0 %vm558_vm0, %v1380_v4 }
  0x5d   :  { %1280 = vmatprep.mubr.msk.bf16.mxu1 %vm558_vm0, %v1381_v5 }
  0x63   :  { %1273 = vmatmul.mubr.msk.bf16.vlgmr.msra.gmra.mxu0 %vm558_vm0, %v1382_v6 }
  0x64   :  { %1281 = vmatmul.mubr.msk.bf16.vlgmr.msra.gmra.mxu1 %vm558_vm0, %v1383_v7  ;;  %1276 = vmatprep.mubr.msk.bf16.mxu0 %vm558_vm0, %v1384_v8 }
  0x65   :  { %1284 = vmatprep.mubr.msk.bf16.mxu1 %vm558_vm0, %v1385_v9 }
  0x6b   :  { %1277 = vmatmul.mubr.msk.bf16.gmra.mxu0 %vm558_vm0, %v1386_v10 }
  0x6c   :  { %1285 = vmatmul.mubr.msk.bf16.gmra.mxu1 %vm558_vm0, %v1387_v11 }
  0xe3   :  { %v1140_v12 = vpop.f32.mrf.mxu0 }
  0xe4   :  { %v1204_v13 = vpop.f32.mrf.mxu1 }
  0xe5   :  { %v1141_v14 = vpop.f32.mrf.mxu0 }
  0xe6   :  { %v1205_v15 = vpop.f32.mrf.mxu1  ;;  %v1142_v58 = vadd.f32 %v1141_v14, %v1140_v12 }
  0xe7   :  { %v1143_v16 = vpop.f32.mrf.mxu0  ;;  %v1206_v8 = vadd.f32 %v1205_v15, %v1204_v13 }
  0xe8   :  { %v1207_v17 = vpop.f32.mrf.mxu1  ;;  %v618_v3 = vadd.f32 %v1142_v58, %v1677_v60 }
  0xe9   :  { %v1144_v18 = vpop.f32.mrf.mxu0 }
  0xea   :  { %v1208_v19 = vpop.f32.mrf.mxu1  ;;  %v1145_v61 = vadd.f32 %v1144_v18, %v1143_v16 }
  0xeb   :  { %v1146_v20 = vpop.f32.mrf.mxu0  ;;  %v1209_v9 = vadd.f32 %v1208_v19, %v1207_v17 }
  0xec   :  { %v1210_v21 = vpop.f32.mrf.mxu1  ;;  %v621_v5 = vadd.f32 %v1145_v61, %v1677_v60 }
  0xed   :  { %v1147_v22 = vpop.f32.mrf.mxu0 }
  0xee   :  { %v1211_v23 = vpop.f32.mrf.mxu1  ;;  %v1148_v62 = vadd.f32 %v1147_v22, %v1146_v20 }
  0xef   :  { %v1149_v24 = vpop.f32.mrf.mxu0  ;;  %v1212_v14 = vadd.f32 %v1211_v23, %v1210_v21 }
  0xf0   :  { %v1213_v25 = vpop.f32.mrf.mxu1  ;;  %v626_v6 = vadd.f32 %v1148_v62, %v1677_v60  ;;  %v1687_v62 = vadd.f32 %v1209_v9, %v621_v5 }
  0xf1   :  { %v1150_v26 = vpop.f32.mrf.mxu0 }
  0xf2   :  { %v1214_v27 = vpop.f32.mrf.mxu1  ;;  %v1151_v1 = vadd.f32 %v1150_v26, %v1149_v24  ;;  %v1685_v26 = vadd.f32 %v1206_v8, %v618_v3 }
  0xf3   :  { %v1152_v28 = vpop.f32.mrf.mxu0  ;;  %v1215_v58 = vadd.f32 %v1214_v27, %v1213_v25 }
  0xf4   :  { %v1644_v29 = vpop.f32.mrf.mxu1  ;;  %v629_v16 = vadd.f32 %v1151_v1, %v1677_v60 }
  0xf5   :  { %v1153_v30 = vpop.f32.mrf.mxu0 }
  0xf6   :  { %v1646_v31 = vpop.f32.mrf.mxu1  ;;  %v1154_v10 = vadd.f32 %v1153_v30, %v1152_v28 }
  0xf7   :  { %v1155_v32 = vpop.f32.mrf.mxu0  ;;  %v1218_v25 = vadd.f32 %v1646_v31, %v1644_v29 }
  0xf8   :  { %v1648_v33 = vpop.f32.mrf.mxu1  ;;  %v634_v13 = vadd.f32 %v1154_v10, %v1677_v60 }
  0xf9   :  { %v1156_v34 = vpop.f32.mrf.mxu0 }
  0xfa   :  { %v1650_v35 = vpop.f32.mrf.mxu1  ;;  %v1157_v11 = vadd.f32 %v1156_v34, %v1155_v32  ;;  %v726_v34 = vadd.f32 %v1215_v58, %v629_v16 }
  0xfb   :  { %v1158_v36 = vpop.f32.mrf.mxu0  ;;  %v1221_v27 = vadd.f32 %v1650_v35, %v1648_v33 }
  0xfc   :  { %v1652_v37 = vpop.f32.mrf.mxu1  ;;  %v637_v15 = vadd.f32 %v1157_v11, %v1677_v60 }
  0xfd   :  { %v1159_v38 = vpop.f32.mrf.mxu0 }
  0xfe   :  { %v1654_v39 = vpop.f32.mrf.mxu1  ;;  %v1160_v18 = vadd.f32 %v1159_v38, %v1158_v36  ;;  %v1706_v33 = vadd.f32 %v1221_v27, %v637_v15 }
  0xff   :  { %v1161_v40 = vpop.f32.mrf.mxu0 }
 0x100   :  { %v1656_v41 = vpop.f32.mrf.mxu1  ;;  %v642_v23 = vadd.f32 %v1160_v18, %v1677_v60 }
 0x101   :  { %v1162_v42 = vpop.f32.mrf.mxu0 }
 0x102   :  { %v1658_v43 = vpop.f32.mrf.mxu1  ;;  %v1163_v20 = vadd.f32 %v1162_v42, %v1161_v40  ;;  %v1224_v42 = vadd.f32 %v1654_v39, %v1652_v37 }
 0x103   :  { %v1164_v44 = vpop.f32.mrf.mxu0 }
 0x104   :  { %v1660_v45 = vpop.f32.mrf.mxu1  ;;  %v645_v28 = vadd.f32 %v1163_v20, %v1677_v60 }
 0x105   :  { %v1165_v46 = vpop.f32.mrf.mxu0 }
 0x106   :  { %v1662_v47 = vpop.f32.mrf.mxu1 }
 0x107   :  { %v1167_v48 = vpop.f32.mrf.mxu0  ;;  %v1230_v35 = vadd.f32 %v1662_v47, %v1660_v45 }
 0x108   :  { %v1664_v49 = vpop.f32.mrf.mxu1 }
 0x109   :  { %v1168_v50 = vpop.f32.mrf.mxu0 }
 0x10a   :  { %v1666_v51 = vpop.f32.mrf.mxu1  ;;  %v1169_v17 = vadd.f32 %v1168_v50, %v1167_v48 }
 0x10b   :  { %v1170_v52 = vpop.f32.mrf.mxu0 }
 0x10c   :  { %v1668_v53 = vpop.f32.mrf.mxu1 }
 0x10d   :  { %v1171_v54 = vpop.f32.mrf.mxu0 }
 0x10e   :  { %v1670_v55 = vpop.f32.mrf.mxu1  ;;  %v1172_v19 = vadd.f32 %v1171_v54, %v1170_v52  ;;  %v653_v52 = vadd.f32 %v1169_v17, %v1677_v60  ;;  %v1704_v54 = vadd.f32 %v1218_v25, %v634_v13 }
 0x10f   :  { %v1173_v56 = vpop.f32.mrf.mxu0 }
 0x110   :  { %v1672_v57 = vpop.f32.mrf.mxu1  ;;  %v658_v29 = vadd.f32 %v1172_v19, %v1677_v60 }
 0x111   :  { %1805 = vst [vmem:[#allocation2_spill] sm:$0xff] %v1672_v57  ;;  %v1174_v59 = vpop.f32.mrf.mxu0  ;;  %v723_v57 = vadd.f32 %v1212_v14, %v626_v6 }
 0x112   :  { %v1238_v63 = vpop.f32.mrf.mxu1  ;;  %v1175_v30 = vadd.f32 %v1174_v59, %v1173_v56  ;;  %v1233_v56 = vadd.f32 %v1666_v51, %v1664_v49  ;;  %v1236_v59 = vadd.f32 %v1670_v55, %v1668_v53 }
 0x113   :  { %v1176_v0 = vpop.f32.mrf.mxu0 }
 0x114   :  { %v1679_v2 = vpop.f32.mrf.mxu1  ;;  %v661_v37 = vadd.f32 %v1175_v30, %v1677_v60  ;;  %v755_v49 = vadd.f32 %v1236_v59, %v658_v29  ;;  %v750_v51 = vadd.f32 %v1233_v56, %v653_v52 }
 0x115   :  { %1806 = vst [vmem:[#allocation3_spill] sm:$0xff] %v1679_v2  ;;  %v1177_v4 = vpop.f32.mrf.mxu0  ;;  %v1166_v2 = vadd.f32 %v1165_v46, %v1164_v44  ;;  %v1227_v44 = vadd.f32 %v1658_v43, %v1656_v41  ;;  %v1711_v41 = vadd.f32 %v1224_v42, %v642_v23 }
 0x116   :  { %v1241_v7 = vpop.f32.mrf.mxu1  ;;  %v1178_v36 = vadd.f32 %v1177_v4, %v1176_v0 }
 0x117   :  { %v1179_v12 = vpop.f32.mrf.mxu0  ;;  %v650_v46 = vadd.f32 %v1166_v2, %v1677_v60  ;;  %v1713_v43 = vadd.f32 %v1227_v44, %v645_v28 }
 0x118   :  { %v1243_v22 = vpop.f32.mrf.mxu1  ;;  %v666_v0 = vadd.f32 %v1178_v36, %v1677_v60  ;;  %v1807_v45 = vld [vmem:[#allocation2_spill] sm:$0xff] }
 0x119   :  { %v1180_v24 = vpop.f32.mrf.mxu0  ;;  %v1239_v47 = vadd.f32 %v1238_v63, %v1807_v45  ;;  %v747_v6 = vadd.f32 %v1230_v35, %v650_v46 }
 0x11a   :  { %v1244_v61 = vpop.f32.mrf.mxu1  ;;  %v1181_v38 = vadd.f32 %v1180_v24, %v1179_v12 }
 0x11b   :  { %v1182_v21 = vpop.f32.mrf.mxu0  ;;  %v1245_v10 = vadd.f32 %v1244_v61, %v1243_v22  ;;  %v758_v16 = vadd.f32 %v1239_v47, %v661_v37 }
 0x11c   :  { %v1246_v32 = vpop.f32.mrf.mxu1  ;;  %v669_v1 = vadd.f32 %v1181_v38, %v1677_v60  ;;  %v1808_v8 = vld [vmem:[#allocation3_spill] sm:$0xff] }
 0x11d   :  { %v1183_v40 = vpop.f32.mrf.mxu0  ;;  %v1242_v9 = vadd.f32 %v1241_v7, %v1808_v8 }
 0x11e   :  { %v1184_v48 = vadd.f32 %v1183_v40, %v1182_v21  ;;  %v1247_v50 = vpop.f32.mrf.mxu1  ;;  %v1725_v58 = vadd.f32 %v1245_v10, %v669_v1 }
 0x11f   :  { %v1185_v31 = vpop.f32.mrf.mxu0  ;;  %v1248_v12 = vadd.f32 %v1247_v50, %v1246_v32  ;;  %v763_v24 = vadd.f32 %v1242_v9, %v666_v0 }
 0x120   :  { %v1249_v39 = vpop.f32.mrf.mxu1  ;;  %v674_v3 = vadd.f32 %v1184_v48, %v1677_v60 }
 0x121   :  { %v1186_v2 = vpop.f32.mrf.mxu0 }
 0x122   :  { %v1187_v4 = vadd.f32 %v1186_v2, %v1185_v31  ;;  %v1250_v5 = vpop.f32.mrf.mxu1  ;;  %v771_v61 = vadd.f32 %v1248_v12, %v674_v3 }
 0x123   :  { %v1274_v11 = vpop.f32.mrf.mxu0  ;;  %v1251_v18 = vadd.f32 %v1250_v5, %v1249_v39 }
 0x124   :  { %v677_v53 = vadd.f32 %v1187_v4, %v1677_v60  ;;  %v820_v55 = vadd.f32 %v1274_v11, %v723_v57  ;;  %v1282_v14 = vpop.f32.mrf.mxu1 }
 0x125   :  { %v852_v20 = vadd.f32 %v1282_v14, %v755_v49  ;;  %v811_v63 = vpop.f32.mrf.mxu0 }
 0x126   :  { %vm876_vm2 = vcmp.ge.f32.partialorder %v820_v55, 0.0  ;;  %v892_v13 = vmul.f32 0.2, %v820_v55  ;;  %v812_v7 = vadd.f32 %v811_v63, %v1685_v26  ;;  %v843_v22 = vpop.f32.mrf.mxu1  ;;  %v1728_v60 = vadd.f32 %v1251_v18, %v677_v53 }
 0x127   :  { %vm884_vm3 = vcmp.ge.f32.partialorder %v852_v20, 0.0  ;;  %v900_v15 = vmul.f32 0.2, %v852_v20  ;;  %v844_v17 = vadd.f32 %v843_v22, %v747_v6  ;;  %v1275_v19 = vpop.f32.mrf.mxu0 }
 0x128   :  { %v908_v57 = vsel %vm876_vm2, %v820_v55, %v892_v13  ;;  %vm874_vm4 = vcmp.ge.f32.partialorder %v812_v7, 0.0  ;;  %v890_v21 = vmul.f32 0.2, %v812_v7  ;;  %v823_v23 = vadd.f32 %v1275_v19, %v726_v34  ;;  %v1283_v28 = vpop.f32.mrf.mxu1 }
 0x129   :  { %v1110_v30 = vpack.c.bf16 %v908_v57, %v908_v57  ;;  %v916_v32 = vsel %vm884_vm3, %v852_v20, %v900_v15  ;;  %vm882_vm5 = vcmp.ge.f32.partialorder %v844_v17, 0.0  ;;  %v898_v25 = vmul.f32 0.2, %v844_v17  ;;  %v814_v27 = vpop.f32.mrf.mxu0 }
 0x12a   :  { %v1118_v36 = vpack.c.bf16 %v916_v32, %v916_v32  ;;  %v906_v26 = vsel %vm874_vm4, %v812_v7, %v890_v21  ;;  %vm877_vm6 = vcmp.ge.f32.partialorder %v823_v23, 0.0  ;;  %v893_v38 = vmul.f32 0.2, %v823_v23  ;;  %v846_v40 = vpop.f32.mrf.mxu1 }
 0x12b   :  { %989 = vst.msk [vmem:[%s1804_s3 + $0x8] sm:$0xf] %vm986_vm1, %v1110_v30  ;;  %v1108_v42 = vpack.c.bf16 %v906_v26, %v906_v26  ;;  %v914_v44 = vsel %vm882_vm5, %v844_v17, %v898_v25  ;;  %v855_v46 = vadd.f32 %v1283_v28, %v758_v16  ;;  %v815_v34 = vadd.f32 %v814_v27, %v1687_v62  ;;  %v1278_v48 = vpop.f32.mrf.mxu0 }
 0x12c   :  { %997 = vst.msk [vmem:[%s1804_s3 + $0x28] sm:$0xf] %vm986_vm1, %v1118_v36  ;;  %v1116_v50 = vpack.c.bf16 %v914_v44, %v914_v44  ;;  %v909_v52 = vsel %vm877_vm6, %v823_v23, %v893_v38  ;;  %v847_v29 = vadd.f32 %v846_v40, %v750_v51  ;;  %v836_v31 = vadd.f32 %v1278_v48, %v1711_v41  ;;  %v1286_v35 = vpop.f32.mrf.mxu1 }
 0x12d   :  { %987 = vst.msk [vmem:[%s1804_s3] sm:$0xf] %vm986_vm1, %v1108_v42  ;;  %v1111_v37 = vpack.c.bf16 %v909_v52, %v909_v52  ;;  %vm885_vm7 = vcmp.ge.f32.partialorder %v855_v46, 0.0  ;;  %v901_v62 = vmul.f32 0.2, %v855_v46  ;;  %vm875_vm8 = vcmp.ge.f32.partialorder %v815_v34, 0.0  ;;  %v827_v39 = vpop.f32.mrf.mxu0 }
 0x12e   :  { %995 = vst.msk [vmem:[%s1804_s3 + $0x20] sm:$0xf] %vm986_vm1, %v1116_v50  ;;  %v891_v56 = vmul.f32 0.2, %v815_v34  ;;  %vm883_vm9 = vcmp.ge.f32.partialorder %v847_v29, 0.0  ;;  %vm880_vm10 = vcmp.ge.f32.partialorder %v836_v31, 0.0  ;;  %v859_v41 = vpop.f32.mrf.mxu1  ;;  %v868_v2 = vadd.f32 %v1286_v35, %v771_v61 }
 0x12f   :  { %v899_v59 = vmul.f32 0.2, %v847_v29  ;;  %990 = vst.msk [vmem:[%s1804_s3 + $0xc] sm:$0xf] %vm986_vm1, %v1111_v37  ;;  %v917_v0 = vsel %vm885_vm7, %v855_v46, %v901_v62  ;;  %v896_v1 = vmul.f32 0.2, %v836_v31  ;;  %v828_v45 = vadd.f32 %v827_v39, %v1704_v54  ;;  %v1279_v47 = vpop.f32.mrf.mxu0 }
 0x130   :  { %v1119_v3 = vpack.c.bf16 %v917_v0, %v917_v0  ;;  %v907_v4 = vsel %vm875_vm8, %v815_v34, %v891_v56  ;;  %v860_v6 = vadd.f32 %v859_v41, %v763_v24  ;;  %v1287_v8 = vpop.f32.mrf.mxu1  ;;  %vm888_vm11 = vcmp.ge.f32.partialorder %v868_v2, 0.0 }
 0x131   :  { %v915_v5 = vsel %vm883_vm9, %v847_v29, %v899_v59  ;;  %v1109_v9 = vpack.c.bf16 %v907_v4, %v907_v4  ;;  %v912_v11 = vsel %vm880_vm10, %v836_v31, %v896_v1  ;;  %v830_v49 = vpop.f32.mrf.mxu0  ;;  %v904_v12 = vmul.f32 0.2, %v868_v2 }
 0x132   :  { %v1117_v10 = vpack.c.bf16 %v915_v5, %v915_v5  ;;  %998 = vst.msk [vmem:[%s1804_s3 + $0x2c] sm:$0xf] %vm986_vm1, %v1119_v3  ;;  %v1114_v51 = vpack.c.bf16 %v912_v11, %v912_v11  ;;  %vm878_vm12 = vcmp.ge.f32.partialorder %v828_v45, 0.0  ;;  %v894_v54 = vmul.f32 0.2, %v828_v45  ;;  %v862_v53 = vpop.f32.mrf.mxu1 }
 0x133   :  { %988 = vst.msk [vmem:[%s1804_s3 + $0x4] sm:$0xf] %vm986_vm1, %v1109_v9  ;;  %vm886_vm13 = vcmp.ge.f32.partialorder %v860_v6, 0.0  ;;  %v902_v55 = vmul.f32 0.2, %v860_v6  ;;  %v839_v14 = vadd.f32 %v1279_v47, %v1713_v43  ;;  %v871_v16 = vadd.f32 %v1287_v8, %v1728_v60 }
 0x134   :  { %996 = vst.msk [vmem:[%s1804_s3 + $0x24] sm:$0xf] %vm986_vm1, %v1117_v10  ;;  %993 = vst.msk [vmem:[%s1804_s3 + $0x18] sm:$0xf] %vm986_vm1, %v1114_v51  ;;  %v920_v18 = vsel %vm888_vm11, %v868_v2, %v904_v12  ;;  %v910_v20 = vsel %vm878_vm12, %v828_v45, %v894_v54  ;;  %v831_v63 = vadd.f32 %v830_v49, %v1706_v33 }
 0x135   :  { %v863_v24 = vadd.f32 %v862_v53, %v1725_v58  ;;  %v1122_v13 = vpack.c.bf16 %v920_v18, %v920_v18  ;;  %v1112_v7 = vpack.c.bf16 %v910_v20, %v910_v20  ;;  %v918_v22 = vsel %vm886_vm13, %v860_v6, %v902_v55 }
 0x136   :  { %vm881_vm14 = vcmp.ge.f32.partialorder %v839_v14, 0.0  ;;  %v1120_v61 = vpack.c.bf16 %v918_v22, %v918_v22  ;;  %v897_v15 = vmul.f32 0.2, %v839_v14  ;;  %vm889_vm15 = vcmp.ge.f32.partialorder %v871_v16, 0.0 }
 0x137   :  { %v905_v43 = vmul.f32 0.2, %v871_v16  ;;  %1001 = vst.msk [vmem:[%s1804_s3 + $0x38] sm:$0xf] %vm986_vm1, %v1122_v13  ;;  %991 = vst.msk [vmem:[%s1804_s3 + $0x10] sm:$0xf] %vm986_vm1, %v1112_v7 }
 0x138   :  { %vm879_vm0 = vcmp.ge.f32.partialorder %v831_v63, 0.0  ;;  %v895_v33 = vmul.f32 0.2, %v831_v63  ;;  %vm887_vm2 = vcmp.ge.f32.partialorder %v863_v24, 0.0  ;;  %v903_v58 = vmul.f32 0.2, %v863_v24 }
 0x139   :  { %999 = vst.msk [vmem:[%s1804_s3 + $0x30] sm:$0xf] %vm986_vm1, %v1120_v61  ;;  %v913_v17 = vsel %vm881_vm14, %v839_v14, %v897_v15  ;;  %v921_v19 = vsel %vm889_vm15, %v871_v16, %v905_v43 }
 0x13a   :  { %v1115_v60 = vpack.c.bf16 %v913_v17, %v913_v17  ;;  %v1123_v57 = vpack.c.bf16 %v921_v19, %v921_v19  ;;  %v911_v21 = vsel %vm879_vm0, %v831_v63, %v895_v33  ;;  %v919_v23 = vsel %vm887_vm2, %v863_v24, %v903_v58 }
 0x13b   :  { %v1113_v28 = vpack.c.bf16 %v911_v21, %v911_v21  ;;  %v1121_v30 = vpack.c.bf16 %v919_v23, %v919_v23 }
 0x13c   :  { %994 = vst.msk [vmem:[%s1804_s3 + $0x1c] sm:$0xf] %vm986_vm1, %v1115_v60  ;;  %1002 = vst.msk [vmem:[%s1804_s3 + $0x3c] sm:$0xf] %vm986_vm1, %v1123_v57 }
 0x13d   :  { %992 = vst.msk [vmem:[%s1804_s3 + $0x14] sm:$0xf] %vm986_vm1, %v1113_v28  ;;  %1000 = vst.msk [vmem:[%s1804_s3 + $0x34] sm:$0xf] %vm986_vm1, %v1121_v30 }

// kernel: _lambda_.47
= control target key start
LH: loop header
LB: loop body
LE: loop exit
PB: predicated region body
PF: predicated region fallthrough
CT: control target
= control target key end

     0   :  { %v555_v0 = vmov 0   ;;  %vm182_vm0 = vcmask 130048   ;;  %vm416_vm3 = vcmask 125952   ;;  %s744_s1 = inlined_call_operand.vmem [shape: bf16[144,16], index: 1, kind: input, shape index: {}]   ;;  %s745_s0 = inlined_call_operand.vmem [shape: bf16[128,144], index: 0, kind: input, shape index: {}]   ;;  %s746_s2 = inlined_call_operand.vmem [shape: f32[1,16], index: 2, kind: input, shape index: {}]   ;;  %s747_s3 = inlined_call_operand.vmem [shape: bf16[128,16], index: 3, kind: output, shape index: {}]  }
   0x1   :  { %207 = vmatprep.subr.bf16.mxu0 %v555_v0  ;;  %503 = vmatprep.subr.bf16.mxu1 %v555_v0  ;;  %v522_v1 = vld [vmem:[%s744_s1 + $0x38] sm:$0xff]   ;;  %v523_v2 = vld [vmem:[%s744_s1 + $0x30] sm:$0xff]   ;;  %v524_v3 = vld [vmem:[%s744_s1 + $0x28] sm:$0xff]  }
   0x2   :  { %208 = vmatpush1.bf16.msra.mxu0 %v522_v1  ;;  %512 = vmatpush1.bf16.msra.mxu1 %v522_v1  ;;  %v525_v4 = vld [vmem:[%s744_s1 + $0x20] sm:$0xff]   ;;  %v526_v7 = vld [vmem:[%s744_s1 + $0x18] sm:$0xff]   ;;  %v527_v8 = vld [vmem:[%s744_s1 + $0x10] sm:$0xff]  }
   0x3   :  { %209 = vmatprep.subr.bf16.mxu0 %v555_v0  ;;  %504 = vmatprep.subr.bf16.mxu1 %v555_v0  ;;  %v533_v5 = vld [vmem:[%s745_s0 + $0x4] ss:$8 sps:$4 sm:$0xff]   ;;  %v531_v12 = vld [vmem:[%s745_s0] ss:$8 sps:$4 sm:$0xff]   ;;  %v537_v14 = vld [vmem:[%s745_s0 + $0x14] ss:$8 sps:$4 sm:$0xff]  }
   0x4   :  { %v536_v6 = vld [vmem:[%s745_s0 + $0x44] ss:$8 sps:$4 sm:$0xff]   ;;  %463 = vmatprep.mubr.msk.bf16.mxu0 %vm182_vm0, %v533_v5  ;;  %v534_v13 = vld [vmem:[%s745_s0 + $0x40] ss:$8 sps:$4 sm:$0xff]   ;;  %v539_v15 = vld [vmem:[%s745_s0 + $0x54] ss:$8 sps:$4 sm:$0xff]  }
   0x5   :  { %467 = vmatprep.mubr.msk.bf16.mxu1 %vm182_vm0, %v536_v6  ;;  %v528_v9 = vld [vmem:[%s744_s1 + $0x8] sm:$0xff]   ;;  %v529_v10 = vld [vmem:[%s744_s1] sm:$0xff]   ;;  %v541_v16 = vld [vmem:[%s745_s0 + $0x10] ss:$8 sps:$4 sm:$0xff]  }
   0x6   :  { %210 = vmatpush1.bf16.msra.mxu0 %v523_v2  ;;  %513 = vmatpush1.bf16.msra.mxu1 %v523_v2  ;;  %v530_v11 = vld [vmem:[%s744_s1 + $0x40] sm:$0xff]   ;;  %v542_v17 = vld [vmem:[%s745_s0 + $0x50] ss:$8 sps:$4 sm:$0xff]   ;;  %v549_v22 = vld [vmem:[%s745_s0 + $0x34] ss:$8 sps:$4 sm:$0xff]  }
   0x7   :  { %211 = vmatprep.subr.bf16.mxu0 %v555_v0  ;;  %505 = vmatprep.subr.bf16.mxu1 %v555_v0  ;;  %v543_v18 = vld [vmem:[%s745_s0 + $0x24] ss:$8 sps:$4 sm:$0xff]   ;;  %v547_v20 = vld [vmem:[%s745_s0 + $0x20] ss:$8 sps:$4 sm:$0xff]   ;;  %v551_v23 = vld [vmem:[%s745_s0 + $0x74] ss:$8 sps:$4 sm:$0xff]  }
   0x8   :  { %v545_v19 = vld [vmem:[%s745_s0 + $0x64] ss:$8 sps:$4 sm:$0xff]   ;;  %v548_v21 = vld [vmem:[%s745_s0 + $0x60] ss:$8 sps:$4 sm:$0xff]   ;;  %v553_v24 = vld [vmem:[%s745_s0 + $0x30] ss:$8 sps:$4 sm:$0xff]  }
   0x9   :  { %v554_v25 = vld [vmem:[%s745_s0 + $0x70] ss:$8 sps:$4 sm:$0xff]   ;;  %v662_v26 = vld [vmem:[%s746_s2] ss:$0 sm:$0xff] }
   0xa   :  { %212 = vmatpush1.bf16.msra.mxu0 %v524_v3  ;;  %514 = vmatpush1.bf16.msra.mxu1 %v524_v3 }
   0xb   :  { %213 = vmatprep.subr.bf16.mxu0 %v555_v0  ;;  %506 = vmatprep.subr.bf16.mxu1 %v555_v0 }
   0xe   :  { %214 = vmatpush1.bf16.msra.mxu0 %v525_v4  ;;  %515 = vmatpush1.bf16.msra.mxu1 %v525_v4 }
   0xf   :  { %215 = vmatprep.subr.bf16.mxu0 %v555_v0  ;;  %507 = vmatprep.subr.bf16.mxu1 %v555_v0 }
  0x12   :  { %216 = vmatpush1.bf16.msra.mxu0 %v526_v7  ;;  %516 = vmatpush1.bf16.msra.mxu1 %v526_v7 }
  0x13   :  { %217 = vmatprep.subr.bf16.mxu0 %v555_v0  ;;  %508 = vmatprep.subr.bf16.mxu1 %v555_v0 }
  0x16   :  { %218 = vmatpush1.bf16.msra.mxu0 %v527_v8  ;;  %517 = vmatpush1.bf16.msra.mxu1 %v527_v8 }
  0x17   :  { %219 = vmatprep.subr.bf16.mxu0 %v555_v0  ;;  %509 = vmatprep.subr.bf16.mxu1 %v555_v0 }
  0x1a   :  { %220 = vmatpush1.bf16.msra.mxu0 %v528_v9  ;;  %518 = vmatpush1.bf16.msra.mxu1 %v528_v9 }
  0x1b   :  { %221 = vmatprep.subr.bf16.mxu0 %v555_v0  ;;  %510 = vmatprep.subr.bf16.mxu1 %v555_v0 }
  0x1e   :  { %222 = vmatpush1.bf16.msra.mxu0 %v529_v10  ;;  %519 = vmatpush1.bf16.msra.mxu1 %v529_v10 }
  0x1f   :  { %237 = vmatprep.subr.bf16.mxu0 %v555_v0  ;;  %511 = vmatprep.subr.bf16.mxu1 %v555_v0 }
  0x22   :  { %238 = vmatpush2.bf16.msra.mxu0 %v530_v11  ;;  %520 = vmatpush2.bf16.msra.mxu1 %v530_v11 }
  0x25   :  { %240 = vmatmul.mubr.bf16.vlgmr.msra.gmra.mxu0 %v531_v12  ;;  %272 = vmatmul.mubr.bf16.vlgmr.msra.gmra.mxu1 %v534_v13 }
  0x26   :  { %464 = vmatprep.mubr.msk.bf16.mxu0 %vm182_vm0, %v537_v14  ;;  %468 = vmatprep.mubr.msk.bf16.mxu1 %vm182_vm0, %v539_v15 }
  0x2d   :  { %248 = vmatmul.mubr.bf16.gmra.mxu0 %v541_v16  ;;  %280 = vmatmul.mubr.bf16.gmra.mxu1 %v542_v17 }
  0x2e   :  { %465 = vmatprep.mubr.msk.bf16.mxu0 %vm182_vm0, %v543_v18  ;;  %469 = vmatprep.mubr.msk.bf16.mxu1 %vm182_vm0, %v545_v19 }
  0x35   :  { %256 = vmatmul.mubr.bf16.gmra.mxu0 %v547_v20  ;;  %288 = vmatmul.mubr.bf16.gmra.mxu1 %v548_v21 }
  0x36   :  { %466 = vmatprep.mubr.msk.bf16.mxu0 %vm182_vm0, %v549_v22  ;;  %470 = vmatprep.mubr.msk.bf16.mxu1 %vm182_vm0, %v551_v23 }
  0x3d   :  { %264 = vmatmul.mubr.bf16.gmra.mxu0 %v553_v24  ;;  %296 = vmatmul.mubr.bf16.gmra.mxu1 %v554_v25 }
  0xe5   :  { %v241_v27 = vpop.f32.mrf.mxu0  ;;  %v273_v28 = vpop.f32.mrf.mxu1 }
  0xe6   :  { %v242_v29 = vadd.f32 %v662_v26, %v241_v27  ;;  %v274_v30 = vadd.f32 %v662_v26, %v273_v28 }
  0xe7   :  { %v243_v31 = vpop.f32.mrf.mxu0  ;;  %v275_v32 = vpop.f32.mrf.mxu1 }
  0xe8   :  { %vm304_vm1 = vcmp.ge.f32.partialorder %v242_v29, 0.0  ;;  %v320_v33 = vmul.f32 0.2, %v242_v29  ;;  %vm312_vm2 = vcmp.ge.f32.partialorder %v274_v30, 0.0  ;;  %v328_v34 = vmul.f32 0.2, %v274_v30 }
  0xe9   :  { %v244_v35 = vpop.f32.mrf.mxu0  ;;  %v276_v36 = vpop.f32.mrf.mxu1 }
  0xea   :  { %v336_v37 = vsel %vm304_vm1, %v242_v29, %v320_v33  ;;  %v344_v38 = vsel %vm312_vm2, %v274_v30, %v328_v34  ;;  %v245_v39 = vadd.f32 %v662_v26, %v244_v35  ;;  %v277_v40 = vadd.f32 %v662_v26, %v276_v36 }
  0xeb   :  { %v487_v41 = vpack.c.bf16 %v336_v37, %v336_v37  ;;  %v495_v42 = vpack.c.bf16 %v344_v38, %v344_v38  ;;  %v246_v43 = vpop.f32.mrf.mxu0  ;;  %v278_v44 = vpop.f32.mrf.mxu1 }
  0xec   :  { %vm305_vm4 = vcmp.ge.f32.partialorder %v245_v39, 0.0  ;;  %v321_v45 = vmul.f32 0.2, %v245_v39  ;;  %vm313_vm5 = vcmp.ge.f32.partialorder %v277_v40, 0.0  ;;  %v329_v46 = vmul.f32 0.2, %v277_v40 }
  0xed   :  { %417 = vst.msk [vmem:[%s747_s3] sm:$0xf] %vm416_vm3, %v487_v41  ;;  %425 = vst.msk [vmem:[%s747_s3 + $0x20] sm:$0xf] %vm416_vm3, %v495_v42  ;;  %v249_v47 = vpop.f32.mrf.mxu0  ;;  %v281_v48 = vpop.f32.mrf.mxu1 }
  0xee   :  { %v337_v49 = vsel %vm305_vm4, %v245_v39, %v321_v45  ;;  %v345_v50 = vsel %vm313_vm5, %v277_v40, %v329_v46  ;;  %v250_v51 = vadd.f32 %v662_v26, %v249_v47  ;;  %v282_v52 = vadd.f32 %v662_v26, %v281_v48 }
  0xef   :  { %v488_v53 = vpack.c.bf16 %v337_v49, %v337_v49  ;;  %v496_v54 = vpack.c.bf16 %v345_v50, %v345_v50  ;;  %v251_v55 = vpop.f32.mrf.mxu0  ;;  %v283_v56 = vpop.f32.mrf.mxu1 }
  0xf0   :  { %vm306_vm6 = vcmp.ge.f32.partialorder %v250_v51, 0.0  ;;  %v322_v57 = vmul.f32 0.2, %v250_v51  ;;  %vm314_vm7 = vcmp.ge.f32.partialorder %v282_v52, 0.0  ;;  %v330_v58 = vmul.f32 0.2, %v282_v52 }
  0xf1   :  { %418 = vst.msk [vmem:[%s747_s3 + $0x4] sm:$0xf] %vm416_vm3, %v488_v53  ;;  %426 = vst.msk [vmem:[%s747_s3 + $0x24] sm:$0xf] %vm416_vm3, %v496_v54  ;;  %v252_v59 = vpop.f32.mrf.mxu0  ;;  %v284_v60 = vpop.f32.mrf.mxu1 }
  0xf2   :  { %v338_v61 = vsel %vm306_vm6, %v250_v51, %v322_v57  ;;  %v346_v62 = vsel %vm314_vm7, %v282_v52, %v330_v58  ;;  %v253_v63 = vadd.f32 %v662_v26, %v252_v59  ;;  %v285_v0 = vadd.f32 %v662_v26, %v284_v60 }
  0xf3   :  { %v489_v1 = vpack.c.bf16 %v338_v61, %v338_v61  ;;  %v497_v2 = vpack.c.bf16 %v346_v62, %v346_v62  ;;  %v254_v3 = vpop.f32.mrf.mxu0  ;;  %v286_v4 = vpop.f32.mrf.mxu1 }
  0xf4   :  { %vm307_vm8 = vcmp.ge.f32.partialorder %v253_v63, 0.0  ;;  %v323_v5 = vmul.f32 0.2, %v253_v63  ;;  %vm315_vm9 = vcmp.ge.f32.partialorder %v285_v0, 0.0  ;;  %v331_v6 = vmul.f32 0.2, %v285_v0 }
  0xf5   :  { %419 = vst.msk [vmem:[%s747_s3 + $0x8] sm:$0xf] %vm416_vm3, %v489_v1  ;;  %427 = vst.msk [vmem:[%s747_s3 + $0x28] sm:$0xf] %vm416_vm3, %v497_v2  ;;  %v257_v7 = vpop.f32.mrf.mxu0  ;;  %v289_v8 = vpop.f32.mrf.mxu1 }
  0xf6   :  { %v339_v9 = vsel %vm307_vm8, %v253_v63, %v323_v5  ;;  %v347_v10 = vsel %vm315_vm9, %v285_v0, %v331_v6  ;;  %v258_v11 = vadd.f32 %v662_v26, %v257_v7  ;;  %v290_v12 = vadd.f32 %v662_v26, %v289_v8 }
  0xf7   :  { %v490_v13 = vpack.c.bf16 %v339_v9, %v339_v9  ;;  %v498_v14 = vpack.c.bf16 %v347_v10, %v347_v10  ;;  %v259_v15 = vpop.f32.mrf.mxu0  ;;  %v291_v16 = vpop.f32.mrf.mxu1 }
  0xf8   :  { %vm308_vm10 = vcmp.ge.f32.partialorder %v258_v11, 0.0  ;;  %v324_v17 = vmul.f32 0.2, %v258_v11  ;;  %vm316_vm11 = vcmp.ge.f32.partialorder %v290_v12, 0.0  ;;  %v332_v18 = vmul.f32 0.2, %v290_v12 }
  0xf9   :  { %420 = vst.msk [vmem:[%s747_s3 + $0xc] sm:$0xf] %vm416_vm3, %v490_v13  ;;  %428 = vst.msk [vmem:[%s747_s3 + $0x2c] sm:$0xf] %vm416_vm3, %v498_v14  ;;  %v260_v19 = vpop.f32.mrf.mxu0  ;;  %v292_v20 = vpop.f32.mrf.mxu1 }
  0xfa   :  { %v340_v21 = vsel %vm308_vm10, %v258_v11, %v324_v17  ;;  %v348_v22 = vsel %vm316_vm11, %v290_v12, %v332_v18  ;;  %v261_v23 = vadd.f32 %v662_v26, %v260_v19  ;;  %v293_v24 = vadd.f32 %v662_v26, %v292_v20 }
  0xfb   :  { %v491_v25 = vpack.c.bf16 %v340_v21, %v340_v21  ;;  %v499_v27 = vpack.c.bf16 %v348_v22, %v348_v22  ;;  %v262_v28 = vpop.f32.mrf.mxu0  ;;  %v294_v29 = vpop.f32.mrf.mxu1 }
  0xfc   :  { %vm309_vm12 = vcmp.ge.f32.partialorder %v261_v23, 0.0  ;;  %v325_v30 = vmul.f32 0.2, %v261_v23  ;;  %vm317_vm13 = vcmp.ge.f32.partialorder %v293_v24, 0.0  ;;  %v333_v31 = vmul.f32 0.2, %v293_v24 }
  0xfd   :  { %421 = vst.msk [vmem:[%s747_s3 + $0x10] sm:$0xf] %vm416_vm3, %v491_v25  ;;  %429 = vst.msk [vmem:[%s747_s3 + $0x30] sm:$0xf] %vm416_vm3, %v499_v27  ;;  %v265_v32 = vpop.f32.mrf.mxu0  ;;  %v297_v33 = vpop.f32.mrf.mxu1 }
  0xfe   :  { %v341_v34 = vsel %vm309_vm12, %v261_v23, %v325_v30  ;;  %v349_v35 = vsel %vm317_vm13, %v293_v24, %v333_v31  ;;  %v266_v36 = vadd.f32 %v662_v26, %v265_v32  ;;  %v298_v37 = vadd.f32 %v662_v26, %v297_v33 }
  0xff   :  { %v492_v38 = vpack.c.bf16 %v341_v34, %v341_v34  ;;  %v500_v39 = vpack.c.bf16 %v349_v35, %v349_v35  ;;  %v267_v40 = vpop.f32.mrf.mxu0  ;;  %v299_v41 = vpop.f32.mrf.mxu1 }
 0x100   :  { %vm310_vm14 = vcmp.ge.f32.partialorder %v266_v36, 0.0  ;;  %v326_v42 = vmul.f32 0.2, %v266_v36  ;;  %vm318_vm15 = vcmp.ge.f32.partialorder %v298_v37, 0.0  ;;  %v334_v43 = vmul.f32 0.2, %v298_v37 }
 0x101   :  { %422 = vst.msk [vmem:[%s747_s3 + $0x14] sm:$0xf] %vm416_vm3, %v492_v38  ;;  %430 = vst.msk [vmem:[%s747_s3 + $0x34] sm:$0xf] %vm416_vm3, %v500_v39  ;;  %v268_v44 = vpop.f32.mrf.mxu0  ;;  %v300_v45 = vpop.f32.mrf.mxu1 }
 0x102   :  { %v342_v46 = vsel %vm310_vm14, %v266_v36, %v326_v42  ;;  %v350_v47 = vsel %vm318_vm15, %v298_v37, %v334_v43  ;;  %v269_v48 = vadd.f32 %v662_v26, %v268_v44  ;;  %v301_v49 = vadd.f32 %v662_v26, %v300_v45 }
 0x103   :  { %v493_v50 = vpack.c.bf16 %v342_v46, %v342_v46  ;;  %v501_v51 = vpack.c.bf16 %v350_v47, %v350_v47  ;;  %v270_v52 = vpop.f32.mrf.mxu0  ;;  %v302_v53 = vpop.f32.mrf.mxu1 }
 0x104   :  { %vm311_vm0 = vcmp.ge.f32.partialorder %v269_v48, 0.0  ;;  %v327_v54 = vmul.f32 0.2, %v269_v48  ;;  %vm319_vm1 = vcmp.ge.f32.partialorder %v301_v49, 0.0  ;;  %v335_v55 = vmul.f32 0.2, %v301_v49 }
 0x105   :  { %423 = vst.msk [vmem:[%s747_s3 + $0x18] sm:$0xf] %vm416_vm3, %v493_v50  ;;  %431 = vst.msk [vmem:[%s747_s3 + $0x38] sm:$0xf] %vm416_vm3, %v501_v51 }
 0x106   :  { %v343_v56 = vsel %vm311_vm0, %v269_v48, %v327_v54  ;;  %v351_v26 = vsel %vm319_vm1, %v301_v49, %v335_v55 }
 0x107   :  { %v494_v57 = vpack.c.bf16 %v343_v56, %v343_v56  ;;  %v502_v58 = vpack.c.bf16 %v351_v26, %v351_v26 }
 0x109   :  { %424 = vst.msk [vmem:[%s747_s3 + $0x1c] sm:$0xf] %vm416_vm3, %v494_v57  ;;  %432 = vst.msk [vmem:[%s747_s3 + $0x3c] sm:$0xf] %vm416_vm3, %v502_v58 }

// kernel: _lambda_.49
= control target key start
LH: loop header
LB: loop body
LE: loop exit
PB: predicated region body
PF: predicated region fallthrough
CT: control target
= control target key end

     0   :  { %v2523_v0 = vmov 0   ;;  %vm774_vm0 = vcmask 261120   ;;  %vm1897_vm2 = vcmask 60416   ;;  %s3446_s1 = inlined_call_operand.vmem [shape: bf16[288,8], index: 1, kind: input, shape index: {}]   ;;  %s3447_s0 = inlined_call_operand.vmem [shape: bf16[512,288], index: 0, kind: input, shape index: {}]   ;;  %s3448_s2 = inlined_call_operand.vmem [shape: f32[1,8], index: 2, kind: input, shape index: {}]   ;;  %s3449_s3 = inlined_call_operand.vmem [shape: bf16[512,8], index: 3, kind: output, shape index: {}]  }
   0x1   :  { %871 = vmatprep.subr.bf16.mxu0 %v2523_v0  ;;  %2343 = vmatprep.subr.bf16.mxu1 %v2523_v0  ;;  %v2376_v1 = vld [vmem:[%s3446_s1 + $0x38] sm:$0xff]   ;;  %v2377_v2 = vld [vmem:[%s3446_s1 + $0x30] sm:$0xff]   ;;  %v2378_v3 = vld [vmem:[%s3446_s1 + $0x28] sm:$0xff]  }
   0x2   :  { %872 = vmatpush1.bf16.msra.mxu0 %v2376_v1  ;;  %2359 = vmatpush1.bf16.msra.mxu1 %v2376_v1  ;;  %v2379_v4 = vld [vmem:[%s3446_s1 + $0x20] sm:$0xff]   ;;  %v2380_v5 = vld [vmem:[%s3446_s1 + $0x18] sm:$0xff]   ;;  %v2381_v7 = vld [vmem:[%s3446_s1 + $0x10] sm:$0xff]  }
   0x3   :  { %873 = vmatprep.subr.bf16.mxu0 %v2523_v0  ;;  %2344 = vmatprep.subr.bf16.mxu1 %v2523_v0  ;;  %v2394_v6 = vld [vmem:[%s3447_s0 + $0x4] ss:$12 sps:$4 sm:$0xff]   ;;  %v2382_v9 = vld [vmem:[%s3446_s1 + $0x8] sm:$0xff]   ;;  %v2384_v11 = vld [vmem:[%s3446_s1 + $0x78] sm:$0xff]  }
   0x4   :  { %v2397_v8 = vld [vmem:[%s3447_s0 + $0x244] ss:$12 sps:$4 sm:$0xff]   ;;  %903 = vmatprep.mubr.bf16.mxu0 %v2394_v6  ;;  %v2386_v13 = vld [vmem:[%s3446_s1 + $0x68] sm:$0xff]   ;;  %v2388_v15 = vld [vmem:[%s3446_s1 + $0x58] sm:$0xff]  }
   0x5   :  { %1095 = vmatprep.mubr.bf16.mxu1 %v2397_v8  ;;  %v2383_v10 = vld [vmem:[%s3446_s1] sm:$0xff]   ;;  %v2385_v12 = vld [vmem:[%s3446_s1 + $0x70] sm:$0xff]   ;;  %v2390_v17 = vld [vmem:[%s3446_s1 + $0x48] sm:$0xff]  }
   0x6   :  { %874 = vmatpush1.bf16.msra.mxu0 %v2377_v2  ;;  %2360 = vmatpush1.bf16.msra.mxu1 %v2377_v2  ;;  %v2387_v14 = vld [vmem:[%s3446_s1 + $0x60] sm:$0xff]   ;;  %v2389_v16 = vld [vmem:[%s3446_s1 + $0x50] sm:$0xff]   ;;  %v2398_v19 = vld [vmem:[%s3446_s1 + $0x88] sm:$0xff]  }
   0x7   :  { %875 = vmatprep.subr.bf16.mxu0 %v2523_v0  ;;  %2345 = vmatprep.subr.bf16.mxu1 %v2523_v0  ;;  %v2391_v18 = vld [vmem:[%s3446_s1 + $0x40] sm:$0xff]   ;;  %v2399_v22 = vld [vmem:[%s3447_s0 + $0x1c] ss:$12 sps:$4 sm:$0xff]   ;;  %v2411_v31 = vld [vmem:[%s3447_s0 + $0x4c] ss:$12 sps:$4 sm:$0xff]  }
   0x8   :  { %v2392_v20 = vld [vmem:[%s3447_s0] ss:$12 sps:$4 sm:$0xff]   ;;  %v2401_v23 = vld [vmem:[%s3447_s0 + $0x25c] ss:$12 sps:$4 sm:$0xff]   ;;  %v2403_v25 = vld [vmem:[%s3447_s0 + $0x18] ss:$12 sps:$4 sm:$0xff]  }
   0x9   :  { %v2395_v21 = vld [vmem:[%s3447_s0 + $0x240] ss:$12 sps:$4 sm:$0xff]   ;;  %v2404_v26 = vld [vmem:[%s3447_s0 + $0x258] ss:$12 sps:$4 sm:$0xff]   ;;  %v2409_v29 = vld [vmem:[%s3447_s0 + $0x30] ss:$12 sps:$4 sm:$0xff]  }
   0xa   :  { %876 = vmatpush1.bf16.msra.mxu0 %v2378_v3  ;;  %2361 = vmatpush1.bf16.msra.mxu1 %v2378_v3  ;;  %v2423_v24 = vld [vmem:[%s3446_s1 + $0x80] sm:$0xff]   ;;  %v2410_v30 = vld [vmem:[%s3447_s0 + $0x270] ss:$12 sps:$4 sm:$0xff]   ;;  %v2413_v32 = vld [vmem:[%s3447_s0 + $0x28c] ss:$12 sps:$4 sm:$0xff]  }
   0xb   :  { %877 = vmatprep.subr.bf16.mxu0 %v2523_v0  ;;  %2346 = vmatprep.subr.bf16.mxu1 %v2523_v0  ;;  %v2405_v27 = vld [vmem:[%s3447_s0 + $0x34] ss:$12 sps:$4 sm:$0xff]   ;;  %v2417_v35 = vld [vmem:[%s3447_s0 + $0x64] ss:$12 sps:$4 sm:$0xff]   ;;  %v2424_v39 = vld [vmem:[%s3447_s0 + $0x7c] ss:$12 sps:$4 sm:$0xff]  }
   0xc   :  { %v2407_v28 = vld [vmem:[%s3447_s0 + $0x274] ss:$12 sps:$4 sm:$0xff]   ;;  %v2419_v36 = vld [vmem:[%s3447_s0 + $0x2a4] ss:$12 sps:$4 sm:$0xff]   ;;  %v2426_v40 = vld [vmem:[%s3447_s0 + $0x2bc] ss:$12 sps:$4 sm:$0xff]  }
   0xd   :  { %v2415_v33 = vld [vmem:[%s3447_s0 + $0x48] ss:$12 sps:$4 sm:$0xff]   ;;  %v2421_v37 = vld [vmem:[%s3447_s0 + $0x60] ss:$12 sps:$4 sm:$0xff]   ;;  %v2428_v41 = vld [vmem:[%s3447_s0 + $0x78] ss:$12 sps:$4 sm:$0xff]  }
   0xe   :  { %878 = vmatpush1.bf16.msra.mxu0 %v2379_v4  ;;  %2362 = vmatpush1.bf16.msra.mxu1 %v2379_v4  ;;  %v2416_v34 = vld [vmem:[%s3447_s0 + $0x288] ss:$12 sps:$4 sm:$0xff]   ;;  %v2422_v38 = vld [vmem:[%s3447_s0 + $0x2a0] ss:$12 sps:$4 sm:$0xff]   ;;  %v2429_v42 = vld [vmem:[%s3447_s0 + $0x2b8] ss:$12 sps:$4 sm:$0xff]  }
   0xf   :  { %879 = vmatprep.subr.bf16.mxu0 %v2523_v0  ;;  %2347 = vmatprep.subr.bf16.mxu1 %v2523_v0  ;;  %v2430_v43 = vld [vmem:[%s3447_s0 + $0x94] ss:$12 sps:$4 sm:$0xff]   ;;  %v2434_v45 = vld [vmem:[%s3447_s0 + $0x90] ss:$12 sps:$4 sm:$0xff]   ;;  %v2436_v47 = vld [vmem:[%s3447_s0 + $0xac] ss:$12 sps:$4 sm:$0xff]  }
  0x10   :  { %v2432_v44 = vld [vmem:[%s3447_s0 + $0x2d4] ss:$12 sps:$4 sm:$0xff]   ;;  %v2435_v46 = vld [vmem:[%s3447_s0 + $0x2d0] ss:$12 sps:$4 sm:$0xff]   ;;  %v2438_v48 = vld [vmem:[%s3447_s0 + $0x2ec] ss:$12 sps:$4 sm:$0xff]  }
  0x11   :  { %v2440_v49 = vld [vmem:[%s3447_s0 + $0xa8] ss:$12 sps:$4 sm:$0xff]   ;;  %v2442_v51 = vld [vmem:[%s3447_s0 + $0xc4] ss:$12 sps:$4 sm:$0xff]   ;;  %v2445_v53 = vld [vmem:[%s3447_s0 + $0xc0] ss:$12 sps:$4 sm:$0xff]  }
  0x12   :  { %880 = vmatpush1.bf16.msra.mxu0 %v2380_v5  ;;  %2363 = vmatpush1.bf16.msra.mxu1 %v2380_v5  ;;  %v2441_v50 = vld [vmem:[%s3447_s0 + $0x2e8] ss:$12 sps:$4 sm:$0xff]   ;;  %v2446_v54 = vld [vmem:[%s3447_s0 + $0x20] ss:$12 sps:$4 sm:$0xff]   ;;  %v2449_v56 = vld [vmem:[%s3447_s0 + $0x38] ss:$12 sps:$4 sm:$0xff]  }
  0x13   :  { %881 = vmatprep.subr.bf16.mxu0 %v2523_v0  ;;  %2348 = vmatprep.subr.bf16.mxu1 %v2523_v0  ;;  %v2444_v52 = vld [vmem:[%s3447_s0 + $0x8] ss:$12 sps:$4 sm:$0xff]   ;;  %v2450_v57 = vld [vmem:[%s3447_s0 + $0xd8] ss:$12 sps:$4 sm:$0xff]   ;;  %v2451_v58 = vld [vmem:[%s3447_s0 + $0x50] ss:$12 sps:$4 sm:$0xff]  }
  0x14   :  { %v2447_v55 = vld [vmem:[%s3447_s0 + $0xdc] ss:$12 sps:$4 sm:$0xff]   ;;  %v2452_v59 = vld [vmem:[%s3447_s0 + $0xf4] ss:$12 sps:$4 sm:$0xff]   ;;  %v2457_v63 = vld [vmem:[%s3447_s0 + $0x10c] ss:$12 sps:$4 sm:$0xff]  }
  0x15   :  { %v2454_v60 = vld [vmem:[%s3447_s0 + $0x68] ss:$12 sps:$4 sm:$0xff]   ;;  %v2455_v61 = vld [vmem:[%s3447_s0 + $0xf0] ss:$12 sps:$4 sm:$0xff]   ;;  %v2456_v62 = vld [vmem:[%s3447_s0 + $0x80] ss:$12 sps:$4 sm:$0xff]  }
  0x16   :  { %882 = vmatpush1.bf16.msra.mxu0 %v2381_v7  ;;  %2364 = vmatpush1.bf16.msra.mxu1 %v2381_v7  ;;  %v2460_v1 = vld [vmem:[%s3447_s0 + $0x108] ss:$12 sps:$4 sm:$0xff]   ;;  %v2461_v2 = vld [vmem:[%s3447_s0 + $0xb0] ss:$12 sps:$4 sm:$0xff]   ;;  %v2465_v5 = vld [vmem:[%s3447_s0 + $0x120] ss:$12 sps:$4 sm:$0xff]  }
  0x17   :  { %883 = vmatprep.subr.bf16.mxu0 %v2523_v0  ;;  %2349 = vmatprep.subr.bf16.mxu1 %v2523_v0  ;;  %v2462_v3 = vld [vmem:[%s3447_s0 + $0x124] ss:$12 sps:$4 sm:$0xff]   ;;  %v2464_v4 = vld [vmem:[%s3447_s0 + $0xc8] ss:$12 sps:$4 sm:$0xff]   ;;  %v2466_v6 = vld [vmem:[%s3447_s0 + $0xe0] ss:$12 sps:$4 sm:$0xff]  }
  0x18   :  { %v2467_v7 = vld [vmem:[%s3447_s0 + $0x13c] ss:$12 sps:$4 sm:$0xff]   ;;  %v2469_v8 = vld [vmem:[%s3447_s0 + $0xf8] ss:$12 sps:$4 sm:$0xff]  }
  0x1a   :  { %884 = vmatpush1.bf16.msra.mxu0 %v2382_v9  ;;  %2365 = vmatpush1.bf16.msra.mxu1 %v2382_v9  ;;  %v2470_v9 = vld [vmem:[%s3447_s0 + $0x138] ss:$12 sps:$4 sm:$0xff]  }
  0x1b   :  { %885 = vmatprep.subr.bf16.mxu0 %v2523_v0  ;;  %2350 = vmatprep.subr.bf16.mxu1 %v2523_v0 }
  0x1e   :  { %886 = vmatpush1.bf16.msra.mxu0 %v2383_v10  ;;  %2366 = vmatpush1.bf16.msra.mxu1 %v2383_v10  ;;  %v2471_v10 = vld [vmem:[%s3447_s0 + $0x110] ss:$12 sps:$4 sm:$0xff]  }
  0x1f   :  { %887 = vmatprep.subr.bf16.mxu0 %v2523_v0  ;;  %2351 = vmatprep.subr.bf16.mxu1 %v2523_v0 }
  0x22   :  { %888 = vmatpush2.bf16.msra.mxu0 %v2384_v11  ;;  %2367 = vmatpush2.bf16.msra.mxu1 %v2384_v11  ;;  %v2472_v11 = vld [vmem:[%s3447_s0 + $0x154] ss:$12 sps:$4 sm:$0xff]  }
  0x23   :  { %889 = vmatprep.subr.bf16.mxu0 %v2523_v0  ;;  %2352 = vmatprep.subr.bf16.mxu1 %v2523_v0 }
  0x26   :  { %890 = vmatpush2.bf16.msra.mxu0 %v2385_v12  ;;  %2368 = vmatpush2.bf16.msra.mxu1 %v2385_v12  ;;  %v2474_v12 = vld [vmem:[%s3447_s0 + $0x128] ss:$12 sps:$4 sm:$0xff]  }
  0x27   :  { %891 = vmatprep.subr.bf16.mxu0 %v2523_v0  ;;  %2353 = vmatprep.subr.bf16.mxu1 %v2523_v0 }
  0x2a   :  { %892 = vmatpush2.bf16.msra.mxu0 %v2386_v13  ;;  %2369 = vmatpush2.bf16.msra.mxu1 %v2386_v13  ;;  %v2475_v13 = vld [vmem:[%s3447_s0 + $0x150] ss:$12 sps:$4 sm:$0xff]  }
  0x2b   :  { %893 = vmatprep.subr.bf16.mxu0 %v2523_v0  ;;  %2354 = vmatprep.subr.bf16.mxu1 %v2523_v0 }
  0x2e   :  { %894 = vmatpush2.bf16.msra.mxu0 %v2387_v14  ;;  %2370 = vmatpush2.bf16.msra.mxu1 %v2387_v14  ;;  %v2476_v14 = vld [vmem:[%s3447_s0 + $0x140] ss:$12 sps:$4 sm:$0xff]  }
  0x2f   :  { %895 = vmatprep.subr.bf16.mxu0 %v2523_v0  ;;  %2355 = vmatprep.subr.bf16.mxu1 %v2523_v0 }
  0x32   :  { %896 = vmatpush2.bf16.msra.mxu0 %v2388_v15  ;;  %2371 = vmatpush2.bf16.msra.mxu1 %v2388_v15  ;;  %v2477_v15 = vld [vmem:[%s3447_s0 + $0x16c] ss:$12 sps:$4 sm:$0xff]  }
  0x33   :  { %897 = vmatprep.subr.bf16.mxu0 %v2523_v0  ;;  %2356 = vmatprep.subr.bf16.mxu1 %v2523_v0 }
  0x36   :  { %898 = vmatpush2.bf16.msra.mxu0 %v2389_v16  ;;  %2372 = vmatpush2.bf16.msra.mxu1 %v2389_v16  ;;  %v2479_v16 = vld [vmem:[%s3447_s0 + $0x158] ss:$12 sps:$4 sm:$0xff]  }
  0x37   :  { %899 = vmatprep.subr.bf16.mxu0 %v2523_v0  ;;  %2357 = vmatprep.subr.bf16.mxu1 %v2523_v0 }
  0x3a   :  { %900 = vmatpush2.bf16.msra.mxu0 %v2390_v17  ;;  %2373 = vmatpush2.bf16.msra.mxu1 %v2390_v17  ;;  %v2480_v17 = vld [vmem:[%s3447_s0 + $0x168] ss:$12 sps:$4 sm:$0xff]  }
  0x3b   :  { %901 = vmatprep.subr.bf16.mxu0 %v2523_v0  ;;  %2358 = vmatprep.subr.bf16.mxu1 %v2523_v0  ;;  %v2459_v0 = vld [vmem:[%s3447_s0 + $0x98] ss:$12 sps:$4 sm:$0xff]  }
  0x3e   :  { %902 = vmatpush2.bf16.msra.mxu0 %v2391_v18  ;;  %2374 = vmatpush2.bf16.msra.mxu1 %v2391_v18  ;;  %v2481_v18 = vld [vmem:[%s3447_s0 + $0x170] ss:$12 sps:$4 sm:$0xff]  }
  0x3f   :  { %2275 = vmatprep.subr.bf16.mxu1 %v2398_v19 }
  0x41   :  { %904 = vmatmul.mubr.bf16.vlgmr.msra.gmra.mxu0 %v2392_v20  ;;  %1096 = vmatmul.mubr.bf16.vlgmr.msra.gmra.mxu1 %v2395_v21  ;;  %v2484_v20 = vld [vmem:[%s3447_s0 + $0x188] ss:$12 sps:$4 sm:$0xff]   ;;  %v2485_v21 = vld [vmem:[%s3447_s0 + $0x180] ss:$12 sps:$4 sm:$0xff]  }
  0x42   :  { %2276 = vmatpush3.bf16.msra.mxu1 %v2398_v19  ;;  %911 = vmatprep.mubr.bf16.mxu0 %v2399_v22  ;;  %v2482_v19 = vld [vmem:[%s3447_s0 + $0x184] ss:$12 sps:$4 sm:$0xff]   ;;  %v2486_v22 = vld [vmem:[%s3447_s0 + $0x1a0] ss:$12 sps:$4 sm:$0xff]  }
  0x43   :  { %1103 = vmatprep.mubr.bf16.mxu1 %v2401_v23  ;;  %2277 = vmatprep.subr.bf16.mxu1 %v2423_v24  ;;  %v2487_v23 = vld [vmem:[%s3447_s0 + $0x19c] ss:$12 sps:$4 sm:$0xff]  }
  0x46   :  { %2278 = vmatpush3.bf16.msra.mxu1 %v2423_v24  ;;  %v2489_v24 = vld [vmem:[%s3447_s0 + $0x1b8] ss:$12 sps:$4 sm:$0xff]  }
  0x49   :  { %912 = vmatmul.mubr.bf16.gmra.mxu0 %v2403_v25  ;;  %1104 = vmatmul.mubr.bf16.gmra.mxu1 %v2404_v26  ;;  %v2490_v25 = vld [vmem:[%s3447_s0 + $0x198] ss:$12 sps:$4 sm:$0xff]   ;;  %v2491_v26 = vld [vmem:[%s3447_s0 + $0x1d0] ss:$12 sps:$4 sm:$0xff]  }
  0x4a   :  { %919 = vmatprep.mubr.bf16.mxu0 %v2405_v27  ;;  %1111 = vmatprep.mubr.bf16.mxu1 %v2407_v28  ;;  %v2492_v27 = vld [vmem:[%s3447_s0 + $0x1b4] ss:$12 sps:$4 sm:$0xff]  }
  0x4b   :  { %v2494_v28 = vld [vmem:[%s3447_s0 + $0x1e8] ss:$12 sps:$4 sm:$0xff]  }
  0x51   :  { %920 = vmatmul.mubr.bf16.gmra.mxu0 %v2409_v29  ;;  %1112 = vmatmul.mubr.bf16.gmra.mxu1 %v2410_v30  ;;  %v2495_v29 = vld [vmem:[%s3447_s0 + $0x1b0] ss:$12 sps:$4 sm:$0xff]   ;;  %v2496_v30 = vld [vmem:[%s3447_s0 + $0x200] ss:$12 sps:$4 sm:$0xff]  }
  0x52   :  { %927 = vmatprep.mubr.bf16.mxu0 %v2411_v31  ;;  %1119 = vmatprep.mubr.bf16.mxu1 %v2413_v32  ;;  %v2497_v31 = vld [vmem:[%s3447_s0 + $0x1cc] ss:$12 sps:$4 sm:$0xff]  }
  0x53   :  { %v2499_v32 = vld [vmem:[%s3447_s0 + $0x218] ss:$12 sps:$4 sm:$0xff]  }
  0x59   :  { %928 = vmatmul.mubr.bf16.gmra.mxu0 %v2415_v33  ;;  %1120 = vmatmul.mubr.bf16.gmra.mxu1 %v2416_v34  ;;  %v2500_v33 = vld [vmem:[%s3447_s0 + $0x1c8] ss:$12 sps:$4 sm:$0xff]   ;;  %v2501_v34 = vld [vmem:[%s3447_s0 + $0x230] ss:$12 sps:$4 sm:$0xff]  }
  0x5a   :  { %935 = vmatprep.mubr.bf16.mxu0 %v2417_v35  ;;  %1127 = vmatprep.mubr.bf16.mxu1 %v2419_v36  ;;  %v2502_v35 = vld [vmem:[%s3447_s0 + $0x1e4] ss:$12 sps:$4 sm:$0xff]   ;;  %v2504_v36 = vld [vmem:[%s3447_s0 + $0x248] ss:$12 sps:$4 sm:$0xff]  }
  0x61   :  { %936 = vmatmul.mubr.bf16.gmra.mxu0 %v2421_v37  ;;  %1128 = vmatmul.mubr.bf16.gmra.mxu1 %v2422_v38  ;;  %v2505_v37 = vld [vmem:[%s3447_s0 + $0x1e0] ss:$12 sps:$4 sm:$0xff]  }
  0x62   :  { %943 = vmatprep.mubr.bf16.mxu0 %v2424_v39  ;;  %1135 = vmatprep.mubr.bf16.mxu1 %v2426_v40  ;;  %v2506_v38 = vld [vmem:[%s3447_s0 + $0x260] ss:$12 sps:$4 sm:$0xff]   ;;  %v2507_v39 = vld [vmem:[%s3447_s0 + $0x1fc] ss:$12 sps:$4 sm:$0xff]   ;;  %v2509_v40 = vld [vmem:[%s3447_s0 + $0x278] ss:$12 sps:$4 sm:$0xff]  }
  0x69   :  { %944 = vmatmul.mubr.bf16.gmra.mxu0 %v2428_v41  ;;  %1136 = vmatmul.mubr.bf16.gmra.mxu1 %v2429_v42  ;;  %v2510_v41 = vld [vmem:[%s3447_s0 + $0x1f8] ss:$12 sps:$4 sm:$0xff]   ;;  %v2511_v42 = vld [vmem:[%s3447_s0 + $0x290] ss:$12 sps:$4 sm:$0xff]  }
  0x6a   :  { %951 = vmatprep.mubr.bf16.mxu0 %v2430_v43  ;;  %1143 = vmatprep.mubr.bf16.mxu1 %v2432_v44  ;;  %v2512_v43 = vld [vmem:[%s3447_s0 + $0x214] ss:$12 sps:$4 sm:$0xff]  }
  0x6b   :  { %v2514_v44 = vld [vmem:[%s3447_s0 + $0x2a8] ss:$12 sps:$4 sm:$0xff]  }
  0x71   :  { %952 = vmatmul.mubr.bf16.gmra.mxu0 %v2434_v45  ;;  %1144 = vmatmul.mubr.bf16.gmra.mxu1 %v2435_v46  ;;  %v2515_v45 = vld [vmem:[%s3447_s0 + $0x210] ss:$12 sps:$4 sm:$0xff]   ;;  %v2516_v46 = vld [vmem:[%s3447_s0 + $0x2c0] ss:$12 sps:$4 sm:$0xff]  }
  0x72   :  { %959 = vmatprep.mubr.bf16.mxu0 %v2436_v47  ;;  %1151 = vmatprep.mubr.bf16.mxu1 %v2438_v48  ;;  %v2517_v47 = vld [vmem:[%s3447_s0 + $0x22c] ss:$12 sps:$4 sm:$0xff]  }
  0x73   :  { %v2519_v48 = vld [vmem:[%s3447_s0 + $0x2d8] ss:$12 sps:$4 sm:$0xff]  }
  0x79   :  { %960 = vmatmul.mubr.bf16.gmra.mxu0 %v2440_v49  ;;  %1152 = vmatmul.mubr.bf16.gmra.mxu1 %v2441_v50  ;;  %v2520_v49 = vld [vmem:[%s3447_s0 + $0x228] ss:$12 sps:$4 sm:$0xff]   ;;  %v2521_v50 = vld [vmem:[%s3447_s0 + $0x2f0] ss:$12 sps:$4 sm:$0xff]  }
  0x7a   :  { %967 = vmatprep.mubr.bf16.mxu0 %v2442_v51  ;;  %2279 = vmatprep.mubr.msk.bf16.mxu1 %vm774_vm0, %v2444_v52 }
  0x81   :  { %968 = vmatmul.mubr.bf16.gmra.mxu0 %v2445_v53  ;;  %2280 = vmatmul.mubr.msk.bf16.vlgmr.msra.gmra.mxu1 %vm774_vm0, %v2446_v54 }
  0x82   :  { %975 = vmatprep.mubr.bf16.mxu0 %v2447_v55  ;;  %2283 = vmatprep.mubr.msk.bf16.mxu1 %vm774_vm0, %v2449_v56 }
  0x89   :  { %976 = vmatmul.mubr.bf16.gmra.mxu0 %v2450_v57  ;;  %2284 = vmatmul.mubr.msk.bf16.gmra.mxu1 %vm774_vm0, %v2451_v58 }
  0x8a   :  { %983 = vmatprep.mubr.bf16.mxu0 %v2452_v59  ;;  %2287 = vmatprep.mubr.msk.bf16.mxu1 %vm774_vm0, %v2454_v60 }
  0x91   :  { %984 = vmatmul.mubr.bf16.gmra.mxu0 %v2455_v61  ;;  %2288 = vmatmul.mubr.msk.bf16.gmra.mxu1 %vm774_vm0, %v2456_v62 }
  0x92   :  { %991 = vmatprep.mubr.bf16.mxu0 %v2457_v63  ;;  %2291 = vmatprep.mubr.msk.bf16.mxu1 %vm774_vm0, %v2459_v0 }
  0x99   :  { %992 = vmatmul.mubr.bf16.gmra.mxu0 %v2460_v1  ;;  %2292 = vmatmul.mubr.msk.bf16.gmra.mxu1 %vm774_vm0, %v2461_v2 }
  0x9a   :  { %999 = vmatprep.mubr.bf16.mxu0 %v2462_v3  ;;  %2295 = vmatprep.mubr.msk.bf16.mxu1 %vm774_vm0, %v2464_v4 }
  0xa1   :  { %1000 = vmatmul.mubr.bf16.gmra.mxu0 %v2465_v5  ;;  %2296 = vmatmul.mubr.msk.bf16.gmra.mxu1 %vm774_vm0, %v2466_v6 }
  0xa2   :  { %1007 = vmatprep.mubr.bf16.mxu0 %v2467_v7  ;;  %2299 = vmatprep.mubr.msk.bf16.mxu1 %vm774_vm0, %v2469_v8 }
  0xa9   :  { %1008 = vmatmul.mubr.bf16.gmra.mxu0 %v2470_v9  ;;  %2300 = vmatmul.mubr.msk.bf16.gmra.mxu1 %vm774_vm0, %v2471_v10 }
  0xaa   :  { %1015 = vmatprep.mubr.bf16.mxu0 %v2472_v11  ;;  %2303 = vmatprep.mubr.msk.bf16.mxu1 %vm774_vm0, %v2474_v12 }
  0xb1   :  { %1016 = vmatmul.mubr.bf16.gmra.mxu0 %v2475_v13  ;;  %2304 = vmatmul.mubr.msk.bf16.gmra.mxu1 %vm774_vm0, %v2476_v14 }
  0xb2   :  { %1023 = vmatprep.mubr.bf16.mxu0 %v2477_v15  ;;  %2307 = vmatprep.mubr.msk.bf16.mxu1 %vm774_vm0, %v2479_v16 }
  0xb9   :  { %1024 = vmatmul.mubr.bf16.gmra.mxu0 %v2480_v17  ;;  %2308 = vmatmul.mubr.msk.bf16.gmra.mxu1 %vm774_vm0, %v2481_v18 }
  0xba   :  { %1031 = vmatprep.mubr.bf16.mxu0 %v2482_v19  ;;  %2311 = vmatprep.mubr.msk.bf16.mxu1 %vm774_vm0, %v2484_v20 }
  0xc1   :  { %1032 = vmatmul.mubr.bf16.gmra.mxu0 %v2485_v21  ;;  %2312 = vmatmul.mubr.msk.bf16.gmra.mxu1 %vm774_vm0, %v2486_v22 }
  0xc2   :  { %1039 = vmatprep.mubr.bf16.mxu0 %v2487_v23  ;;  %2315 = vmatprep.mubr.msk.bf16.mxu1 %vm774_vm0, %v2489_v24 }
  0xc9   :  { %1040 = vmatmul.mubr.bf16.gmra.mxu0 %v2490_v25  ;;  %2316 = vmatmul.mubr.msk.bf16.gmra.mxu1 %vm774_vm0, %v2491_v26 }
  0xca   :  { %1047 = vmatprep.mubr.bf16.mxu0 %v2492_v27  ;;  %2319 = vmatprep.mubr.msk.bf16.mxu1 %vm774_vm0, %v2494_v28 }
  0xd1   :  { %1048 = vmatmul.mubr.bf16.gmra.mxu0 %v2495_v29  ;;  %2320 = vmatmul.mubr.msk.bf16.gmra.mxu1 %vm774_vm0, %v2496_v30 }
  0xd2   :  { %1055 = vmatprep.mubr.bf16.mxu0 %v2497_v31  ;;  %2323 = vmatprep.mubr.msk.bf16.mxu1 %vm774_vm0, %v2499_v32 }
  0xd9   :  { %1056 = vmatmul.mubr.bf16.gmra.mxu0 %v2500_v33  ;;  %2324 = vmatmul.mubr.msk.bf16.gmra.mxu1 %vm774_vm0, %v2501_v34 }
  0xda   :  { %1063 = vmatprep.mubr.bf16.mxu0 %v2502_v35  ;;  %2327 = vmatprep.mubr.msk.bf16.mxu1 %vm774_vm0, %v2504_v36 }
  0xe1   :  { %1064 = vmatmul.mubr.bf16.gmra.mxu0 %v2505_v37  ;;  %2328 = vmatmul.mubr.msk.bf16.gmra.mxu1 %vm774_vm0, %v2506_v38 }
  0xe2   :  { %1071 = vmatprep.mubr.bf16.mxu0 %v2507_v39  ;;  %2331 = vmatprep.mubr.msk.bf16.mxu1 %vm774_vm0, %v2509_v40 }
  0xe9   :  { %1072 = vmatmul.mubr.bf16.gmra.mxu0 %v2510_v41  ;;  %2332 = vmatmul.mubr.msk.bf16.gmra.mxu1 %vm774_vm0, %v2511_v42 }
  0xea   :  { %1079 = vmatprep.mubr.bf16.mxu0 %v2512_v43  ;;  %2335 = vmatprep.mubr.msk.bf16.mxu1 %vm774_vm0, %v2514_v44 }
  0xf1   :  { %1080 = vmatmul.mubr.bf16.gmra.mxu0 %v2515_v45  ;;  %2336 = vmatmul.mubr.msk.bf16.gmra.mxu1 %vm774_vm0, %v2516_v46 }
  0xf2   :  { %1087 = vmatprep.mubr.bf16.mxu0 %v2517_v47  ;;  %2339 = vmatprep.mubr.msk.bf16.mxu1 %vm774_vm0, %v2519_v48 }
  0xf9   :  { %1088 = vmatmul.mubr.bf16.gmra.mxu0 %v2520_v49  ;;  %2340 = vmatmul.mubr.msk.bf16.gmra.mxu1 %vm774_vm0, %v2521_v50  ;;  %v3015_v49 = vld [vmem:[%s3448_s2] ss:$0 sm:$0xff] }
 0x101   :  { %v2950_v51 = vpop.f32.mrf.mxu0  ;;  %v2952_v52 = vpop.f32.mrf.mxu1 }
 0x103   :  { %v907_v53 = vpop.f32.mrf.mxu0  ;;  %v1099_v54 = vpop.f32.mrf.mxu1 }
 0x105   :  { %v2954_v55 = vpop.f32.mrf.mxu0  ;;  %v2956_v56 = vpop.f32.mrf.mxu1 }
 0x107   :  { %v910_v57 = vpop.f32.mrf.mxu0  ;;  %v1102_v58 = vpop.f32.mrf.mxu1 }
 0x109   :  { %v913_v59 = vpop.f32.mrf.mxu0  ;;  %v2958_v60 = vpop.f32.mrf.mxu1 }
 0x10a   :  { %v914_v54 = vadd.f32 %v3015_v49, %v913_v59  ;;  %v909_v59 = vadd.f32 %v3015_v49, %v2954_v55 }
 0x10b   :  { %v915_v61 = vpop.f32.mrf.mxu0  ;;  %v1107_v62 = vpop.f32.mrf.mxu1 }
 0x10c   :  { %v906_v61 = vadd.f32 %v3015_v49, %v2950_v51 }
 0x10d   :  { %v2960_v63 = vpop.f32.mrf.mxu0  ;;  %v2962_v0 = vpop.f32.mrf.mxu1 }
 0x10f   :  { %v918_v1 = vpop.f32.mrf.mxu0  ;;  %v1110_v2 = vpop.f32.mrf.mxu1 }
 0x111   :  { %v2964_v3 = vpop.f32.mrf.mxu0  ;;  %v2966_v4 = vpop.f32.mrf.mxu1 }
 0x113   :  { %v923_v5 = vpop.f32.mrf.mxu0  ;;  %v1115_v6 = vpop.f32.mrf.mxu1 }
 0x115   :  { %v2968_v7 = vpop.f32.mrf.mxu0  ;;  %v2970_v8 = vpop.f32.mrf.mxu1 }
 0x117   :  { %v926_v9 = vpop.f32.mrf.mxu0  ;;  %v1118_v10 = vpop.f32.mrf.mxu1 }
 0x118   :  { %v917_v9 = vadd.f32 %v3015_v49, %v2960_v63 }
 0x119   :  { %v2972_v11 = vpop.f32.mrf.mxu0  ;;  %v2974_v12 = vpop.f32.mrf.mxu1 }
 0x11b   :  { %v931_v13 = vpop.f32.mrf.mxu0  ;;  %v1123_v14 = vpop.f32.mrf.mxu1 }
 0x11d   :  { %v2976_v15 = vpop.f32.mrf.mxu0  ;;  %v2978_v16 = vpop.f32.mrf.mxu1 }
 0x11f   :  { %v934_v17 = vpop.f32.mrf.mxu0  ;;  %v1126_v18 = vpop.f32.mrf.mxu1 }
 0x121   :  { %v2980_v19 = vpop.f32.mrf.mxu0  ;;  %v2982_v20 = vpop.f32.mrf.mxu1 }
 0x123   :  { %v939_v21 = vpop.f32.mrf.mxu0  ;;  %v1131_v22 = vpop.f32.mrf.mxu1 }
 0x125   :  { %v2984_v23 = vpop.f32.mrf.mxu0  ;;  %v2986_v24 = vpop.f32.mrf.mxu1 }
 0x127   :  { %v942_v25 = vpop.f32.mrf.mxu0  ;;  %v1134_v26 = vpop.f32.mrf.mxu1 }
 0x128   :  { %v930_v25 = vadd.f32 %v3015_v49, %v2972_v11  ;;  %v933_v11 = vadd.f32 %v3015_v49, %v2976_v15  ;;  %v925_v15 = vadd.f32 %v3015_v49, %v2968_v7 }
 0x129   :  { %v2988_v27 = vpop.f32.mrf.mxu0  ;;  %v2990_v28 = vpop.f32.mrf.mxu1 }
 0x12b   :  { %v947_v29 = vpop.f32.mrf.mxu0  ;;  %v1139_v30 = vpop.f32.mrf.mxu1 }
 0x12d   :  { %v2992_v31 = vpop.f32.mrf.mxu0  ;;  %v2994_v32 = vpop.f32.mrf.mxu1 }
 0x12f   :  { %v950_v33 = vpop.f32.mrf.mxu0  ;;  %v1142_v34 = vpop.f32.mrf.mxu1 }
 0x131   :  { %v2996_v35 = vpop.f32.mrf.mxu0  ;;  %v2998_v36 = vpop.f32.mrf.mxu1 }
 0x133   :  { %v955_v37 = vpop.f32.mrf.mxu0  ;;  %v1147_v38 = vpop.f32.mrf.mxu1 }
 0x134   :  { %v922_v38 = vadd.f32 %v3015_v49, %v2964_v3 }
 0x135   :  { %v3000_v39 = vpop.f32.mrf.mxu0  ;;  %v3002_v40 = vpop.f32.mrf.mxu1 }
 0x137   :  { %v958_v41 = vpop.f32.mrf.mxu0  ;;  %v1150_v42 = vpop.f32.mrf.mxu1 }
 0x139   :  { %v3004_v43 = vpop.f32.mrf.mxu0  ;;  %v3006_v44 = vpop.f32.mrf.mxu1 }
 0x13b   :  { %v963_v45 = vpop.f32.mrf.mxu0  ;;  %v1155_v46 = vpop.f32.mrf.mxu1 }
 0x13d   :  { %v3008_v47 = vpop.f32.mrf.mxu0  ;;  %v3010_v48 = vpop.f32.mrf.mxu1 }
 0x13f   :  { %v966_v50 = vpop.f32.mrf.mxu0  ;;  %v1158_v53 = vpop.f32.mrf.mxu1 }
 0x141   :  { %v3018_v57 = vpop.f32.mrf.mxu0  ;;  %v2281_v58 = vpop.f32.mrf.mxu1 }
 0x142   :  { %v1203_v62 = vadd.f32 %v2281_v58, %v914_v54 }
 0x143   :  { %v971_v1 = vpop.f32.mrf.mxu0  ;;  %v1194_v2 = vpop.f32.mrf.mxu1 }
 0x144   :  { %vm1451_vm1 = vcmp.ge.f32.partialorder %v1203_v62, 0.0  ;;  %v1515_v5 = vmul.f32 0.2, %v1203_v62  ;;  %v1195_v6 = vadd.f32 %v1194_v2, %v906_v61 }
 0x145   :  { %v3024_v10 = vpop.f32.mrf.mxu0  ;;  %v2282_v13 = vpop.f32.mrf.mxu1 }
 0x146   :  { %v1579_v14 = vsel %vm1451_vm1, %v1203_v62, %v1515_v5  ;;  %vm1449_vm3 = vcmp.ge.f32.partialorder %v1195_v6, 0.0  ;;  %v1513_v17 = vmul.f32 0.2, %v1195_v6  ;;  %v1206_v18 = vadd.f32 %v2282_v13, %v917_v9 }
 0x147   :  { %v2179_v51 = vpack.c.bf16 %v1579_v14, %v1579_v14  ;;  %v974_v21 = vpop.f32.mrf.mxu0  ;;  %v1197_v22 = vpop.f32.mrf.mxu1  ;;  %v946_v14 = vadd.f32 %v3015_v49, %v2988_v27  ;;  %v949_v27 = vadd.f32 %v3015_v49, %v2992_v31 }
 0x148   :  { %v1577_v26 = vsel %vm1449_vm3, %v1195_v6, %v1513_v17  ;;  %v1198_v29 = vadd.f32 %v1197_v22, %v909_v59  ;;  %vm1452_vm4 = vcmp.ge.f32.partialorder %v1206_v18, 0.0  ;;  %v1516_v55 = vmul.f32 0.2, %v1206_v18 }
 0x149   :  { %1900 = vst.msk [vmem:[%s3449_s3 + $0x8] sm:$0xf] %vm1897_vm2, %v2179_v51  ;;  %v2177_v63 = vpack.c.bf16 %v1577_v26, %v1577_v26  ;;  %v3034_v30 = vpop.f32.mrf.mxu0  ;;  %v2285_v33 = vpop.f32.mrf.mxu1  ;;  %v938_v59 = vadd.f32 %v3015_v49, %v2980_v19 }
 0x14a   :  { %vm1450_vm5 = vcmp.ge.f32.partialorder %v1198_v29, 0.0  ;;  %v1514_v34 = vmul.f32 0.2, %v1198_v29  ;;  %v1219_v37 = vadd.f32 %v2285_v33, %v930_v25  ;;  %v1580_v41 = vsel %vm1452_vm4, %v1206_v18, %v1516_v55 }
 0x14b   :  { %1898 = vst.msk [vmem:[%s3449_s3] sm:$0xf] %vm1897_vm2, %v2177_v63  ;;  %v979_v42 = vpop.f32.mrf.mxu0  ;;  %v1210_v45 = vpop.f32.mrf.mxu1  ;;  %v2180_v46 = vpack.c.bf16 %v1580_v41, %v1580_v41 }
 0x14c   :  { %v1578_v50 = vsel %vm1450_vm5, %v1198_v29, %v1514_v34  ;;  %vm1455_vm6 = vcmp.ge.f32.partialorder %v1219_v37, 0.0  ;;  %v1519_v53 = vmul.f32 0.2, %v1219_v37  ;;  %v1211_v58 = vadd.f32 %v1210_v45, %v922_v38 }
 0x14d   :  { %v2178_v54 = vpack.c.bf16 %v1578_v50, %v1578_v50  ;;  %v3044_v61 = vpop.f32.mrf.mxu0  ;;  %v2286_v3 = vpop.f32.mrf.mxu1  ;;  %1901 = vst.msk [vmem:[%s3449_s3 + $0xc] sm:$0xf] %vm1897_vm2, %v2180_v46  ;;  %v941_v42 = vadd.f32 %v3015_v49, %v2984_v23  ;;  %v962_v45 = vadd.f32 %v3015_v49, %v3004_v43  ;;  %v954_v43 = vadd.f32 %v3015_v49, %v2996_v35 }
 0x14e   :  { %v1583_v62 = vsel %vm1455_vm6, %v1219_v37, %v1519_v53  ;;  %v1222_v1 = vadd.f32 %v2286_v3, %v933_v11  ;;  %vm1453_vm7 = vcmp.ge.f32.partialorder %v1211_v58, 0.0  ;;  %v1517_v5 = vmul.f32 0.2, %v1211_v58 }
 0x14f   :  { %1899 = vst.msk [vmem:[%s3449_s3 + $0x4] sm:$0xf] %vm1897_vm2, %v2178_v54  ;;  %v2183_v2 = vpack.c.bf16 %v1583_v62, %v1583_v62  ;;  %v982_v6 = vpop.f32.mrf.mxu0  ;;  %v1213_v9 = vpop.f32.mrf.mxu1 }
 0x150   :  { %vm1456_vm8 = vcmp.ge.f32.partialorder %v1222_v1, 0.0  ;;  %v1520_v13 = vmul.f32 0.2, %v1222_v1  ;;  %v1214_v7 = vadd.f32 %v1213_v9, %v925_v15  ;;  %v1581_v17 = vsel %vm1453_vm7, %v1211_v58, %v1517_v5 }
 0x151   :  { %1904 = vst.msk [vmem:[%s3449_s3 + $0x18] sm:$0xf] %vm1897_vm2, %v2183_v2  ;;  %v3064_v51 = vpop.f32.mrf.mxu0  ;;  %v2289_v18 = vpop.f32.mrf.mxu1  ;;  %v2181_v21 = vpack.c.bf16 %v1581_v17, %v1581_v17  ;;  %v965_v17 = vadd.f32 %v3015_v49, %v3008_v47  ;;  %v978_v47 = vadd.f32 %v3015_v49, %v3034_v30 }
 0x152   :  { %v1584_v22 = vsel %vm1456_vm8, %v1222_v1, %v1520_v13  ;;  %vm1454_vm9 = vcmp.ge.f32.partialorder %v1214_v7, 0.0  ;;  %v1518_v25 = vmul.f32 0.2, %v1214_v7  ;;  %v1235_v29 = vadd.f32 %v2289_v18, %v946_v14 }
 0x153   :  { %v2184_v26 = vpack.c.bf16 %v1584_v22, %v1584_v22  ;;  %v987_v63 = vpop.f32.mrf.mxu0  ;;  %v1226_v19 = vpop.f32.mrf.mxu1  ;;  %1902 = vst.msk [vmem:[%s3449_s3 + $0x10] sm:$0xf] %vm1897_vm2, %v2181_v21  ;;  %v957_v14 = vadd.f32 %v3015_v49, %v3000_v39 }
 0x154   :  { %v1582_v55 = vsel %vm1454_vm9, %v1214_v7, %v1518_v25  ;;  %v1227_v33 = vadd.f32 %v1226_v19, %v938_v59  ;;  %vm1459_vm10 = vcmp.ge.f32.partialorder %v1235_v29, 0.0  ;;  %v1523_v37 = vmul.f32 0.2, %v1235_v29 }
 0x155   :  { %1905 = vst.msk [vmem:[%s3449_s3 + $0x1c] sm:$0xf] %vm1897_vm2, %v2184_v26  ;;  %v2182_v34 = vpack.c.bf16 %v1582_v55, %v1582_v55  ;;  %v3076_v38 = vpop.f32.mrf.mxu0  ;;  %v2290_v11 = vpop.f32.mrf.mxu1 }
 0x156   :  { %vm1457_vm11 = vcmp.ge.f32.partialorder %v1227_v33, 0.0  ;;  %v1521_v31 = vmul.f32 0.2, %v1227_v33  ;;  %v1238_v41 = vadd.f32 %v2290_v11, %v949_v27  ;;  %v1587_v46 = vsel %vm1459_vm10, %v1235_v29, %v1523_v37 }
 0x157   :  { %1903 = vst.msk [vmem:[%s3449_s3 + $0x14] sm:$0xf] %vm1897_vm2, %v2182_v34  ;;  %v990_v50 = vpop.f32.mrf.mxu0  ;;  %v1229_v53 = vpop.f32.mrf.mxu1  ;;  %v2187_v54 = vpack.c.bf16 %v1587_v46, %v1587_v46 }
 0x158   :  { %v1585_v58 = vsel %vm1457_vm11, %v1227_v33, %v1521_v31  ;;  %vm1460_vm12 = vcmp.ge.f32.partialorder %v1238_v41, 0.0  ;;  %v1524_v3 = vmul.f32 0.2, %v1238_v41  ;;  %v1230_v62 = vadd.f32 %v1229_v53, %v941_v42 }
 0x159   :  { %v2185_v15 = vpack.c.bf16 %v1585_v58, %v1585_v58  ;;  %v3086_v1 = vpop.f32.mrf.mxu0  ;;  %v2293_v23 = vpop.f32.mrf.mxu1  ;;  %1908 = vst.msk [vmem:[%s3449_s3 + $0x28] sm:$0xf] %vm1897_vm2, %v2187_v54  ;;  %v970_v42 = vadd.f32 %v3015_v49, %v3018_v57 }
 0x15a   :  { %v1588_v2 = vsel %vm1460_vm12, %v1238_v41, %v1524_v3  ;;  %v1251_v5 = vadd.f32 %v2293_v23, %v962_v45  ;;  %vm1458_vm13 = vcmp.ge.f32.partialorder %v1230_v62, 0.0  ;;  %v1522_v9 = vmul.f32 0.2, %v1230_v62 }
 0x15b   :  { %1906 = vst.msk [vmem:[%s3449_s3 + $0x20] sm:$0xf] %vm1897_vm2, %v2185_v15  ;;  %v2188_v6 = vpack.c.bf16 %v1588_v2, %v1588_v2  ;;  %v995_v13 = vpop.f32.mrf.mxu0  ;;  %v1242_v7 = vpop.f32.mrf.mxu1  ;;  %v981_v45 = vadd.f32 %v3015_v49, %v3044_v61  ;;  %v973_v61 = vadd.f32 %v3015_v49, %v3024_v10 }
 0x15c   :  { %vm1463_vm14 = vcmp.ge.f32.partialorder %v1251_v5, 0.0  ;;  %v1527_v59 = vmul.f32 0.2, %v1251_v5  ;;  %v1243_v35 = vadd.f32 %v1242_v7, %v954_v43  ;;  %v1586_v18 = vsel %vm1458_vm13, %v1230_v62, %v1522_v9 }
 0x15d   :  { %1909 = vst.msk [vmem:[%s3449_s3 + $0x2c] sm:$0xf] %vm1897_vm2, %v2188_v6  ;;  %v3106_v21 = vpop.f32.mrf.mxu0  ;;  %v2294_v22 = vpop.f32.mrf.mxu1  ;;  %v2186_v25 = vpack.c.bf16 %v1586_v18, %v1586_v18 }
 0x15e   :  { %v1591_v26 = vsel %vm1463_vm14, %v1251_v5, %v1527_v59  ;;  %vm1461_vm15 = vcmp.ge.f32.partialorder %v1243_v35, 0.0  ;;  %v1525_v29 = vmul.f32 0.2, %v1243_v35  ;;  %v1254_v19 = vadd.f32 %v2294_v22, %v965_v17 }
 0x15f   :  { %v2191_v63 = vpack.c.bf16 %v1591_v26, %v1591_v26  ;;  %v998_v27 = vpop.f32.mrf.mxu0  ;;  %v1245_v39 = vpop.f32.mrf.mxu1  ;;  %1907 = vst.msk [vmem:[%s3449_s3 + $0x24] sm:$0xf] %vm1897_vm2, %v2186_v25  ;;  %v986_v59 = vadd.f32 %v3015_v49, %v3064_v51  ;;  %v997_v51 = vadd.f32 %v3015_v49, %v3106_v21 }
 0x160   :  { %v1589_v55 = vsel %vm1461_vm15, %v1243_v35, %v1525_v29  ;;  %v1246_v33 = vadd.f32 %v1245_v39, %v957_v14  ;;  %vm1464_vm0 = vcmp.ge.f32.partialorder %v1254_v19, 0.0  ;;  %v1528_v37 = vmul.f32 0.2, %v1254_v19 }
 0x161   :  { %1912 = vst.msk [vmem:[%s3449_s3 + $0x38] sm:$0xf] %vm1897_vm2, %v2191_v63  ;;  %v2189_v34 = vpack.c.bf16 %v1589_v55, %v1589_v55  ;;  %v3118_v11 = vpop.f32.mrf.mxu0  ;;  %v2297_v31 = vpop.f32.mrf.mxu1  ;;  %v994_v35 = vadd.f32 %v3015_v49, %v3086_v1 }
 0x162   :  { %vm1462_vm1 = vcmp.ge.f32.partialorder %v1246_v33, 0.0  ;;  %v1526_v30 = vmul.f32 0.2, %v1246_v33  ;;  %v1267_v41 = vadd.f32 %v2297_v31, %v978_v47  ;;  %v1592_v46 = vsel %vm1464_vm0, %v1254_v19, %v1528_v37 }
 0x163   :  { %1910 = vst.msk [vmem:[%s3449_s3 + $0x30] sm:$0xf] %vm1897_vm2, %v2189_v34  ;;  %v1003_v50 = vpop.f32.mrf.mxu0  ;;  %v1258_v53 = vpop.f32.mrf.mxu1  ;;  %v2192_v54 = vpack.c.bf16 %v1592_v46, %v1592_v46  ;;  %v989_v31 = vadd.f32 %v3015_v49, %v3076_v38  ;;  %v1002_v38 = vadd.f32 %v3015_v49, %v3118_v11 }
 0x164   :  { %v1590_v58 = vsel %vm1462_vm1, %v1246_v33, %v1526_v30  ;;  %vm1467_vm3 = vcmp.ge.f32.partialorder %v1267_v41, 0.0  ;;  %v1531_v3 = vmul.f32 0.2, %v1267_v41  ;;  %v1259_v62 = vadd.f32 %v1258_v53, %v970_v42 }
 0x165   :  { %v2190_v15 = vpack.c.bf16 %v1590_v58, %v1590_v58  ;;  %v3128_v23 = vpop.f32.mrf.mxu0  ;;  %v2298_v57 = vpop.f32.mrf.mxu1  ;;  %1913 = vst.msk [vmem:[%s3449_s3 + $0x3c] sm:$0xf] %vm1897_vm2, %v2192_v54 }
 0x166   :  { %v1595_v43 = vsel %vm1467_vm3, %v1267_v41, %v1531_v3  ;;  %v1270_v2 = vadd.f32 %v2298_v57, %v981_v45  ;;  %vm1465_vm4 = vcmp.ge.f32.partialorder %v1259_v62, 0.0  ;;  %v1529_v6 = vmul.f32 0.2, %v1259_v62 }
 0x167   :  { %1911 = vst.msk [vmem:[%s3449_s3 + $0x34] sm:$0xf] %vm1897_vm2, %v2190_v15  ;;  %v2195_v5 = vpack.c.bf16 %v1595_v43, %v1595_v43  ;;  %v1006_v9 = vpop.f32.mrf.mxu0  ;;  %v1261_v13 = vpop.f32.mrf.mxu1 }
 0x168   :  { %vm1468_vm5 = vcmp.ge.f32.partialorder %v1270_v2, 0.0  ;;  %v1532_v7 = vmul.f32 0.2, %v1270_v2  ;;  %v1262_v10 = vadd.f32 %v1261_v13, %v973_v61  ;;  %v1593_v14 = vsel %vm1465_vm4, %v1259_v62, %v1529_v6 }
 0x169   :  { %1916 = vst.msk [vmem:[%s3449_s3 + $0x48] sm:$0xf] %vm1897_vm2, %v2195_v5  ;;  %v1009_v17 = vpop.f32.mrf.mxu0  ;;  %v2301_v18 = vpop.f32.mrf.mxu1  ;;  %v2193_v22 = vpack.c.bf16 %v1593_v14, %v1593_v14  ;;  %v1005_v9 = vadd.f32 %v3015_v49, %v3128_v23 }
 0x16a   :  { %v1596_v25 = vsel %vm1468_vm5, %v1270_v2, %v1532_v7  ;;  %vm1466_vm6 = vcmp.ge.f32.partialorder %v1262_v10, 0.0  ;;  %v1530_v26 = vmul.f32 0.2, %v1262_v10  ;;  %v1283_v63 = vadd.f32 %v2301_v18, %v994_v35 }
 0x16b   :  { %v2196_v29 = vpack.c.bf16 %v1596_v25, %v1596_v25  ;;  %v1011_v19 = vpop.f32.mrf.mxu0  ;;  %v1274_v27 = vpop.f32.mrf.mxu1  ;;  %1914 = vst.msk [vmem:[%s3449_s3 + $0x40] sm:$0xf] %vm1897_vm2, %v2193_v22  ;;  %v1010_v30 = vadd.f32 %v3015_v49, %v1009_v17 }
 0x16c   :  { %v1594_v1 = vsel %vm1466_vm6, %v1262_v10, %v1530_v26  ;;  %v1275_v39 = vadd.f32 %v1274_v27, %v986_v59  ;;  %vm1471_vm7 = vcmp.ge.f32.partialorder %v1283_v63, 0.0  ;;  %v1535_v55 = vmul.f32 0.2, %v1283_v63 }
 0x16d   :  { %1917 = vst.msk [vmem:[%s3449_s3 + $0x4c] sm:$0xf] %vm1897_vm2, %v2196_v29  ;;  %v2194_v47 = vpack.c.bf16 %v1594_v1, %v1594_v1  ;;  %v1012_v33 = vpop.f32.mrf.mxu0  ;;  %v2302_v34 = vpop.f32.mrf.mxu1 }
 0x16e   :  { %vm1469_vm8 = vcmp.ge.f32.partialorder %v1275_v39, 0.0  ;;  %v1533_v37 = vmul.f32 0.2, %v1275_v39  ;;  %v1286_v21 = vadd.f32 %v2302_v34, %v997_v51  ;;  %v1599_v41 = vsel %vm1471_vm7, %v1283_v63, %v1535_v55 }
 0x16f   :  { %1915 = vst.msk [vmem:[%s3449_s3 + $0x44] sm:$0xf] %vm1897_vm2, %v2194_v47  ;;  %v1014_v42 = vpop.f32.mrf.mxu0  ;;  %v1277_v45 = vpop.f32.mrf.mxu1  ;;  %v2199_v46 = vpack.c.bf16 %v1599_v41, %v1599_v41  ;;  %v1013_v13 = vadd.f32 %v3015_v49, %v1012_v33 }
 0x170   :  { %v1597_v50 = vsel %vm1469_vm8, %v1275_v39, %v1533_v37  ;;  %vm1472_vm9 = vcmp.ge.f32.partialorder %v1286_v21, 0.0  ;;  %v1536_v53 = vmul.f32 0.2, %v1286_v21  ;;  %v1278_v58 = vadd.f32 %v1277_v45, %v989_v31 }
 0x171   :  { %v2197_v54 = vpack.c.bf16 %v1597_v50, %v1597_v50  ;;  %v1017_v3 = vpop.f32.mrf.mxu0  ;;  %v2305_v15 = vpop.f32.mrf.mxu1  ;;  %1920 = vst.msk [vmem:[%s3449_s3 + $0x58] sm:$0xf] %vm1897_vm2, %v2199_v46 }
 0x172   :  { %v1600_v62 = vsel %vm1472_vm9, %v1286_v21, %v1536_v53  ;;  %v1299_v57 = vadd.f32 %v2305_v15, %v1010_v30  ;;  %vm1470_vm10 = vcmp.ge.f32.partialorder %v1278_v58, 0.0  ;;  %v1534_v43 = vmul.f32 0.2, %v1278_v58 }
 0x173   :  { %1918 = vst.msk [vmem:[%s3449_s3 + $0x50] sm:$0xf] %vm1897_vm2, %v2197_v54  ;;  %v2200_v61 = vpack.c.bf16 %v1600_v62, %v1600_v62  ;;  %v1019_v2 = vpop.f32.mrf.mxu0  ;;  %v1290_v5 = vpop.f32.mrf.mxu1  ;;  %v1018_v1 = vadd.f32 %v3015_v49, %v1017_v3 }
 0x174   :  { %vm1475_vm11 = vcmp.ge.f32.partialorder %v1299_v57, 0.0  ;;  %v1539_v6 = vmul.f32 0.2, %v1299_v57  ;;  %v1291_v11 = vadd.f32 %v1290_v5, %v1002_v38  ;;  %v1598_v7 = vsel %vm1470_vm10, %v1278_v58, %v1534_v43 }
 0x175   :  { %1921 = vst.msk [vmem:[%s3449_s3 + $0x5c] sm:$0xf] %vm1897_vm2, %v2200_v61  ;;  %v1020_v10 = vpop.f32.mrf.mxu0  ;;  %v2306_v59 = vpop.f32.mrf.mxu1  ;;  %v2198_v35 = vpack.c.bf16 %v1598_v7, %v1598_v7 }
 0x176   :  { %v1603_v14 = vsel %vm1475_vm11, %v1299_v57, %v1539_v6  ;;  %vm1473_vm12 = vcmp.ge.f32.partialorder %v1291_v11, 0.0  ;;  %v1537_v17 = vmul.f32 0.2, %v1291_v11  ;;  %v1302_v22 = vadd.f32 %v2306_v59, %v1013_v13 }
 0x177   :  { %v2203_v18 = vpack.c.bf16 %v1603_v14, %v1603_v14  ;;  %v1022_v25 = vpop.f32.mrf.mxu0  ;;  %v1293_v26 = vpop.f32.mrf.mxu1  ;;  %1919 = vst.msk [vmem:[%s3449_s3 + $0x54] sm:$0xf] %vm1897_vm2, %v2198_v35  ;;  %v1021_v41 = vadd.f32 %v3015_v49, %v1020_v10 }
 0x178   :  { %v1601_v23 = vsel %vm1473_vm12, %v1291_v11, %v1537_v17  ;;  %v1294_v29 = vadd.f32 %v1293_v26, %v1005_v9  ;;  %vm1476_vm13 = vcmp.ge.f32.partialorder %v1302_v22, 0.0  ;;  %v1540_v19 = vmul.f32 0.2, %v1302_v22 }
 0x179   :  { %1924 = vst.msk [vmem:[%s3449_s3 + $0x68] sm:$0xf] %vm1897_vm2, %v2203_v18  ;;  %v2201_v63 = vpack.c.bf16 %v1601_v23, %v1601_v23  ;;  %v1025_v27 = vpop.f32.mrf.mxu0  ;;  %v2309_v51 = vpop.f32.mrf.mxu1 }
 0x17a   :  { %vm1474_vm14 = vcmp.ge.f32.partialorder %v1294_v29, 0.0  ;;  %v1538_v39 = vmul.f32 0.2, %v1294_v29  ;;  %v1026_v47 = vadd.f32 %v3015_v49, %v1025_v27  ;;  %v1604_v55 = vsel %vm1476_vm13, %v1302_v22, %v1540_v19 }
 0x17b   :  { %1922 = vst.msk [vmem:[%s3449_s3 + $0x60] sm:$0xf] %vm1897_vm2, %v2201_v63  ;;  %v1027_v33 = vpop.f32.mrf.mxu0  ;;  %v1306_v34 = vpop.f32.mrf.mxu1  ;;  %v2204_v37 = vpack.c.bf16 %v1604_v55, %v1604_v55 }
 0x17c   :  { %v1602_v21 = vsel %vm1474_vm14, %v1294_v29, %v1538_v39  ;;  %v1315_v31 = vadd.f32 %v2309_v51, %v1026_v47  ;;  %v1307_v30 = vadd.f32 %v1306_v34, %v1018_v1 }
 0x17d   :  { %v2202_v42 = vpack.c.bf16 %v1602_v21, %v1602_v21  ;;  %v1028_v45 = vpop.f32.mrf.mxu0  ;;  %v2310_v46 = vpop.f32.mrf.mxu1  ;;  %1925 = vst.msk [vmem:[%s3449_s3 + $0x6c] sm:$0xf] %vm1897_vm2, %v2204_v37 }
 0x17e   :  { %vm1479_vm15 = vcmp.ge.f32.partialorder %v1315_v31, 0.0  ;;  %v1543_v50 = vmul.f32 0.2, %v1315_v31  ;;  %vm1477_vm0 = vcmp.ge.f32.partialorder %v1307_v30, 0.0  ;;  %v1541_v53 = vmul.f32 0.2, %v1307_v30 }
 0x17f   :  { %1923 = vst.msk [vmem:[%s3449_s3 + $0x64] sm:$0xf] %vm1897_vm2, %v2202_v42  ;;  %v1029_v54 = vadd.f32 %v3015_v49, %v1028_v45  ;;  %v1030_v58 = vpop.f32.mrf.mxu0  ;;  %v1309_v3 = vpop.f32.mrf.mxu1 }
 0x180   :  { %v1607_v15 = vsel %vm1479_vm15, %v1315_v31, %v1543_v50  ;;  %v1605_v38 = vsel %vm1477_vm0, %v1307_v30, %v1541_v53  ;;  %v1310_v62 = vadd.f32 %v1309_v3, %v1021_v41 }
 0x181   :  { %v2207_v57 = vpack.c.bf16 %v1607_v15, %v1607_v15  ;;  %v2205_v61 = vpack.c.bf16 %v1605_v38, %v1605_v38  ;;  %v1318_v43 = vadd.f32 %v2310_v46, %v1029_v54  ;;  %v1033_v2 = vpop.f32.mrf.mxu0  ;;  %v2313_v5 = vpop.f32.mrf.mxu1 }
 0x182   :  { %vm1478_vm1 = vcmp.ge.f32.partialorder %v1310_v62, 0.0  ;;  %v1542_v6 = vmul.f32 0.2, %v1310_v62  ;;  %v1034_v11 = vadd.f32 %v3015_v49, %v1033_v2 }
 0x183   :  { %1928 = vst.msk [vmem:[%s3449_s3 + $0x78] sm:$0xf] %vm1897_vm2, %v2207_v57  ;;  %1926 = vst.msk [vmem:[%s3449_s3 + $0x70] sm:$0xf] %vm1897_vm2, %v2205_v61  ;;  %vm1480_vm3 = vcmp.ge.f32.partialorder %v1318_v43, 0.0  ;;  %v1035_v13 = vpop.f32.mrf.mxu0  ;;  %v1322_v7 = vpop.f32.mrf.mxu1 }
 0x184   :  { %v1544_v9 = vmul.f32 0.2, %v1318_v43  ;;  %v1606_v10 = vsel %vm1478_vm1, %v1310_v62, %v1542_v6  ;;  %v1323_v59 = vadd.f32 %v1322_v7, %v1034_v11 }
 0x185   :  { %v2206_v14 = vpack.c.bf16 %v1606_v10, %v1606_v10  ;;  %v1036_v17 = vpop.f32.mrf.mxu0  ;;  %v2314_v18 = vpop.f32.mrf.mxu1 }
 0x186   :  { %v1608_v35 = vsel %vm1480_vm3, %v1318_v43, %v1544_v9  ;;  %vm1481_vm4 = vcmp.ge.f32.partialorder %v1323_v59, 0.0  ;;  %v1545_v25 = vmul.f32 0.2, %v1323_v59  ;;  %v1037_v26 = vadd.f32 %v3015_v49, %v1036_v17 }
 0x187   :  { %v2208_v22 = vpack.c.bf16 %v1608_v35, %v1608_v35  ;;  %1927 = vst.msk [vmem:[%s3449_s3 + $0x74] sm:$0xf] %vm1897_vm2, %v2206_v14  ;;  %v1038_v23 = vpop.f32.mrf.mxu0  ;;  %v1325_v29 = vpop.f32.mrf.mxu1 }
 0x188   :  { %v1609_v63 = vsel %vm1481_vm4, %v1323_v59, %v1545_v25  ;;  %v1326_v19 = vadd.f32 %v1325_v29, %v1037_v26 }
 0x189   :  { %1929 = vst.msk [vmem:[%s3449_s3 + $0x7c] sm:$0xf] %vm1897_vm2, %v2208_v22  ;;  %v2209_v27 = vpack.c.bf16 %v1609_v63, %v1609_v63  ;;  %v1041_v51 = vpop.f32.mrf.mxu0  ;;  %v2317_v1 = vpop.f32.mrf.mxu1 }
 0x18a   :  { %vm1482_vm5 = vcmp.ge.f32.partialorder %v1326_v19, 0.0  ;;  %v1546_v39 = vmul.f32 0.2, %v1326_v19  ;;  %v1042_v47 = vadd.f32 %v3015_v49, %v1041_v51 }
 0x18b   :  { %1930 = vst.msk [vmem:[%s3449_s3 + $0x80] sm:$0xf] %vm1897_vm2, %v2209_v27  ;;  %v1043_v55 = vpop.f32.mrf.mxu0  ;;  %v1338_v33 = vpop.f32.mrf.mxu1 }
 0x18c   :  { %v1610_v34 = vsel %vm1482_vm5, %v1326_v19, %v1546_v39  ;;  %v1331_v37 = vadd.f32 %v2313_v5, %v1042_v47 }
 0x18d   :  { %v2210_v21 = vpack.c.bf16 %v1610_v34, %v1610_v34  ;;  %v1044_v31 = vpop.f32.mrf.mxu0  ;;  %v2318_v30 = vpop.f32.mrf.mxu1 }
 0x18e   :  { %vm1483_vm6 = vcmp.ge.f32.partialorder %v1331_v37, 0.0  ;;  %v1547_v41 = vmul.f32 0.2, %v1331_v37  ;;  %v1045_v42 = vadd.f32 %v3015_v49, %v1044_v31  ;;  %v1109_v31 = vadd.f32 %v3015_v49, %v2962_v0 }
 0x18f   :  { %1931 = vst.msk [vmem:[%s3449_s3 + $0x84] sm:$0xf] %vm1897_vm2, %v2210_v21  ;;  %v1046_v45 = vpop.f32.mrf.mxu0  ;;  %v1341_v46 = vpop.f32.mrf.mxu1  ;;  %v1101_v21 = vadd.f32 %v3015_v49, %v2956_v56  ;;  %v1122_v56 = vadd.f32 %v3015_v49, %v2974_v12  ;;  %v3287_v0 = vadd.f32 %v3015_v49, %v2978_v16  ;;  %v3299_v12 = vadd.f32 %v3015_v49, %v2986_v24 }
 0x190   :  { %v1611_v50 = vsel %vm1483_vm6, %v1331_v37, %v1547_v41  ;;  %v1334_v53 = vadd.f32 %v2314_v18, %v1045_v42  ;;  %v1098_v37 = vadd.f32 %v3015_v49, %v2952_v52  ;;  %v3281_v52 = vadd.f32 %v3015_v49, %v2970_v8 }
 0x191   :  { %v2211_v54 = vpack.c.bf16 %v1611_v50, %v1611_v50  ;;  %v1049_v58 = vpop.f32.mrf.mxu0  ;;  %v3234_v3 = vpop.f32.mrf.mxu1  ;;  %v3295_v8 = vadd.f32 %v3015_v49, %v2982_v20 }
 0x192   :  { %vm1484_vm7 = vcmp.ge.f32.partialorder %v1334_v53, 0.0  ;;  %v1548_v15 = vmul.f32 0.2, %v1334_v53  ;;  %v1050_v38 = vadd.f32 %v3015_v49, %v1049_v58 }
 0x193   :  { %1932 = vst.msk [vmem:[%s3449_s3 + $0x88] sm:$0xf] %vm1897_vm2, %v2211_v54  ;;  %v1051_v62 = vpop.f32.mrf.mxu0  ;;  %v1354_v57 = vpop.f32.mrf.mxu1 }
 0x194   :  { %v1612_v61 = vsel %vm1484_vm7, %v1334_v53, %v1548_v15  ;;  %v1339_v43 = vadd.f32 %v1338_v33, %v1050_v38  ;;  %v1106_v33 = vadd.f32 %v3015_v49, %v2958_v60  ;;  %v1114_v60 = vadd.f32 %v3015_v49, %v2966_v4 }
 0x195   :  { %v2212_v2 = vpack.c.bf16 %v1612_v61, %v1612_v61  ;;  %v1052_v5 = vpop.f32.mrf.mxu0  ;;  %v3241_v6 = vpop.f32.mrf.mxu1 }
 0x196   :  { %vm1485_vm8 = vcmp.ge.f32.partialorder %v1339_v43, 0.0  ;;  %v1549_v11 = vmul.f32 0.2, %v1339_v43  ;;  %v1053_v9 = vadd.f32 %v3015_v49, %v1052_v5 }
 0x197   :  { %1933 = vst.msk [vmem:[%s3449_s3 + $0x8c] sm:$0xf] %vm1897_vm2, %v2212_v2  ;;  %v1054_v13 = vpop.f32.mrf.mxu0  ;;  %v3248_v7 = vpop.f32.mrf.mxu1 }
 0x198   :  { %v1613_v10 = vsel %vm1485_vm8, %v1339_v43, %v1549_v11  ;;  %v1342_v59 = vadd.f32 %v1341_v46, %v1053_v9  ;;  %v3308_v13 = vadd.f32 %v3015_v49, %v2990_v28 }
 0x199   :  { %v2213_v35 = vpack.c.bf16 %v1613_v10, %v1613_v10  ;;  %v1057_v14 = vpop.f32.mrf.mxu0  ;;  %v3250_v17 = vpop.f32.mrf.mxu1 }
 0x19a   :  { %vm1486_vm9 = vcmp.ge.f32.partialorder %v1342_v59, 0.0  ;;  %v1550_v18 = vmul.f32 0.2, %v1342_v59  ;;  %v1058_v22 = vadd.f32 %v3015_v49, %v1057_v14 }
 0x19b   :  { %1934 = vst.msk [vmem:[%s3449_s3 + $0x90] sm:$0xf] %vm1897_vm2, %v2213_v35  ;;  %v1059_v25 = vpop.f32.mrf.mxu0  ;;  %v3257_v26 = vpop.f32.mrf.mxu1 }
 0x19c   :  { %v1614_v23 = vsel %vm1486_vm9, %v1342_v59, %v1550_v18  ;;  %v1347_v29 = vadd.f32 %v2317_v1, %v1058_v22 }
 0x19d   :  { %v2214_v63 = vpack.c.bf16 %v1614_v23, %v1614_v23  ;;  %v1060_v19 = vpop.f32.mrf.mxu0  ;;  %v3259_v27 = vpop.f32.mrf.mxu1 }
 0x19e   :  { %vm1487_vm10 = vcmp.ge.f32.partialorder %v1347_v29, 0.0  ;;  %v1551_v51 = vmul.f32 0.2, %v1347_v29  ;;  %v1061_v39 = vadd.f32 %v3015_v49, %v1060_v19 }
 0x19f   :  { %1935 = vst.msk [vmem:[%s3449_s3 + $0x94] sm:$0xf] %vm1897_vm2, %v2214_v63  ;;  %v1062_v47 = vpop.f32.mrf.mxu0  ;;  %v3266_v55 = vpop.f32.mrf.mxu1 }
 0x1a0   :  { %v1615_v1 = vsel %vm1487_vm10, %v1347_v29, %v1551_v51  ;;  %v1350_v34 = vadd.f32 %v2318_v30, %v1061_v39 }
 0x1a1   :  { %v2215_v41 = vpack.c.bf16 %v1615_v1, %v1615_v1  ;;  %v1065_v42 = vpop.f32.mrf.mxu0  ;;  %v2329_v45 = vpop.f32.mrf.mxu1 }
 0x1a2   :  { %vm1488_vm11 = vcmp.ge.f32.partialorder %v1350_v34, 0.0  ;;  %v1552_v46 = vmul.f32 0.2, %v1350_v34  ;;  %v1066_v50 = vadd.f32 %v3015_v49, %v1065_v42  ;;  %v1395_v53 = vadd.f32 %v2329_v45, %v1106_v33 }
 0x1a3   :  { %1936 = vst.msk [vmem:[%s3449_s3 + $0x98] sm:$0xf] %vm1897_vm2, %v2215_v41  ;;  %v1067_v30 = vpop.f32.mrf.mxu0  ;;  %v1386_v54 = vpop.f32.mrf.mxu1  ;;  %v3322_v33 = vadd.f32 %v3015_v49, %v2994_v32 }
 0x1a4   :  { %v1616_v58 = vsel %vm1488_vm11, %v1350_v34, %v1552_v46  ;;  %v1355_v4 = vadd.f32 %v1354_v57, %v1066_v50  ;;  %vm1499_vm12 = vcmp.ge.f32.partialorder %v1395_v53, 0.0  ;;  %v1563_v15 = vmul.f32 0.2, %v1395_v53 }
 0x1a5   :  { %v2216_v16 = vpack.c.bf16 %v1616_v58, %v1616_v58  ;;  %v1387_v38 = vadd.f32 %v1386_v54, %v1098_v37  ;;  %v1068_v62 = vpop.f32.mrf.mxu0  ;;  %v2330_v61 = vpop.f32.mrf.mxu1  ;;  %v3341_v54 = vadd.f32 %v3015_v49, %v2998_v36 }
 0x1a6   :  { %vm1489_vm13 = vcmp.ge.f32.partialorder %v1355_v4, 0.0  ;;  %v1553_v43 = vmul.f32 0.2, %v1355_v4  ;;  %v1627_v2 = vsel %vm1499_vm12, %v1395_v53, %v1563_v15  ;;  %v1069_v5 = vadd.f32 %v3015_v49, %v1068_v62 }
 0x1a7   :  { %1937 = vst.msk [vmem:[%s3449_s3 + $0x9c] sm:$0xf] %vm1897_vm2, %v2216_v16  ;;  %v2227_v20 = vpack.c.bf16 %v1627_v2, %v1627_v2  ;;  %vm1497_vm14 = vcmp.ge.f32.partialorder %v1387_v38, 0.0  ;;  %v1561_v57 = vmul.f32 0.2, %v1387_v38  ;;  %v1398_v11 = vadd.f32 %v2330_v61, %v1109_v31  ;;  %v1070_v24 = vpop.f32.mrf.mxu0  ;;  %v1389_v9 = vpop.f32.mrf.mxu1 }
 0x1a8   :  { %v1617_v10 = vsel %vm1489_vm13, %v1355_v4, %v1553_v43  ;;  %v1358_v59 = vadd.f32 %v3248_v7, %v1069_v5  ;;  %v1390_v35 = vadd.f32 %v1389_v9, %v1101_v21 }
 0x1a9   :  { %v2217_v14 = vpack.c.bf16 %v1617_v10, %v1617_v10  ;;  %1948 = vst.msk [vmem:[%s3449_s3 + $0xc8] sm:$0xf] %vm1897_vm2, %v2227_v20  ;;  %v1625_v18 = vsel %vm1497_vm14, %v1387_v38, %v1561_v57  ;;  %vm1500_vm15 = vcmp.ge.f32.partialorder %v1398_v11, 0.0  ;;  %v1564_v22 = vmul.f32 0.2, %v1398_v11  ;;  %v1073_v25 = vpop.f32.mrf.mxu0  ;;  %v2333_v23 = vpop.f32.mrf.mxu1 }
 0x1aa   :  { %v2225_v29 = vpack.c.bf16 %v1625_v18, %v1625_v18  ;;  %vm1490_vm0 = vcmp.ge.f32.partialorder %v1358_v59, 0.0  ;;  %v1554_v63 = vmul.f32 0.2, %v1358_v59  ;;  %vm1498_vm1 = vcmp.ge.f32.partialorder %v1390_v35, 0.0 }
 0x1ab   :  { %1938 = vst.msk [vmem:[%s3449_s3 + $0xa0] sm:$0xf] %vm1897_vm2, %v2217_v14  ;;  %v1628_v28 = vsel %vm1500_vm15, %v1398_v11, %v1564_v22  ;;  %v1562_v7 = vmul.f32 0.2, %v1390_v35  ;;  %v1074_v19 = vadd.f32 %v3015_v49, %v1073_v25  ;;  %v1411_v51 = vadd.f32 %v2333_v23, %v1122_v56  ;;  %v1075_v39 = vpop.f32.mrf.mxu0  ;;  %v1402_v47 = vpop.f32.mrf.mxu1 }
 0x1ac   :  { %1946 = vst.msk [vmem:[%s3449_s3 + $0xc0] sm:$0xf] %vm1897_vm2, %v2225_v29  ;;  %v1618_v1 = vsel %vm1490_vm0, %v1358_v59, %v1554_v63  ;;  %v2228_v34 = vpack.c.bf16 %v1628_v28, %v1628_v28  ;;  %v1403_v37 = vadd.f32 %v1402_v47, %v1114_v60  ;;  %v3361_v11 = vadd.f32 %v3015_v49, %v3002_v40 }
 0x1ad   :  { %v2218_v21 = vpack.c.bf16 %v1618_v1, %v1618_v1  ;;  %v1626_v31 = vsel %vm1498_vm1, %v1390_v35, %v1562_v7  ;;  %v1363_v41 = vadd.f32 %v3234_v3, %v1074_v19  ;;  %vm1503_vm3 = vcmp.ge.f32.partialorder %v1411_v51, 0.0  ;;  %v1076_v42 = vpop.f32.mrf.mxu0  ;;  %v2334_v45 = vpop.f32.mrf.mxu1 }
 0x1ae   :  { %1949 = vst.msk [vmem:[%s3449_s3 + $0xcc] sm:$0xf] %vm1897_vm2, %v2228_v34  ;;  %v2226_v32 = vpack.c.bf16 %v1626_v31, %v1626_v31  ;;  %v1567_v46 = vmul.f32 0.2, %v1411_v51  ;;  %vm1501_vm4 = vcmp.ge.f32.partialorder %v1403_v37, 0.0  ;;  %v1077_v3 = vadd.f32 %v3015_v49, %v1076_v42 }
 0x1af   :  { %v1565_v50 = vmul.f32 0.2, %v1403_v37  ;;  %1939 = vst.msk [vmem:[%s3449_s3 + $0xa4] sm:$0xf] %vm1897_vm2, %v2218_v21  ;;  %vm1491_vm5 = vcmp.ge.f32.partialorder %v1363_v41, 0.0  ;;  %v1414_v60 = vadd.f32 %v2334_v45, %v3287_v0  ;;  %v1078_v56 = vpop.f32.mrf.mxu0  ;;  %v1405_v30 = vpop.f32.mrf.mxu1  ;;  %v1154_v39 = vadd.f32 %v3015_v49, %v3006_v44 }
 0x1b0   :  { %v1555_v53 = vmul.f32 0.2, %v1363_v41  ;;  %1947 = vst.msk [vmem:[%s3449_s3 + $0xc4] sm:$0xf] %vm1897_vm2, %v2226_v32  ;;  %v1631_v58 = vsel %vm1503_vm3, %v1411_v51, %v1567_v46  ;;  %v1406_v15 = vadd.f32 %v1405_v30, %v3281_v52  ;;  %v1366_v0 = vadd.f32 %v3241_v6, %v1077_v3  ;;  %v2522_v44 = vld [vmem:[%s3448_s2] ss:$0 sm:$0xff] }
 0x1b1   :  { %v1629_v4 = vsel %vm1501_vm4, %v1403_v37, %v1565_v50  ;;  %v2231_v38 = vpack.c.bf16 %v1631_v58, %v1631_v58  ;;  %v1081_v61 = vpop.f32.mrf.mxu0  ;;  %v2337_v43 = vpop.f32.mrf.mxu1  ;;  %vm1504_vm6 = vcmp.ge.f32.partialorder %v1414_v60, 0.0  ;;  %v1568_v36 = vmul.f32 0.2, %v1414_v60 }
 0x1b2   :  { %v1619_v16 = vsel %vm1491_vm5, %v1363_v41, %v1555_v53  ;;  %v2229_v62 = vpack.c.bf16 %v1629_v4, %v1629_v4  ;;  %vm1502_vm7 = vcmp.ge.f32.partialorder %v1406_v15, 0.0  ;;  %vm1492_vm8 = vcmp.ge.f32.partialorder %v1366_v0, 0.0 }
 0x1b3   :  { %v2219_v2 = vpack.c.bf16 %v1619_v16, %v1619_v16  ;;  %1952 = vst.msk [vmem:[%s3449_s3 + $0xd8] sm:$0xf] %vm1897_vm2, %v2231_v38  ;;  %v1556_v52 = vmul.f32 0.2, %v1366_v0  ;;  %v1566_v5 = vmul.f32 0.2, %v1406_v15  ;;  %v1082_v6 = vadd.f32 %v3015_v49, %v1081_v61  ;;  %v1083_v20 = vpop.f32.mrf.mxu0  ;;  %v1418_v57 = vpop.f32.mrf.mxu1 }
 0x1b4   :  { %1950 = vst.msk [vmem:[%s3449_s3 + $0xd0] sm:$0xf] %vm1897_vm2, %v2229_v62  ;;  %v1632_v24 = vsel %vm1504_vm6, %v1414_v60, %v1568_v36  ;;  %v1427_v9 = vadd.f32 %v2337_v43, %v3308_v13  ;;  %v1419_v10 = vadd.f32 %v1418_v57, %v3295_v8  ;;  %v1157_v53 = vadd.f32 %v2522_v44, %v3010_v48 }
 0x1b5   :  { %1940 = vst.msk [vmem:[%s3449_s3 + $0xa8] sm:$0xf] %vm1897_vm2, %v2219_v2  ;;  %v1620_v59 = vsel %vm1492_vm8, %v1366_v0, %v1556_v52  ;;  %v2232_v35 = vpack.c.bf16 %v1632_v24, %v1632_v24  ;;  %v1630_v14 = vsel %vm1502_vm7, %v1406_v15, %v1566_v5  ;;  %v1371_v18 = vadd.f32 %v3257_v26, %v1082_v6  ;;  %v1084_v22 = vpop.f32.mrf.mxu0  ;;  %v2338_v25 = vpop.f32.mrf.mxu1 }
 0x1b6   :  { %v2220_v40 = vpack.c.bf16 %v1620_v59, %v1620_v59  ;;  %v2230_v23 = vpack.c.bf16 %v1630_v14, %v1630_v14  ;;  %vm1507_vm9 = vcmp.ge.f32.partialorder %v1427_v9, 0.0  ;;  %v1571_v29 = vmul.f32 0.2, %v1427_v9 }
 0x1b7   :  { %1953 = vst.msk [vmem:[%s3449_s3 + $0xdc] sm:$0xf] %vm1897_vm2, %v2232_v35  ;;  %vm1493_vm10 = vcmp.ge.f32.partialorder %v1371_v18, 0.0  ;;  %v1557_v13 = vmul.f32 0.2, %v1371_v18  ;;  %vm1505_vm11 = vcmp.ge.f32.partialorder %v1419_v10, 0.0  ;;  %v1086_v63 = vpop.f32.mrf.mxu0  ;;  %v1421_v28 = vpop.f32.mrf.mxu1  ;;  %v1085_v7 = vadd.f32 %v3015_v49, %v1084_v22 }
 0x1b8   :  { %v1569_v8 = vmul.f32 0.2, %v1419_v10  ;;  %1941 = vst.msk [vmem:[%s3449_s3 + $0xac] sm:$0xf] %vm1897_vm2, %v2220_v40  ;;  %1951 = vst.msk [vmem:[%s3449_s3 + $0xd4] sm:$0xf] %vm1897_vm2, %v2230_v23  ;;  %v1635_v26 = vsel %vm1507_vm9, %v1427_v9, %v1571_v29  ;;  %v1430_v19 = vadd.f32 %v2338_v25, %v3322_v33  ;;  %v1422_v51 = vadd.f32 %v1421_v28, %v3299_v12 }
 0x1b9   :  { %v1621_v47 = vsel %vm1493_vm10, %v1371_v18, %v1557_v13  ;;  %v2235_v1 = vpack.c.bf16 %v1635_v26, %v1635_v26  ;;  %v1089_v37 = vpop.f32.mrf.mxu0  ;;  %v2341_v21 = vpop.f32.mrf.mxu1  ;;  %v1374_v42 = vadd.f32 %v3266_v55, %v1085_v7 }
 0x1ba   :  { %v1633_v34 = vsel %vm1505_vm11, %v1419_v10, %v1569_v8  ;;  %v2221_v31 = vpack.c.bf16 %v1621_v47, %v1621_v47  ;;  %vm1508_vm12 = vcmp.ge.f32.partialorder %v1430_v19, 0.0  ;;  %v1572_v33 = vmul.f32 0.2, %v1430_v19 }
 0x1bb   :  { %v2233_v41 = vpack.c.bf16 %v1633_v34, %v1633_v34  ;;  %1956 = vst.msk [vmem:[%s3449_s3 + $0xe8] sm:$0xf] %vm1897_vm2, %v2235_v1  ;;  %vm1506_vm13 = vcmp.ge.f32.partialorder %v1422_v51, 0.0  ;;  %v1570_v12 = vmul.f32 0.2, %v1422_v51  ;;  %v1090_v49 = vadd.f32 %v2522_v44, %v1089_v37  ;;  %v1091_v45 = vpop.f32.mrf.mxu0  ;;  %v1434_v32 = vpop.f32.mrf.mxu1 }
 0x1bc   :  { %1942 = vst.msk [vmem:[%s3449_s3 + $0xb0] sm:$0xf] %vm1897_vm2, %v2221_v31  ;;  %vm1494_vm14 = vcmp.ge.f32.partialorder %v1374_v42, 0.0  ;;  %v1558_v55 = vmul.f32 0.2, %v1374_v42  ;;  %v1443_v46 = vadd.f32 %v2341_v21, %v1154_v39  ;;  %v1435_v50 = vadd.f32 %v1434_v32, %v3341_v54 }
 0x1bd   :  { %1954 = vst.msk [vmem:[%s3449_s3 + $0xe0] sm:$0xf] %vm1897_vm2, %v2233_v41  ;;  %v1636_v3 = vsel %vm1508_vm12, %v1430_v19, %v1572_v33  ;;  %v1634_v60 = vsel %vm1506_vm13, %v1422_v51, %v1570_v12  ;;  %v1379_v56 = vadd.f32 %v3250_v17, %v1090_v49  ;;  %v1092_v30 = vpop.f32.mrf.mxu0  ;;  %v2342_v58 = vpop.f32.mrf.mxu1 }
 0x1be   :  { %v1622_v4 = vsel %vm1494_vm14, %v1374_v42, %v1558_v55  ;;  %v2236_v15 = vpack.c.bf16 %v1636_v3, %v1636_v3  ;;  %v2234_v16 = vpack.c.bf16 %v1634_v60, %v1634_v60  ;;  %vm1511_vm15 = vcmp.ge.f32.partialorder %v1443_v46, 0.0 }
 0x1bf   :  { %v2222_v38 = vpack.c.bf16 %v1622_v4, %v1622_v4  ;;  %vm1495_vm0 = vcmp.ge.f32.partialorder %v1379_v56, 0.0  ;;  %v1559_v62 = vmul.f32 0.2, %v1379_v56  ;;  %v1575_v0 = vmul.f32 0.2, %v1443_v46  ;;  %v1094_v61 = vpop.f32.mrf.mxu0  ;;  %v1437_v43 = vpop.f32.mrf.mxu1 }
 0x1c0   :  { %1957 = vst.msk [vmem:[%s3449_s3 + $0xec] sm:$0xf] %vm1897_vm2, %v2236_v15  ;;  %1955 = vst.msk [vmem:[%s3449_s3 + $0xe4] sm:$0xf] %vm1897_vm2, %v2234_v16  ;;  %vm1509_vm1 = vcmp.ge.f32.partialorder %v1435_v50, 0.0  ;;  %v1093_v17 = vadd.f32 %v2522_v44, %v1092_v30  ;;  %v1446_v54 = vadd.f32 %v2342_v58, %v1157_v53  ;;  %v1438_v52 = vadd.f32 %v1437_v43, %v3361_v11 }
 0x1c1   :  { %v1573_v48 = vmul.f32 0.2, %v1435_v50  ;;  %1943 = vst.msk [vmem:[%s3449_s3 + $0xb4] sm:$0xf] %vm1897_vm2, %v2222_v38  ;;  %v1623_v2 = vsel %vm1495_vm0, %v1379_v56, %v1559_v62  ;;  %v1639_v36 = vsel %vm1511_vm15, %v1443_v46, %v1575_v0 }
 0x1c2   :  { %v2223_v5 = vpack.c.bf16 %v1623_v2, %v1623_v2  ;;  %v2239_v6 = vpack.c.bf16 %v1639_v36, %v1639_v36  ;;  %v1382_v57 = vadd.f32 %v3259_v27, %v1093_v17  ;;  %vm1512_vm3 = vcmp.ge.f32.partialorder %v1446_v54, 0.0 }
 0x1c3   :  { %v1637_v20 = vsel %vm1509_vm1, %v1435_v50, %v1573_v48  ;;  %v1576_v9 = vmul.f32 0.2, %v1446_v54  ;;  %vm1510_vm4 = vcmp.ge.f32.partialorder %v1438_v52, 0.0  ;;  %v1574_v10 = vmul.f32 0.2, %v1438_v52 }
 0x1c4   :  { %v2237_v24 = vpack.c.bf16 %v1637_v20, %v1637_v20  ;;  %1944 = vst.msk [vmem:[%s3449_s3 + $0xb8] sm:$0xf] %vm1897_vm2, %v2223_v5  ;;  %1960 = vst.msk [vmem:[%s3449_s3 + $0xf8] sm:$0xf] %vm1897_vm2, %v2239_v6  ;;  %vm1496_vm5 = vcmp.ge.f32.partialorder %v1382_v57, 0.0 }
 0x1c5   :  { %v1560_v11 = vmul.f32 0.2, %v1382_v57  ;;  %v1640_v27 = vsel %vm1512_vm3, %v1446_v54, %v1576_v9  ;;  %v1638_v14 = vsel %vm1510_vm4, %v1438_v52, %v1574_v10 }
 0x1c6   :  { %1958 = vst.msk [vmem:[%s3449_s3 + $0xf0] sm:$0xf] %vm1897_vm2, %v2237_v24  ;;  %v2240_v35 = vpack.c.bf16 %v1640_v27, %v1640_v27  ;;  %v2238_v22 = vpack.c.bf16 %v1638_v14, %v1638_v14 }
 0x1c7   :  { %v1624_v59 = vsel %vm1496_vm5, %v1382_v57, %v1560_v11 }
 0x1c8   :  { %v2224_v18 = vpack.c.bf16 %v1624_v59, %v1624_v59  ;;  %1961 = vst.msk [vmem:[%s3449_s3 + $0xfc] sm:$0xf] %vm1897_vm2, %v2240_v35  ;;  %1959 = vst.msk [vmem:[%s3449_s3 + $0xf4] sm:$0xf] %vm1897_vm2, %v2238_v22 }
 0x1ca   :  { %1945 = vst.msk [vmem:[%s3449_s3 + $0xbc] sm:$0xf] %vm1897_vm2, %v2224_v18 }

// kernel: _lambda_.50
= control target key start
LH: loop header
LB: loop body
LE: loop exit
PB: predicated region body
PF: predicated region fallthrough
CT: control target
= control target key end

     0   :  { %vm379_vm0 = vcmask 1043456   ;;  %vm282_vm1 = vcmask 588800   ;;  %vm864_vm2 = vcmask 31744   ;;  %s1651_s1 = inlined_call_operand.vmem [shape: bf16[72,4], index: 1, kind: input, shape index: {}]   ;;  %s1652_s0 = inlined_call_operand.vmem [shape: bf16[512,72], index: 0, kind: input, shape index: {}]   ;;  %s1653_s2 = inlined_call_operand.vmem [shape: f32[1,4], index: 2, kind: input, shape index: {}]   ;;  %s1654_s3 = inlined_call_operand.vmem [shape: f32[512,4], index: 3, kind: output, shape index: {}]  }
   0x1   :  { %v1126_v0 = vld [vmem:[%s1651_s1 + $0x20] ss:$0 sps:$4 sm:$0xff]   ;;  %v1127_v1 = vld [vmem:[%s1651_s1 + $0x18] sm:$0xff]   ;;  %v1128_v3 = vld [vmem:[%s1651_s1 + $0x10] sm:$0xff]  }
   0x2   :  { %1124 = vmatprep.subr.msk.bf16.mxu0 %vm379_vm0, %v1126_v0  ;;  %1125 = vmatprep.subr.msk.bf16.mxu1 %vm379_vm0, %v1126_v0  ;;  %v381_v2 = vsel %vm379_vm0, %v1126_v0, 0  ;;  %v1131_v4 = vld [vmem:[%s1652_s0] sm:$0xff]   ;;  %v1129_v6 = vld [vmem:[%s1651_s1 + $0x8] sm:$0xff]   ;;  %v1135_v10 = vld [vmem:[%s1652_s0 + $0x10] sm:$0xff]  }
   0x3   :  { %1041 = vmatpush3.bf16.msra.mxu0 %v381_v2  ;;  %1119 = vmatpush3.bf16.msra.mxu1 %v381_v2  ;;  %v1132_v5 = vld [vmem:[%s1652_s0 + $0x80] sm:$0xff]   ;;  %v1133_v8 = vld [vmem:[%s1652_s0 + $0x8] sm:$0xff]   ;;  %v1136_v11 = vld [vmem:[%s1652_s0 + $0x90] sm:$0xff]  }
   0x4   :  { %1042 = vmatprep.subr.bf16.mxu0 %v1127_v1  ;;  %1115 = vmatprep.subr.bf16.mxu1 %v1127_v1  ;;  %v1130_v7 = vld [vmem:[%s1651_s1] sm:$0xff]   ;;  %v1134_v9 = vld [vmem:[%s1652_s0 + $0x88] sm:$0xff]   ;;  %v1137_v12 = vld [vmem:[%s1652_s0 + $0x18] sm:$0xff]  }
   0x5   :  { %1050 = vmatprep.mubr.msk.bf16.mxu0 %vm282_vm1, %v1131_v4  ;;  %1082 = vmatprep.mubr.msk.bf16.mxu1 %vm282_vm1, %v1132_v5  ;;  %v1138_v13 = vld [vmem:[%s1652_s0 + $0x98] sm:$0xff]   ;;  %v1139_v14 = vld [vmem:[%s1652_s0 + $0x20] sm:$0xff]   ;;  %v1141_v16 = vld [vmem:[%s1652_s0 + $0x28] sm:$0xff]  }
   0x6   :  { %v1140_v15 = vld [vmem:[%s1652_s0 + $0xa0] sm:$0xff]   ;;  %v1142_v17 = vld [vmem:[%s1652_s0 + $0xa8] sm:$0xff]   ;;  %v1143_v18 = vld [vmem:[%s1652_s0 + $0x30] sm:$0xff]  }
   0x7   :  { %1043 = vmatpush3.bf16.msra.mxu0 %v1127_v1  ;;  %1120 = vmatpush3.bf16.msra.mxu1 %v1127_v1  ;;  %v1144_v19 = vld [vmem:[%s1652_s0 + $0xb0] sm:$0xff]   ;;  %v1145_v20 = vld [vmem:[%s1652_s0 + $0x38] sm:$0xff]   ;;  %v1147_v22 = vld [vmem:[%s1652_s0 + $0x40] sm:$0xff]  }
   0x8   :  { %1044 = vmatprep.subr.bf16.mxu0 %v1128_v3  ;;  %1116 = vmatprep.subr.bf16.mxu1 %v1128_v3  ;;  %v1146_v21 = vld [vmem:[%s1652_s0 + $0xb8] sm:$0xff]   ;;  %v1148_v23 = vld [vmem:[%s1652_s0 + $0xc0] sm:$0xff]   ;;  %v1149_v24 = vld [vmem:[%s1652_s0 + $0x48] sm:$0xff]  }
   0x9   :  { %v1150_v25 = vld [vmem:[%s1652_s0 + $0xc8] sm:$0xff]   ;;  %v1151_v26 = vld [vmem:[%s1652_s0 + $0x50] sm:$0xff]   ;;  %v1153_v28 = vld [vmem:[%s1652_s0 + $0x58] sm:$0xff]  }
   0xa   :  { %v1152_v27 = vld [vmem:[%s1652_s0 + $0xd0] sm:$0xff]   ;;  %v1154_v29 = vld [vmem:[%s1652_s0 + $0xd8] sm:$0xff]   ;;  %v1155_v30 = vld [vmem:[%s1652_s0 + $0x60] sm:$0xff]  }
   0xb   :  { %1045 = vmatpush3.bf16.msra.mxu0 %v1128_v3  ;;  %1121 = vmatpush3.bf16.msra.mxu1 %v1128_v3  ;;  %v1156_v31 = vld [vmem:[%s1652_s0 + $0xe0] sm:$0xff]   ;;  %v1157_v32 = vld [vmem:[%s1652_s0 + $0x68] sm:$0xff]   ;;  %v1159_v34 = vld [vmem:[%s1652_s0 + $0x70] sm:$0xff]  }
   0xc   :  { %1046 = vmatprep.subr.bf16.mxu0 %v1129_v6  ;;  %1117 = vmatprep.subr.bf16.mxu1 %v1129_v6  ;;  %v1158_v33 = vld [vmem:[%s1652_s0 + $0xe8] sm:$0xff]   ;;  %v1160_v35 = vld [vmem:[%s1652_s0 + $0xf0] sm:$0xff]   ;;  %v1161_v36 = vld [vmem:[%s1652_s0 + $0x78] sm:$0xff]  }
   0xd   :  { %v1162_v37 = vld [vmem:[%s1652_s0 + $0xf8] sm:$0xff]   ;;  %v1329_v38 = vld [vmem:[%s1653_s2] ss:$0 sm:$0xff] }
   0xf   :  { %1047 = vmatpush3.bf16.msra.mxu0 %v1129_v6  ;;  %1122 = vmatpush3.bf16.msra.mxu1 %v1129_v6 }
  0x10   :  { %1048 = vmatprep.subr.bf16.mxu0 %v1130_v7  ;;  %1118 = vmatprep.subr.bf16.mxu1 %v1130_v7 }
  0x13   :  { %1049 = vmatpush3.bf16.msra.mxu0 %v1130_v7  ;;  %1123 = vmatpush3.bf16.msra.mxu1 %v1130_v7 }
  0x16   :  { %1051 = vmatmul.mubr.msk.bf16.vlgmr.msra.gmra.mxu0 %vm282_vm1, %v1133_v8  ;;  %1083 = vmatmul.mubr.msk.bf16.vlgmr.msra.gmra.mxu1 %vm282_vm1, %v1134_v9 }
  0x17   :  { %1054 = vmatprep.mubr.msk.bf16.mxu0 %vm282_vm1, %v1135_v10  ;;  %1086 = vmatprep.mubr.msk.bf16.mxu1 %vm282_vm1, %v1136_v11 }
  0x1e   :  { %1055 = vmatmul.mubr.msk.bf16.gmra.mxu0 %vm282_vm1, %v1137_v12  ;;  %1087 = vmatmul.mubr.msk.bf16.gmra.mxu1 %vm282_vm1, %v1138_v13 }
  0x1f   :  { %1058 = vmatprep.mubr.msk.bf16.mxu0 %vm282_vm1, %v1139_v14  ;;  %1090 = vmatprep.mubr.msk.bf16.mxu1 %vm282_vm1, %v1140_v15 }
  0x26   :  { %1059 = vmatmul.mubr.msk.bf16.gmra.mxu0 %vm282_vm1, %v1141_v16  ;;  %1091 = vmatmul.mubr.msk.bf16.gmra.mxu1 %vm282_vm1, %v1142_v17 }
  0x27   :  { %1062 = vmatprep.mubr.msk.bf16.mxu0 %vm282_vm1, %v1143_v18  ;;  %1094 = vmatprep.mubr.msk.bf16.mxu1 %vm282_vm1, %v1144_v19 }
  0x2e   :  { %1063 = vmatmul.mubr.msk.bf16.gmra.mxu0 %vm282_vm1, %v1145_v20  ;;  %1095 = vmatmul.mubr.msk.bf16.gmra.mxu1 %vm282_vm1, %v1146_v21 }
  0x2f   :  { %1066 = vmatprep.mubr.msk.bf16.mxu0 %vm282_vm1, %v1147_v22  ;;  %1098 = vmatprep.mubr.msk.bf16.mxu1 %vm282_vm1, %v1148_v23 }
  0x36   :  { %1067 = vmatmul.mubr.msk.bf16.gmra.mxu0 %vm282_vm1, %v1149_v24  ;;  %1099 = vmatmul.mubr.msk.bf16.gmra.mxu1 %vm282_vm1, %v1150_v25 }
  0x37   :  { %1070 = vmatprep.mubr.msk.bf16.mxu0 %vm282_vm1, %v1151_v26  ;;  %1102 = vmatprep.mubr.msk.bf16.mxu1 %vm282_vm1, %v1152_v27 }
  0x3e   :  { %1071 = vmatmul.mubr.msk.bf16.gmra.mxu0 %vm282_vm1, %v1153_v28  ;;  %1103 = vmatmul.mubr.msk.bf16.gmra.mxu1 %vm282_vm1, %v1154_v29 }
  0x3f   :  { %1074 = vmatprep.mubr.msk.bf16.mxu0 %vm282_vm1, %v1155_v30  ;;  %1106 = vmatprep.mubr.msk.bf16.mxu1 %vm282_vm1, %v1156_v31 }
  0x46   :  { %1075 = vmatmul.mubr.msk.bf16.gmra.mxu0 %vm282_vm1, %v1157_v32  ;;  %1107 = vmatmul.mubr.msk.bf16.gmra.mxu1 %vm282_vm1, %v1158_v33 }
  0x47   :  { %1078 = vmatprep.mubr.msk.bf16.mxu0 %vm282_vm1, %v1159_v34  ;;  %1110 = vmatprep.mubr.msk.bf16.mxu1 %vm282_vm1, %v1160_v35 }
  0x4e   :  { %1079 = vmatmul.mubr.msk.bf16.gmra.mxu0 %vm282_vm1, %v1161_v36  ;;  %1111 = vmatmul.mubr.msk.bf16.gmra.mxu1 %vm282_vm1, %v1162_v37 }
  0xd6   :  { %v1052_v39 = vpop.f32.mrf.mxu0  ;;  %v1084_v40 = vpop.f32.mrf.mxu1 }
  0xd7   :  { %v426_v41 = vadd.f32 %v1052_v39, %v1329_v38  ;;  %v554_v42 = vadd.f32 %v1084_v40, %v1329_v38 }
  0xd8   :  { %v417_v43 = vpop.f32.mrf.mxu0  ;;  %v545_v44 = vpop.f32.mrf.mxu1 }
  0xd9   :  { %vm674_vm3 = vcmp.ge.f32.partialorder %v426_v41, 0.0  ;;  %v738_v45 = vmul.f32 0.2, %v426_v41  ;;  %vm706_vm4 = vcmp.ge.f32.partialorder %v554_v42, 0.0  ;;  %v770_v46 = vmul.f32 0.2, %v554_v42 }
  0xda   :  { %v418_v47 = vadd.f32 %v1329_v38, %v417_v43  ;;  %v546_v48 = vadd.f32 %v1329_v38, %v545_v44  ;;  %v1053_v49 = vpop.f32.mrf.mxu0  ;;  %v1085_v50 = vpop.f32.mrf.mxu1 }
  0xdb   :  { %v802_v51 = vsel %vm674_vm3, %v426_v41, %v738_v45  ;;  %v834_v52 = vsel %vm706_vm4, %v554_v42, %v770_v46  ;;  %v429_v53 = vadd.f32 %v1053_v49, %v1329_v38  ;;  %v557_v54 = vadd.f32 %v1085_v50, %v1329_v38 }
  0xdc   :  { %867 = vst.msk [vmem:[%s1654_s3 + $0x10] sm:$0xff] %vm864_vm2, %v802_v51  ;;  %899 = vst.msk [vmem:[%s1654_s3 + $0x110] sm:$0xff] %vm864_vm2, %v834_v52  ;;  %vm672_vm5 = vcmp.ge.f32.partialorder %v418_v47, 0.0  ;;  %v736_v55 = vmul.f32 0.2, %v418_v47  ;;  %vm704_vm6 = vcmp.ge.f32.partialorder %v546_v48, 0.0  ;;  %v420_v57 = vpop.f32.mrf.mxu0  ;;  %v548_v58 = vpop.f32.mrf.mxu1 }
  0xdd   :  { %v768_v56 = vmul.f32 0.2, %v546_v48  ;;  %vm675_vm7 = vcmp.ge.f32.partialorder %v429_v53, 0.0  ;;  %v739_v59 = vmul.f32 0.2, %v429_v53  ;;  %vm707_vm8 = vcmp.ge.f32.partialorder %v557_v54, 0.0 }
  0xde   :  { %v771_v60 = vmul.f32 0.2, %v557_v54  ;;  %v800_v61 = vsel %vm672_vm5, %v418_v47, %v736_v55  ;;  %v421_v63 = vadd.f32 %v1329_v38, %v420_v57  ;;  %v549_v0 = vadd.f32 %v1329_v38, %v548_v58  ;;  %v1056_v1 = vpop.f32.mrf.mxu0  ;;  %v1088_v2 = vpop.f32.mrf.mxu1 }
  0xdf   :  { %v832_v62 = vsel %vm704_vm6, %v546_v48, %v768_v56  ;;  %865 = vst.msk [vmem:[%s1654_s3] sm:$0xff] %vm864_vm2, %v800_v61  ;;  %v803_v3 = vsel %vm675_vm7, %v429_v53, %v739_v59  ;;  %v442_v5 = vadd.f32 %v1056_v1, %v1329_v38  ;;  %v570_v6 = vadd.f32 %v1088_v2, %v1329_v38 }
  0xe0   :  { %897 = vst.msk [vmem:[%s1654_s3 + $0x100] sm:$0xff] %vm864_vm2, %v832_v62  ;;  %v835_v4 = vsel %vm707_vm8, %v557_v54, %v771_v60  ;;  %868 = vst.msk [vmem:[%s1654_s3 + $0x18] sm:$0xff] %vm864_vm2, %v803_v3  ;;  %vm673_vm9 = vcmp.ge.f32.partialorder %v421_v63, 0.0  ;;  %v737_v7 = vmul.f32 0.2, %v421_v63  ;;  %vm705_vm10 = vcmp.ge.f32.partialorder %v549_v0, 0.0  ;;  %v433_v9 = vpop.f32.mrf.mxu0  ;;  %v561_v10 = vpop.f32.mrf.mxu1 }
  0xe1   :  { %900 = vst.msk [vmem:[%s1654_s3 + $0x118] sm:$0xff] %vm864_vm2, %v835_v4  ;;  %v769_v8 = vmul.f32 0.2, %v549_v0  ;;  %vm678_vm11 = vcmp.ge.f32.partialorder %v442_v5, 0.0  ;;  %v742_v11 = vmul.f32 0.2, %v442_v5  ;;  %v434_v15 = vadd.f32 %v1329_v38, %v433_v9 }
  0xe2   :  { %vm710_vm12 = vcmp.ge.f32.partialorder %v570_v6, 0.0  ;;  %v774_v12 = vmul.f32 0.2, %v570_v6  ;;  %v801_v13 = vsel %vm673_vm9, %v421_v63, %v737_v7  ;;  %v562_v16 = vadd.f32 %v1329_v38, %v561_v10  ;;  %v1057_v17 = vpop.f32.mrf.mxu0  ;;  %v1089_v18 = vpop.f32.mrf.mxu1 }
  0xe3   :  { %v833_v14 = vsel %vm705_vm10, %v549_v0, %v769_v8  ;;  %866 = vst.msk [vmem:[%s1654_s3 + $0x8] sm:$0xff] %vm864_vm2, %v801_v13  ;;  %v806_v19 = vsel %vm678_vm11, %v442_v5, %v742_v11  ;;  %v445_v21 = vadd.f32 %v1057_v17, %v1329_v38  ;;  %v573_v22 = vadd.f32 %v1089_v18, %v1329_v38 }
  0xe4   :  { %898 = vst.msk [vmem:[%s1654_s3 + $0x108] sm:$0xff] %vm864_vm2, %v833_v14  ;;  %v838_v20 = vsel %vm710_vm12, %v570_v6, %v774_v12  ;;  %871 = vst.msk [vmem:[%s1654_s3 + $0x30] sm:$0xff] %vm864_vm2, %v806_v19  ;;  %vm676_vm13 = vcmp.ge.f32.partialorder %v434_v15, 0.0  ;;  %v740_v23 = vmul.f32 0.2, %v434_v15  ;;  %vm708_vm14 = vcmp.ge.f32.partialorder %v562_v16, 0.0  ;;  %v436_v25 = vpop.f32.mrf.mxu0  ;;  %v564_v26 = vpop.f32.mrf.mxu1 }
  0xe5   :  { %903 = vst.msk [vmem:[%s1654_s3 + $0x130] sm:$0xff] %vm864_vm2, %v838_v20  ;;  %v772_v24 = vmul.f32 0.2, %v562_v16  ;;  %vm679_vm15 = vcmp.ge.f32.partialorder %v445_v21, 0.0  ;;  %v743_v27 = vmul.f32 0.2, %v445_v21  ;;  %v437_v31 = vadd.f32 %v1329_v38, %v436_v25 }
  0xe6   :  { %vm711_vm0 = vcmp.ge.f32.partialorder %v573_v22, 0.0  ;;  %v775_v28 = vmul.f32 0.2, %v573_v22  ;;  %v804_v29 = vsel %vm676_vm13, %v434_v15, %v740_v23  ;;  %v565_v32 = vadd.f32 %v1329_v38, %v564_v26  ;;  %v1060_v33 = vpop.f32.mrf.mxu0  ;;  %v1092_v34 = vpop.f32.mrf.mxu1 }
  0xe7   :  { %v836_v30 = vsel %vm708_vm14, %v562_v16, %v772_v24  ;;  %869 = vst.msk [vmem:[%s1654_s3 + $0x20] sm:$0xff] %vm864_vm2, %v804_v29  ;;  %v807_v35 = vsel %vm679_vm15, %v445_v21, %v743_v27  ;;  %v458_v37 = vadd.f32 %v1060_v33, %v1329_v38  ;;  %v586_v39 = vadd.f32 %v1092_v34, %v1329_v38 }
  0xe8   :  { %901 = vst.msk [vmem:[%s1654_s3 + $0x120] sm:$0xff] %vm864_vm2, %v836_v30  ;;  %v839_v36 = vsel %vm711_vm0, %v573_v22, %v775_v28  ;;  %872 = vst.msk [vmem:[%s1654_s3 + $0x38] sm:$0xff] %vm864_vm2, %v807_v35  ;;  %vm677_vm1 = vcmp.ge.f32.partialorder %v437_v31, 0.0  ;;  %v741_v40 = vmul.f32 0.2, %v437_v31  ;;  %vm709_vm3 = vcmp.ge.f32.partialorder %v565_v32, 0.0  ;;  %v449_v42 = vpop.f32.mrf.mxu0  ;;  %v577_v43 = vpop.f32.mrf.mxu1 }
  0xe9   :  { %904 = vst.msk [vmem:[%s1654_s3 + $0x138] sm:$0xff] %vm864_vm2, %v839_v36  ;;  %v773_v41 = vmul.f32 0.2, %v565_v32  ;;  %vm682_vm4 = vcmp.ge.f32.partialorder %v458_v37, 0.0  ;;  %v746_v44 = vmul.f32 0.2, %v458_v37  ;;  %v450_v48 = vadd.f32 %v1329_v38, %v449_v42 }
  0xea   :  { %vm714_vm5 = vcmp.ge.f32.partialorder %v586_v39, 0.0  ;;  %v778_v45 = vmul.f32 0.2, %v586_v39  ;;  %v805_v46 = vsel %vm677_vm1, %v437_v31, %v741_v40  ;;  %v578_v49 = vadd.f32 %v1329_v38, %v577_v43  ;;  %v1061_v50 = vpop.f32.mrf.mxu0  ;;  %v1093_v51 = vpop.f32.mrf.mxu1 }
  0xeb   :  { %v837_v47 = vsel %vm709_vm3, %v565_v32, %v773_v41  ;;  %870 = vst.msk [vmem:[%s1654_s3 + $0x28] sm:$0xff] %vm864_vm2, %v805_v46  ;;  %v810_v52 = vsel %vm682_vm4, %v458_v37, %v746_v44  ;;  %v461_v54 = vadd.f32 %v1061_v50, %v1329_v38  ;;  %v589_v55 = vadd.f32 %v1093_v51, %v1329_v38 }
  0xec   :  { %902 = vst.msk [vmem:[%s1654_s3 + $0x128] sm:$0xff] %vm864_vm2, %v837_v47  ;;  %v842_v53 = vsel %vm714_vm5, %v586_v39, %v778_v45  ;;  %875 = vst.msk [vmem:[%s1654_s3 + $0x50] sm:$0xff] %vm864_vm2, %v810_v52  ;;  %vm680_vm6 = vcmp.ge.f32.partialorder %v450_v48, 0.0  ;;  %v744_v56 = vmul.f32 0.2, %v450_v48  ;;  %vm712_vm7 = vcmp.ge.f32.partialorder %v578_v49, 0.0  ;;  %v452_v58 = vpop.f32.mrf.mxu0  ;;  %v580_v59 = vpop.f32.mrf.mxu1 }
  0xed   :  { %907 = vst.msk [vmem:[%s1654_s3 + $0x150] sm:$0xff] %vm864_vm2, %v842_v53  ;;  %v776_v57 = vmul.f32 0.2, %v578_v49  ;;  %vm683_vm8 = vcmp.ge.f32.partialorder %v461_v54, 0.0  ;;  %v747_v60 = vmul.f32 0.2, %v461_v54  ;;  %v453_v0 = vadd.f32 %v1329_v38, %v452_v58 }
  0xee   :  { %vm715_vm9 = vcmp.ge.f32.partialorder %v589_v55, 0.0  ;;  %v779_v61 = vmul.f32 0.2, %v589_v55  ;;  %v808_v62 = vsel %vm680_vm6, %v450_v48, %v744_v56  ;;  %v581_v1 = vadd.f32 %v1329_v38, %v580_v59  ;;  %v1064_v2 = vpop.f32.mrf.mxu0  ;;  %v1096_v3 = vpop.f32.mrf.mxu1 }
  0xef   :  { %v840_v63 = vsel %vm712_vm7, %v578_v49, %v776_v57  ;;  %873 = vst.msk [vmem:[%s1654_s3 + $0x40] sm:$0xff] %vm864_vm2, %v808_v62  ;;  %v811_v4 = vsel %vm683_vm8, %v461_v54, %v747_v60  ;;  %v474_v6 = vadd.f32 %v1064_v2, %v1329_v38  ;;  %v602_v7 = vadd.f32 %v1096_v3, %v1329_v38 }
  0xf0   :  { %905 = vst.msk [vmem:[%s1654_s3 + $0x140] sm:$0xff] %vm864_vm2, %v840_v63  ;;  %v843_v5 = vsel %vm715_vm9, %v589_v55, %v779_v61  ;;  %876 = vst.msk [vmem:[%s1654_s3 + $0x58] sm:$0xff] %vm864_vm2, %v811_v4  ;;  %vm681_vm10 = vcmp.ge.f32.partialorder %v453_v0, 0.0  ;;  %v745_v8 = vmul.f32 0.2, %v453_v0  ;;  %vm713_vm11 = vcmp.ge.f32.partialorder %v581_v1, 0.0  ;;  %v465_v10 = vpop.f32.mrf.mxu0  ;;  %v593_v11 = vpop.f32.mrf.mxu1 }
  0xf1   :  { %908 = vst.msk [vmem:[%s1654_s3 + $0x158] sm:$0xff] %vm864_vm2, %v843_v5  ;;  %v777_v9 = vmul.f32 0.2, %v581_v1  ;;  %vm686_vm12 = vcmp.ge.f32.partialorder %v474_v6, 0.0  ;;  %v750_v12 = vmul.f32 0.2, %v474_v6  ;;  %v466_v16 = vadd.f32 %v1329_v38, %v465_v10 }
  0xf2   :  { %vm718_vm13 = vcmp.ge.f32.partialorder %v602_v7, 0.0  ;;  %v782_v13 = vmul.f32 0.2, %v602_v7  ;;  %v809_v14 = vsel %vm681_vm10, %v453_v0, %v745_v8  ;;  %v594_v17 = vadd.f32 %v1329_v38, %v593_v11  ;;  %v1065_v18 = vpop.f32.mrf.mxu0  ;;  %v1097_v19 = vpop.f32.mrf.mxu1 }
  0xf3   :  { %v841_v15 = vsel %vm713_vm11, %v581_v1, %v777_v9  ;;  %874 = vst.msk [vmem:[%s1654_s3 + $0x48] sm:$0xff] %vm864_vm2, %v809_v14  ;;  %v814_v20 = vsel %vm686_vm12, %v474_v6, %v750_v12  ;;  %v477_v22 = vadd.f32 %v1065_v18, %v1329_v38  ;;  %v605_v23 = vadd.f32 %v1097_v19, %v1329_v38 }
  0xf4   :  { %906 = vst.msk [vmem:[%s1654_s3 + $0x148] sm:$0xff] %vm864_vm2, %v841_v15  ;;  %v846_v21 = vsel %vm718_vm13, %v602_v7, %v782_v13  ;;  %879 = vst.msk [vmem:[%s1654_s3 + $0x70] sm:$0xff] %vm864_vm2, %v814_v20  ;;  %vm684_vm14 = vcmp.ge.f32.partialorder %v466_v16, 0.0  ;;  %v748_v24 = vmul.f32 0.2, %v466_v16  ;;  %vm716_vm15 = vcmp.ge.f32.partialorder %v594_v17, 0.0  ;;  %v468_v26 = vpop.f32.mrf.mxu0  ;;  %v596_v27 = vpop.f32.mrf.mxu1 }
  0xf5   :  { %911 = vst.msk [vmem:[%s1654_s3 + $0x170] sm:$0xff] %vm864_vm2, %v846_v21  ;;  %v780_v25 = vmul.f32 0.2, %v594_v17  ;;  %vm687_vm0 = vcmp.ge.f32.partialorder %v477_v22, 0.0  ;;  %v751_v28 = vmul.f32 0.2, %v477_v22  ;;  %v469_v32 = vadd.f32 %v1329_v38, %v468_v26 }
  0xf6   :  { %vm719_vm1 = vcmp.ge.f32.partialorder %v605_v23, 0.0  ;;  %v783_v29 = vmul.f32 0.2, %v605_v23  ;;  %v812_v30 = vsel %vm684_vm14, %v466_v16, %v748_v24  ;;  %v597_v33 = vadd.f32 %v1329_v38, %v596_v27  ;;  %v1068_v34 = vpop.f32.mrf.mxu0  ;;  %v1100_v35 = vpop.f32.mrf.mxu1 }
  0xf7   :  { %v844_v31 = vsel %vm716_vm15, %v594_v17, %v780_v25  ;;  %877 = vst.msk [vmem:[%s1654_s3 + $0x60] sm:$0xff] %vm864_vm2, %v812_v30  ;;  %v815_v36 = vsel %vm687_vm0, %v477_v22, %v751_v28  ;;  %v490_v39 = vadd.f32 %v1068_v34, %v1329_v38  ;;  %v618_v40 = vadd.f32 %v1100_v35, %v1329_v38 }
  0xf8   :  { %909 = vst.msk [vmem:[%s1654_s3 + $0x160] sm:$0xff] %vm864_vm2, %v844_v31  ;;  %v847_v37 = vsel %vm719_vm1, %v605_v23, %v783_v29  ;;  %880 = vst.msk [vmem:[%s1654_s3 + $0x78] sm:$0xff] %vm864_vm2, %v815_v36  ;;  %vm685_vm3 = vcmp.ge.f32.partialorder %v469_v32, 0.0  ;;  %v749_v41 = vmul.f32 0.2, %v469_v32  ;;  %vm717_vm4 = vcmp.ge.f32.partialorder %v597_v33, 0.0  ;;  %v481_v43 = vpop.f32.mrf.mxu0  ;;  %v609_v44 = vpop.f32.mrf.mxu1 }
  0xf9   :  { %912 = vst.msk [vmem:[%s1654_s3 + $0x178] sm:$0xff] %vm864_vm2, %v847_v37  ;;  %v781_v42 = vmul.f32 0.2, %v597_v33  ;;  %vm690_vm5 = vcmp.ge.f32.partialorder %v490_v39, 0.0  ;;  %v754_v45 = vmul.f32 0.2, %v490_v39  ;;  %v482_v49 = vadd.f32 %v1329_v38, %v481_v43 }
  0xfa   :  { %vm722_vm6 = vcmp.ge.f32.partialorder %v618_v40, 0.0  ;;  %v786_v46 = vmul.f32 0.2, %v618_v40  ;;  %v813_v47 = vsel %vm685_vm3, %v469_v32, %v749_v41  ;;  %v610_v50 = vadd.f32 %v1329_v38, %v609_v44  ;;  %v1069_v51 = vpop.f32.mrf.mxu0  ;;  %v1101_v52 = vpop.f32.mrf.mxu1 }
  0xfb   :  { %v845_v48 = vsel %vm717_vm4, %v597_v33, %v781_v42  ;;  %878 = vst.msk [vmem:[%s1654_s3 + $0x68] sm:$0xff] %vm864_vm2, %v813_v47  ;;  %v818_v53 = vsel %vm690_vm5, %v490_v39, %v754_v45  ;;  %v493_v55 = vadd.f32 %v1069_v51, %v1329_v38  ;;  %v621_v56 = vadd.f32 %v1101_v52, %v1329_v38 }
  0xfc   :  { %910 = vst.msk [vmem:[%s1654_s3 + $0x168] sm:$0xff] %vm864_vm2, %v845_v48  ;;  %v850_v54 = vsel %vm722_vm6, %v618_v40, %v786_v46  ;;  %883 = vst.msk [vmem:[%s1654_s3 + $0x90] sm:$0xff] %vm864_vm2, %v818_v53  ;;  %vm688_vm7 = vcmp.ge.f32.partialorder %v482_v49, 0.0  ;;  %v752_v57 = vmul.f32 0.2, %v482_v49  ;;  %vm720_vm8 = vcmp.ge.f32.partialorder %v610_v50, 0.0  ;;  %v484_v59 = vpop.f32.mrf.mxu0  ;;  %v612_v60 = vpop.f32.mrf.mxu1 }
  0xfd   :  { %915 = vst.msk [vmem:[%s1654_s3 + $0x190] sm:$0xff] %vm864_vm2, %v850_v54  ;;  %v784_v58 = vmul.f32 0.2, %v610_v50  ;;  %vm691_vm9 = vcmp.ge.f32.partialorder %v493_v55, 0.0  ;;  %v755_v61 = vmul.f32 0.2, %v493_v55  ;;  %v485_v1 = vadd.f32 %v1329_v38, %v484_v59 }
  0xfe   :  { %vm723_vm10 = vcmp.ge.f32.partialorder %v621_v56, 0.0  ;;  %v787_v62 = vmul.f32 0.2, %v621_v56  ;;  %v816_v63 = vsel %vm688_vm7, %v482_v49, %v752_v57  ;;  %v613_v2 = vadd.f32 %v1329_v38, %v612_v60  ;;  %v1072_v3 = vpop.f32.mrf.mxu0  ;;  %v1104_v4 = vpop.f32.mrf.mxu1 }
  0xff   :  { %v848_v0 = vsel %vm720_vm8, %v610_v50, %v784_v58  ;;  %881 = vst.msk [vmem:[%s1654_s3 + $0x80] sm:$0xff] %vm864_vm2, %v816_v63  ;;  %v819_v5 = vsel %vm691_vm9, %v493_v55, %v755_v61  ;;  %v506_v7 = vadd.f32 %v1072_v3, %v1329_v38  ;;  %v634_v8 = vadd.f32 %v1104_v4, %v1329_v38 }
 0x100   :  { %913 = vst.msk [vmem:[%s1654_s3 + $0x180] sm:$0xff] %vm864_vm2, %v848_v0  ;;  %v851_v6 = vsel %vm723_vm10, %v621_v56, %v787_v62  ;;  %884 = vst.msk [vmem:[%s1654_s3 + $0x98] sm:$0xff] %vm864_vm2, %v819_v5  ;;  %vm689_vm11 = vcmp.ge.f32.partialorder %v485_v1, 0.0  ;;  %v753_v9 = vmul.f32 0.2, %v485_v1  ;;  %vm721_vm12 = vcmp.ge.f32.partialorder %v613_v2, 0.0  ;;  %v497_v11 = vpop.f32.mrf.mxu0  ;;  %v625_v12 = vpop.f32.mrf.mxu1 }
 0x101   :  { %916 = vst.msk [vmem:[%s1654_s3 + $0x198] sm:$0xff] %vm864_vm2, %v851_v6  ;;  %v785_v10 = vmul.f32 0.2, %v613_v2  ;;  %vm694_vm13 = vcmp.ge.f32.partialorder %v506_v7, 0.0  ;;  %v758_v13 = vmul.f32 0.2, %v506_v7  ;;  %v498_v17 = vadd.f32 %v1329_v38, %v497_v11 }
 0x102   :  { %vm726_vm14 = vcmp.ge.f32.partialorder %v634_v8, 0.0  ;;  %v790_v14 = vmul.f32 0.2, %v634_v8  ;;  %v817_v15 = vsel %vm689_vm11, %v485_v1, %v753_v9  ;;  %v626_v18 = vadd.f32 %v1329_v38, %v625_v12  ;;  %v1073_v19 = vpop.f32.mrf.mxu0  ;;  %v1105_v20 = vpop.f32.mrf.mxu1 }
 0x103   :  { %v849_v16 = vsel %vm721_vm12, %v613_v2, %v785_v10  ;;  %882 = vst.msk [vmem:[%s1654_s3 + $0x88] sm:$0xff] %vm864_vm2, %v817_v15  ;;  %v822_v21 = vsel %vm694_vm13, %v506_v7, %v758_v13  ;;  %v509_v23 = vadd.f32 %v1073_v19, %v1329_v38  ;;  %v637_v24 = vadd.f32 %v1105_v20, %v1329_v38 }
 0x104   :  { %914 = vst.msk [vmem:[%s1654_s3 + $0x188] sm:$0xff] %vm864_vm2, %v849_v16  ;;  %v854_v22 = vsel %vm726_vm14, %v634_v8, %v790_v14  ;;  %887 = vst.msk [vmem:[%s1654_s3 + $0xb0] sm:$0xff] %vm864_vm2, %v822_v21  ;;  %vm692_vm15 = vcmp.ge.f32.partialorder %v498_v17, 0.0  ;;  %v756_v25 = vmul.f32 0.2, %v498_v17  ;;  %vm724_vm0 = vcmp.ge.f32.partialorder %v626_v18, 0.0  ;;  %v500_v27 = vpop.f32.mrf.mxu0  ;;  %v628_v28 = vpop.f32.mrf.mxu1 }
 0x105   :  { %919 = vst.msk [vmem:[%s1654_s3 + $0x1b0] sm:$0xff] %vm864_vm2, %v854_v22  ;;  %v788_v26 = vmul.f32 0.2, %v626_v18  ;;  %vm695_vm1 = vcmp.ge.f32.partialorder %v509_v23, 0.0  ;;  %v759_v29 = vmul.f32 0.2, %v509_v23  ;;  %v501_v33 = vadd.f32 %v1329_v38, %v500_v27 }
 0x106   :  { %vm727_vm3 = vcmp.ge.f32.partialorder %v637_v24, 0.0  ;;  %v791_v30 = vmul.f32 0.2, %v637_v24  ;;  %v820_v31 = vsel %vm692_vm15, %v498_v17, %v756_v25  ;;  %v629_v34 = vadd.f32 %v1329_v38, %v628_v28  ;;  %v1076_v35 = vpop.f32.mrf.mxu0  ;;  %v1108_v36 = vpop.f32.mrf.mxu1 }
 0x107   :  { %v852_v32 = vsel %vm724_vm0, %v626_v18, %v788_v26  ;;  %885 = vst.msk [vmem:[%s1654_s3 + $0xa0] sm:$0xff] %vm864_vm2, %v820_v31  ;;  %v823_v37 = vsel %vm695_vm1, %v509_v23, %v759_v29  ;;  %v522_v40 = vadd.f32 %v1076_v35, %v1329_v38  ;;  %v650_v41 = vadd.f32 %v1108_v36, %v1329_v38 }
 0x108   :  { %917 = vst.msk [vmem:[%s1654_s3 + $0x1a0] sm:$0xff] %vm864_vm2, %v852_v32  ;;  %v855_v39 = vsel %vm727_vm3, %v637_v24, %v791_v30  ;;  %888 = vst.msk [vmem:[%s1654_s3 + $0xb8] sm:$0xff] %vm864_vm2, %v823_v37  ;;  %vm693_vm4 = vcmp.ge.f32.partialorder %v501_v33, 0.0  ;;  %v757_v42 = vmul.f32 0.2, %v501_v33  ;;  %vm725_vm5 = vcmp.ge.f32.partialorder %v629_v34, 0.0  ;;  %v513_v44 = vpop.f32.mrf.mxu0  ;;  %v641_v45 = vpop.f32.mrf.mxu1 }
 0x109   :  { %920 = vst.msk [vmem:[%s1654_s3 + $0x1b8] sm:$0xff] %vm864_vm2, %v855_v39  ;;  %v789_v43 = vmul.f32 0.2, %v629_v34  ;;  %vm698_vm6 = vcmp.ge.f32.partialorder %v522_v40, 0.0  ;;  %v762_v46 = vmul.f32 0.2, %v522_v40  ;;  %v514_v50 = vadd.f32 %v1329_v38, %v513_v44 }
 0x10a   :  { %vm730_vm7 = vcmp.ge.f32.partialorder %v650_v41, 0.0  ;;  %v794_v47 = vmul.f32 0.2, %v650_v41  ;;  %v821_v48 = vsel %vm693_vm4, %v501_v33, %v757_v42  ;;  %v642_v51 = vadd.f32 %v1329_v38, %v641_v45  ;;  %v1077_v52 = vpop.f32.mrf.mxu0  ;;  %v1109_v53 = vpop.f32.mrf.mxu1 }
 0x10b   :  { %v853_v49 = vsel %vm725_vm5, %v629_v34, %v789_v43  ;;  %886 = vst.msk [vmem:[%s1654_s3 + $0xa8] sm:$0xff] %vm864_vm2, %v821_v48  ;;  %v826_v54 = vsel %vm698_vm6, %v522_v40, %v762_v46  ;;  %v525_v56 = vadd.f32 %v1077_v52, %v1329_v38  ;;  %v653_v57 = vadd.f32 %v1109_v53, %v1329_v38 }
 0x10c   :  { %918 = vst.msk [vmem:[%s1654_s3 + $0x1a8] sm:$0xff] %vm864_vm2, %v853_v49  ;;  %v858_v55 = vsel %vm730_vm7, %v650_v41, %v794_v47  ;;  %891 = vst.msk [vmem:[%s1654_s3 + $0xd0] sm:$0xff] %vm864_vm2, %v826_v54  ;;  %vm696_vm8 = vcmp.ge.f32.partialorder %v514_v50, 0.0  ;;  %v760_v58 = vmul.f32 0.2, %v514_v50  ;;  %vm728_vm9 = vcmp.ge.f32.partialorder %v642_v51, 0.0  ;;  %v516_v60 = vpop.f32.mrf.mxu0  ;;  %v644_v61 = vpop.f32.mrf.mxu1 }
 0x10d   :  { %923 = vst.msk [vmem:[%s1654_s3 + $0x1d0] sm:$0xff] %vm864_vm2, %v858_v55  ;;  %v792_v59 = vmul.f32 0.2, %v642_v51  ;;  %vm699_vm10 = vcmp.ge.f32.partialorder %v525_v56, 0.0  ;;  %v763_v62 = vmul.f32 0.2, %v525_v56  ;;  %v517_v2 = vadd.f32 %v1329_v38, %v516_v60 }
 0x10e   :  { %vm731_vm11 = vcmp.ge.f32.partialorder %v653_v57, 0.0  ;;  %v795_v63 = vmul.f32 0.2, %v653_v57  ;;  %v824_v0 = vsel %vm696_vm8, %v514_v50, %v760_v58  ;;  %v645_v3 = vadd.f32 %v1329_v38, %v644_v61  ;;  %v1080_v4 = vpop.f32.mrf.mxu0  ;;  %v1112_v5 = vpop.f32.mrf.mxu1 }
 0x10f   :  { %v856_v1 = vsel %vm728_vm9, %v642_v51, %v792_v59  ;;  %889 = vst.msk [vmem:[%s1654_s3 + $0xc0] sm:$0xff] %vm864_vm2, %v824_v0  ;;  %v827_v6 = vsel %vm699_vm10, %v525_v56, %v763_v62  ;;  %v538_v8 = vadd.f32 %v1080_v4, %v1329_v38  ;;  %v666_v9 = vadd.f32 %v1112_v5, %v1329_v38 }
 0x110   :  { %921 = vst.msk [vmem:[%s1654_s3 + $0x1c0] sm:$0xff] %vm864_vm2, %v856_v1  ;;  %v859_v7 = vsel %vm731_vm11, %v653_v57, %v795_v63  ;;  %892 = vst.msk [vmem:[%s1654_s3 + $0xd8] sm:$0xff] %vm864_vm2, %v827_v6  ;;  %vm697_vm12 = vcmp.ge.f32.partialorder %v517_v2, 0.0  ;;  %v761_v10 = vmul.f32 0.2, %v517_v2  ;;  %vm729_vm13 = vcmp.ge.f32.partialorder %v645_v3, 0.0  ;;  %v529_v12 = vpop.f32.mrf.mxu0  ;;  %v657_v13 = vpop.f32.mrf.mxu1 }
 0x111   :  { %924 = vst.msk [vmem:[%s1654_s3 + $0x1d8] sm:$0xff] %vm864_vm2, %v859_v7  ;;  %v793_v11 = vmul.f32 0.2, %v645_v3  ;;  %vm702_vm14 = vcmp.ge.f32.partialorder %v538_v8, 0.0  ;;  %v766_v14 = vmul.f32 0.2, %v538_v8  ;;  %v530_v18 = vadd.f32 %v1329_v38, %v529_v12 }
 0x112   :  { %vm734_vm15 = vcmp.ge.f32.partialorder %v666_v9, 0.0  ;;  %v798_v15 = vmul.f32 0.2, %v666_v9  ;;  %v825_v16 = vsel %vm697_vm12, %v517_v2, %v761_v10  ;;  %v658_v19 = vadd.f32 %v1329_v38, %v657_v13  ;;  %v1081_v20 = vpop.f32.mrf.mxu0  ;;  %v1113_v21 = vpop.f32.mrf.mxu1 }
 0x113   :  { %v857_v17 = vsel %vm729_vm13, %v645_v3, %v793_v11  ;;  %890 = vst.msk [vmem:[%s1654_s3 + $0xc8] sm:$0xff] %vm864_vm2, %v825_v16  ;;  %v830_v22 = vsel %vm702_vm14, %v538_v8, %v766_v14  ;;  %v541_v24 = vadd.f32 %v1081_v20, %v1329_v38  ;;  %v669_v25 = vadd.f32 %v1113_v21, %v1329_v38 }
 0x114   :  { %922 = vst.msk [vmem:[%s1654_s3 + $0x1c8] sm:$0xff] %vm864_vm2, %v857_v17  ;;  %v862_v23 = vsel %vm734_vm15, %v666_v9, %v798_v15  ;;  %895 = vst.msk [vmem:[%s1654_s3 + $0xf0] sm:$0xff] %vm864_vm2, %v830_v22  ;;  %vm700_vm0 = vcmp.ge.f32.partialorder %v530_v18, 0.0  ;;  %v764_v26 = vmul.f32 0.2, %v530_v18  ;;  %vm732_vm1 = vcmp.ge.f32.partialorder %v658_v19, 0.0  ;;  %v532_v28 = vpop.f32.mrf.mxu0  ;;  %v660_v29 = vpop.f32.mrf.mxu1 }
 0x115   :  { %927 = vst.msk [vmem:[%s1654_s3 + $0x1f0] sm:$0xff] %vm864_vm2, %v862_v23  ;;  %v796_v27 = vmul.f32 0.2, %v658_v19  ;;  %vm703_vm3 = vcmp.ge.f32.partialorder %v541_v24, 0.0  ;;  %v767_v30 = vmul.f32 0.2, %v541_v24  ;;  %v533_v34 = vadd.f32 %v1329_v38, %v532_v28 }
 0x116   :  { %vm735_vm4 = vcmp.ge.f32.partialorder %v669_v25, 0.0  ;;  %v799_v31 = vmul.f32 0.2, %v669_v25  ;;  %v828_v32 = vsel %vm700_vm0, %v530_v18, %v764_v26  ;;  %v661_v35 = vadd.f32 %v1329_v38, %v660_v29 }
 0x117   :  { %v860_v33 = vsel %vm732_vm1, %v658_v19, %v796_v27  ;;  %893 = vst.msk [vmem:[%s1654_s3 + $0xe0] sm:$0xff] %vm864_vm2, %v828_v32  ;;  %v831_v36 = vsel %vm703_vm3, %v541_v24, %v767_v30  ;;  %vm701_vm5 = vcmp.ge.f32.partialorder %v533_v34, 0.0  ;;  %v765_v38 = vmul.f32 0.2, %v533_v34 }
 0x118   :  { %925 = vst.msk [vmem:[%s1654_s3 + $0x1e0] sm:$0xff] %vm864_vm2, %v860_v33  ;;  %v863_v37 = vsel %vm735_vm4, %v669_v25, %v799_v31  ;;  %896 = vst.msk [vmem:[%s1654_s3 + $0xf8] sm:$0xff] %vm864_vm2, %v831_v36  ;;  %vm733_vm6 = vcmp.ge.f32.partialorder %v661_v35, 0.0  ;;  %v797_v39 = vmul.f32 0.2, %v661_v35 }
 0x119   :  { %928 = vst.msk [vmem:[%s1654_s3 + $0x1f8] sm:$0xff] %vm864_vm2, %v863_v37  ;;  %v829_v40 = vsel %vm701_vm5, %v533_v34, %v765_v38 }
 0x11a   :  { %v861_v41 = vsel %vm733_vm6, %v661_v35, %v797_v39  ;;  %894 = vst.msk [vmem:[%s1654_s3 + $0xe8] sm:$0xff] %vm864_vm2, %v829_v40 }
 0x11b   :  { %926 = vst.msk [vmem:[%s1654_s3 + $0x1e8] sm:$0xff] %vm864_vm2, %v861_v41 }

// kernel: _lambda_.51
= control target key start
LH: loop header
LB: loop body
LE: loop exit
PB: predicated region body
PF: predicated region fallthrough
CT: control target
= control target key end

     0   :  { %vm363_vm0 = vcmask 1041408   ;;  %vm266_vm1 = vcmask 293888   ;;  %vm656_vm2 = vcmask 15360   ;;  %s1423_s1 = inlined_call_operand.vmem [shape: bf16[36,2], index: 1, kind: input, shape index: {}]   ;;  %s1424_s0 = inlined_call_operand.vmem [shape: bf16[512,36], index: 0, kind: input, shape index: {}]   ;;  %s1425_s2 = inlined_call_operand.vmem [shape: f32[1,2], index: 2, kind: input, shape index: {}]   ;;  %s1426_s3 = inlined_call_operand.vmem [shape: f32[512,2], index: 3, kind: output, shape index: {}]  }
   0x1   :  { %v906_v0 = vld [vmem:[%s1423_s1 + $0x10] ss:$0 sps:$4 sm:$0x33]   ;;  %v907_v1 = vld [vmem:[%s1423_s1 + $0x8] sm:$0xff]   ;;  %v908_v3 = vld [vmem:[%s1423_s1] sm:$0xff]  }
   0x2   :  { %904 = vmatprep.subr.msk.bf16.mxu0 %vm363_vm0, %v906_v0  ;;  %905 = vmatprep.subr.msk.bf16.mxu1 %vm363_vm0, %v906_v0  ;;  %v365_v2 = vsel %vm363_vm0, %v906_v0, 0  ;;  %v909_v4 = vld [vmem:[%s1424_s0] sm:$0xff]   ;;  %v911_v6 = vld [vmem:[%s1424_s0 + $0x8] sm:$0xff]   ;;  %v913_v8 = vld [vmem:[%s1424_s0 + $0x10] sm:$0xff]  }
   0x3   :  { %829 = vmatpush3.bf16.msra.mxu0 %v365_v2  ;;  %901 = vmatpush3.bf16.msra.mxu1 %v365_v2  ;;  %v910_v5 = vld [vmem:[%s1424_s0 + $0x80] sm:$0xff]   ;;  %v912_v7 = vld [vmem:[%s1424_s0 + $0x88] sm:$0xff]   ;;  %v914_v9 = vld [vmem:[%s1424_s0 + $0x90] sm:$0xff]  }
   0x4   :  { %830 = vmatprep.subr.bf16.mxu0 %v907_v1  ;;  %899 = vmatprep.subr.bf16.mxu1 %v907_v1  ;;  %v915_v10 = vld [vmem:[%s1424_s0 + $0x18] sm:$0xff]   ;;  %v917_v12 = vld [vmem:[%s1424_s0 + $0x20] sm:$0xff]   ;;  %v919_v14 = vld [vmem:[%s1424_s0 + $0x28] sm:$0xff]  }
   0x5   :  { %834 = vmatprep.mubr.msk.bf16.mxu0 %vm266_vm1, %v909_v4  ;;  %866 = vmatprep.mubr.msk.bf16.mxu1 %vm266_vm1, %v910_v5  ;;  %v916_v11 = vld [vmem:[%s1424_s0 + $0x98] sm:$0xff]   ;;  %v918_v13 = vld [vmem:[%s1424_s0 + $0xa0] sm:$0xff]   ;;  %v920_v15 = vld [vmem:[%s1424_s0 + $0xa8] sm:$0xff]  }
   0x6   :  { %v921_v16 = vld [vmem:[%s1424_s0 + $0x30] sm:$0xff]   ;;  %v923_v18 = vld [vmem:[%s1424_s0 + $0x38] sm:$0xff]   ;;  %v925_v20 = vld [vmem:[%s1424_s0 + $0x40] sm:$0xff]  }
   0x7   :  { %831 = vmatpush3.bf16.msra.mxu0 %v907_v1  ;;  %902 = vmatpush3.bf16.msra.mxu1 %v907_v1  ;;  %v922_v17 = vld [vmem:[%s1424_s0 + $0xb0] sm:$0xff]   ;;  %v924_v19 = vld [vmem:[%s1424_s0 + $0xb8] sm:$0xff]   ;;  %v926_v21 = vld [vmem:[%s1424_s0 + $0xc0] sm:$0xff]  }
   0x8   :  { %832 = vmatprep.subr.bf16.mxu0 %v908_v3  ;;  %900 = vmatprep.subr.bf16.mxu1 %v908_v3  ;;  %v927_v22 = vld [vmem:[%s1424_s0 + $0x48] sm:$0xff]   ;;  %v929_v24 = vld [vmem:[%s1424_s0 + $0x50] sm:$0xff]   ;;  %v931_v26 = vld [vmem:[%s1424_s0 + $0x58] sm:$0xff]  }
   0x9   :  { %v928_v23 = vld [vmem:[%s1424_s0 + $0xc8] sm:$0xff]   ;;  %v930_v25 = vld [vmem:[%s1424_s0 + $0xd0] sm:$0xff]   ;;  %v932_v27 = vld [vmem:[%s1424_s0 + $0xd8] sm:$0xff]  }
   0xa   :  { %v933_v28 = vld [vmem:[%s1424_s0 + $0x60] sm:$0xff]   ;;  %v935_v30 = vld [vmem:[%s1424_s0 + $0x68] sm:$0xff]   ;;  %v937_v32 = vld [vmem:[%s1424_s0 + $0x70] sm:$0xff]  }
   0xb   :  { %833 = vmatpush3.bf16.msra.mxu0 %v908_v3  ;;  %903 = vmatpush3.bf16.msra.mxu1 %v908_v3  ;;  %v934_v29 = vld [vmem:[%s1424_s0 + $0xe0] sm:$0xff]   ;;  %v936_v31 = vld [vmem:[%s1424_s0 + $0xe8] sm:$0xff]   ;;  %v938_v33 = vld [vmem:[%s1424_s0 + $0xf0] sm:$0xff]  }
   0xc   :  { %v939_v34 = vld [vmem:[%s1424_s0 + $0x78] sm:$0xff]   ;;  %v1101_v36 = vld [vmem:[%s1425_s2] ss:$0 sm:$0xff] }
   0xd   :  { %v940_v35 = vld [vmem:[%s1424_s0 + $0xf8] sm:$0xff]  }
   0xe   :  { %835 = vmatmul.mubr.msk.bf16.vlgmr.msra.gmra.mxu0 %vm266_vm1, %v911_v6  ;;  %867 = vmatmul.mubr.msk.bf16.vlgmr.msra.gmra.mxu1 %vm266_vm1, %v912_v7 }
   0xf   :  { %838 = vmatprep.mubr.msk.bf16.mxu0 %vm266_vm1, %v913_v8  ;;  %870 = vmatprep.mubr.msk.bf16.mxu1 %vm266_vm1, %v914_v9 }
  0x16   :  { %839 = vmatmul.mubr.msk.bf16.gmra.mxu0 %vm266_vm1, %v915_v10  ;;  %871 = vmatmul.mubr.msk.bf16.gmra.mxu1 %vm266_vm1, %v916_v11 }
  0x17   :  { %842 = vmatprep.mubr.msk.bf16.mxu0 %vm266_vm1, %v917_v12  ;;  %874 = vmatprep.mubr.msk.bf16.mxu1 %vm266_vm1, %v918_v13 }
  0x1e   :  { %843 = vmatmul.mubr.msk.bf16.gmra.mxu0 %vm266_vm1, %v919_v14  ;;  %875 = vmatmul.mubr.msk.bf16.gmra.mxu1 %vm266_vm1, %v920_v15 }
  0x1f   :  { %846 = vmatprep.mubr.msk.bf16.mxu0 %vm266_vm1, %v921_v16  ;;  %878 = vmatprep.mubr.msk.bf16.mxu1 %vm266_vm1, %v922_v17 }
  0x26   :  { %847 = vmatmul.mubr.msk.bf16.gmra.mxu0 %vm266_vm1, %v923_v18  ;;  %879 = vmatmul.mubr.msk.bf16.gmra.mxu1 %vm266_vm1, %v924_v19 }
  0x27   :  { %850 = vmatprep.mubr.msk.bf16.mxu0 %vm266_vm1, %v925_v20  ;;  %882 = vmatprep.mubr.msk.bf16.mxu1 %vm266_vm1, %v926_v21 }
  0x2e   :  { %851 = vmatmul.mubr.msk.bf16.gmra.mxu0 %vm266_vm1, %v927_v22  ;;  %883 = vmatmul.mubr.msk.bf16.gmra.mxu1 %vm266_vm1, %v928_v23 }
  0x2f   :  { %854 = vmatprep.mubr.msk.bf16.mxu0 %vm266_vm1, %v929_v24  ;;  %886 = vmatprep.mubr.msk.bf16.mxu1 %vm266_vm1, %v930_v25 }
  0x36   :  { %855 = vmatmul.mubr.msk.bf16.gmra.mxu0 %vm266_vm1, %v931_v26  ;;  %887 = vmatmul.mubr.msk.bf16.gmra.mxu1 %vm266_vm1, %v932_v27 }
  0x37   :  { %858 = vmatprep.mubr.msk.bf16.mxu0 %vm266_vm1, %v933_v28  ;;  %890 = vmatprep.mubr.msk.bf16.mxu1 %vm266_vm1, %v934_v29 }
  0x3e   :  { %859 = vmatmul.mubr.msk.bf16.gmra.mxu0 %vm266_vm1, %v935_v30  ;;  %891 = vmatmul.mubr.msk.bf16.gmra.mxu1 %vm266_vm1, %v936_v31 }
  0x3f   :  { %862 = vmatprep.mubr.msk.bf16.mxu0 %vm266_vm1, %v937_v32  ;;  %894 = vmatprep.mubr.msk.bf16.mxu1 %vm266_vm1, %v938_v33 }
  0x46   :  { %863 = vmatmul.mubr.msk.bf16.gmra.mxu0 %vm266_vm1, %v939_v34  ;;  %895 = vmatmul.mubr.msk.bf16.gmra.mxu1 %vm266_vm1, %v940_v35 }
  0xce   :  { %v836_v37 = vpop.f32.mrf.mxu0  ;;  %v868_v38 = vpop.f32.mrf.mxu1 }
  0xcf   :  { %v410_v39 = vadd.f32 %v836_v37, %v1101_v36  ;;  %v538_v40 = vadd.f32 %v868_v38, %v1101_v36 }
  0xd0   :  { %v401_v41 = vpop.f32.mrf.mxu0  ;;  %v529_v42 = vpop.f32.mrf.mxu1 }
  0xd1   :  { %659 = vst.msk [vmem:[%s1426_s3 + $0x10] sm:$0xff] %vm656_vm2, %v410_v39  ;;  %691 = vst.msk [vmem:[%s1426_s3 + $0x110] sm:$0xff] %vm656_vm2, %v538_v40  ;;  %v402_v43 = vadd.f32 %v1101_v36, %v401_v41  ;;  %v530_v44 = vadd.f32 %v1101_v36, %v529_v42 }
  0xd2   :  { %v837_v45 = vpop.f32.mrf.mxu0  ;;  %v869_v46 = vpop.f32.mrf.mxu1 }
  0xd3   :  { %657 = vst.msk [vmem:[%s1426_s3] sm:$0xff] %vm656_vm2, %v402_v43  ;;  %689 = vst.msk [vmem:[%s1426_s3 + $0x100] sm:$0xff] %vm656_vm2, %v530_v44  ;;  %v413_v47 = vadd.f32 %v837_v45, %v1101_v36  ;;  %v541_v48 = vadd.f32 %v869_v46, %v1101_v36 }
  0xd4   :  { %v404_v49 = vpop.f32.mrf.mxu0  ;;  %v532_v50 = vpop.f32.mrf.mxu1 }
  0xd5   :  { %660 = vst.msk [vmem:[%s1426_s3 + $0x18] sm:$0xff] %vm656_vm2, %v413_v47  ;;  %692 = vst.msk [vmem:[%s1426_s3 + $0x118] sm:$0xff] %vm656_vm2, %v541_v48  ;;  %v405_v51 = vadd.f32 %v1101_v36, %v404_v49  ;;  %v533_v52 = vadd.f32 %v1101_v36, %v532_v50 }
  0xd6   :  { %v840_v53 = vpop.f32.mrf.mxu0  ;;  %v872_v54 = vpop.f32.mrf.mxu1 }
  0xd7   :  { %658 = vst.msk [vmem:[%s1426_s3 + $0x8] sm:$0xff] %vm656_vm2, %v405_v51  ;;  %690 = vst.msk [vmem:[%s1426_s3 + $0x108] sm:$0xff] %vm656_vm2, %v533_v52  ;;  %v426_v55 = vadd.f32 %v840_v53, %v1101_v36  ;;  %v554_v56 = vadd.f32 %v872_v54, %v1101_v36 }
  0xd8   :  { %v417_v57 = vpop.f32.mrf.mxu0  ;;  %v545_v58 = vpop.f32.mrf.mxu1 }
  0xd9   :  { %663 = vst.msk [vmem:[%s1426_s3 + $0x30] sm:$0xff] %vm656_vm2, %v426_v55  ;;  %695 = vst.msk [vmem:[%s1426_s3 + $0x130] sm:$0xff] %vm656_vm2, %v554_v56  ;;  %v418_v59 = vadd.f32 %v1101_v36, %v417_v57  ;;  %v546_v60 = vadd.f32 %v1101_v36, %v545_v58 }
  0xda   :  { %v841_v61 = vpop.f32.mrf.mxu0  ;;  %v873_v62 = vpop.f32.mrf.mxu1 }
  0xdb   :  { %661 = vst.msk [vmem:[%s1426_s3 + $0x20] sm:$0xff] %vm656_vm2, %v418_v59  ;;  %693 = vst.msk [vmem:[%s1426_s3 + $0x120] sm:$0xff] %vm656_vm2, %v546_v60  ;;  %v429_v63 = vadd.f32 %v841_v61, %v1101_v36  ;;  %v557_v0 = vadd.f32 %v873_v62, %v1101_v36 }
  0xdc   :  { %v420_v1 = vpop.f32.mrf.mxu0  ;;  %v548_v2 = vpop.f32.mrf.mxu1 }
  0xdd   :  { %664 = vst.msk [vmem:[%s1426_s3 + $0x38] sm:$0xff] %vm656_vm2, %v429_v63  ;;  %696 = vst.msk [vmem:[%s1426_s3 + $0x138] sm:$0xff] %vm656_vm2, %v557_v0  ;;  %v421_v3 = vadd.f32 %v1101_v36, %v420_v1  ;;  %v549_v4 = vadd.f32 %v1101_v36, %v548_v2 }
  0xde   :  { %v844_v5 = vpop.f32.mrf.mxu0  ;;  %v876_v6 = vpop.f32.mrf.mxu1 }
  0xdf   :  { %662 = vst.msk [vmem:[%s1426_s3 + $0x28] sm:$0xff] %vm656_vm2, %v421_v3  ;;  %694 = vst.msk [vmem:[%s1426_s3 + $0x128] sm:$0xff] %vm656_vm2, %v549_v4  ;;  %v442_v7 = vadd.f32 %v844_v5, %v1101_v36  ;;  %v570_v8 = vadd.f32 %v876_v6, %v1101_v36 }
  0xe0   :  { %v433_v9 = vpop.f32.mrf.mxu0  ;;  %v561_v10 = vpop.f32.mrf.mxu1 }
  0xe1   :  { %667 = vst.msk [vmem:[%s1426_s3 + $0x50] sm:$0xff] %vm656_vm2, %v442_v7  ;;  %699 = vst.msk [vmem:[%s1426_s3 + $0x150] sm:$0xff] %vm656_vm2, %v570_v8  ;;  %v434_v11 = vadd.f32 %v1101_v36, %v433_v9  ;;  %v562_v12 = vadd.f32 %v1101_v36, %v561_v10 }
  0xe2   :  { %v845_v13 = vpop.f32.mrf.mxu0  ;;  %v877_v14 = vpop.f32.mrf.mxu1 }
  0xe3   :  { %665 = vst.msk [vmem:[%s1426_s3 + $0x40] sm:$0xff] %vm656_vm2, %v434_v11  ;;  %697 = vst.msk [vmem:[%s1426_s3 + $0x140] sm:$0xff] %vm656_vm2, %v562_v12  ;;  %v445_v15 = vadd.f32 %v845_v13, %v1101_v36  ;;  %v573_v16 = vadd.f32 %v877_v14, %v1101_v36 }
  0xe4   :  { %v436_v17 = vpop.f32.mrf.mxu0  ;;  %v564_v18 = vpop.f32.mrf.mxu1 }
  0xe5   :  { %668 = vst.msk [vmem:[%s1426_s3 + $0x58] sm:$0xff] %vm656_vm2, %v445_v15  ;;  %700 = vst.msk [vmem:[%s1426_s3 + $0x158] sm:$0xff] %vm656_vm2, %v573_v16  ;;  %v437_v19 = vadd.f32 %v1101_v36, %v436_v17  ;;  %v565_v20 = vadd.f32 %v1101_v36, %v564_v18 }
  0xe6   :  { %v848_v21 = vpop.f32.mrf.mxu0  ;;  %v880_v22 = vpop.f32.mrf.mxu1 }
  0xe7   :  { %666 = vst.msk [vmem:[%s1426_s3 + $0x48] sm:$0xff] %vm656_vm2, %v437_v19  ;;  %698 = vst.msk [vmem:[%s1426_s3 + $0x148] sm:$0xff] %vm656_vm2, %v565_v20  ;;  %v458_v23 = vadd.f32 %v848_v21, %v1101_v36  ;;  %v586_v24 = vadd.f32 %v880_v22, %v1101_v36 }
  0xe8   :  { %v449_v25 = vpop.f32.mrf.mxu0  ;;  %v577_v26 = vpop.f32.mrf.mxu1 }
  0xe9   :  { %671 = vst.msk [vmem:[%s1426_s3 + $0x70] sm:$0xff] %vm656_vm2, %v458_v23  ;;  %703 = vst.msk [vmem:[%s1426_s3 + $0x170] sm:$0xff] %vm656_vm2, %v586_v24  ;;  %v450_v27 = vadd.f32 %v1101_v36, %v449_v25  ;;  %v578_v28 = vadd.f32 %v1101_v36, %v577_v26 }
  0xea   :  { %v849_v29 = vpop.f32.mrf.mxu0  ;;  %v881_v30 = vpop.f32.mrf.mxu1 }
  0xeb   :  { %669 = vst.msk [vmem:[%s1426_s3 + $0x60] sm:$0xff] %vm656_vm2, %v450_v27  ;;  %701 = vst.msk [vmem:[%s1426_s3 + $0x160] sm:$0xff] %vm656_vm2, %v578_v28  ;;  %v461_v31 = vadd.f32 %v849_v29, %v1101_v36  ;;  %v589_v32 = vadd.f32 %v881_v30, %v1101_v36 }
  0xec   :  { %v452_v33 = vpop.f32.mrf.mxu0  ;;  %v580_v34 = vpop.f32.mrf.mxu1 }
  0xed   :  { %672 = vst.msk [vmem:[%s1426_s3 + $0x78] sm:$0xff] %vm656_vm2, %v461_v31  ;;  %704 = vst.msk [vmem:[%s1426_s3 + $0x178] sm:$0xff] %vm656_vm2, %v589_v32  ;;  %v453_v35 = vadd.f32 %v1101_v36, %v452_v33  ;;  %v581_v37 = vadd.f32 %v1101_v36, %v580_v34 }
  0xee   :  { %v852_v38 = vpop.f32.mrf.mxu0  ;;  %v884_v39 = vpop.f32.mrf.mxu1 }
  0xef   :  { %670 = vst.msk [vmem:[%s1426_s3 + $0x68] sm:$0xff] %vm656_vm2, %v453_v35  ;;  %702 = vst.msk [vmem:[%s1426_s3 + $0x168] sm:$0xff] %vm656_vm2, %v581_v37  ;;  %v474_v40 = vadd.f32 %v852_v38, %v1101_v36  ;;  %v602_v41 = vadd.f32 %v884_v39, %v1101_v36 }
  0xf0   :  { %v465_v42 = vpop.f32.mrf.mxu0  ;;  %v593_v43 = vpop.f32.mrf.mxu1 }
  0xf1   :  { %675 = vst.msk [vmem:[%s1426_s3 + $0x90] sm:$0xff] %vm656_vm2, %v474_v40  ;;  %707 = vst.msk [vmem:[%s1426_s3 + $0x190] sm:$0xff] %vm656_vm2, %v602_v41  ;;  %v466_v44 = vadd.f32 %v1101_v36, %v465_v42  ;;  %v594_v45 = vadd.f32 %v1101_v36, %v593_v43 }
  0xf2   :  { %v853_v46 = vpop.f32.mrf.mxu0  ;;  %v885_v47 = vpop.f32.mrf.mxu1 }
  0xf3   :  { %673 = vst.msk [vmem:[%s1426_s3 + $0x80] sm:$0xff] %vm656_vm2, %v466_v44  ;;  %705 = vst.msk [vmem:[%s1426_s3 + $0x180] sm:$0xff] %vm656_vm2, %v594_v45  ;;  %v477_v48 = vadd.f32 %v853_v46, %v1101_v36  ;;  %v605_v49 = vadd.f32 %v885_v47, %v1101_v36 }
  0xf4   :  { %v468_v50 = vpop.f32.mrf.mxu0  ;;  %v596_v51 = vpop.f32.mrf.mxu1 }
  0xf5   :  { %676 = vst.msk [vmem:[%s1426_s3 + $0x98] sm:$0xff] %vm656_vm2, %v477_v48  ;;  %708 = vst.msk [vmem:[%s1426_s3 + $0x198] sm:$0xff] %vm656_vm2, %v605_v49  ;;  %v469_v52 = vadd.f32 %v1101_v36, %v468_v50  ;;  %v597_v53 = vadd.f32 %v1101_v36, %v596_v51 }
  0xf6   :  { %v856_v54 = vpop.f32.mrf.mxu0  ;;  %v888_v55 = vpop.f32.mrf.mxu1 }
  0xf7   :  { %674 = vst.msk [vmem:[%s1426_s3 + $0x88] sm:$0xff] %vm656_vm2, %v469_v52  ;;  %706 = vst.msk [vmem:[%s1426_s3 + $0x188] sm:$0xff] %vm656_vm2, %v597_v53  ;;  %v490_v56 = vadd.f32 %v856_v54, %v1101_v36  ;;  %v618_v57 = vadd.f32 %v888_v55, %v1101_v36 }
  0xf8   :  { %v481_v58 = vpop.f32.mrf.mxu0  ;;  %v609_v59 = vpop.f32.mrf.mxu1 }
  0xf9   :  { %679 = vst.msk [vmem:[%s1426_s3 + $0xb0] sm:$0xff] %vm656_vm2, %v490_v56  ;;  %711 = vst.msk [vmem:[%s1426_s3 + $0x1b0] sm:$0xff] %vm656_vm2, %v618_v57  ;;  %v482_v60 = vadd.f32 %v1101_v36, %v481_v58  ;;  %v610_v61 = vadd.f32 %v1101_v36, %v609_v59 }
  0xfa   :  { %v857_v62 = vpop.f32.mrf.mxu0  ;;  %v889_v63 = vpop.f32.mrf.mxu1 }
  0xfb   :  { %677 = vst.msk [vmem:[%s1426_s3 + $0xa0] sm:$0xff] %vm656_vm2, %v482_v60  ;;  %709 = vst.msk [vmem:[%s1426_s3 + $0x1a0] sm:$0xff] %vm656_vm2, %v610_v61  ;;  %v493_v0 = vadd.f32 %v857_v62, %v1101_v36  ;;  %v621_v1 = vadd.f32 %v889_v63, %v1101_v36 }
  0xfc   :  { %v484_v2 = vpop.f32.mrf.mxu0  ;;  %v612_v3 = vpop.f32.mrf.mxu1 }
  0xfd   :  { %680 = vst.msk [vmem:[%s1426_s3 + $0xb8] sm:$0xff] %vm656_vm2, %v493_v0  ;;  %712 = vst.msk [vmem:[%s1426_s3 + $0x1b8] sm:$0xff] %vm656_vm2, %v621_v1  ;;  %v485_v4 = vadd.f32 %v1101_v36, %v484_v2  ;;  %v613_v5 = vadd.f32 %v1101_v36, %v612_v3 }
  0xfe   :  { %v860_v6 = vpop.f32.mrf.mxu0  ;;  %v892_v7 = vpop.f32.mrf.mxu1 }
  0xff   :  { %678 = vst.msk [vmem:[%s1426_s3 + $0xa8] sm:$0xff] %vm656_vm2, %v485_v4  ;;  %710 = vst.msk [vmem:[%s1426_s3 + $0x1a8] sm:$0xff] %vm656_vm2, %v613_v5  ;;  %v506_v8 = vadd.f32 %v860_v6, %v1101_v36  ;;  %v634_v9 = vadd.f32 %v892_v7, %v1101_v36 }
 0x100   :  { %v497_v10 = vpop.f32.mrf.mxu0  ;;  %v625_v11 = vpop.f32.mrf.mxu1 }
 0x101   :  { %683 = vst.msk [vmem:[%s1426_s3 + $0xd0] sm:$0xff] %vm656_vm2, %v506_v8  ;;  %715 = vst.msk [vmem:[%s1426_s3 + $0x1d0] sm:$0xff] %vm656_vm2, %v634_v9  ;;  %v498_v12 = vadd.f32 %v1101_v36, %v497_v10  ;;  %v626_v13 = vadd.f32 %v1101_v36, %v625_v11 }
 0x102   :  { %v861_v14 = vpop.f32.mrf.mxu0  ;;  %v893_v15 = vpop.f32.mrf.mxu1 }
 0x103   :  { %681 = vst.msk [vmem:[%s1426_s3 + $0xc0] sm:$0xff] %vm656_vm2, %v498_v12  ;;  %713 = vst.msk [vmem:[%s1426_s3 + $0x1c0] sm:$0xff] %vm656_vm2, %v626_v13  ;;  %v509_v16 = vadd.f32 %v861_v14, %v1101_v36  ;;  %v637_v17 = vadd.f32 %v893_v15, %v1101_v36 }
 0x104   :  { %v500_v18 = vpop.f32.mrf.mxu0  ;;  %v628_v19 = vpop.f32.mrf.mxu1 }
 0x105   :  { %684 = vst.msk [vmem:[%s1426_s3 + $0xd8] sm:$0xff] %vm656_vm2, %v509_v16  ;;  %716 = vst.msk [vmem:[%s1426_s3 + $0x1d8] sm:$0xff] %vm656_vm2, %v637_v17  ;;  %v501_v20 = vadd.f32 %v1101_v36, %v500_v18  ;;  %v629_v21 = vadd.f32 %v1101_v36, %v628_v19 }
 0x106   :  { %v864_v22 = vpop.f32.mrf.mxu0  ;;  %v896_v23 = vpop.f32.mrf.mxu1 }
 0x107   :  { %682 = vst.msk [vmem:[%s1426_s3 + $0xc8] sm:$0xff] %vm656_vm2, %v501_v20  ;;  %714 = vst.msk [vmem:[%s1426_s3 + $0x1c8] sm:$0xff] %vm656_vm2, %v629_v21  ;;  %v522_v24 = vadd.f32 %v864_v22, %v1101_v36  ;;  %v650_v25 = vadd.f32 %v896_v23, %v1101_v36 }
 0x108   :  { %v513_v26 = vpop.f32.mrf.mxu0  ;;  %v641_v27 = vpop.f32.mrf.mxu1 }
 0x109   :  { %687 = vst.msk [vmem:[%s1426_s3 + $0xf0] sm:$0xff] %vm656_vm2, %v522_v24  ;;  %719 = vst.msk [vmem:[%s1426_s3 + $0x1f0] sm:$0xff] %vm656_vm2, %v650_v25  ;;  %v514_v28 = vadd.f32 %v1101_v36, %v513_v26  ;;  %v642_v29 = vadd.f32 %v1101_v36, %v641_v27 }
 0x10a   :  { %v865_v30 = vpop.f32.mrf.mxu0  ;;  %v897_v31 = vpop.f32.mrf.mxu1 }
 0x10b   :  { %685 = vst.msk [vmem:[%s1426_s3 + $0xe0] sm:$0xff] %vm656_vm2, %v514_v28  ;;  %717 = vst.msk [vmem:[%s1426_s3 + $0x1e0] sm:$0xff] %vm656_vm2, %v642_v29  ;;  %v525_v32 = vadd.f32 %v865_v30, %v1101_v36  ;;  %v653_v33 = vadd.f32 %v897_v31, %v1101_v36 }
 0x10c   :  { %v516_v34 = vpop.f32.mrf.mxu0  ;;  %v644_v35 = vpop.f32.mrf.mxu1 }
 0x10d   :  { %688 = vst.msk [vmem:[%s1426_s3 + $0xf8] sm:$0xff] %vm656_vm2, %v525_v32  ;;  %720 = vst.msk [vmem:[%s1426_s3 + $0x1f8] sm:$0xff] %vm656_vm2, %v653_v33  ;;  %v517_v37 = vadd.f32 %v1101_v36, %v516_v34  ;;  %v645_v38 = vadd.f32 %v1101_v36, %v644_v35 }
 0x10f   :  { %686 = vst.msk [vmem:[%s1426_s3 + $0xe8] sm:$0xff] %vm656_vm2, %v517_v37  ;;  %718 = vst.msk [vmem:[%s1426_s3 + $0x1e8] sm:$0xff] %vm656_vm2, %v645_v38 }

</bundles_post_ra>
